<compile_context>
chip_gen: v6e
topology: v6e:2x2x1
jax: 0.10.0
libtpu: 0.0.40
codegen_flags: <defaults>
</compile_context>

<pallas_src>
import functools
import math

import jax
import jax.numpy as jnp
from jax.experimental import pallas as pl
from jax.experimental.pallas import tpu as pltpu

EPS = 1e-5
TM_CAP = 512  # lane-tile for the M (= N*H*W) axis


def _m_tile(m):
    return m if m <= TM_CAP else TM_CAP


# --------------------------------------------------------------------------
# Kernel 1: fused GEMM  y = SiLU(W @ x + shift) [* post_scale + post_shift]
#   W:(Cout,K) bf16 (BN scale folded in), x:(K,tm) f32/bf16, out:(Cout,tm) f32
# --------------------------------------------------------------------------
def _gemm_kernel(w_ref, shift_ref, x_ref, *rest, act, has_post):
    if has_post:
        post_ref, o_ref = rest
    else:
        (o_ref,) = rest
    x = x_ref[...].astype(jnp.bfloat16)
    y = jnp.dot(w_ref[...], x, preferred_element_type=jnp.float32)
    y = y + shift_ref[...]
    if act:
        y = y * jax.nn.sigmoid(y)          # SiLU
    if has_post:                           # trailing BatchNorm (inference affine)
        y = y * post_ref[:, 0:1] + post_ref[:, 1:2]
    o_ref[...] = y


def fused_gemm(wt, shift, x, act=True, post=None):
    """wt:(Cout,K) bf16, shift:(Cout,1) f32, x:(K,M) -> (Cout,M) f32."""
    cout, k = wt.shape
    m = x.shape[1]
    tm = _m_tile(m)
    grid = (pl.cdiv(m, tm),)
    const = lambda i: (0, 0)
    colmap = lambda i: (0, i)
    inputs = [wt, shift, x]
    in_specs = [pl.BlockSpec((cout, k), const),
                pl.BlockSpec((cout, 1), const),
                pl.BlockSpec((k, tm), colmap)]
    if post is not None:
        inputs.append(post)
        in_specs.append(pl.BlockSpec((cout, 2), const))
    return pl.pallas_call(
        functools.partial(_gemm_kernel, act=act, has_post=post is not None),
        grid=grid,
        in_specs=in_specs,
        out_specs=pl.BlockSpec((cout, tm), colmap),
        out_shape=jax.ShapeDtypeStruct((cout, m), jnp.float32),
        compiler_params=pltpu.CompilerParams(dimension_semantics=("parallel",)),
    )(*inputs)


# --------------------------------------------------------------------------
# Kernel 2: fused C2f block (cv1 split + n bottlenecks + cv2 over concat)
# --------------------------------------------------------------------------
def _c2f_kernel(*refs, n, shortcut, has_bn):
    x_ref = refs[0]
    cv1a_w, cv1a_s, cv1b_w, cv1b_s = refs[1:5]
    m_refs = refs[5:5 + 4 * n]
    cv2_w, cv2_s = refs[5 + 4 * n], refs[6 + 4 * n]
    pos = 7 + 4 * n
    if has_bn:
        bn_ref = refs[pos]
        o_ref, obn_ref = refs[pos + 1], refs[pos + 2]
    else:
        o_ref = refs[pos]

    def cb(w_ref_, s_ref_, xb, res=None):
        # xb is already bf16; result kept in f32 for BN-shift / SiLU / residual.
        y = jnp.dot(w_ref_[...], xb, preferred_element_type=jnp.float32)
        y = y + s_ref_[...]
        y = y * jax.nn.sigmoid(y)
        return y if res is None else y + res

    xb = x_ref[...].astype(jnp.bfloat16)
    y0 = cb(cv1a_w, cv1a_s, xb)
    y1 = cb(cv1b_w, cv1b_s, xb)
    ys = [y0, y1]
    ys_b = [y0.astype(jnp.bfloat16), y1.astype(jnp.bfloat16)]   # cast once, reuse
    for b in range(n):
        w1, s1, w2, s2 = m_refs[4 * b:4 * b + 4]
        inp, inp_b = ys[-1], ys_b[-1]
        h = cb(w1, s1, inp_b)
        y = cb(w2, s2, h.astype(jnp.bfloat16), res=inp if shortcut else None)
        ys.append(y)
        ys_b.append(y.astype(jnp.bfloat16))

    # cv2 over the channel-concat, done as a sum of per-branch matmuls.
    acc = jnp.dot(cv2_w[0], ys_b[0], preferred_element_type=jnp.float32)
    for j in range(1, 2 + n):
        acc = acc + jnp.dot(cv2_w[j], ys_b[j], preferred_element_type=jnp.float32)
    y = acc + cv2_s[...]
    y = y * jax.nn.sigmoid(y)
    o_ref[...] = y
    if has_bn:
        obn_ref[...] = y * bn_ref[:, 0:1] + bn_ref[:, 1:2]


def apply_c2f(p, x, bn=None):
    n = p["n"]
    c1, m = x.shape
    c2 = p["cv2_s"].shape[0]
    tm = _m_tile(m)
    grid = (pl.cdiv(m, tm),)
    const = lambda i: (0, 0)
    const3 = lambda i: (0, 0, 0)
    colmap = lambda i: (0, i)

    inputs = [x, p["cv1a_w"], p["cv1a_s"], p["cv1b_w"], p["cv1b_s"]]
    in_specs = [pl.BlockSpec((c1, tm), colmap),
                pl.BlockSpec(p["cv1a_w"].shape, const),
                pl.BlockSpec(p["cv1a_s"].shape, const),
                pl.BlockSpec(p["cv1b_w"].shape, const),
                pl.BlockSpec(p["cv1b_s"].shape, const)]
    for (w1, s1, w2, s2) in p["m"]:
        inputs += [w1, s1, w2, s2]
        in_specs += [pl.BlockSpec(w1.shape, const), pl.BlockSpec(s1.shape, const),
                     pl.BlockSpec(w2.shape, const), pl.BlockSpec(s2.shape, const)]
    inputs += [p["cv2_w"], p["cv2_s"]]
    in_specs += [pl.BlockSpec(p["cv2_w"].shape, const3),
                 pl.BlockSpec(p["cv2_s"].shape, const)]

    has_bn = bn is not None
    if has_bn:
        inputs.append(bn)
        in_specs.append(pl.BlockSpec(bn.shape, const))
        out_shape = (jax.ShapeDtypeStruct((c2, m), jnp.float32),
                     jax.ShapeDtypeStruct((c2, m), jnp.float32))
        out_specs = (pl.BlockSpec((c2, tm), colmap),
                     pl.BlockSpec((c2, tm), colmap))
    else:
        out_shape = jax.ShapeDtypeStruct((c2, m), jnp.float32)
        out_specs = pl.BlockSpec((c2, tm), colmap)

    return pl.pallas_call(
        functools.partial(_c2f_kernel, n=n, shortcut=p["shortcut"], has_bn=has_bn),
        grid=grid,
        in_specs=in_specs,
        out_specs=out_specs,
        out_shape=out_shape,
        compiler_params=pltpu.CompilerParams(dimension_semantics=("parallel",)),
    )(*inputs)


# --------------------------------------------------------------------------
# Kernel 3: SPPF pooling — y1/y2/y3 (chained 5x5/s1/p2 pools == 5/9/13 windows)
# computed separably from one -inf-padded input; slot 0 carries x itself so the
# SPPF concat comes out of the kernel pre-assembled.
# --------------------------------------------------------------------------
def _sppf_pool_kernel(xp_ref, o_ref):
    xp = xp_ref[...]                        # (CN, H+12, W+12), -inf padded
    cn, hp, wp = xp.shape
    h, w = hp - 12, wp - 12

    o_ref[0] = xp[:, 6:6 + h, 6:6 + w]      # x itself

    # H-direction 5-window running max: a[r] = max_{d<5} xp[r+d]
    a = xp[:, 0:h + 8, :]
    for d in range(1, 5):
        a = jnp.maximum(a, xp[:, d:d + h + 8, :])
    rows = {
        1: a[:, 4:4 + h, :],                                          # 5-window
        2: jnp.maximum(a[:, 2:2 + h, :], a[:, 6:6 + h, :]),           # 9-window
        3: jnp.maximum(jnp.maximum(a[:, 0:h, :], a[:, 4:4 + h, :]),
                       a[:, 8:8 + h, :]),                             # 13-window
    }
    for slot in (1, 2, 3):
        t = rows[slot]
        b = t[:, :, 0:w + 8]
        for d in range(1, 5):
            b = jnp.maximum(b, t[:, :, d:d + w + 8])
        if slot == 1:
            y = b[:, :, 4:4 + w]
        elif slot == 2:
            y = jnp.maximum(b[:, :, 2:2 + w], b[:, :, 6:6 + w])
        else:
            y = jnp.maximum(jnp.maximum(b[:, :, 0:w], b[:, :, 4:4 + w]),
                            b[:, :, 8:8 + w])
        o_ref[slot] = y


def apply_sppf(p, x, n_batch, h, w, bn):
    c_ = p["cv1_s"].shape[0]
    y = fused_gemm(p["cv1_w"], p["cv1_s"], x)              # (c_, M)
    xp = jnp.pad(y.reshape(c_ * n_batch, h, w),
                 ((0, 0), (6, 6), (6, 6)), constant_values=-jnp.inf)
    pools = pl.pallas_call(
        _sppf_pool_kernel,
        out_shape=jax.ShapeDtypeStruct((4, c_ * n_batch, h, w), jnp.float32),
    )(xp)
    cat = pools.reshape(4 * c_, n_batch * h * w)           # [x, y1, y2, y3] channels
    return fused_gemm(p["cv2_w"], p["cv2_s"], cat, post=bn)


# --------------------------------------------------------------------------
# Stride-2 3x3 ConvBlock: im2col in XLA glue (bf16, (K,M) layout) + fused GEMM
# --------------------------------------------------------------------------
def apply_conv3x3_s2(p, x, n_batch, h, w):
    cin = x.shape[0]
    ho, wo = (h + 1) // 2, (w + 1) // 2
    x4 = x.reshape(cin, n_batch, h, w)
    xp = jnp.pad(x4, ((0, 0), (0, 0), (1, 1), (1, 1)))
    taps = []
    for ky in range(3):
        for kx in range(3):
            taps.append(xp[:, :, ky:ky + 2 * ho:2, kx:kx + 2 * wo:2])
    patches = jnp.stack(taps, axis=0).reshape(9 * cin, n_batch * ho * wo)
    patches = patches.astype(jnp.bfloat16)
    y = fused_gemm(p["wt"], p["shift"], patches)
    return y, ho, wo


# --------------------------------------------------------------------------
# Parameter construction (deterministic, synthetic)
# --------------------------------------------------------------------------
class ParamGen:
    def __init__(self, key):
        self.key = key

    def next(self, shape, scale=0.1):
        self.key, sub = jax.random.split(self.key)
        return jax.random.normal(sub, shape, jnp.float32) * scale


def _folded_bn(pg, c):
    gamma = 1.0 + pg.next((c,), 0.1)
    beta = pg.next((c,), 0.1)
    rmean = pg.next((c,), 0.1)
    rvar = 1.0 + jnp.abs(pg.next((c,), 0.1))
    scale = gamma / jnp.sqrt(rvar + EPS)
    shift = beta - rmean * scale
    return scale, shift


def _bn_affine(pg, c):
    scale, shift = _folded_bn(pg, c)
    return jnp.stack([scale, shift], axis=1)               # (c, 2) f32


def make_convblock_params(pg, cin, cout, k):
    fan_in = k * k * cin
    if k == 1:
        w2d = pg.next((cin, cout), 1.0 / math.sqrt(fan_in))           # (K, Cout)
    else:
        w = pg.next((k, k, cin, cout), 1.0 / math.sqrt(fan_in))
        w2d = w.reshape(k * k * cin, cout)                            # (ky,kx,cin) rows
    scale, shift = _folded_bn(pg, cout)
    wt = (w2d.T * scale[:, None]).astype(jnp.bfloat16)                # (Cout, K)
    return {"wt": wt, "shift": shift.reshape(cout, 1)}


def make_c2f_params(pg, c1, c2, k, n, shortcut=True):
    c = c2 // 2
    cv1 = make_convblock_params(pg, c1, 2 * c, 1)
    m = []
    for _ in range(n):
        b1 = make_convblock_params(pg, c, c, k)
        b2 = make_convblock_params(pg, c, c, k)
        m.append((b1["wt"], b1["shift"], b2["wt"], b2["shift"]))
    cv2 = make_convblock_params(pg, (2 + n) * c, c2, 1)
    cv2_w = cv2["wt"].reshape(c2, 2 + n, c).transpose(1, 0, 2)        # (2+n, C2, c)
    return {"cv1a_w": cv1["wt"][:c], "cv1a_s": cv1["shift"][:c],
            "cv1b_w": cv1["wt"][c:], "cv1b_s": cv1["shift"][c:],
            "m": m, "cv2_w": cv2_w, "cv2_s": cv2["shift"],
            "n": n, "shortcut": shortcut}


def make_sppf_params(pg, c1, c2):
    c_ = c1 // 2
    cv1 = make_convblock_params(pg, c1, c_, 1)
    cv2 = make_convblock_params(pg, 4 * c_, c2, 1)
    return {"cv1_w": cv1["wt"], "cv1_s": cv1["shift"],
            "cv2_w": cv2["wt"], "cv2_s": cv2["shift"]}


def make_backbone_params(pg, output_channels, depth=1, input_channels=3):
    assert output_channels / 16 >= 1
    assert depth >= 1
    s4 = output_channels
    s3 = output_channels // 2
    s2 = output_channels // 4
    s1 = output_channels // 8
    s0 = output_channels // 16
    p = {
        "conv1": [
            make_convblock_params(pg, input_channels, s0, 3),
            make_convblock_params(pg, s0, s1, 3),
            make_c2f_params(pg, s1, s1, 1, depth),
            make_convblock_params(pg, s1, s2, 3),
            make_c2f_params(pg, s2, s2, 1, depth),
        ],
        "conv2": [
            make_convblock_params(pg, s2, s3, 3),
            make_c2f_params(pg, s3, s3, 1, 2 * depth),
        ],
        "conv3": [
            make_convblock_params(pg, s3, s4, 3),
            make_c2f_params(pg, s4, s4, 1, depth),
            make_sppf_params(pg, s4, s4),
        ],
    }
    p["bn1"] = _bn_affine(pg, s2)
    p["bn2"] = _bn_affine(pg, s3)
    p["bn3"] = _bn_affine(pg, s4)
    return p


# --------------------------------------------------------------------------
# Forward pass (channels-first (C, N*H*W) internally)
# --------------------------------------------------------------------------
def backbone_forward(params, x_nchw):
    n, c, h, w = x_nchw.shape
    x = jnp.transpose(x_nchw, (1, 0, 2, 3)).reshape(c, n * h * w)

    p1 = params["conv1"]
    x, h, w = apply_conv3x3_s2(p1[0], x, n, h, w)
    x, h, w = apply_conv3x3_s2(p1[1], x, n, h, w)
    x = apply_c2f(p1[2], x)
    x, h, w = apply_conv3x3_s2(p1[3], x, n, h, w)
    x1_raw, x1 = apply_c2f(p1[4], x, bn=params["bn1"])      # downstream uses pre-BN x1
    h1, w1 = h, w

    p2 = params["conv2"]
    x, h, w = apply_conv3x3_s2(p2[0], x1_raw, n, h, w)
    x2_raw, x2 = apply_c2f(p2[1], x, bn=params["bn2"])      # downstream uses pre-BN x2
    h2, w2 = h, w

    p3 = params["conv3"]
    x, h, w = apply_conv3x3_s2(p3[0], x2_raw, n, h, w)
    x = apply_c2f(p3[1], x)
    x3 = apply_sppf(p3[2], x, n, h, w, bn=params["bn3"])

    def to_nchw(t, hh, ww):
        cc = t.shape[0]
        return jnp.transpose(t.reshape(cc, n, hh, ww), (1, 0, 2, 3))

    return to_nchw(x1, h1, w1), to_nchw(x2, h2, w2), to_nchw(x3, h, w)


def backbone_nchw(params, x_nchw):
    return backbone_forward(params, x_nchw)


# --------------------------------------------------------------------------
if __name__ == "__main__":
    OUTPUT_CHANNELS = 32
    DEPTH = 1
    INPUT_CHANNELS = 3

    pg = ParamGen(jax.random.PRNGKey(0))
    params = make_backbone_params(pg, OUTPUT_CHANNELS, DEPTH, INPUT_CHANNELS)

    x = jax.random.normal(
        jax.random.fold_in(jax.random.PRNGKey(0), 123),
        (2, INPUT_CHANNELS, 64, 64), jnp.float32)          # NCHW like PyTorch

    fwd = jax.jit(lambda inp: backbone_nchw(params, inp))
    x1, x2, x3 = fwd(x)
    jax.block_until_ready((x1, x2, x3))

    assert x1.shape == (2, OUTPUT_CHANNELS // 4, 8, 8)
    assert x2.shape == (2, OUTPUT_CHANNELS // 2, 4, 4)
    assert x3.shape == (2, OUTPUT_CHANNELS, 2, 2)
    assert all(bool(jnp.all(jnp.isfinite(t))) for t in (x1, x2, x3))
    print("KERNEL_OK")
</pallas_src>

<mosaic_0001>
module attributes {stable_mosaic.version = 11 : i64} {
  func.func @_gemm_kernel(%arg0: i32, %arg1: memref<2x27xbf16, #tpu.memory_space<vmem>>, %arg2: memref<2x1xf32, #tpu.memory_space<vmem>>, %arg3: memref<27x512xbf16, #tpu.memory_space<vmem>>, %arg4: memref<2x512xf32, #tpu.memory_space<vmem>>) attributes {dimension_semantics = [#tpu.dimension_semantics<parallel>], iteration_bounds = array<i64: 4>, scalar_prefetch = 0 : i64, scratch_operands = 0 : i64, tpu.core_type = #tpu.core_type<tc>, window_params = [{pipeline_mode = #tpu.pipeline_mode<synchronous>, transform_indices = @transform_0, window_bounds = array<i64: 2, 27>}, {pipeline_mode = #tpu.pipeline_mode<synchronous>, transform_indices = @transform_1, window_bounds = array<i64: 2, 1>}, {transform_indices = @transform_2, window_bounds = array<i64: 27, 512>}, {transform_indices = @transform_3, window_bounds = array<i64: 2, 512>}]} {
    %c0 = arith.constant 0 : index
    %c0_0 = arith.constant 0 : index
    %0 = vector.load %arg3[%c0, %c0_0] : memref<27x512xbf16, #tpu.memory_space<vmem>>, vector<27x512xbf16>
    %c0_1 = arith.constant 0 : index
    %c0_2 = arith.constant 0 : index
    %1 = vector.load %arg1[%c0_1, %c0_2] : memref<2x27xbf16, #tpu.memory_space<vmem>>, vector<2x27xbf16>
    %cst = arith.constant dense<0.000000e+00> : vector<2x512xf32>
    %2 = tpu.matmul %1, %0, %cst {dimension_numbers = #tpu.dot_dimension_numbers<[1], [0], [0], [1], [0, 0, 1, 1], [], []>} : vector<2x27xbf16>, vector<27x512xbf16>, vector<2x512xf32> -> vector<2x512xf32>
    %c0_3 = arith.constant 0 : index
    %c0_4 = arith.constant 0 : index
    %3 = vector.load %arg2[%c0_3, %c0_4] : memref<2x1xf32, #tpu.memory_space<vmem>>, vector<2x1xf32>
    %4 = vector.broadcast %3 : vector<2x1xf32> to vector<2x512xf32>
    %5 = arith.addf %2, %4 : vector<2x512xf32>
    %6 = arith.negf %5 : vector<2x512xf32>
    %7 = math.exp %6 : vector<2x512xf32>
    %cst_5 = arith.constant 1.000000e+00 : f32
    %8 = vector.broadcast %cst_5 : f32 to vector<2x512xf32>
    %9 = arith.addf %8, %7 : vector<2x512xf32>
    %10 = arith.divf %8, %9 : vector<2x512xf32>
    %11 = arith.mulf %5, %10 : vector<2x512xf32>
    %c0_6 = arith.constant 0 : index
    %c0_7 = arith.constant 0 : index
    %12 = vector.load %arg4[%c0_6, %c0_7] : memref<2x512xf32, #tpu.memory_space<vmem>>, vector<2x512xf32>
    tpu.vector_store %arg4[%c0_6, %c0_7], %11 {strides = array<i32>} : memref<2x512xf32, #tpu.memory_space<vmem>>, vector<2x512xf32>,
    return
  }
  func.func @transform_0(%arg0: i32) -> (i32, i32) {
    %c0_i32 = arith.constant 0 : i32
    %c0_i32_0 = arith.constant 0 : i32
    %c0_i32_1 = arith.constant 0 : i32
    return %c0_i32, %c0_i32_0 : i32, i32
  }
  func.func @transform_1(%arg0: i32) -> (i32, i32) {
    %c0_i32 = arith.constant 0 : i32
    %c0_i32_0 = arith.constant 0 : i32
    %c0_i32_1 = arith.constant 0 : i32
    return %c0_i32, %c0_i32_0 : i32, i32
  }
  func.func @transform_2(%arg0: i32) -> (i32, i32) {
    %c0_i32 = arith.constant 0 : i32
    %c0_i32_0 = arith.constant 0 : i32
    return %c0_i32, %arg0 : i32, i32
  }
  func.func @transform_3(%arg0: i32) -> (i32, i32) {
    %c0_i32 = arith.constant 0 : i32
    %c0_i32_0 = arith.constant 0 : i32
    return %c0_i32, %arg0 : i32, i32
  }
}

module attributes {stable_mosaic.version = 11 : i64} {
  func.func @_gemm_kernel(%arg0: i32, %arg1: memref<4x18xbf16, #tpu.memory_space<vmem>>, %arg2: memref<4x1xf32, #tpu.memory_space<vmem>>, %arg3: memref<18x512xbf16, #tpu.memory_space<vmem>>, %arg4: memref<4x512xf32, #tpu.memory_space<vmem>>) attributes {dimension_semantics = [#tpu.dimension_semantics<parallel>], iteration_bounds = array<i64: 1>, scalar_prefetch = 0 : i64, scratch_operands = 0 : i64, tpu.core_type = #tpu.core_type<tc>, window_params = [{pipeline_mode = #tpu.pipeline_mode<synchronous>, transform_indices = @transform_0, window_bounds = array<i64: 4, 18>}, {pipeline_mode = #tpu.pipeline_mode<synchronous>, transform_indices = @transform_1, window_bounds = array<i64: 4, 1>}, {transform_indices = @transform_2, window_bounds = array<i64: 18, 512>}, {transform_indices = @transform_3, window_bounds = array<i64: 4, 512>}]} {
    %c0 = arith.constant 0 : index
    %c0_0 = arith.constant 0 : index
    %0 = vector.load %arg3[%c0, %c0_0] : memref<18x512xbf16, #tpu.memory_space<vmem>>, vector<18x512xbf16>
    %c0_1 = arith.constant 0 : index
    %c0_2 = arith.constant 0 : index
    %1 = vector.load %arg1[%c0_1, %c0_2] : memref<4x18xbf16, #tpu.memory_space<vmem>>, vector<4x18xbf16>
    %cst = arith.constant dense<0.000000e+00> : vector<4x512xf32>
    %2 = tpu.matmul %1, %0, %cst {dimension_numbers = #tpu.dot_dimension_numbers<[1], [0], [0], [1], [0, 0, 1, 1], [], []>} : vector<4x18xbf16>, vector<18x512xbf16>, vector<4x512xf32> -> vector<4x512xf32>
    %c0_3 = arith.constant 0 : index
    %c0_4 = arith.constant 0 : index
    %3 = vector.load %arg2[%c0_3, %c0_4] : memref<4x1xf32, #tpu.memory_space<vmem>>, vector<4x1xf32>
    %4 = vector.broadcast %3 : vector<4x1xf32> to vector<4x512xf32>
    %5 = arith.addf %2, %4 : vector<4x512xf32>
    %6 = arith.negf %5 : vector<4x512xf32>
    %7 = math.exp %6 : vector<4x512xf32>
    %cst_5 = arith.constant 1.000000e+00 : f32
    %8 = vector.broadcast %cst_5 : f32 to vector<4x512xf32>
    %9 = arith.addf %8, %7 : vector<4x512xf32>
    %10 = arith.divf %8, %9 : vector<4x512xf32>
    %11 = arith.mulf %5, %10 : vector<4x512xf32>
    %c0_6 = arith.constant 0 : index
    %c0_7 = arith.constant 0 : index
    %12 = vector.load %arg4[%c0_6, %c0_7] : memref<4x512xf32, #tpu.memory_space<vmem>>, vector<4x512xf32>
    tpu.vector_store %arg4[%c0_6, %c0_7], %11 {strides = array<i32>} : memref<4x512xf32, #tpu.memory_space<vmem>>, vector<4x512xf32>,
    return
  }
  func.func @transform_0(%arg0: i32) -> (i32, i32) {
    %c0_i32 = arith.constant 0 : i32
    %c0_i32_0 = arith.constant 0 : i32
    %c0_i32_1 = arith.constant 0 : i32
    return %c0_i32, %c0_i32_0 : i32, i32
  }
  func.func @transform_1(%arg0: i32) -> (i32, i32) {
    %c0_i32 = arith.constant 0 : i32
    %c0_i32_0 = arith.constant 0 : i32
    %c0_i32_1 = arith.constant 0 : i32
    return %c0_i32, %c0_i32_0 : i32, i32
  }
  func.func @transform_2(%arg0: i32) -> (i32, i32) {
    %c0_i32 = arith.constant 0 : i32
    %c0_i32_0 = arith.constant 0 : i32
    return %c0_i32, %arg0 : i32, i32
  }
  func.func @transform_3(%arg0: i32) -> (i32, i32) {
    %c0_i32 = arith.constant 0 : i32
    %c0_i32_0 = arith.constant 0 : i32
    return %c0_i32, %arg0 : i32, i32
  }
}

module attributes {stable_mosaic.version = 11 : i64} {
  func.func @_c2f_kernel(%arg0: i32, %arg1: memref<4x512xf32, #tpu.memory_space<vmem>>, %arg2: memref<2x4xbf16, #tpu.memory_space<vmem>>, %arg3: memref<2x1xf32, #tpu.memory_space<vmem>>, %arg4: memref<2x4xbf16, #tpu.memory_space<vmem>>, %arg5: memref<2x1xf32, #tpu.memory_space<vmem>>, %arg6: memref<2x2xbf16, #tpu.memory_space<vmem>>, %arg7: memref<2x1xf32, #tpu.memory_space<vmem>>, %arg8: memref<2x2xbf16, #tpu.memory_space<vmem>>, %arg9: memref<2x1xf32, #tpu.memory_space<vmem>>, %arg10: memref<3x4x2xbf16, #tpu.memory_space<vmem>>, %arg11: memref<4x1xf32, #tpu.memory_space<vmem>>, %arg12: memref<4x512xf32, #tpu.memory_space<vmem>>) attributes {dimension_semantics = [#tpu.dimension_semantics<parallel>], iteration_bounds = array<i64: 1>, scalar_prefetch = 0 : i64, scratch_operands = 0 : i64, tpu.core_type = #tpu.core_type<tc>, window_params = [{transform_indices = @transform_0, window_bounds = array<i64: 4, 512>}, {pipeline_mode = #tpu.pipeline_mode<synchronous>, transform_indices = @transform_1, window_bounds = array<i64: 2, 4>}, {pipeline_mode = #tpu.pipeline_mode<synchronous>, transform_indices = @transform_2, window_bounds = array<i64: 2, 1>}, {pipeline_mode = #tpu.pipeline_mode<synchronous>, transform_indices = @transform_3, window_bounds = array<i64: 2, 4>}, {pipeline_mode = #tpu.pipeline_mode<synchronous>, transform_indices = @transform_4, window_bounds = array<i64: 2, 1>}, {pipeline_mode = #tpu.pipeline_mode<synchronous>, transform_indices = @transform_5, window_bounds = array<i64: 2, 2>}, {pipeline_mode = #tpu.pipeline_mode<synchronous>, transform_indices = @transform_6, window_bounds = array<i64: 2, 1>}, {pipeline_mode = #tpu.pipeline_mode<synchronous>, transform_indices = @transform_7, window_bounds = array<i64: 2, 2>}, {pipeline_mode = #tpu.pipeline_mode<synchronous>, transform_indices = @transform_8, window_bounds = array<i64: 2, 1>}, {pipeline_mode = #tpu.pipeline_mode<synchronous>, transform_indices = @transform_9, window_bounds = array<i64: 3, 4, 2>}, {pipeline_mode = #tpu.pipeline_mode<synchronous>, transform_indices = @transform_10, window_bounds = array<i64: 4, 1>}, {transform_indices = @transform_11, window_bounds = array<i64: 4, 512>}]} {
    %c0 = arith.constant 0 : index
    %c0_0 = arith.constant 0 : index
    %0 = vector.load %arg1[%c0, %c0_0] : memref<4x512xf32, #tpu.memory_space<vmem>>, vector<4x512xf32>
    %1 = arith.truncf %0 : vector<4x512xf32> to vector<4x512xbf16>
    %c0_1 = arith.constant 0 : index
    %c0_2 = arith.constant 0 : index
    %2 = vector.load %arg2[%c0_1, %c0_2] : memref<2x4xbf16, #tpu.memory_space<vmem>>, vector<2x4xbf16>
    %cst = arith.constant dense<0.000000e+00> : vector<2x512xf32>
    %3 = tpu.matmul %2, %1, %cst {dimension_numbers = #tpu.dot_dimension_numbers<[1], [0], [0], [1], [0, 0, 1, 1], [], []>} : vector<2x4xbf16>, vector<4x512xbf16>, vector<2x512xf32> -> vector<2x512xf32>
    %c0_3 = arith.constant 0 : index
    %c0_4 = arith.constant 0 : index
    %4 = vector.load %arg3[%c0_3, %c0_4] : memref<2x1xf32, #tpu.memory_space<vmem>>, vector<2x1xf32>
    %5 = vector.broadcast %4 : vector<2x1xf32> to vector<2x512xf32>
    %6 = arith.addf %3, %5 : vector<2x512xf32>
    %7 = arith.negf %6 : vector<2x512xf32>
    %8 = math.exp %7 : vector<2x512xf32>
    %cst_5 = arith.constant 1.000000e+00 : f32
    %9 = vector.broadcast %cst_5 : f32 to vector<2x512xf32>
    %10 = arith.addf %9, %8 : vector<2x512xf32>
    %11 = arith.divf %9, %10 : vector<2x512xf32>
    %12 = arith.mulf %6, %11 : vector<2x512xf32>
    %c0_6 = arith.constant 0 : index
    %c0_7 = arith.constant 0 : index
    %13 = vector.load %arg4[%c0_6, %c0_7] : memref<2x4xbf16, #tpu.memory_space<vmem>>, vector<2x4xbf16>
    %cst_8 = arith.constant dense<0.000000e+00> : vector<2x512xf32>
    %14 = tpu.matmul %13, %1, %cst_8 {dimension_numbers = #tpu.dot_dimension_numbers<[1], [0], [0], [1], [0, 0, 1, 1], [], []>} : vector<2x4xbf16>, vector<4x512xbf16>, vector<2x512xf32> -> vector<2x512xf32>
    %c0_9 = arith.constant 0 : index
    %c0_10 = arith.constant 0 : index
    %15 = vector.load %arg5[%c0_9, %c0_10] : memref<2x1xf32, #tpu.memory_space<vmem>>, vector<2x1xf32>
    %16 = vector.broadcast %15 : vector<2x1xf32> to vector<2x512xf32>
    %17 = arith.addf %14, %16 : vector<2x512xf32>
    %18 = arith.negf %17 : vector<2x512xf32>
    %19 = math.exp %18 : vector<2x512xf32>
    %cst_11 = arith.constant 1.000000e+00 : f32
    %20 = vector.broadcast %cst_11 : f32 to vector<2x512xf32>
    %21 = arith.addf %20, %19 : vector<2x512xf32>
    %22 = arith.divf %20, %21 : vector<2x512xf32>
    %23 = arith.mulf %17, %22 : vector<2x512xf32>
    %24 = arith.truncf %12 : vector<2x512xf32> to vector<2x512xbf16>
    %25 = arith.truncf %23 : vector<2x512xf32> to vector<2x512xbf16>
    %c0_12 = arith.constant 0 : index
    %c0_13 = arith.constant 0 : index
    %26 = vector.load %arg6[%c0_12, %c0_13] : memref<2x2xbf16, #tpu.memory_space<vmem>>, vector<2x2xbf16>
    %cst_14 = arith.constant dense<0.000000e+00> : vector<2x512xf32>
    %27 = tpu.matmul %26, %25, %cst_14 {dimension_numbers = #tpu.dot_dimension_numbers<[1], [0], [0], [1], [0, 0, 1, 1], [], []>} : vector<2x2xbf16>, vector<2x512xbf16>, vector<2x512xf32> -> vector<2x512xf32>
    %c0_15 = arith.constant 0 : index
    %c0_16 = arith.constant 0 : index
    %28 = vector.load %arg7[%c0_15, %c0_16] : memref<2x1xf32, #tpu.memory_space<vmem>>, vector<2x1xf32>
    %29 = vector.broadcast %28 : vector<2x1xf32> to vector<2x512xf32>
    %30 = arith.addf %27, %29 : vector<2x512xf32>
    %31 = arith.negf %30 : vector<2x512xf32>
    %32 = math.exp %31 : vector<2x512xf32>
    %cst_17 = arith.constant 1.000000e+00 : f32
    %33 = vector.broadcast %cst_17 : f32 to vector<2x512xf32>
    %34 = arith.addf %33, %32 : vector<2x512xf32>
    %35 = arith.divf %33, %34 : vector<2x512xf32>
    %36 = arith.mulf %30, %35 : vector<2x512xf32>
    %37 = arith.truncf %36 : vector<2x512xf32> to vector<2x512xbf16>
    %c0_18 = arith.constant 0 : index
    %c0_19 = arith.constant 0 : index
    %38 = vector.load %arg8[%c0_18, %c0_19] : memref<2x2xbf16, #tpu.memory_space<vmem>>, vector<2x2xbf16>
    %cst_20 = arith.constant dense<0.000000e+00> : vector<2x512xf32>
    %39 = tpu.matmul %38, %37, %cst_20 {dimension_numbers = #tpu.dot_dimension_numbers<[1], [0], [0], [1], [0, 0, 1, 1], [], []>} : vector<2x2xbf16>, vector<2x512xbf16>, vector<2x512xf32> -> vector<2x512xf32>
    %c0_21 = arith.constant 0 : index
    %c0_22 = arith.constant 0 : index
    %40 = vector.load %arg9[%c0_21, %c0_22] : memref<2x1xf32, #tpu.memory_space<vmem>>, vector<2x1xf32>
    %41 = vector.broadcast %40 : vector<2x1xf32> to vector<2x512xf32>
    %42 = arith.addf %39, %41 : vector<2x512xf32>
    %43 = arith.negf %42 : vector<2x512xf32>
    %44 = math.exp %43 : vector<2x512xf32>
    %cst_23 = arith.constant 1.000000e+00 : f32
    %45 = vector.broadcast %cst_23 : f32 to vector<2x512xf32>
    %46 = arith.addf %45, %44 : vector<2x512xf32>
    %47 = arith.divf %45, %46 : vector<2x512xf32>
    %48 = arith.mulf %42, %47 : vector<2x512xf32>
    %49 = arith.addf %48, %23 : vector<2x512xf32>
    %50 = arith.truncf %49 : vector<2x512xf32> to vector<2x512xbf16>
    %c0_24 = arith.constant 0 : index
    %c0_25 = arith.constant 0 : index
    %c0_26 = arith.constant 0 : index
    %51 = vector.load %arg10[%c0_24, %c0_25, %c0_26] : memref<3x4x2xbf16, #tpu.memory_space<vmem>>, vector<1x4x2xbf16>
    %52 = vector.shape_cast %51 : vector<1x4x2xbf16> to vector<4x2xbf16>
    %cst_27 = arith.constant dense<0.000000e+00> : vector<4x512xf32>
    %53 = tpu.matmul %52, %24, %cst_27 {dimension_numbers = #tpu.dot_dimension_numbers<[1], [0], [0], [1], [0, 0, 1, 1], [], []>} : vector<4x2xbf16>, vector<2x512xbf16>, vector<4x512xf32> -> vector<4x512xf32>
    %c1 = arith.constant 1 : index
    %c0_28 = arith.constant 0 : index
    %c0_29 = arith.constant 0 : index
    %54 = vector.load %arg10[%c1, %c0_28, %c0_29] : memref<3x4x2xbf16, #tpu.memory_space<vmem>>, vector<1x4x2xbf16>
    %55 = vector.shape_cast %54 : vector<1x4x2xbf16> to vector<4x2xbf16>
    %cst_30 = arith.constant dense<0.000000e+00> : vector<4x512xf32>
    %56 = tpu.matmul %55, %25, %cst_30 {dimension_numbers = #tpu.dot_dimension_numbers<[1], [0], [0], [1], [0, 0, 1, 1], [], []>} : vector<4x2xbf16>, vector<2x512xbf16>, vector<4x512xf32> -> vector<4x512xf32>
    %57 = arith.addf %53, %56 : vector<4x512xf32>
    %c2 = arith.constant 2 : index
    %c0_31 = arith.constant 0 : index
    %c0_32 = arith.constant 0 : index
    %58 = vector.load %arg10[%c2, %c0_31, %c0_32] : memref<3x4x2xbf16, #tpu.memory_space<vmem>>, vector<1x4x2xbf16>
    %59 = vector.shape_cast %58 : vector<1x4x2xbf16> to vector<4x2xbf16>
    %cst_33 = arith.constant dense<0.000000e+00> : vector<4x512xf32>
    %60 = tpu.matmul %59, %50, %cst_33 {dimension_numbers = #tpu.dot_dimension_numbers<[1], [0], [0], [1], [0, 0, 1, 1], [], []>} : vector<4x2xbf16>, vector<2x512xbf16>, vector<4x512xf32> -> vector<4x512xf32>
    %61 = arith.addf %57, %60 : vector<4x512xf32>
    %c0_34 = arith.constant 0 : index
    %c0_35 = arith.constant 0 : index
    %62 = vector.load %arg11[%c0_34, %c0_35] : memref<4x1xf32, #tpu.memory_space<vmem>>, vector<4x1xf32>
    %63 = vector.broadcast %62 : vector<4x1xf32> to vector<4x512xf32>
    %64 = arith.addf %61, %63 : vector<4x512xf32>
    %65 = arith.negf %64 : vector<4x512xf32>
    %66 = math.exp %65 : vector<4x512xf32>
    %cst_36 = arith.constant 1.000000e+00 : f32
    %67 = vector.broadcast %cst_36 : f32 to vector<4x512xf32>
    %68 = arith.addf %67, %66 : vector<4x512xf32>
    %69 = arith.divf %67, %68 : vector<4x512xf32>
    %70 = arith.mulf %64, %69 : vector<4x512xf32>
    %c0_37 = arith.constant 0 : index
    %c0_38 = arith.constant 0 : index
    %71 = vector.load %arg12[%c0_37, %c0_38] : memref<4x512xf32, #tpu.memory_space<vmem>>, vector<4x512xf32>
    tpu.vector_store %arg12[%c0_37, %c0_38], %70 {strides = array<i32>} : memref<4x512xf32, #tpu.memory_space<vmem>>, vector<4x512xf32>,
    return
  }
  func.func @transform_0(%arg0: i32) -> (i32, i32) {
    %c0_i32 = arith.constant 0 : i32
    %c0_i32_0 = arith.constant 0 : i32
    return %c0_i32, %arg0 : i32, i32
  }
  func.func @transform_1(%arg0: i32) -> (i32, i32) {
    %c0_i32 = arith.constant 0 : i32
    %c0_i32_0 = arith.constant 0 : i32
    %c0_i32_1 = arith.constant 0 : i32
    return %c0_i32, %c0_i32_0 : i32, i32
  }
  func.func @transform_2(%arg0: i32) -> (i32, i32) {
    %c0_i32 = arith.constant 0 : i32
    %c0_i32_0 = arith.constant 0 : i32
    %c0_i32_1 = arith.constant 0 : i32
    return %c0_i32, %c0_i32_0 : i32, i32
  }
  func.func @transform_3(%arg0: i32) -> (i32, i32) {
    %c0_i32 = arith.constant 0 : i32
    %c0_i32_0 = arith.constant 0 : i32
    %c0_i32_1 = arith.constant 0 : i32
    return %c0_i32, %c0_i32_0 : i32, i32
  }
  func.func @transform_4(%arg0: i32) -> (i32, i32) {
    %c0_i32 = arith.constant 0 : i32
    %c0_i32_0 = arith.constant 0 : i32
    %c0_i32_1 = arith.constant 0 : i32
    return %c0_i32, %c0_i32_0 : i32, i32
  }
  func.func @transform_5(%arg0: i32) -> (i32, i32) {
    %c0_i32 = arith.constant 0 : i32
    %c0_i32_0 = arith.constant 0 : i32
    %c0_i32_1 = arith.constant 0 : i32
    return %c0_i32, %c0_i32_0 : i32, i32
  }
  func.func @transform_6(%arg0: i32) -> (i32, i32) {
    %c0_i32 = arith.constant 0 : i32
    %c0_i32_0 = arith.constant 0 : i32
    %c0_i32_1 = arith.constant 0 : i32
    return %c0_i32, %c0_i32_0 : i32, i32
  }
  func.func @transform_7(%arg0: i32) -> (i32, i32) {
    %c0_i32 = arith.constant 0 : i32
    %c0_i32_0 = arith.constant 0 : i32
    %c0_i32_1 = arith.constant 0 : i32
    return %c0_i32, %c0_i32_0 : i32, i32
  }
  func.func @transform_8(%arg0: i32) -> (i32, i32) {
    %c0_i32 = arith.constant 0 : i32
    %c0_i32_0 = arith.constant 0 : i32
    %c0_i32_1 = arith.constant 0 : i32
    return %c0_i32, %c0_i32_0 : i32, i32
  }
  func.func @transform_9(%arg0: i32) -> (i32, i32, i32) {
    %c0_i32 = arith.constant 0 : i32
    %c0_i32_0 = arith.constant 0 : i32
    %c0_i32_1 = arith.constant 0 : i32
    %c0_i32_2 = arith.constant 0 : i32
    return %c0_i32, %c0_i32_0, %c0_i32_1 : i32, i32, i32
  }
  func.func @transform_10(%arg0: i32) -> (i32, i32) {
    %c0_i32 = arith.constant 0 : i32
    %c0_i32_0 = arith.constant 0 : i32
    %c0_i32_1 = arith.constant 0 : i32
    return %c0_i32, %c0_i32_0 : i32, i32
  }
  func.func @transform_11(%arg0: i32) -> (i32, i32) {
    %c0_i32 = arith.constant 0 : i32
    %c0_i32_0 = arith.constant 0 : i32
    return %c0_i32, %arg0 : i32, i32
  }
}

module attributes {stable_mosaic.version = 11 : i64} {
  func.func @_c2f_kernel(%arg0: i32, %arg1: memref<8x128xf32, #tpu.memory_space<vmem>>, %arg2: memref<4x8xbf16, #tpu.memory_space<vmem>>, %arg3: memref<4x1xf32, #tpu.memory_space<vmem>>, %arg4: memref<4x8xbf16, #tpu.memory_space<vmem>>, %arg5: memref<4x1xf32, #tpu.memory_space<vmem>>, %arg6: memref<4x4xbf16, #tpu.memory_space<vmem>>, %arg7: memref<4x1xf32, #tpu.memory_space<vmem>>, %arg8: memref<4x4xbf16, #tpu.memory_space<vmem>>, %arg9: memref<4x1xf32, #tpu.memory_space<vmem>>, %arg10: memref<3x8x4xbf16, #tpu.memory_space<vmem>>, %arg11: memref<8x1xf32, #tpu.memory_space<vmem>>, %arg12: memref<8x2xf32, #tpu.memory_space<vmem>>, %arg13: memref<8x128xf32, #tpu.memory_space<vmem>>, %arg14: memref<8x128xf32, #tpu.memory_space<vmem>>) attributes {dimension_semantics = [#tpu.dimension_semantics<parallel>], iteration_bounds = array<i64: 1>, scalar_prefetch = 0 : i64, scratch_operands = 0 : i64, tpu.core_type = #tpu.core_type<tc>, window_params = [{transform_indices = @transform_0, window_bounds = array<i64: 8, 128>}, {pipeline_mode = #tpu.pipeline_mode<synchronous>, transform_indices = @transform_1, window_bounds = array<i64: 4, 8>}, {pipeline_mode = #tpu.pipeline_mode<synchronous>, transform_indices = @transform_2, window_bounds = array<i64: 4, 1>}, {pipeline_mode = #tpu.pipeline_mode<synchronous>, transform_indices = @transform_3, window_bounds = array<i64: 4, 8>}, {pipeline_mode = #tpu.pipeline_mode<synchronous>, transform_indices = @transform_4, window_bounds = array<i64: 4, 1>}, {pipeline_mode = #tpu.pipeline_mode<synchronous>, transform_indices = @transform_5, window_bounds = array<i64: 4, 4>}, {pipeline_mode = #tpu.pipeline_mode<synchronous>, transform_indices = @transform_6, window_bounds = array<i64: 4, 1>}, {pipeline_mode = #tpu.pipeline_mode<synchronous>, transform_indices = @transform_7, window_bounds = array<i64: 4, 4>}, {pipeline_mode = #tpu.pipeline_mode<synchronous>, transform_indices = @transform_8, window_bounds = array<i64: 4, 1>}, {pipeline_mode = #tpu.pipeline_mode<synchronous>, transform_indices = @transform_9, window_bounds = array<i64: 3, 8, 4>}, {pipeline_mode = #tpu.pipeline_mode<synchronous>, transform_indices = @transform_10, window_bounds = array<i64: 8, 1>}, {pipeline_mode = #tpu.pipeline_mode<synchronous>, transform_indices = @transform_11, window_bounds = array<i64: 8, 2>}, {transform_indices = @transform_12, window_bounds = array<i64: 8, 128>}, {transform_indices = @transform_13, window_bounds = array<i64: 8, 128>}]} {
    %c0 = arith.constant 0 : index
    %c0_0 = arith.constant 0 : index
    %0 = vector.load %arg1[%c0, %c0_0] : memref<8x128xf32, #tpu.memory_space<vmem>>, vector<8x128xf32>
    %1 = arith.truncf %0 : vector<8x128xf32> to vector<8x128xbf16>
    %c0_1 = arith.constant 0 : index
    %c0_2 = arith.constant 0 : index
    %2 = vector.load %arg2[%c0_1, %c0_2] : memref<4x8xbf16, #tpu.memory_space<vmem>>, vector<4x8xbf16>
    %cst = arith.constant dense<0.000000e+00> : vector<4x128xf32>
    %3 = tpu.matmul %2, %1, %cst {dimension_numbers = #tpu.dot_dimension_numbers<[1], [0], [0], [1], [0, 0, 1, 1], [], []>} : vector<4x8xbf16>, vector<8x128xbf16>, vector<4x128xf32> -> vector<4x128xf32>
    %c0_3 = arith.constant 0 : index
    %c0_4 = arith.constant 0 : index
    %4 = vector.load %arg3[%c0_3, %c0_4] : memref<4x1xf32, #tpu.memory_space<vmem>>, vector<4x1xf32>
    %5 = vector.broadcast %4 : vector<4x1xf32> to vector<4x128xf32>
    %6 = arith.addf %3, %5 : vector<4x128xf32>
    %7 = arith.negf %6 : vector<4x128xf32>
    %8 = math.exp %7 : vector<4x128xf32>
    %cst_5 = arith.constant 1.000000e+00 : f32
    %9 = vector.broadcast %cst_5 : f32 to vector<4x128xf32>
    %10 = arith.addf %9, %8 : vector<4x128xf32>
    %11 = arith.divf %9, %10 : vector<4x128xf32>
    %12 = arith.mulf %6, %11 : vector<4x128xf32>
    %c0_6 = arith.constant 0 : index
    %c0_7 = arith.constant 0 : index
    %13 = vector.load %arg4[%c0_6, %c0_7] : memref<4x8xbf16, #tpu.memory_space<vmem>>, vector<4x8xbf16>
    %cst_8 = arith.constant dense<0.000000e+00> : vector<4x128xf32>
    %14 = tpu.matmul %13, %1, %cst_8 {dimension_numbers = #tpu.dot_dimension_numbers<[1], [0], [0], [1], [0, 0, 1, 1], [], []>} : vector<4x8xbf16>, vector<8x128xbf16>, vector<4x128xf32> -> vector<4x128xf32>
    %c0_9 = arith.constant 0 : index
    %c0_10 = arith.constant 0 : index
    %15 = vector.load %arg5[%c0_9, %c0_10] : memref<4x1xf32, #tpu.memory_space<vmem>>, vector<4x1xf32>
    %16 = vector.broadcast %15 : vector<4x1xf32> to vector<4x128xf32>
    %17 = arith.addf %14, %16 : vector<4x128xf32>
    %18 = arith.negf %17 : vector<4x128xf32>
    %19 = math.exp %18 : vector<4x128xf32>
    %cst_11 = arith.constant 1.000000e+00 : f32
    %20 = vector.broadcast %cst_11 : f32 to vector<4x128xf32>
    %21 = arith.addf %20, %19 : vector<4x128xf32>
    %22 = arith.divf %20, %21 : vector<4x128xf32>
    %23 = arith.mulf %17, %22 : vector<4x128xf32>
    %24 = arith.truncf %12 : vector<4x128xf32> to vector<4x128xbf16>
    %25 = arith.truncf %23 : vector<4x128xf32> to vector<4x128xbf16>
    %c0_12 = arith.constant 0 : index
    %c0_13 = arith.constant 0 : index
    %26 = vector.load %arg6[%c0_12, %c0_13] : memref<4x4xbf16, #tpu.memory_space<vmem>>, vector<4x4xbf16>
    %cst_14 = arith.constant dense<0.000000e+00> : vector<4x128xf32>
    %27 = tpu.matmul %26, %25, %cst_14 {dimension_numbers = #tpu.dot_dimension_numbers<[1], [0], [0], [1], [0, 0, 1, 1], [], []>} : vector<4x4xbf16>, vector<4x128xbf16>, vector<4x128xf32> -> vector<4x128xf32>
    %c0_15 = arith.constant 0 : index
    %c0_16 = arith.constant 0 : index
    %28 = vector.load %arg7[%c0_15, %c0_16] : memref<4x1xf32, #tpu.memory_space<vmem>>, vector<4x1xf32>
    %29 = vector.broadcast %28 : vector<4x1xf32> to vector<4x128xf32>
    %30 = arith.addf %27, %29 : vector<4x128xf32>
    %31 = arith.negf %30 : vector<4x128xf32>
    %32 = math.exp %31 : vector<4x128xf32>
    %cst_17 = arith.constant 1.000000e+00 : f32
    %33 = vector.broadcast %cst_17 : f32 to vector<4x128xf32>
    %34 = arith.addf %33, %32 : vector<4x128xf32>
    %35 = arith.divf %33, %34 : vector<4x128xf32>
    %36 = arith.mulf %30, %35 : vector<4x128xf32>
    %37 = arith.truncf %36 : vector<4x128xf32> to vector<4x128xbf16>
    %c0_18 = arith.constant 0 : index
    %c0_19 = arith.constant 0 : index
    %38 = vector.load %arg8[%c0_18, %c0_19] : memref<4x4xbf16, #tpu.memory_space<vmem>>, vector<4x4xbf16>
    %cst_20 = arith.constant dense<0.000000e+00> : vector<4x128xf32>
    %39 = tpu.matmul %38, %37, %cst_20 {dimension_numbers = #tpu.dot_dimension_numbers<[1], [0], [0], [1], [0, 0, 1, 1], [], []>} : vector<4x4xbf16>, vector<4x128xbf16>, vector<4x128xf32> -> vector<4x128xf32>
    %c0_21 = arith.constant 0 : index
    %c0_22 = arith.constant 0 : index
    %40 = vector.load %arg9[%c0_21, %c0_22] : memref<4x1xf32, #tpu.memory_space<vmem>>, vector<4x1xf32>
    %41 = vector.broadcast %40 : vector<4x1xf32> to vector<4x128xf32>
    %42 = arith.addf %39, %41 : vector<4x128xf32>
    %43 = arith.negf %42 : vector<4x128xf32>
    %44 = math.exp %43 : vector<4x128xf32>
    %cst_23 = arith.constant 1.000000e+00 : f32
    %45 = vector.broadcast %cst_23 : f32 to vector<4x128xf32>
    %46 = arith.addf %45, %44 : vector<4x128xf32>
    %47 = arith.divf %45, %46 : vector<4x128xf32>
    %48 = arith.mulf %42, %47 : vector<4x128xf32>
    %49 = arith.addf %48, %23 : vector<4x128xf32>
    %50 = arith.truncf %49 : vector<4x128xf32> to vector<4x128xbf16>
    %c0_24 = arith.constant 0 : index
    %c0_25 = arith.constant 0 : index
    %c0_26 = arith.constant 0 : index
    %51 = vector.load %arg10[%c0_24, %c0_25, %c0_26] : memref<3x8x4xbf16, #tpu.memory_space<vmem>>, vector<1x8x4xbf16>
    %52 = vector.shape_cast %51 : vector<1x8x4xbf16> to vector<8x4xbf16>
    %cst_27 = arith.constant dense<0.000000e+00> : vector<8x128xf32>
    %53 = tpu.matmul %52, %24, %cst_27 {dimension_numbers = #tpu.dot_dimension_numbers<[1], [0], [0], [1], [0, 0, 1, 1], [], []>} : vector<8x4xbf16>, vector<4x128xbf16>, vector<8x128xf32> -> vector<8x128xf32>
    %c1 = arith.constant 1 : index
    %c0_28 = arith.constant 0 : index
    %c0_29 = arith.constant 0 : index
    %54 = vector.load %arg10[%c1, %c0_28, %c0_29] : memref<3x8x4xbf16, #tpu.memory_space<vmem>>, vector<1x8x4xbf16>
    %55 = vector.shape_cast %54 : vector<1x8x4xbf16> to vector<8x4xbf16>
    %cst_30 = arith.constant dense<0.000000e+00> : vector<8x128xf32>
    %56 = tpu.matmul %55, %25, %cst_30 {dimension_numbers = #tpu.dot_dimension_numbers<[1], [0], [0], [1], [0, 0, 1, 1], [], []>} : vector<8x4xbf16>, vector<4x128xbf16>, vector<8x128xf32> -> vector<8x128xf32>
    %57 = arith.addf %53, %56 : vector<8x128xf32>
    %c2 = arith.constant 2 : index
    %c0_31 = arith.constant 0 : index
    %c0_32 = arith.constant 0 : index
    %58 = vector.load %arg10[%c2, %c0_31, %c0_32] : memref<3x8x4xbf16, #tpu.memory_space<vmem>>, vector<1x8x4xbf16>
    %59 = vector.shape_cast %58 : vector<1x8x4xbf16> to vector<8x4xbf16>
    %cst_33 = arith.constant dense<0.000000e+00> : vector<8x128xf32>
    %60 = tpu.matmul %59, %50, %cst_33 {dimension_numbers = #tpu.dot_dimension_numbers<[1], [0], [0], [1], [0, 0, 1, 1], [], []>} : vector<8x4xbf16>, vector<4x128xbf16>, vector<8x128xf32> -> vector<8x128xf32>
    %61 = arith.addf %57, %60 : vector<8x128xf32>
    %c0_34 = arith.constant 0 : index
    %c0_35 = arith.constant 0 : index
    %62 = vector.load %arg11[%c0_34, %c0_35] : memref<8x1xf32, #tpu.memory_space<vmem>>, vector<8x1xf32>
    %63 = vector.broadcast %62 : vector<8x1xf32> to vector<8x128xf32>
    %64 = arith.addf %61, %63 : vector<8x128xf32>
    %65 = arith.negf %64 : vector<8x128xf32>
    %66 = math.exp %65 : vector<8x128xf32>
    %cst_36 = arith.constant 1.000000e+00 : f32
    %67 = vector.broadcast %cst_36 : f32 to vector<8x128xf32>
    %68 = arith.addf %67, %66 : vector<8x128xf32>
    %69 = arith.divf %67, %68 : vector<8x128xf32>
    %70 = arith.mulf %64, %69 : vector<8x128xf32>
    %c0_37 = arith.constant 0 : index
    %c0_38 = arith.constant 0 : index
    %71 = vector.load %arg13[%c0_37, %c0_38] : memref<8x128xf32, #tpu.memory_space<vmem>>, vector<8x128xf32>
    tpu.vector_store %arg13[%c0_37, %c0_38], %70 {strides = array<i32>} : memref<8x128xf32, #tpu.memory_space<vmem>>, vector<8x128xf32>,
    %c0_39 = arith.constant 0 : index
    %c0_40 = arith.constant 0 : index
    %72 = vector.load %arg12[%c0_39, %c0_40] : memref<8x2xf32, #tpu.memory_space<vmem>>, vector<8x1xf32>
    %73 = vector.broadcast %72 : vector<8x1xf32> to vector<8x128xf32>
    %74 = arith.mulf %70, %73 : vector<8x128xf32>
    %c0_41 = arith.constant 0 : index
    %c1_42 = arith.constant 1 : index
    %75 = vector.load %arg12[%c0_41, %c1_42] : memref<8x2xf32, #tpu.memory_space<vmem>>, vector<8x1xf32>
    %76 = vector.broadcast %75 : vector<8x1xf32> to vector<8x128xf32>
    %77 = arith.addf %74, %76 : vector<8x128xf32>
    %c0_43 = arith.constant 0 : index
    %c0_44 = arith.constant 0 : index
    %78 = vector.load %arg14[%c0_43, %c0_44] : memref<8x128xf32, #tpu.memory_space<vmem>>, vector<8x128xf32>
    tpu.vector_store %arg14[%c0_43, %c0_44], %77 {strides = array<i32>} : memref<8x128xf32, #tpu.memory_space<vmem>>, vector<8x128xf32>,
    return
  }
  func.func @transform_0(%arg0: i32) -> (i32, i32) {
    %c0_i32 = arith.constant 0 : i32
    %c0_i32_0 = arith.constant 0 : i32
    return %c0_i32, %arg0 : i32, i32
  }
  func.func @transform_1(%arg0: i32) -> (i32, i32) {
    %c0_i32 = arith.constant 0 : i32
    %c0_i32_0 = arith.constant 0 : i32
    %c0_i32_1 = arith.constant 0 : i32
    return %c0_i32, %c0_i32_0 : i32, i32
  }
  func.func @transform_2(%arg0: i32) -> (i32, i32) {
    %c0_i32 = arith.constant 0 : i32
    %c0_i32_0 = arith.constant 0 : i32
    %c0_i32_1 = arith.constant 0 : i32
    return %c0_i32, %c0_i32_0 : i32, i32
  }
  func.func @transform_3(%arg0: i32) -> (i32, i32) {
    %c0_i32 = arith.constant 0 : i32
    %c0_i32_0 = arith.constant 0 : i32
    %c0_i32_1 = arith.constant 0 : i32
    return %c0_i32, %c0_i32_0 : i32, i32
  }
  func.func @transform_4(%arg0: i32) -> (i32, i32) {
    %c0_i32 = arith.constant 0 : i32
    %c0_i32_0 = arith.constant 0 : i32
    %c0_i32_1 = arith.constant 0 : i32
    return %c0_i32, %c0_i32_0 : i32, i32
  }
  func.func @transform_5(%arg0: i32) -> (i32, i32) {
    %c0_i32 = arith.constant 0 : i32
    %c0_i32_0 = arith.constant 0 : i32
    %c0_i32_1 = arith.constant 0 : i32
    return %c0_i32, %c0_i32_0 : i32, i32
  }
  func.func @transform_6(%arg0: i32) -> (i32, i32) {
    %c0_i32 = arith.constant 0 : i32
    %c0_i32_0 = arith.constant 0 : i32
    %c0_i32_1 = arith.constant 0 : i32
    return %c0_i32, %c0_i32_0 : i32, i32
  }
  func.func @transform_7(%arg0: i32) -> (i32, i32) {
    %c0_i32 = arith.constant 0 : i32
    %c0_i32_0 = arith.constant 0 : i32
    %c0_i32_1 = arith.constant 0 : i32
    return %c0_i32, %c0_i32_0 : i32, i32
  }
  func.func @transform_8(%arg0: i32) -> (i32, i32) {
    %c0_i32 = arith.constant 0 : i32
    %c0_i32_0 = arith.constant 0 : i32
    %c0_i32_1 = arith.constant 0 : i32
    return %c0_i32, %c0_i32_0 : i32, i32
  }
  func.func @transform_9(%arg0: i32) -> (i32, i32, i32) {
    %c0_i32 = arith.constant 0 : i32
    %c0_i32_0 = arith.constant 0 : i32
    %c0_i32_1 = arith.constant 0 : i32
    %c0_i32_2 = arith.constant 0 : i32
    return %c0_i32, %c0_i32_0, %c0_i32_1 : i32, i32, i32
  }
  func.func @transform_10(%arg0: i32) -> (i32, i32) {
    %c0_i32 = arith.constant 0 : i32
    %c0_i32_0 = arith.constant 0 : i32
    %c0_i32_1 = arith.constant 0 : i32
    return %c0_i32, %c0_i32_0 : i32, i32
  }
  func.func @transform_11(%arg0: i32) -> (i32, i32) {
    %c0_i32 = arith.constant 0 : i32
    %c0_i32_0 = arith.constant 0 : i32
    %c0_i32_1 = arith.constant 0 : i32
    return %c0_i32, %c0_i32_0 : i32, i32
  }
  func.func @transform_12(%arg0: i32) -> (i32, i32) {
    %c0_i32 = arith.constant 0 : i32
    %c0_i32_0 = arith.constant 0 : i32
    return %c0_i32, %arg0 : i32, i32
  }
  func.func @transform_13(%arg0: i32) -> (i32, i32) {
    %c0_i32 = arith.constant 0 : i32
    %c0_i32_0 = arith.constant 0 : i32
    return %c0_i32, %arg0 : i32, i32
  }
}

module attributes {stable_mosaic.version = 11 : i64} {
  func.func @_gemm_kernel(%arg0: i32, %arg1: memref<8x36xbf16, #tpu.memory_space<vmem>>, %arg2: memref<8x1xf32, #tpu.memory_space<vmem>>, %arg3: memref<36x128xbf16, #tpu.memory_space<vmem>>, %arg4: memref<8x128xf32, #tpu.memory_space<vmem>>) attributes {dimension_semantics = [#tpu.dimension_semantics<parallel>], iteration_bounds = array<i64: 1>, scalar_prefetch = 0 : i64, scratch_operands = 0 : i64, tpu.core_type = #tpu.core_type<tc>, window_params = [{pipeline_mode = #tpu.pipeline_mode<synchronous>, transform_indices = @transform_0, window_bounds = array<i64: 8, 36>}, {pipeline_mode = #tpu.pipeline_mode<synchronous>, transform_indices = @transform_1, window_bounds = array<i64: 8, 1>}, {transform_indices = @transform_2, window_bounds = array<i64: 36, 128>}, {transform_indices = @transform_3, window_bounds = array<i64: 8, 128>}]} {
    %c0 = arith.constant 0 : index
    %c0_0 = arith.constant 0 : index
    %0 = vector.load %arg3[%c0, %c0_0] : memref<36x128xbf16, #tpu.memory_space<vmem>>, vector<36x128xbf16>
    %c0_1 = arith.constant 0 : index
    %c0_2 = arith.constant 0 : index
    %1 = vector.load %arg1[%c0_1, %c0_2] : memref<8x36xbf16, #tpu.memory_space<vmem>>, vector<8x36xbf16>
    %cst = arith.constant dense<0.000000e+00> : vector<8x128xf32>
    %2 = tpu.matmul %1, %0, %cst {dimension_numbers = #tpu.dot_dimension_numbers<[1], [0], [0], [1], [0, 0, 1, 1], [], []>} : vector<8x36xbf16>, vector<36x128xbf16>, vector<8x128xf32> -> vector<8x128xf32>
    %c0_3 = arith.constant 0 : index
    %c0_4 = arith.constant 0 : index
    %3 = vector.load %arg2[%c0_3, %c0_4] : memref<8x1xf32, #tpu.memory_space<vmem>>, vector<8x1xf32>
    %4 = vector.broadcast %3 : vector<8x1xf32> to vector<8x128xf32>
    %5 = arith.addf %2, %4 : vector<8x128xf32>
    %6 = arith.negf %5 : vector<8x128xf32>
    %7 = math.exp %6 : vector<8x128xf32>
    %cst_5 = arith.constant 1.000000e+00 : f32
    %8 = vector.broadcast %cst_5 : f32 to vector<8x128xf32>
    %9 = arith.addf %8, %7 : vector<8x128xf32>
    %10 = arith.divf %8, %9 : vector<8x128xf32>
    %11 = arith.mulf %5, %10 : vector<8x128xf32>
    %c0_6 = arith.constant 0 : index
    %c0_7 = arith.constant 0 : index
    %12 = vector.load %arg4[%c0_6, %c0_7] : memref<8x128xf32, #tpu.memory_space<vmem>>, vector<8x128xf32>
    tpu.vector_store %arg4[%c0_6, %c0_7], %11 {strides = array<i32>} : memref<8x128xf32, #tpu.memory_space<vmem>>, vector<8x128xf32>,
    return
  }
  func.func @transform_0(%arg0: i32) -> (i32, i32) {
    %c0_i32 = arith.constant 0 : i32
    %c0_i32_0 = arith.constant 0 : i32
    %c0_i32_1 = arith.constant 0 : i32
    return %c0_i32, %c0_i32_0 : i32, i32
  }
  func.func @transform_1(%arg0: i32) -> (i32, i32) {
    %c0_i32 = arith.constant 0 : i32
    %c0_i32_0 = arith.constant 0 : i32
    %c0_i32_1 = arith.constant 0 : i32
    return %c0_i32, %c0_i32_0 : i32, i32
  }
  func.func @transform_2(%arg0: i32) -> (i32, i32) {
    %c0_i32 = arith.constant 0 : i32
    %c0_i32_0 = arith.constant 0 : i32
    return %c0_i32, %arg0 : i32, i32
  }
  func.func @transform_3(%arg0: i32) -> (i32, i32) {
    %c0_i32 = arith.constant 0 : i32
    %c0_i32_0 = arith.constant 0 : i32
    return %c0_i32, %arg0 : i32, i32
  }
}

module attributes {stable_mosaic.version = 11 : i64} {
  func.func @_gemm_kernel(%arg0: i32, %arg1: memref<16x72xbf16, #tpu.memory_space<vmem>>, %arg2: memref<16x1xf32, #tpu.memory_space<vmem>>, %arg3: memref<72x32xbf16, #tpu.memory_space<vmem>>, %arg4: memref<16x32xf32, #tpu.memory_space<vmem>>) attributes {dimension_semantics = [#tpu.dimension_semantics<parallel>], iteration_bounds = array<i64: 1>, scalar_prefetch = 0 : i64, scratch_operands = 0 : i64, tpu.core_type = #tpu.core_type<tc>, window_params = [{pipeline_mode = #tpu.pipeline_mode<synchronous>, transform_indices = @transform_0, window_bounds = array<i64: 16, 72>}, {pipeline_mode = #tpu.pipeline_mode<synchronous>, transform_indices = @transform_1, window_bounds = array<i64: 16, 1>}, {transform_indices = @transform_2, window_bounds = array<i64: 72, 32>}, {transform_indices = @transform_3, window_bounds = array<i64: 16, 32>}]} {
    %c0 = arith.constant 0 : index
    %c0_0 = arith.constant 0 : index
    %0 = vector.load %arg3[%c0, %c0_0] : memref<72x32xbf16, #tpu.memory_space<vmem>>, vector<72x32xbf16>
    %c0_1 = arith.constant 0 : index
    %c0_2 = arith.constant 0 : index
    %1 = vector.load %arg1[%c0_1, %c0_2] : memref<16x72xbf16, #tpu.memory_space<vmem>>, vector<16x72xbf16>
    %cst = arith.constant dense<0.000000e+00> : vector<16x32xf32>
    %2 = tpu.matmul %1, %0, %cst {dimension_numbers = #tpu.dot_dimension_numbers<[1], [0], [0], [1], [0, 0, 1, 1], [], []>} : vector<16x72xbf16>, vector<72x32xbf16>, vector<16x32xf32> -> vector<16x32xf32>
    %c0_3 = arith.constant 0 : index
    %c0_4 = arith.constant 0 : index
    %3 = vector.load %arg2[%c0_3, %c0_4] : memref<16x1xf32, #tpu.memory_space<vmem>>, vector<16x1xf32>
    %4 = vector.broadcast %3 : vector<16x1xf32> to vector<16x32xf32>
    %5 = arith.addf %2, %4 : vector<16x32xf32>
    %6 = arith.negf %5 : vector<16x32xf32>
    %7 = math.exp %6 : vector<16x32xf32>
    %cst_5 = arith.constant 1.000000e+00 : f32
    %8 = vector.broadcast %cst_5 : f32 to vector<16x32xf32>
    %9 = arith.addf %8, %7 : vector<16x32xf32>
    %10 = arith.divf %8, %9 : vector<16x32xf32>
    %11 = arith.mulf %5, %10 : vector<16x32xf32>
    %c0_6 = arith.constant 0 : index
    %c0_7 = arith.constant 0 : index
    %12 = vector.load %arg4[%c0_6, %c0_7] : memref<16x32xf32, #tpu.memory_space<vmem>>, vector<16x32xf32>
    tpu.vector_store %arg4[%c0_6, %c0_7], %11 {strides = array<i32>} : memref<16x32xf32, #tpu.memory_space<vmem>>, vector<16x32xf32>,
    return
  }
  func.func @transform_0(%arg0: i32) -> (i32, i32) {
    %c0_i32 = arith.constant 0 : i32
    %c0_i32_0 = arith.constant 0 : i32
    %c0_i32_1 = arith.constant 0 : i32
    return %c0_i32, %c0_i32_0 : i32, i32
  }
  func.func @transform_1(%arg0: i32) -> (i32, i32) {
    %c0_i32 = arith.constant 0 : i32
    %c0_i32_0 = arith.constant 0 : i32
    %c0_i32_1 = arith.constant 0 : i32
    return %c0_i32, %c0_i32_0 : i32, i32
  }
  func.func @transform_2(%arg0: i32) -> (i32, i32) {
    %c0_i32 = arith.constant 0 : i32
    %c0_i32_0 = arith.constant 0 : i32
    return %c0_i32, %arg0 : i32, i32
  }
  func.func @transform_3(%arg0: i32) -> (i32, i32) {
    %c0_i32 = arith.constant 0 : i32
    %c0_i32_0 = arith.constant 0 : i32
    return %c0_i32, %arg0 : i32, i32
  }
}

module attributes {stable_mosaic.version = 11 : i64} {
  func.func @_c2f_kernel(%arg0: i32, %arg1: memref<16x32xf32, #tpu.memory_space<vmem>>, %arg2: memref<8x16xbf16, #tpu.memory_space<vmem>>, %arg3: memref<8x1xf32, #tpu.memory_space<vmem>>, %arg4: memref<8x16xbf16, #tpu.memory_space<vmem>>, %arg5: memref<8x1xf32, #tpu.memory_space<vmem>>, %arg6: memref<8x8xbf16, #tpu.memory_space<vmem>>, %arg7: memref<8x1xf32, #tpu.memory_space<vmem>>, %arg8: memref<8x8xbf16, #tpu.memory_space<vmem>>, %arg9: memref<8x1xf32, #tpu.memory_space<vmem>>, %arg10: memref<8x8xbf16, #tpu.memory_space<vmem>>, %arg11: memref<8x1xf32, #tpu.memory_space<vmem>>, %arg12: memref<8x8xbf16, #tpu.memory_space<vmem>>, %arg13: memref<8x1xf32, #tpu.memory_space<vmem>>, %arg14: memref<4x16x8xbf16, #tpu.memory_space<vmem>>, %arg15: memref<16x1xf32, #tpu.memory_space<vmem>>, %arg16: memref<16x2xf32, #tpu.memory_space<vmem>>, %arg17: memref<16x32xf32, #tpu.memory_space<vmem>>, %arg18: memref<16x32xf32, #tpu.memory_space<vmem>>) attributes {dimension_semantics = [#tpu.dimension_semantics<parallel>], iteration_bounds = array<i64: 1>, scalar_prefetch = 0 : i64, scratch_operands = 0 : i64, tpu.core_type = #tpu.core_type<tc>, window_params = [{transform_indices = @transform_0, window_bounds = array<i64: 16, 32>}, {pipeline_mode = #tpu.pipeline_mode<synchronous>, transform_indices = @transform_1, window_bounds = array<i64: 8, 16>}, {pipeline_mode = #tpu.pipeline_mode<synchronous>, transform_indices = @transform_2, window_bounds = array<i64: 8, 1>}, {pipeline_mode = #tpu.pipeline_mode<synchronous>, transform_indices = @transform_3, window_bounds = array<i64: 8, 16>}, {pipeline_mode = #tpu.pipeline_mode<synchronous>, transform_indices = @transform_4, window_bounds = array<i64: 8, 1>}, {pipeline_mode = #tpu.pipeline_mode<synchronous>, transform_indices = @transform_5, window_bounds = array<i64: 8, 8>}, {pipeline_mode = #tpu.pipeline_mode<synchronous>, transform_indices = @transform_6, window_bounds = array<i64: 8, 1>}, {pipeline_mode = #tpu.pipeline_mode<synchronous>, transform_indices = @transform_7, window_bounds = array<i64: 8, 8>}, {pipeline_mode = #tpu.pipeline_mode<synchronous>, transform_indices = @transform_8, window_bounds = array<i64: 8, 1>}, {pipeline_mode = #tpu.pipeline_mode<synchronous>, transform_indices = @transform_9, window_bounds = array<i64: 8, 8>}, {pipeline_mode = #tpu.pipeline_mode<synchronous>, transform_indices = @transform_10, window_bounds = array<i64: 8, 1>}, {pipeline_mode = #tpu.pipeline_mode<synchronous>, transform_indices = @transform_11, window_bounds = array<i64: 8, 8>}, {pipeline_mode = #tpu.pipeline_mode<synchronous>, transform_indices = @transform_12, window_bounds = array<i64: 8, 1>}, {pipeline_mode = #tpu.pipeline_mode<synchronous>, transform_indices = @transform_13, window_bounds = array<i64: 4, 16, 8>}, {pipeline_mode = #tpu.pipeline_mode<synchronous>, transform_indices = @transform_14, window_bounds = array<i64: 16, 1>}, {pipeline_mode = #tpu.pipeline_mode<synchronous>, transform_indices = @transform_15, window_bounds = array<i64: 16, 2>}, {transform_indices = @transform_16, window_bounds = array<i64: 16, 32>}, {transform_indices = @transform_17, window_bounds = array<i64: 16, 32>}]} {
    %c0 = arith.constant 0 : index
    %c0_0 = arith.constant 0 : index
    %0 = vector.load %arg1[%c0, %c0_0] : memref<16x32xf32, #tpu.memory_space<vmem>>, vector<16x32xf32>
    %1 = arith.truncf %0 : vector<16x32xf32> to vector<16x32xbf16>
    %c0_1 = arith.constant 0 : index
    %c0_2 = arith.constant 0 : index
    %2 = vector.load %arg2[%c0_1, %c0_2] : memref<8x16xbf16, #tpu.memory_space<vmem>>, vector<8x16xbf16>
    %cst = arith.constant dense<0.000000e+00> : vector<8x32xf32>
    %3 = tpu.matmul %2, %1, %cst {dimension_numbers = #tpu.dot_dimension_numbers<[1], [0], [0], [1], [0, 0, 1, 1], [], []>} : vector<8x16xbf16>, vector<16x32xbf16>, vector<8x32xf32> -> vector<8x32xf32>
    %c0_3 = arith.constant 0 : index
    %c0_4 = arith.constant 0 : index
    %4 = vector.load %arg3[%c0_3, %c0_4] : memref<8x1xf32, #tpu.memory_space<vmem>>, vector<8x1xf32>
    %5 = vector.broadcast %4 : vector<8x1xf32> to vector<8x32xf32>
    %6 = arith.addf %3, %5 : vector<8x32xf32>
    %7 = arith.negf %6 : vector<8x32xf32>
    %8 = math.exp %7 : vector<8x32xf32>
    %cst_5 = arith.constant 1.000000e+00 : f32
    %9 = vector.broadcast %cst_5 : f32 to vector<8x32xf32>
    %10 = arith.addf %9, %8 : vector<8x32xf32>
    %11 = arith.divf %9, %10 : vector<8x32xf32>
    %12 = arith.mulf %6, %11 : vector<8x32xf32>
    %c0_6 = arith.constant 0 : index
    %c0_7 = arith.constant 0 : index
    %13 = vector.load %arg4[%c0_6, %c0_7] : memref<8x16xbf16, #tpu.memory_space<vmem>>, vector<8x16xbf16>
    %cst_8 = arith.constant dense<0.000000e+00> : vector<8x32xf32>
    %14 = tpu.matmul %13, %1, %cst_8 {dimension_numbers = #tpu.dot_dimension_numbers<[1], [0], [0], [1], [0, 0, 1, 1], [], []>} : vector<8x16xbf16>, vector<16x32xbf16>, vector<8x32xf32> -> vector<8x32xf32>
    %c0_9 = arith.constant 0 : index
    %c0_10 = arith.constant 0 : index
    %15 = vector.load %arg5[%c0_9, %c0_10] : memref<8x1xf32, #tpu.memory_space<vmem>>, vector<8x1xf32>
    %16 = vector.broadcast %15 : vector<8x1xf32> to vector<8x32xf32>
    %17 = arith.addf %14, %16 : vector<8x32xf32>
    %18 = arith.negf %17 : vector<8x32xf32>
    %19 = math.exp %18 : vector<8x32xf32>
    %cst_11 = arith.constant 1.000000e+00 : f32
    %20 = vector.broadcast %cst_11 : f32 to vector<8x32xf32>
    %21 = arith.addf %20, %19 : vector<8x32xf32>
    %22 = arith.divf %20, %21 : vector<8x32xf32>
    %23 = arith.mulf %17, %22 : vector<8x32xf32>
    %24 = arith.truncf %12 : vector<8x32xf32> to vector<8x32xbf16>
    %25 = arith.truncf %23 : vector<8x32xf32> to vector<8x32xbf16>
    %c0_12 = arith.constant 0 : index
    %c0_13 = arith.constant 0 : index
    %26 = vector.load %arg6[%c0_12, %c0_13] : memref<8x8xbf16, #tpu.memory_space<vmem>>, vector<8x8xbf16>
    %cst_14 = arith.constant dense<0.000000e+00> : vector<8x32xf32>
    %27 = tpu.matmul %26, %25, %cst_14 {dimension_numbers = #tpu.dot_dimension_numbers<[1], [0], [0], [1], [0, 0, 1, 1], [], []>} : vector<8x8xbf16>, vector<8x32xbf16>, vector<8x32xf32> -> vector<8x32xf32>
    %c0_15 = arith.constant 0 : index
    %c0_16 = arith.constant 0 : index
    %28 = vector.load %arg7[%c0_15, %c0_16] : memref<8x1xf32, #tpu.memory_space<vmem>>, vector<8x1xf32>
    %29 = vector.broadcast %28 : vector<8x1xf32> to vector<8x32xf32>
    %30 = arith.addf %27, %29 : vector<8x32xf32>
    %31 = arith.negf %30 : vector<8x32xf32>
    %32 = math.exp %31 : vector<8x32xf32>
    %cst_17 = arith.constant 1.000000e+00 : f32
    %33 = vector.broadcast %cst_17 : f32 to vector<8x32xf32>
    %34 = arith.addf %33, %32 : vector<8x32xf32>
    %35 = arith.divf %33, %34 : vector<8x32xf32>
    %36 = arith.mulf %30, %35 : vector<8x32xf32>
    %37 = arith.truncf %36 : vector<8x32xf32> to vector<8x32xbf16>
    %c0_18 = arith.constant 0 : index
    %c0_19 = arith.constant 0 : index
    %38 = vector.load %arg8[%c0_18, %c0_19] : memref<8x8xbf16, #tpu.memory_space<vmem>>, vector<8x8xbf16>
    %cst_20 = arith.constant dense<0.000000e+00> : vector<8x32xf32>
    %39 = tpu.matmul %38, %37, %cst_20 {dimension_numbers = #tpu.dot_dimension_numbers<[1], [0], [0], [1], [0, 0, 1, 1], [], []>} : vector<8x8xbf16>, vector<8x32xbf16>, vector<8x32xf32> -> vector<8x32xf32>
    %c0_21 = arith.constant 0 : index
    %c0_22 = arith.constant 0 : index
    %40 = vector.load %arg9[%c0_21, %c0_22] : memref<8x1xf32, #tpu.memory_space<vmem>>, vector<8x1xf32>
    %41 = vector.broadcast %40 : vector<8x1xf32> to vector<8x32xf32>
    %42 = arith.addf %39, %41 : vector<8x32xf32>
    %43 = arith.negf %42 : vector<8x32xf32>
    %44 = math.exp %43 : vector<8x32xf32>
    %cst_23 = arith.constant 1.000000e+00 : f32
    %45 = vector.broadcast %cst_23 : f32 to vector<8x32xf32>
    %46 = arith.addf %45, %44 : vector<8x32xf32>
    %47 = arith.divf %45, %46 : vector<8x32xf32>
    %48 = arith.mulf %42, %47 : vector<8x32xf32>
    %49 = arith.addf %48, %23 : vector<8x32xf32>
    %50 = arith.truncf %49 : vector<8x32xf32> to vector<8x32xbf16>
    %c0_24 = arith.constant 0 : index
    %c0_25 = arith.constant 0 : index
    %51 = vector.load %arg10[%c0_24, %c0_25] : memref<8x8xbf16, #tpu.memory_space<vmem>>, vector<8x8xbf16>
    %cst_26 = arith.constant dense<0.000000e+00> : vector<8x32xf32>
    %52 = tpu.matmul %51, %50, %cst_26 {dimension_numbers = #tpu.dot_dimension_numbers<[1], [0], [0], [1], [0, 0, 1, 1], [], []>} : vector<8x8xbf16>, vector<8x32xbf16>, vector<8x32xf32> -> vector<8x32xf32>
    %c0_27 = arith.constant 0 : index
    %c0_28 = arith.constant 0 : index
    %53 = vector.load %arg11[%c0_27, %c0_28] : memref<8x1xf32, #tpu.memory_space<vmem>>, vector<8x1xf32>
    %54 = vector.broadcast %53 : vector<8x1xf32> to vector<8x32xf32>
    %55 = arith.addf %52, %54 : vector<8x32xf32>
    %56 = arith.negf %55 : vector<8x32xf32>
    %57 = math.exp %56 : vector<8x32xf32>
    %cst_29 = arith.constant 1.000000e+00 : f32
    %58 = vector.broadcast %cst_29 : f32 to vector<8x32xf32>
    %59 = arith.addf %58, %57 : vector<8x32xf32>
    %60 = arith.divf %58, %59 : vector<8x32xf32>
    %61 = arith.mulf %55, %60 : vector<8x32xf32>
    %62 = arith.truncf %61 : vector<8x32xf32> to vector<8x32xbf16>
    %c0_30 = arith.constant 0 : index
    %c0_31 = arith.constant 0 : index
    %63 = vector.load %arg12[%c0_30, %c0_31] : memref<8x8xbf16, #tpu.memory_space<vmem>>, vector<8x8xbf16>
    %cst_32 = arith.constant dense<0.000000e+00> : vector<8x32xf32>
    %64 = tpu.matmul %63, %62, %cst_32 {dimension_numbers = #tpu.dot_dimension_numbers<[1], [0], [0], [1], [0, 0, 1, 1], [], []>} : vector<8x8xbf16>, vector<8x32xbf16>, vector<8x32xf32> -> vector<8x32xf32>
    %c0_33 = arith.constant 0 : index
    %c0_34 = arith.constant 0 : index
    %65 = vector.load %arg13[%c0_33, %c0_34] : memref<8x1xf32, #tpu.memory_space<vmem>>, vector<8x1xf32>
    %66 = vector.broadcast %65 : vector<8x1xf32> to vector<8x32xf32>
    %67 = arith.addf %64, %66 : vector<8x32xf32>
    %68 = arith.negf %67 : vector<8x32xf32>
    %69 = math.exp %68 : vector<8x32xf32>
    %cst_35 = arith.constant 1.000000e+00 : f32
    %70 = vector.broadcast %cst_35 : f32 to vector<8x32xf32>
    %71 = arith.addf %70, %69 : vector<8x32xf32>
    %72 = arith.divf %70, %71 : vector<8x32xf32>
    %73 = arith.mulf %67, %72 : vector<8x32xf32>
    %74 = arith.addf %73, %49 : vector<8x32xf32>
    %75 = arith.truncf %74 : vector<8x32xf32> to vector<8x32xbf16>
    %c0_36 = arith.constant 0 : index
    %c0_37 = arith.constant 0 : index
    %c0_38 = arith.constant 0 : index
    %76 = vector.load %arg14[%c0_36, %c0_37, %c0_38] : memref<4x16x8xbf16, #tpu.memory_space<vmem>>, vector<1x16x8xbf16>
    %77 = vector.shape_cast %76 : vector<1x16x8xbf16> to vector<16x8xbf16>
    %cst_39 = arith.constant dense<0.000000e+00> : vector<16x32xf32>
    %78 = tpu.matmul %77, %24, %cst_39 {dimension_numbers = #tpu.dot_dimension_numbers<[1], [0], [0], [1], [0, 0, 1, 1], [], []>} : vector<16x8xbf16>, vector<8x32xbf16>, vector<16x32xf32> -> vector<16x32xf32>
    %c1 = arith.constant 1 : index
    %c0_40 = arith.constant 0 : index
    %c0_41 = arith.constant 0 : index
    %79 = vector.load %arg14[%c1, %c0_40, %c0_41] : memref<4x16x8xbf16, #tpu.memory_space<vmem>>, vector<1x16x8xbf16>
    %80 = vector.shape_cast %79 : vector<1x16x8xbf16> to vector<16x8xbf16>
    %cst_42 = arith.constant dense<0.000000e+00> : vector<16x32xf32>
    %81 = tpu.matmul %80, %25, %cst_42 {dimension_numbers = #tpu.dot_dimension_numbers<[1], [0], [0], [1], [0, 0, 1, 1], [], []>} : vector<16x8xbf16>, vector<8x32xbf16>, vector<16x32xf32> -> vector<16x32xf32>
    %82 = arith.addf %78, %81 : vector<16x32xf32>
    %c2 = arith.constant 2 : index
    %c0_43 = arith.constant 0 : index
    %c0_44 = arith.constant 0 : index
    %83 = vector.load %arg14[%c2, %c0_43, %c0_44] : memref<4x16x8xbf16, #tpu.memory_space<vmem>>, vector<1x16x8xbf16>
    %84 = vector.shape_cast %83 : vector<1x16x8xbf16> to vector<16x8xbf16>
    %cst_45 = arith.constant dense<0.000000e+00> : vector<16x32xf32>
    %85 = tpu.matmul %84, %50, %cst_45 {dimension_numbers = #tpu.dot_dimension_numbers<[1], [0], [0], [1], [0, 0, 1, 1], [], []>} : vector<16x8xbf16>, vector<8x32xbf16>, vector<16x32xf32> -> vector<16x32xf32>
    %86 = arith.addf %82, %85 : vector<16x32xf32>
    %c3 = arith.constant 3 : index
    %c0_46 = arith.constant 0 : index
    %c0_47 = arith.constant 0 : index
    %87 = vector.load %arg14[%c3, %c0_46, %c0_47] : memref<4x16x8xbf16, #tpu.memory_space<vmem>>, vector<1x16x8xbf16>
    %88 = vector.shape_cast %87 : vector<1x16x8xbf16> to vector<16x8xbf16>
    %cst_48 = arith.constant dense<0.000000e+00> : vector<16x32xf32>
    %89 = tpu.matmul %88, %75, %cst_48 {dimension_numbers = #tpu.dot_dimension_numbers<[1], [0], [0], [1], [0, 0, 1, 1], [], []>} : vector<16x8xbf16>, vector<8x32xbf16>, vector<16x32xf32> -> vector<16x32xf32>
    %90 = arith.addf %86, %89 : vector<16x32xf32>
    %c0_49 = arith.constant 0 : index
    %c0_50 = arith.constant 0 : index
    %91 = vector.load %arg15[%c0_49, %c0_50] : memref<16x1xf32, #tpu.memory_space<vmem>>, vector<16x1xf32>
    %92 = vector.broadcast %91 : vector<16x1xf32> to vector<16x32xf32>
    %93 = arith.addf %90, %92 : vector<16x32xf32>
    %94 = arith.negf %93 : vector<16x32xf32>
    %95 = math.exp %94 : vector<16x32xf32>
    %cst_51 = arith.constant 1.000000e+00 : f32
    %96 = vector.broadcast %cst_51 : f32 to vector<16x32xf32>
    %97 = arith.addf %96, %95 : vector<16x32xf32>
    %98 = arith.divf %96, %97 : vector<16x32xf32>
    %99 = arith.mulf %93, %98 : vector<16x32xf32>
    %c0_52 = arith.constant 0 : index
    %c0_53 = arith.constant 0 : index
    %100 = vector.load %arg17[%c0_52, %c0_53] : memref<16x32xf32, #tpu.memory_space<vmem>>, vector<16x32xf32>
    tpu.vector_store %arg17[%c0_52, %c0_53], %99 {strides = array<i32>} : memref<16x32xf32, #tpu.memory_space<vmem>>, vector<16x32xf32>,
    %c0_54 = arith.constant 0 : index
    %c0_55 = arith.constant 0 : index
    %101 = vector.load %arg16[%c0_54, %c0_55] : memref<16x2xf32, #tpu.memory_space<vmem>>, vector<16x1xf32>
    %102 = vector.broadcast %101 : vector<16x1xf32> to vector<16x32xf32>
    %103 = arith.mulf %99, %102 : vector<16x32xf32>
    %c0_56 = arith.constant 0 : index
    %c1_57 = arith.constant 1 : index
    %104 = vector.load %arg16[%c0_56, %c1_57] : memref<16x2xf32, #tpu.memory_space<vmem>>, vector<16x1xf32>
    %105 = vector.broadcast %104 : vector<16x1xf32> to vector<16x32xf32>
    %106 = arith.addf %103, %105 : vector<16x32xf32>
    %c0_58 = arith.constant 0 : index
    %c0_59 = arith.constant 0 : index
    %107 = vector.load %arg18[%c0_58, %c0_59] : memref<16x32xf32, #tpu.memory_space<vmem>>, vector<16x32xf32>
    tpu.vector_store %arg18[%c0_58, %c0_59], %106 {strides = array<i32>} : memref<16x32xf32, #tpu.memory_space<vmem>>, vector<16x32xf32>,
    return
  }
  func.func @transform_0(%arg0: i32) -> (i32, i32) {
    %c0_i32 = arith.constant 0 : i32
    %c0_i32_0 = arith.constant 0 : i32
    return %c0_i32, %arg0 : i32, i32
  }
  func.func @transform_1(%arg0: i32) -> (i32, i32) {
    %c0_i32 = arith.constant 0 : i32
    %c0_i32_0 = arith.constant 0 : i32
    %c0_i32_1 = arith.constant 0 : i32
    return %c0_i32, %c0_i32_0 : i32, i32
  }
  func.func @transform_2(%arg0: i32) -> (i32, i32) {
    %c0_i32 = arith.constant 0 : i32
    %c0_i32_0 = arith.constant 0 : i32
    %c0_i32_1 = arith.constant 0 : i32
    return %c0_i32, %c0_i32_0 : i32, i32
  }
  func.func @transform_3(%arg0: i32) -> (i32, i32) {
    %c0_i32 = arith.constant 0 : i32
    %c0_i32_0 = arith.constant 0 : i32
    %c0_i32_1 = arith.constant 0 : i32
    return %c0_i32, %c0_i32_0 : i32, i32
  }
  func.func @transform_4(%arg0: i32) -> (i32, i32) {
    %c0_i32 = arith.constant 0 : i32
    %c0_i32_0 = arith.constant 0 : i32
    %c0_i32_1 = arith.constant 0 : i32
    return %c0_i32, %c0_i32_0 : i32, i32
  }
  func.func @transform_5(%arg0: i32) -> (i32, i32) {
    %c0_i32 = arith.constant 0 : i32
    %c0_i32_0 = arith.constant 0 : i32
    %c0_i32_1 = arith.constant 0 : i32
    return %c0_i32, %c0_i32_0 : i32, i32
  }
  func.func @transform_6(%arg0: i32) -> (i32, i32) {
    %c0_i32 = arith.constant 0 : i32
    %c0_i32_0 = arith.constant 0 : i32
    %c0_i32_1 = arith.constant 0 : i32
    return %c0_i32, %c0_i32_0 : i32, i32
  }
  func.func @transform_7(%arg0: i32) -> (i32, i32) {
    %c0_i32 = arith.constant 0 : i32
    %c0_i32_0 = arith.constant 0 : i32
    %c0_i32_1 = arith.constant 0 : i32
    return %c0_i32, %c0_i32_0 : i32, i32
  }
  func.func @transform_8(%arg0: i32) -> (i32, i32) {
    %c0_i32 = arith.constant 0 : i32
    %c0_i32_0 = arith.constant 0 : i32
    %c0_i32_1 = arith.constant 0 : i32
    return %c0_i32, %c0_i32_0 : i32, i32
  }
  func.func @transform_9(%arg0: i32) -> (i32, i32) {
    %c0_i32 = arith.constant 0 : i32
    %c0_i32_0 = arith.constant 0 : i32
    %c0_i32_1 = arith.constant 0 : i32
    return %c0_i32, %c0_i32_0 : i32, i32
  }
  func.func @transform_10(%arg0: i32) -> (i32, i32) {
    %c0_i32 = arith.constant 0 : i32
    %c0_i32_0 = arith.constant 0 : i32
    %c0_i32_1 = arith.constant 0 : i32
    return %c0_i32, %c0_i32_0 : i32, i32
  }
  func.func @transform_11(%arg0: i32) -> (i32, i32) {
    %c0_i32 = arith.constant 0 : i32
    %c0_i32_0 = arith.constant 0 : i32
    %c0_i32_1 = arith.constant 0 : i32
    return %c0_i32, %c0_i32_0 : i32, i32
  }
  func.func @transform_12(%arg0: i32) -> (i32, i32) {
    %c0_i32 = arith.constant 0 : i32
    %c0_i32_0 = arith.constant 0 : i32
    %c0_i32_1 = arith.constant 0 : i32
    return %c0_i32, %c0_i32_0 : i32, i32
  }
  func.func @transform_13(%arg0: i32) -> (i32, i32, i32) {
    %c0_i32 = arith.constant 0 : i32
    %c0_i32_0 = arith.constant 0 : i32
    %c0_i32_1 = arith.constant 0 : i32
    %c0_i32_2 = arith.constant 0 : i32
    return %c0_i32, %c0_i32_0, %c0_i32_1 : i32, i32, i32
  }
  func.func @transform_14(%arg0: i32) -> (i32, i32) {
    %c0_i32 = arith.constant 0 : i32
    %c0_i32_0 = arith.constant 0 : i32
    %c0_i32_1 = arith.constant 0 : i32
    return %c0_i32, %c0_i32_0 : i32, i32
  }
  func.func @transform_15(%arg0: i32) -> (i32, i32) {
    %c0_i32 = arith.constant 0 : i32
    %c0_i32_0 = arith.constant 0 : i32
    %c0_i32_1 = arith.constant 0 : i32
    return %c0_i32, %c0_i32_0 : i32, i32
  }
  func.func @transform_16(%arg0: i32) -> (i32, i32) {
    %c0_i32 = arith.constant 0 : i32
    %c0_i32_0 = arith.constant 0 : i32
    return %c0_i32, %arg0 : i32, i32
  }
  func.func @transform_17(%arg0: i32) -> (i32, i32) {
    %c0_i32 = arith.constant 0 : i32
    %c0_i32_0 = arith.constant 0 : i32
    return %c0_i32, %arg0 : i32, i32
  }
}

module attributes {stable_mosaic.version = 11 : i64} {
  func.func @_c2f_kernel(%arg0: i32, %arg1: memref<32x8xf32, #tpu.memory_space<vmem>>, %arg2: memref<16x32xbf16, #tpu.memory_space<vmem>>, %arg3: memref<16x1xf32, #tpu.memory_space<vmem>>, %arg4: memref<16x32xbf16, #tpu.memory_space<vmem>>, %arg5: memref<16x1xf32, #tpu.memory_space<vmem>>, %arg6: memref<16x16xbf16, #tpu.memory_space<vmem>>, %arg7: memref<16x1xf32, #tpu.memory_space<vmem>>, %arg8: memref<16x16xbf16, #tpu.memory_space<vmem>>, %arg9: memref<16x1xf32, #tpu.memory_space<vmem>>, %arg10: memref<3x32x16xbf16, #tpu.memory_space<vmem>>, %arg11: memref<32x1xf32, #tpu.memory_space<vmem>>, %arg12: memref<32x8xf32, #tpu.memory_space<vmem>>) attributes {dimension_semantics = [#tpu.dimension_semantics<parallel>], iteration_bounds = array<i64: 1>, scalar_prefetch = 0 : i64, scratch_operands = 0 : i64, tpu.core_type = #tpu.core_type<tc>, window_params = [{transform_indices = @transform_0, window_bounds = array<i64: 32, 8>}, {pipeline_mode = #tpu.pipeline_mode<synchronous>, transform_indices = @transform_1, window_bounds = array<i64: 16, 32>}, {pipeline_mode = #tpu.pipeline_mode<synchronous>, transform_indices = @transform_2, window_bounds = array<i64: 16, 1>}, {pipeline_mode = #tpu.pipeline_mode<synchronous>, transform_indices = @transform_3, window_bounds = array<i64: 16, 32>}, {pipeline_mode = #tpu.pipeline_mode<synchronous>, transform_indices = @transform_4, window_bounds = array<i64: 16, 1>}, {pipeline_mode = #tpu.pipeline_mode<synchronous>, transform_indices = @transform_5, window_bounds = array<i64: 16, 16>}, {pipeline_mode = #tpu.pipeline_mode<synchronous>, transform_indices = @transform_6, window_bounds = array<i64: 16, 1>}, {pipeline_mode = #tpu.pipeline_mode<synchronous>, transform_indices = @transform_7, window_bounds = array<i64: 16, 16>}, {pipeline_mode = #tpu.pipeline_mode<synchronous>, transform_indices = @transform_8, window_bounds = array<i64: 16, 1>}, {pipeline_mode = #tpu.pipeline_mode<synchronous>, transform_indices = @transform_9, window_bounds = array<i64: 3, 32, 16>}, {pipeline_mode = #tpu.pipeline_mode<synchronous>, transform_indices = @transform_10, window_bounds = array<i64: 32, 1>}, {transform_indices = @transform_11, window_bounds = array<i64: 32, 8>}]} {
    %c0 = arith.constant 0 : index
    %c0_0 = arith.constant 0 : index
    %0 = vector.load %arg1[%c0, %c0_0] : memref<32x8xf32, #tpu.memory_space<vmem>>, vector<32x8xf32>
    %1 = arith.truncf %0 : vector<32x8xf32> to vector<32x8xbf16>
    %c0_1 = arith.constant 0 : index
    %c0_2 = arith.constant 0 : index
    %2 = vector.load %arg2[%c0_1, %c0_2] : memref<16x32xbf16, #tpu.memory_space<vmem>>, vector<16x32xbf16>
    %cst = arith.constant dense<0.000000e+00> : vector<16x8xf32>
    %3 = tpu.matmul %2, %1, %cst {dimension_numbers = #tpu.dot_dimension_numbers<[1], [0], [0], [1], [0, 0, 1, 1], [], []>} : vector<16x32xbf16>, vector<32x8xbf16>, vector<16x8xf32> -> vector<16x8xf32>
    %c0_3 = arith.constant 0 : index
    %c0_4 = arith.constant 0 : index
    %4 = vector.load %arg3[%c0_3, %c0_4] : memref<16x1xf32, #tpu.memory_space<vmem>>, vector<16x1xf32>
    %5 = vector.broadcast %4 : vector<16x1xf32> to vector<16x8xf32>
    %6 = arith.addf %3, %5 : vector<16x8xf32>
    %7 = arith.negf %6 : vector<16x8xf32>
    %8 = math.exp %7 : vector<16x8xf32>
    %cst_5 = arith.constant 1.000000e+00 : f32
    %9 = vector.broadcast %cst_5 : f32 to vector<16x8xf32>
    %10 = arith.addf %9, %8 : vector<16x8xf32>
    %11 = arith.divf %9, %10 : vector<16x8xf32>
    %12 = arith.mulf %6, %11 : vector<16x8xf32>
    %c0_6 = arith.constant 0 : index
    %c0_7 = arith.constant 0 : index
    %13 = vector.load %arg4[%c0_6, %c0_7] : memref<16x32xbf16, #tpu.memory_space<vmem>>, vector<16x32xbf16>
    %cst_8 = arith.constant dense<0.000000e+00> : vector<16x8xf32>
    %14 = tpu.matmul %13, %1, %cst_8 {dimension_numbers = #tpu.dot_dimension_numbers<[1], [0], [0], [1], [0, 0, 1, 1], [], []>} : vector<16x32xbf16>, vector<32x8xbf16>, vector<16x8xf32> -> vector<16x8xf32>
    %c0_9 = arith.constant 0 : index
    %c0_10 = arith.constant 0 : index
    %15 = vector.load %arg5[%c0_9, %c0_10] : memref<16x1xf32, #tpu.memory_space<vmem>>, vector<16x1xf32>
    %16 = vector.broadcast %15 : vector<16x1xf32> to vector<16x8xf32>
    %17 = arith.addf %14, %16 : vector<16x8xf32>
    %18 = arith.negf %17 : vector<16x8xf32>
    %19 = math.exp %18 : vector<16x8xf32>
    %cst_11 = arith.constant 1.000000e+00 : f32
    %20 = vector.broadcast %cst_11 : f32 to vector<16x8xf32>
    %21 = arith.addf %20, %19 : vector<16x8xf32>
    %22 = arith.divf %20, %21 : vector<16x8xf32>
    %23 = arith.mulf %17, %22 : vector<16x8xf32>
    %24 = arith.truncf %12 : vector<16x8xf32> to vector<16x8xbf16>
    %25 = arith.truncf %23 : vector<16x8xf32> to vector<16x8xbf16>
    %c0_12 = arith.constant 0 : index
    %c0_13 = arith.constant 0 : index
    %26 = vector.load %arg6[%c0_12, %c0_13] : memref<16x16xbf16, #tpu.memory_space<vmem>>, vector<16x16xbf16>
    %cst_14 = arith.constant dense<0.000000e+00> : vector<16x8xf32>
    %27 = tpu.matmul %26, %25, %cst_14 {dimension_numbers = #tpu.dot_dimension_numbers<[1], [0], [0], [1], [0, 0, 1, 1], [], []>} : vector<16x16xbf16>, vector<16x8xbf16>, vector<16x8xf32> -> vector<16x8xf32>
    %c0_15 = arith.constant 0 : index
    %c0_16 = arith.constant 0 : index
    %28 = vector.load %arg7[%c0_15, %c0_16] : memref<16x1xf32, #tpu.memory_space<vmem>>, vector<16x1xf32>
    %29 = vector.broadcast %28 : vector<16x1xf32> to vector<16x8xf32>
    %30 = arith.addf %27, %29 : vector<16x8xf32>
    %31 = arith.negf %30 : vector<16x8xf32>
    %32 = math.exp %31 : vector<16x8xf32>
    %cst_17 = arith.constant 1.000000e+00 : f32
    %33 = vector.broadcast %cst_17 : f32 to vector<16x8xf32>
    %34 = arith.addf %33, %32 : vector<16x8xf32>
    %35 = arith.divf %33, %34 : vector<16x8xf32>
    %36 = arith.mulf %30, %35 : vector<16x8xf32>
    %37 = arith.truncf %36 : vector<16x8xf32> to vector<16x8xbf16>
    %c0_18 = arith.constant 0 : index
    %c0_19 = arith.constant 0 : index
    %38 = vector.load %arg8[%c0_18, %c0_19] : memref<16x16xbf16, #tpu.memory_space<vmem>>, vector<16x16xbf16>
    %cst_20 = arith.constant dense<0.000000e+00> : vector<16x8xf32>
    %39 = tpu.matmul %38, %37, %cst_20 {dimension_numbers = #tpu.dot_dimension_numbers<[1], [0], [0], [1], [0, 0, 1, 1], [], []>} : vector<16x16xbf16>, vector<16x8xbf16>, vector<16x8xf32> -> vector<16x8xf32>
    %c0_21 = arith.constant 0 : index
    %c0_22 = arith.constant 0 : index
    %40 = vector.load %arg9[%c0_21, %c0_22] : memref<16x1xf32, #tpu.memory_space<vmem>>, vector<16x1xf32>
    %41 = vector.broadcast %40 : vector<16x1xf32> to vector<16x8xf32>
    %42 = arith.addf %39, %41 : vector<16x8xf32>
    %43 = arith.negf %42 : vector<16x8xf32>
    %44 = math.exp %43 : vector<16x8xf32>
    %cst_23 = arith.constant 1.000000e+00 : f32
    %45 = vector.broadcast %cst_23 : f32 to vector<16x8xf32>
    %46 = arith.addf %45, %44 : vector<16x8xf32>
    %47 = arith.divf %45, %46 : vector<16x8xf32>
    %48 = arith.mulf %42, %47 : vector<16x8xf32>
    %49 = arith.addf %48, %23 : vector<16x8xf32>
    %50 = arith.truncf %49 : vector<16x8xf32> to vector<16x8xbf16>
    %c0_24 = arith.constant 0 : index
    %c0_25 = arith.constant 0 : index
    %c0_26 = arith.constant 0 : index
    %51 = vector.load %arg10[%c0_24, %c0_25, %c0_26] : memref<3x32x16xbf16, #tpu.memory_space<vmem>>, vector<1x32x16xbf16>
    %52 = vector.shape_cast %51 : vector<1x32x16xbf16> to vector<32x16xbf16>
    %cst_27 = arith.constant dense<0.000000e+00> : vector<32x8xf32>
    %53 = tpu.matmul %52, %24, %cst_27 {dimension_numbers = #tpu.dot_dimension_numbers<[1], [0], [0], [1], [0, 0, 1, 1], [], []>} : vector<32x16xbf16>, vector<16x8xbf16>, vector<32x8xf32> -> vector<32x8xf32>
    %c1 = arith.constant 1 : index
    %c0_28 = arith.constant 0 : index
    %c0_29 = arith.constant 0 : index
    %54 = vector.load %arg10[%c1, %c0_28, %c0_29] : memref<3x32x16xbf16, #tpu.memory_space<vmem>>, vector<1x32x16xbf16>
    %55 = vector.shape_cast %54 : vector<1x32x16xbf16> to vector<32x16xbf16>
    %cst_30 = arith.constant dense<0.000000e+00> : vector<32x8xf32>
    %56 = tpu.matmul %55, %25, %cst_30 {dimension_numbers = #tpu.dot_dimension_numbers<[1], [0], [0], [1], [0, 0, 1, 1], [], []>} : vector<32x16xbf16>, vector<16x8xbf16>, vector<32x8xf32> -> vector<32x8xf32>
    %57 = arith.addf %53, %56 : vector<32x8xf32>
    %c2 = arith.constant 2 : index
    %c0_31 = arith.constant 0 : index
    %c0_32 = arith.constant 0 : index
    %58 = vector.load %arg10[%c2, %c0_31, %c0_32] : memref<3x32x16xbf16, #tpu.memory_space<vmem>>, vector<1x32x16xbf16>
    %59 = vector.shape_cast %58 : vector<1x32x16xbf16> to vector<32x16xbf16>
    %cst_33 = arith.constant dense<0.000000e+00> : vector<32x8xf32>
    %60 = tpu.matmul %59, %50, %cst_33 {dimension_numbers = #tpu.dot_dimension_numbers<[1], [0], [0], [1], [0, 0, 1, 1], [], []>} : vector<32x16xbf16>, vector<16x8xbf16>, vector<32x8xf32> -> vector<32x8xf32>
    %61 = arith.addf %57, %60 : vector<32x8xf32>
    %c0_34 = arith.constant 0 : index
    %c0_35 = arith.constant 0 : index
    %62 = vector.load %arg11[%c0_34, %c0_35] : memref<32x1xf32, #tpu.memory_space<vmem>>, vector<32x1xf32>
    %63 = vector.broadcast %62 : vector<32x1xf32> to vector<32x8xf32>
    %64 = arith.addf %61, %63 : vector<32x8xf32>
    %65 = arith.negf %64 : vector<32x8xf32>
    %66 = math.exp %65 : vector<32x8xf32>
    %cst_36 = arith.constant 1.000000e+00 : f32
    %67 = vector.broadcast %cst_36 : f32 to vector<32x8xf32>
    %68 = arith.addf %67, %66 : vector<32x8xf32>
    %69 = arith.divf %67, %68 : vector<32x8xf32>
    %70 = arith.mulf %64, %69 : vector<32x8xf32>
    %c0_37 = arith.constant 0 : index
    %c0_38 = arith.constant 0 : index
    %71 = vector.load %arg12[%c0_37, %c0_38] : memref<32x8xf32, #tpu.memory_space<vmem>>, vector<32x8xf32>
    tpu.vector_store %arg12[%c0_37, %c0_38], %70 {strides = array<i32>} : memref<32x8xf32, #tpu.memory_space<vmem>>, vector<32x8xf32>,
    return
  }
  func.func @transform_0(%arg0: i32) -> (i32, i32) {
    %c0_i32 = arith.constant 0 : i32
    %c0_i32_0 = arith.constant 0 : i32
    return %c0_i32, %arg0 : i32, i32
  }
  func.func @transform_1(%arg0: i32) -> (i32, i32) {
    %c0_i32 = arith.constant 0 : i32
    %c0_i32_0 = arith.constant 0 : i32
    %c0_i32_1 = arith.constant 0 : i32
    return %c0_i32, %c0_i32_0 : i32, i32
  }
  func.func @transform_2(%arg0: i32) -> (i32, i32) {
    %c0_i32 = arith.constant 0 : i32
    %c0_i32_0 = arith.constant 0 : i32
    %c0_i32_1 = arith.constant 0 : i32
    return %c0_i32, %c0_i32_0 : i32, i32
  }
  func.func @transform_3(%arg0: i32) -> (i32, i32) {
    %c0_i32 = arith.constant 0 : i32
    %c0_i32_0 = arith.constant 0 : i32
    %c0_i32_1 = arith.constant 0 : i32
    return %c0_i32, %c0_i32_0 : i32, i32
  }
  func.func @transform_4(%arg0: i32) -> (i32, i32) {
    %c0_i32 = arith.constant 0 : i32
    %c0_i32_0 = arith.constant 0 : i32
    %c0_i32_1 = arith.constant 0 : i32
    return %c0_i32, %c0_i32_0 : i32, i32
  }
  func.func @transform_5(%arg0: i32) -> (i32, i32) {
    %c0_i32 = arith.constant 0 : i32
    %c0_i32_0 = arith.constant 0 : i32
    %c0_i32_1 = arith.constant 0 : i32
    return %c0_i32, %c0_i32_0 : i32, i32
  }
  func.func @transform_6(%arg0: i32) -> (i32, i32) {
    %c0_i32 = arith.constant 0 : i32
    %c0_i32_0 = arith.constant 0 : i32
    %c0_i32_1 = arith.constant 0 : i32
    return %c0_i32, %c0_i32_0 : i32, i32
  }
  func.func @transform_7(%arg0: i32) -> (i32, i32) {
    %c0_i32 = arith.constant 0 : i32
    %c0_i32_0 = arith.constant 0 : i32
    %c0_i32_1 = arith.constant 0 : i32
    return %c0_i32, %c0_i32_0 : i32, i32
  }
  func.func @transform_8(%arg0: i32) -> (i32, i32) {
    %c0_i32 = arith.constant 0 : i32
    %c0_i32_0 = arith.constant 0 : i32
    %c0_i32_1 = arith.constant 0 : i32
    return %c0_i32, %c0_i32_0 : i32, i32
  }
  func.func @transform_9(%arg0: i32) -> (i32, i32, i32) {
    %c0_i32 = arith.constant 0 : i32
    %c0_i32_0 = arith.constant 0 : i32
    %c0_i32_1 = arith.constant 0 : i32
    %c0_i32_2 = arith.constant 0 : i32
    return %c0_i32, %c0_i32_0, %c0_i32_1 : i32, i32, i32
  }
  func.func @transform_10(%arg0: i32) -> (i32, i32) {
    %c0_i32 = arith.constant 0 : i32
    %c0_i32_0 = arith.constant 0 : i32
    %c0_i32_1 = arith.constant 0 : i32
    return %c0_i32, %c0_i32_0 : i32, i32
  }
  func.func @transform_11(%arg0: i32) -> (i32, i32) {
    %c0_i32 = arith.constant 0 : i32
    %c0_i32_0 = arith.constant 0 : i32
    return %c0_i32, %arg0 : i32, i32
  }
}

module attributes {stable_mosaic.version = 11 : i64} {
  func.func @_gemm_kernel(%arg0: i32, %arg1: memref<32x144xbf16, #tpu.memory_space<vmem>>, %arg2: memref<32x1xf32, #tpu.memory_space<vmem>>, %arg3: memref<144x8xbf16, #tpu.memory_space<vmem>>, %arg4: memref<32x8xf32, #tpu.memory_space<vmem>>) attributes {dimension_semantics = [#tpu.dimension_semantics<parallel>], iteration_bounds = array<i64: 1>, scalar_prefetch = 0 : i64, scratch_operands = 0 : i64, tpu.core_type = #tpu.core_type<tc>, window_params = [{pipeline_mode = #tpu.pipeline_mode<synchronous>, transform_indices = @transform_0, window_bounds = array<i64: 32, 144>}, {pipeline_mode = #tpu.pipeline_mode<synchronous>, transform_indices = @transform_1, window_bounds = array<i64: 32, 1>}, {transform_indices = @transform_2, window_bounds = array<i64: 144, 8>}, {transform_indices = @transform_3, window_bounds = array<i64: 32, 8>}]} {
    %c0 = arith.constant 0 : index
    %c0_0 = arith.constant 0 : index
    %0 = vector.load %arg3[%c0, %c0_0] : memref<144x8xbf16, #tpu.memory_space<vmem>>, vector<144x8xbf16>
    %c0_1 = arith.constant 0 : index
    %c0_2 = arith.constant 0 : index
    %1 = vector.load %arg1[%c0_1, %c0_2] : memref<32x144xbf16, #tpu.memory_space<vmem>>, vector<32x144xbf16>
    %cst = arith.constant dense<0.000000e+00> : vector<32x8xf32>
    %2 = tpu.matmul %1, %0, %cst {dimension_numbers = #tpu.dot_dimension_numbers<[1], [0], [0], [1], [0, 0, 1, 1], [], []>} : vector<32x144xbf16>, vector<144x8xbf16>, vector<32x8xf32> -> vector<32x8xf32>
    %c0_3 = arith.constant 0 : index
    %c0_4 = arith.constant 0 : index
    %3 = vector.load %arg2[%c0_3, %c0_4] : memref<32x1xf32, #tpu.memory_space<vmem>>, vector<32x1xf32>
    %4 = vector.broadcast %3 : vector<32x1xf32> to vector<32x8xf32>
    %5 = arith.addf %2, %4 : vector<32x8xf32>
    %6 = arith.negf %5 : vector<32x8xf32>
    %7 = math.exp %6 : vector<32x8xf32>
    %cst_5 = arith.constant 1.000000e+00 : f32
    %8 = vector.broadcast %cst_5 : f32 to vector<32x8xf32>
    %9 = arith.addf %8, %7 : vector<32x8xf32>
    %10 = arith.divf %8, %9 : vector<32x8xf32>
    %11 = arith.mulf %5, %10 : vector<32x8xf32>
    %c0_6 = arith.constant 0 : index
    %c0_7 = arith.constant 0 : index
    %12 = vector.load %arg4[%c0_6, %c0_7] : memref<32x8xf32, #tpu.memory_space<vmem>>, vector<32x8xf32>
    tpu.vector_store %arg4[%c0_6, %c0_7], %11 {strides = array<i32>} : memref<32x8xf32, #tpu.memory_space<vmem>>, vector<32x8xf32>,
    return
  }
  func.func @transform_0(%arg0: i32) -> (i32, i32) {
    %c0_i32 = arith.constant 0 : i32
    %c0_i32_0 = arith.constant 0 : i32
    %c0_i32_1 = arith.constant 0 : i32
    return %c0_i32, %c0_i32_0 : i32, i32
  }
  func.func @transform_1(%arg0: i32) -> (i32, i32) {
    %c0_i32 = arith.constant 0 : i32
    %c0_i32_0 = arith.constant 0 : i32
    %c0_i32_1 = arith.constant 0 : i32
    return %c0_i32, %c0_i32_0 : i32, i32
  }
  func.func @transform_2(%arg0: i32) -> (i32, i32) {
    %c0_i32 = arith.constant 0 : i32
    %c0_i32_0 = arith.constant 0 : i32
    return %c0_i32, %arg0 : i32, i32
  }
  func.func @transform_3(%arg0: i32) -> (i32, i32) {
    %c0_i32 = arith.constant 0 : i32
    %c0_i32_0 = arith.constant 0 : i32
    return %c0_i32, %arg0 : i32, i32
  }
}

module attributes {stable_mosaic.version = 11 : i64} {
  func.func @_gemm_kernel(%arg0: i32, %arg1: memref<16x32xbf16, #tpu.memory_space<vmem>>, %arg2: memref<16x1xf32, #tpu.memory_space<vmem>>, %arg3: memref<32x8xf32, #tpu.memory_space<vmem>>, %arg4: memref<16x8xf32, #tpu.memory_space<vmem>>) attributes {dimension_semantics = [#tpu.dimension_semantics<parallel>], iteration_bounds = array<i64: 1>, scalar_prefetch = 0 : i64, scratch_operands = 0 : i64, tpu.core_type = #tpu.core_type<tc>, window_params = [{pipeline_mode = #tpu.pipeline_mode<synchronous>, transform_indices = @transform_0, window_bounds = array<i64: 16, 32>}, {pipeline_mode = #tpu.pipeline_mode<synchronous>, transform_indices = @transform_1, window_bounds = array<i64: 16, 1>}, {transform_indices = @transform_2, window_bounds = array<i64: 32, 8>}, {transform_indices = @transform_3, window_bounds = array<i64: 16, 8>}]} {
    %c0 = arith.constant 0 : index
    %c0_0 = arith.constant 0 : index
    %0 = vector.load %arg3[%c0, %c0_0] : memref<32x8xf32, #tpu.memory_space<vmem>>, vector<32x8xf32>
    %1 = arith.truncf %0 : vector<32x8xf32> to vector<32x8xbf16>
    %c0_1 = arith.constant 0 : index
    %c0_2 = arith.constant 0 : index
    %2 = vector.load %arg1[%c0_1, %c0_2] : memref<16x32xbf16, #tpu.memory_space<vmem>>, vector<16x32xbf16>
    %cst = arith.constant dense<0.000000e+00> : vector<16x8xf32>
    %3 = tpu.matmul %2, %1, %cst {dimension_numbers = #tpu.dot_dimension_numbers<[1], [0], [0], [1], [0, 0, 1, 1], [], []>} : vector<16x32xbf16>, vector<32x8xbf16>, vector<16x8xf32> -> vector<16x8xf32>
    %c0_3 = arith.constant 0 : index
    %c0_4 = arith.constant 0 : index
    %4 = vector.load %arg2[%c0_3, %c0_4] : memref<16x1xf32, #tpu.memory_space<vmem>>, vector<16x1xf32>
    %5 = vector.broadcast %4 : vector<16x1xf32> to vector<16x8xf32>
    %6 = arith.addf %3, %5 : vector<16x8xf32>
    %7 = arith.negf %6 : vector<16x8xf32>
    %8 = math.exp %7 : vector<16x8xf32>
    %cst_5 = arith.constant 1.000000e+00 : f32
    %9 = vector.broadcast %cst_5 : f32 to vector<16x8xf32>
    %10 = arith.addf %9, %8 : vector<16x8xf32>
    %11 = arith.divf %9, %10 : vector<16x8xf32>
    %12 = arith.mulf %6, %11 : vector<16x8xf32>
    %c0_6 = arith.constant 0 : index
    %c0_7 = arith.constant 0 : index
    %13 = vector.load %arg4[%c0_6, %c0_7] : memref<16x8xf32, #tpu.memory_space<vmem>>, vector<16x8xf32>
    tpu.vector_store %arg4[%c0_6, %c0_7], %12 {strides = array<i32>} : memref<16x8xf32, #tpu.memory_space<vmem>>, vector<16x8xf32>,
    return
  }
  func.func @transform_0(%arg0: i32) -> (i32, i32) {
    %c0_i32 = arith.constant 0 : i32
    %c0_i32_0 = arith.constant 0 : i32
    %c0_i32_1 = arith.constant 0 : i32
    return %c0_i32, %c0_i32_0 : i32, i32
  }
  func.func @transform_1(%arg0: i32) -> (i32, i32) {
    %c0_i32 = arith.constant 0 : i32
    %c0_i32_0 = arith.constant 0 : i32
    %c0_i32_1 = arith.constant 0 : i32
    return %c0_i32, %c0_i32_0 : i32, i32
  }
  func.func @transform_2(%arg0: i32) -> (i32, i32) {
    %c0_i32 = arith.constant 0 : i32
    %c0_i32_0 = arith.constant 0 : i32
    return %c0_i32, %arg0 : i32, i32
  }
  func.func @transform_3(%arg0: i32) -> (i32, i32) {
    %c0_i32 = arith.constant 0 : i32
    %c0_i32_0 = arith.constant 0 : i32
    return %c0_i32, %arg0 : i32, i32
  }
}

module attributes {stable_mosaic.version = 11 : i64} {
  func.func @_sppf_pool_kernel(%arg0: memref<32x14x14xf32, #tpu.memory_space<vmem>>, %arg1: memref<4x32x2x2xf32, #tpu.memory_space<vmem>>) attributes {dimension_semantics = [], scalar_prefetch = 0 : i64, scratch_operands = 0 : i64, tpu.core_type = #tpu.core_type<tc>} {
    %c0 = arith.constant 0 : index
    %c0_0 = arith.constant 0 : index
    %c0_1 = arith.constant 0 : index
    %0 = vector.load %arg0[%c0, %c0_0, %c0_1] : memref<32x14x14xf32, #tpu.memory_space<vmem>>, vector<32x14x14xf32>
    %1 = vector.extract_strided_slice %0 {offsets = [0, 6, 6], sizes = [32, 2, 2], strides = [1, 1, 1]} : vector<32x14x14xf32> to vector<32x2x2xf32>
    %c0_2 = arith.constant 0 : index
    %c0_3 = arith.constant 0 : index
    %c0_4 = arith.constant 0 : index
    %c0_5 = arith.constant 0 : index
    %2 = vector.load %arg1[%c0_2, %c0_3, %c0_4, %c0_5] : memref<4x32x2x2xf32, #tpu.memory_space<vmem>>, vector<1x32x2x2xf32>
    %3 = vector.shape_cast %2 : vector<1x32x2x2xf32> to vector<32x2x2xf32>
    %4 = vector.shape_cast %1 : vector<32x2x2xf32> to vector<1x32x2x2xf32>
    tpu.vector_store %arg1[%c0_2, %c0_3, %c0_4, %c0_5], %4 {strides = array<i32>} : memref<4x32x2x2xf32, #tpu.memory_space<vmem>>, vector<1x32x2x2xf32>,
    %5 = vector.extract_strided_slice %0 {offsets = [0, 0, 0], sizes = [32, 10, 14], strides = [1, 1, 1]} : vector<32x14x14xf32> to vector<32x10x14xf32>
    %6 = vector.extract_strided_slice %0 {offsets = [0, 1, 0], sizes = [32, 10, 14], strides = [1, 1, 1]} : vector<32x14x14xf32> to vector<32x10x14xf32>
    %7 = arith.maximumf %5, %6 : vector<32x10x14xf32>
    %8 = vector.extract_strided_slice %0 {offsets = [0, 2, 0], sizes = [32, 10, 14], strides = [1, 1, 1]} : vector<32x14x14xf32> to vector<32x10x14xf32>
    %9 = arith.maximumf %7, %8 : vector<32x10x14xf32>
    %10 = vector.extract_strided_slice %0 {offsets = [0, 3, 0], sizes = [32, 10, 14], strides = [1, 1, 1]} : vector<32x14x14xf32> to vector<32x10x14xf32>
    %11 = arith.maximumf %9, %10 : vector<32x10x14xf32>
    %12 = vector.extract_strided_slice %0 {offsets = [0, 4, 0], sizes = [32, 10, 14], strides = [1, 1, 1]} : vector<32x14x14xf32> to vector<32x10x14xf32>
    %13 = arith.maximumf %11, %12 : vector<32x10x14xf32>
    %14 = vector.extract_strided_slice %13 {offsets = [0, 4, 0], sizes = [32, 2, 14], strides = [1, 1, 1]} : vector<32x10x14xf32> to vector<32x2x14xf32>
    %15 = vector.extract_strided_slice %13 {offsets = [0, 2, 0], sizes = [32, 2, 14], strides = [1, 1, 1]} : vector<32x10x14xf32> to vector<32x2x14xf32>
    %16 = vector.extract_strided_slice %13 {offsets = [0, 6, 0], sizes = [32, 2, 14], strides = [1, 1, 1]} : vector<32x10x14xf32> to vector<32x2x14xf32>
    %17 = arith.maximumf %15, %16 : vector<32x2x14xf32>
    %18 = vector.extract_strided_slice %13 {offsets = [0, 0, 0], sizes = [32, 2, 14], strides = [1, 1, 1]} : vector<32x10x14xf32> to vector<32x2x14xf32>
    %19 = vector.extract_strided_slice %13 {offsets = [0, 4, 0], sizes = [32, 2, 14], strides = [1, 1, 1]} : vector<32x10x14xf32> to vector<32x2x14xf32>
    %20 = arith.maximumf %18, %19 : vector<32x2x14xf32>
    %21 = vector.extract_strided_slice %13 {offsets = [0, 8, 0], sizes = [32, 2, 14], strides = [1, 1, 1]} : vector<32x10x14xf32> to vector<32x2x14xf32>
    %22 = arith.maximumf %20, %21 : vector<32x2x14xf32>
    %23 = vector.extract_strided_slice %14 {offsets = [0, 0, 0], sizes = [32, 2, 10], strides = [1, 1, 1]} : vector<32x2x14xf32> to vector<32x2x10xf32>
    %24 = vector.extract_strided_slice %14 {offsets = [0, 0, 1], sizes = [32, 2, 10], strides = [1, 1, 1]} : vector<32x2x14xf32> to vector<32x2x10xf32>
    %25 = arith.maximumf %23, %24 : vector<32x2x10xf32>
    %26 = vector.extract_strided_slice %14 {offsets = [0, 0, 2], sizes = [32, 2, 10], strides = [1, 1, 1]} : vector<32x2x14xf32> to vector<32x2x10xf32>
    %27 = arith.maximumf %25, %26 : vector<32x2x10xf32>
    %28 = vector.extract_strided_slice %14 {offsets = [0, 0, 3], sizes = [32, 2, 10], strides = [1, 1, 1]} : vector<32x2x14xf32> to vector<32x2x10xf32>
    %29 = arith.maximumf %27, %28 : vector<32x2x10xf32>
    %30 = vector.extract_strided_slice %14 {offsets = [0, 0, 4], sizes = [32, 2, 10], strides = [1, 1, 1]} : vector<32x2x14xf32> to vector<32x2x10xf32>
    %31 = arith.maximumf %29, %30 : vector<32x2x10xf32>
    %32 = vector.extract_strided_slice %31 {offsets = [0, 0, 4], sizes = [32, 2, 2], strides = [1, 1, 1]} : vector<32x2x10xf32> to vector<32x2x2xf32>
    %c1 = arith.constant 1 : index
    %c0_6 = arith.constant 0 : index
    %c0_7 = arith.constant 0 : index
    %c0_8 = arith.constant 0 : index
    %33 = vector.load %arg1[%c1, %c0_6, %c0_7, %c0_8] : memref<4x32x2x2xf32, #tpu.memory_space<vmem>>, vector<1x32x2x2xf32>
    %34 = vector.shape_cast %33 : vector<1x32x2x2xf32> to vector<32x2x2xf32>
    %35 = vector.shape_cast %32 : vector<32x2x2xf32> to vector<1x32x2x2xf32>
    tpu.vector_store %arg1[%c1, %c0_6, %c0_7, %c0_8], %35 {strides = array<i32>} : memref<4x32x2x2xf32, #tpu.memory_space<vmem>>, vector<1x32x2x2xf32>,
    %36 = vector.extract_strided_slice %17 {offsets = [0, 0, 0], sizes = [32, 2, 10], strides = [1, 1, 1]} : vector<32x2x14xf32> to vector<32x2x10xf32>
    %37 = vector.extract_strided_slice %17 {offsets = [0, 0, 1], sizes = [32, 2, 10], strides = [1, 1, 1]} : vector<32x2x14xf32> to vector<32x2x10xf32>
    %38 = arith.maximumf %36, %37 : vector<32x2x10xf32>
    %39 = vector.extract_strided_slice %17 {offsets = [0, 0, 2], sizes = [32, 2, 10], strides = [1, 1, 1]} : vector<32x2x14xf32> to vector<32x2x10xf32>
    %40 = arith.maximumf %38, %39 : vector<32x2x10xf32>
    %41 = vector.extract_strided_slice %17 {offsets = [0, 0, 3], sizes = [32, 2, 10], strides = [1, 1, 1]} : vector<32x2x14xf32> to vector<32x2x10xf32>
    %42 = arith.maximumf %40, %41 : vector<32x2x10xf32>
    %43 = vector.extract_strided_slice %17 {offsets = [0, 0, 4], sizes = [32, 2, 10], strides = [1, 1, 1]} : vector<32x2x14xf32> to vector<32x2x10xf32>
    %44 = arith.maximumf %42, %43 : vector<32x2x10xf32>
    %45 = vector.extract_strided_slice %44 {offsets = [0, 0, 2], sizes = [32, 2, 2], strides = [1, 1, 1]} : vector<32x2x10xf32> to vector<32x2x2xf32>
    %46 = vector.extract_strided_slice %44 {offsets = [0, 0, 6], sizes = [32, 2, 2], strides = [1, 1, 1]} : vector<32x2x10xf32> to vector<32x2x2xf32>
    %47 = arith.maximumf %45, %46 : vector<32x2x2xf32>
    %c2 = arith.constant 2 : index
    %c0_9 = arith.constant 0 : index
    %c0_10 = arith.constant 0 : index
    %c0_11 = arith.constant 0 : index
    %48 = vector.load %arg1[%c2, %c0_9, %c0_10, %c0_11] : memref<4x32x2x2xf32, #tpu.memory_space<vmem>>, vector<1x32x2x2xf32>
    %49 = vector.shape_cast %48 : vector<1x32x2x2xf32> to vector<32x2x2xf32>
    %50 = vector.shape_cast %47 : vector<32x2x2xf32> to vector<1x32x2x2xf32>
    tpu.vector_store %arg1[%c2, %c0_9, %c0_10, %c0_11], %50 {strides = array<i32>} : memref<4x32x2x2xf32, #tpu.memory_space<vmem>>, vector<1x32x2x2xf32>,
    %51 = vector.extract_strided_slice %22 {offsets = [0, 0, 0], sizes = [32, 2, 10], strides = [1, 1, 1]} : vector<32x2x14xf32> to vector<32x2x10xf32>
    %52 = vector.extract_strided_slice %22 {offsets = [0, 0, 1], sizes = [32, 2, 10], strides = [1, 1, 1]} : vector<32x2x14xf32> to vector<32x2x10xf32>
    %53 = arith.maximumf %51, %52 : vector<32x2x10xf32>
    %54 = vector.extract_strided_slice %22 {offsets = [0, 0, 2], sizes = [32, 2, 10], strides = [1, 1, 1]} : vector<32x2x14xf32> to vector<32x2x10xf32>
    %55 = arith.maximumf %53, %54 : vector<32x2x10xf32>
    %56 = vector.extract_strided_slice %22 {offsets = [0, 0, 3], sizes = [32, 2, 10], strides = [1, 1, 1]} : vector<32x2x14xf32> to vector<32x2x10xf32>
    %57 = arith.maximumf %55, %56 : vector<32x2x10xf32>
    %58 = vector.extract_strided_slice %22 {offsets = [0, 0, 4], sizes = [32, 2, 10], strides = [1, 1, 1]} : vector<32x2x14xf32> to vector<32x2x10xf32>
    %59 = arith.maximumf %57, %58 : vector<32x2x10xf32>
    %60 = vector.extract_strided_slice %59 {offsets = [0, 0, 0], sizes = [32, 2, 2], strides = [1, 1, 1]} : vector<32x2x10xf32> to vector<32x2x2xf32>
    %61 = vector.extract_strided_slice %59 {offsets = [0, 0, 4], sizes = [32, 2, 2], strides = [1, 1, 1]} : vector<32x2x10xf32> to vector<32x2x2xf32>
    %62 = arith.maximumf %60, %61 : vector<32x2x2xf32>
    %63 = vector.extract_strided_slice %59 {offsets = [0, 0, 8], sizes = [32, 2, 2], strides = [1, 1, 1]} : vector<32x2x10xf32> to vector<32x2x2xf32>
    %64 = arith.maximumf %62, %63 : vector<32x2x2xf32>
    %c3 = arith.constant 3 : index
    %c0_12 = arith.constant 0 : index
    %c0_13 = arith.constant 0 : index
    %c0_14 = arith.constant 0 : index
    %65 = vector.load %arg1[%c3, %c0_12, %c0_13, %c0_14] : memref<4x32x2x2xf32, #tpu.memory_space<vmem>>, vector<1x32x2x2xf32>
    %66 = vector.shape_cast %65 : vector<1x32x2x2xf32> to vector<32x2x2xf32>
    %67 = vector.shape_cast %64 : vector<32x2x2xf32> to vector<1x32x2x2xf32>
    tpu.vector_store %arg1[%c3, %c0_12, %c0_13, %c0_14], %67 {strides = array<i32>} : memref<4x32x2x2xf32, #tpu.memory_space<vmem>>, vector<1x32x2x2xf32>,
    return
  }
}

module attributes {stable_mosaic.version = 11 : i64} {
  func.func @_gemm_kernel(%arg0: i32, %arg1: memref<32x64xbf16, #tpu.memory_space<vmem>>, %arg2: memref<32x1xf32, #tpu.memory_space<vmem>>, %arg3: memref<64x8xf32, #tpu.memory_space<vmem>>, %arg4: memref<32x2xf32, #tpu.memory_space<vmem>>, %arg5: memref<32x8xf32, #tpu.memory_space<vmem>>) attributes {dimension_semantics = [#tpu.dimension_semantics<parallel>], iteration_bounds = array<i64: 1>, scalar_prefetch = 0 : i64, scratch_operands = 0 : i64, tpu.core_type = #tpu.core_type<tc>, window_params = [{pipeline_mode = #tpu.pipeline_mode<synchronous>, transform_indices = @transform_0, window_bounds = array<i64: 32, 64>}, {pipeline_mode = #tpu.pipeline_mode<synchronous>, transform_indices = @transform_1, window_bounds = array<i64: 32, 1>}, {transform_indices = @transform_2, window_bounds = array<i64: 64, 8>}, {pipeline_mode = #tpu.pipeline_mode<synchronous>, transform_indices = @transform_3, window_bounds = array<i64: 32, 2>}, {transform_indices = @transform_4, window_bounds = array<i64: 32, 8>}]} {
    %c0 = arith.constant 0 : index
    %c0_0 = arith.constant 0 : index
    %0 = vector.load %arg3[%c0, %c0_0] : memref<64x8xf32, #tpu.memory_space<vmem>>, vector<64x8xf32>
    %1 = arith.truncf %0 : vector<64x8xf32> to vector<64x8xbf16>
    %c0_1 = arith.constant 0 : index
    %c0_2 = arith.constant 0 : index
    %2 = vector.load %arg1[%c0_1, %c0_2] : memref<32x64xbf16, #tpu.memory_space<vmem>>, vector<32x64xbf16>
    %cst = arith.constant dense<0.000000e+00> : vector<32x8xf32>
    %3 = tpu.matmul %2, %1, %cst {dimension_numbers = #tpu.dot_dimension_numbers<[1], [0], [0], [1], [0, 0, 1, 1], [], []>} : vector<32x64xbf16>, vector<64x8xbf16>, vector<32x8xf32> -> vector<32x8xf32>
    %c0_3 = arith.constant 0 : index
    %c0_4 = arith.constant 0 : index
    %4 = vector.load %arg2[%c0_3, %c0_4] : memref<32x1xf32, #tpu.memory_space<vmem>>, vector<32x1xf32>
    %5 = vector.broadcast %4 : vector<32x1xf32> to vector<32x8xf32>
    %6 = arith.addf %3, %5 : vector<32x8xf32>
    %7 = arith.negf %6 : vector<32x8xf32>
    %8 = math.exp %7 : vector<32x8xf32>
    %cst_5 = arith.constant 1.000000e+00 : f32
    %9 = vector.broadcast %cst_5 : f32 to vector<32x8xf32>
    %10 = arith.addf %9, %8 : vector<32x8xf32>
    %11 = arith.divf %9, %10 : vector<32x8xf32>
    %12 = arith.mulf %6, %11 : vector<32x8xf32>
    %c0_6 = arith.constant 0 : index
    %c0_7 = arith.constant 0 : index
    %13 = vector.load %arg4[%c0_6, %c0_7] : memref<32x2xf32, #tpu.memory_space<vmem>>, vector<32x1xf32>
    %14 = vector.broadcast %13 : vector<32x1xf32> to vector<32x8xf32>
    %15 = arith.mulf %12, %14 : vector<32x8xf32>
    %c0_8 = arith.constant 0 : index
    %c1 = arith.constant 1 : index
    %16 = vector.load %arg4[%c0_8, %c1] : memref<32x2xf32, #tpu.memory_space<vmem>>, vector<32x1xf32>
    %17 = vector.broadcast %16 : vector<32x1xf32> to vector<32x8xf32>
    %18 = arith.addf %15, %17 : vector<32x8xf32>
    %c0_9 = arith.constant 0 : index
    %c0_10 = arith.constant 0 : index
    %19 = vector.load %arg5[%c0_9, %c0_10] : memref<32x8xf32, #tpu.memory_space<vmem>>, vector<32x8xf32>
    tpu.vector_store %arg5[%c0_9, %c0_10], %18 {strides = array<i32>} : memref<32x8xf32, #tpu.memory_space<vmem>>, vector<32x8xf32>,
    return
  }
  func.func @transform_0(%arg0: i32) -> (i32, i32) {
    %c0_i32 = arith.constant 0 : i32
    %c0_i32_0 = arith.constant 0 : i32
    %c0_i32_1 = arith.constant 0 : i32
    return %c0_i32, %c0_i32_0 : i32, i32
  }
  func.func @transform_1(%arg0: i32) -> (i32, i32) {
    %c0_i32 = arith.constant 0 : i32
    %c0_i32_0 = arith.constant 0 : i32
    %c0_i32_1 = arith.constant 0 : i32
    return %c0_i32, %c0_i32_0 : i32, i32
  }
  func.func @transform_2(%arg0: i32) -> (i32, i32) {
    %c0_i32 = arith.constant 0 : i32
    %c0_i32_0 = arith.constant 0 : i32
    return %c0_i32, %arg0 : i32, i32
  }
  func.func @transform_3(%arg0: i32) -> (i32, i32) {
    %c0_i32 = arith.constant 0 : i32
    %c0_i32_0 = arith.constant 0 : i32
    %c0_i32_1 = arith.constant 0 : i32
    return %c0_i32, %c0_i32_0 : i32, i32
  }
  func.func @transform_4(%arg0: i32) -> (i32, i32) {
    %c0_i32 = arith.constant 0 : i32
    %c0_i32_0 = arith.constant 0 : i32
    return %c0_i32, %arg0 : i32, i32
  }
}

</mosaic_0001>

<bundles_post_ra>
// kernel: _lambda_.12
= control target key start
LH: loop header
LB: loop body
LE: loop exit
PB: predicated region body
PF: predicated region fallthrough
CT: control target
= control target key end

     0   :  { %s605_s12 = smov 0   ;;  %s607_s13 = smov 0   ;;  %s663_s0 = inlined_call_operand.vmem [shape: bf16[2,27], index: 0, kind: input, shape index: {}]   ;;  %s664_s1 = inlined_call_operand.vmem [shape: f32[2,1], index: 1, kind: input, shape index: {}]   ;;  %s665_s2 = inlined_call_operand.vmem [shape: bf16[27,2048], index: 2, kind: input, shape index: {}]   ;;  %s666_s3 = inlined_call_operand.vmem [shape: f32[2,2048], index: 3, kind: output, shape index: {}]  }
   0x1   :  { %s609_s14 = smov 0  }
   0x2 LB: > { %s474_s15 = sadd.s32 4294967295, %s580_s14   ;;  %s622_s16 = sadd.s32 1, %s580_s14   ;;  %s580_s14 = sphi %s609_s14, %s669_s14   ;;  %s576_s13 = sphi %s607_s13, %s668_s13   ;;  %s572_s12 = sphi %s605_s12, %s667_s12  }
   0x3   : > { %s59_s17 = ssub.s32 %s580_s14, %s622_s16  ;;  %s62_s18 = sadd.s32 1, %s576_s13 }
   0x4   : > { %p60_p0 = scmp.eq.s32.totalorder %s59_s17, 0  ;;  %p69_p1 = scmp.ne.s32.totalorder %s576_s13, %s572_s12 }
   0x5   : > { %p70_p2 = scmp.eq.s32.totalorder %s580_s14, 0  ;;  %p477_p4 = scmp.ge.s32.totalorder %s580_s14, 4 }
   0x6   : > { %s631_s19 = scalar_select %p60_p0, %s576_s13, %s62_s18  }
   0x7   : > { %p71_p3 = por %p70_p2, %p69_p1  ;;  %127 = sbr.rel (%p477_p4) target bundleno = 20 (0x14), region = 24 }
   0xc   : > { %130 = sbr.rel (!%p71_p3) target bundleno = 20 (0x14), region = 28  ;;  %s132_s20 = sand.u32 (%p71_p3), 1, %s576_s13  }
   0xd   : > { %s501_s21 = sshll.u32 (%p71_p3), %s580_s14, 4  ;;  %s478_s22 = sshll.u32 (%p71_p3), %s132_s20, 6 }
   0xe   : > { %s137_s25 = scalar_lea.vmem (%p71_p3), %s665_s2, %s501_s21  ;;  %s134_s26 = scalar_lea.vmem (%p71_p3), [#allocation2], %s478_s22 }
   0xf   : > { %v150_v0 = vld [vmem:[%s137_s25] sm:$0xff] (%p71_p3)  ;;  %v152_v1 = vld [vmem:[%s137_s25 + $0x8] sm:$0xff] (%p71_p3) }
  0x10   : > { %v154_v2 = vld [vmem:[%s137_s25 + $0x40] sm:$0xff] (%p71_p3)  ;;  %151 = vst [vmem:[%s134_s26] sm:$0xff] (%p71_p3), %v150_v0  ;;  %153 = vst [vmem:[%s134_s26 + $0x8] sm:$0xff] (%p71_p3), %v152_v1  ;;  %v156_v3 = vld [vmem:[%s137_s25 + $0x48] sm:$0xff] (%p71_p3) }
  0x11   : > { %155 = vst [vmem:[%s134_s26 + $0x10] sm:$0xff] %v154_v2  ;;  %v158_v4 = vld [vmem:[%s137_s25 + $0x80] sm:$0xff]  ;;  %v160_v5 = vld [vmem:[%s137_s25 + $0x88] sm:$0xff]  ;;  %157 = vst [vmem:[%s134_s26 + $0x18] sm:$0xff] %v156_v3 }
  0x12   : > { %159 = vst [vmem:[%s134_s26 + $0x20] sm:$0xff] %v158_v4  ;;  %161 = vst [vmem:[%s134_s26 + $0x28] sm:$0xff] %v160_v5  ;;  %v162_v6 = vld [vmem:[%s137_s25 + $0xc0] sm:$0xff]  ;;  %v164_v7 = vld [vmem:[%s137_s25 + $0xc8] sm:$0xff] }
  0x13   : > { %163 = vst [vmem:[%s134_s26 + $0x30] sm:$0xff] %v162_v6  ;;  %165 = vst [vmem:[%s134_s26 + $0x38] sm:$0xff] %v164_v7 }
  0x14 PF: > { %p481_p5 = scmp.ge.s32.totalorder %s580_s14, 1  ;;  %p170_p6 = scmp.lt.s32.totalorder %s580_s14, 5 }
  0x16   : > { %p171_p7 = pnand %p481_p5, %p170_p6 }
  0x17   : > { %s177_s27 = sand.u32 (!%p171_p7), 1, %s572_s12   ;;  %s483_s7 = sshll.u32 (!%p171_p7), %s474_s15, 2 }
  0x18   : > { %174 = sbr.rel (%p171_p7) target bundleno = 281 (0x119), region = 51  ;;  %s482_s28 = sshll.u32 (!%p171_p7), %s177_s27, 6 }
  0x19   : > { %s179_s4 = scalar_lea.vmem (!%p171_p7), [#allocation2], %s482_s28  ;;  %p202_p8 = scmp.lt.s32.totalorder (!%p171_p7), %s483_s7, 15 }
  0x1d   : > { %vm263_vm0 = vcmask 1044480   ;;  %vm264_vm1 = vcmask 1045504   ;;  %v582_v8 = vmov 65535   ;;  %v583_v10 = vmov 0   ;;  %v217_v12 = vld [vmem:[%s664_s1] sm:$0x3] }
  0x1e   : > { %v265_v9 = vsel %vm263_vm0, 4294967295, %v582_v8  ;;  %311 = vmatprep.mubr.bf16.mxu0 %v583_v10  ;;  %352 = vmatprep.mubr.bf16.mxu1 %v583_v10  ;;  %v530_v13 = vld [vmem:[%s179_s4 + $0x24] ss:$16 sps:$4 sm:$0x3f]   ;;  %v538_v22 = vld [vmem:[%s179_s4 + $0xc] ss:$16 sps:$4 sm:$0xff]   ;;  %v398_v53 = vlaneseq }
  0x1f   : > { %v266_v11 = vsel %vm264_vm1, %v265_v9, 0  ;;  %529 = vset.pattern.permute.xlu0 %v583_v10  ;;  %v532_v14 = vld [vmem:[%s179_s4 + $0x2c] ss:$16 sps:$4 sm:$0x3f]   ;;  %v536_v19 = vld [vmem:[%s179_s4 + $0x4] ss:$16 sps:$4 sm:$0xff]  }
  0x20   : > { %220 = vperm.xlu0 %529, %v217_v12   ;;  %v271_v15 = vand.u32 %v530_v13, %v266_v11  ;;  %v534_v16 = vld [vmem:[%s179_s4 + $0x20] ss:$16 sps:$4 sm:$0x3f]   ;;  %v535_v17 = vld [vmem:[%s179_s4 + $0x28] ss:$16 sps:$4 sm:$0x3f]   ;;  %v277_v18 = vand.u32 %v532_v14, %v266_v11 }
  0x21   : > { %v268_v20 = vand.u32 %v534_v16, %v266_v11  ;;  %v274_v21 = vand.u32 %v535_v17, %v266_v11  ;;  %v540_v23 = vld [vmem:[%s179_s4] ss:$16 sps:$4 sm:$0xff]   ;;  %v541_v24 = vld [vmem:[%s179_s4 + $0x8] ss:$16 sps:$4 sm:$0xff]   ;;  %vm259_vm2 = vcmask 220160   ;;  %v399_v55 = vshrl.u32 %v398_v53, 7 }
  0x22   : > { %291 = vmatprep.subr.bf16.mxu0 %v271_v15  ;;  %332 = vmatprep.subr.bf16.mxu1 %v277_v18  ;;  %v216_v25 = vld [vmem:[%s663_s0] sm:$0x1]  ;;  %v584_v51 = vmov 1983009808   ;;  %s671_s7 = smov (!%p202_p8, %s483_s7), 15 }
  0x23   : > { %292 = vmatpush1.bf16.msra.mxu0 %v268_v20  ;;  %333 = vmatpush1.bf16.msra.mxu1 %v274_v21  ;;  %v396_v52 = vunpack.c.l.s4 %v584_v51  ;;  %s484_s8 = sshll.u32 %s671_s7, 1 }
  0x24   : > { %293 = vmatprep.subr.bf16.mxu0 %v536_v19  ;;  %334 = vmatprep.subr.bf16.mxu1 %v538_v22  ;;  %s205_s11 = scalar_lea.vmem %s666_s3, %s484_s8 }
  0x25   : > { %v397_v54 = vunpack.c.0.s8 %v396_v52 }
  0x27   : > { %294 = vmatpush1.bf16.msra.mxu0 %v540_v23  ;;  %335 = vmatpush1.bf16.msra.mxu1 %v541_v24  ;;  %v400_v62 = vsub.s32 %v397_v54, %v399_v55 }
  0x2a   : > { %493 = vmatmul.mubr.msk.bf16.vlgmr.msra.gmra.mxu0 %vm259_vm2, %v216_v25  ;;  %494 = vmatmul.mubr.msk.bf16.vlgmr.msra.gmra.mxu1 %vm259_vm2, %v216_v25 }
  0x9b   : > { %v221_v26 = vpop.permute.xlu0 %220 }
  0xea   : > { %v313_v27 = vpop.f32.mrf.mxu0  ;;  %v354_v28 = vpop.f32.mrf.mxu1 }
  0xeb   : > { %v314_v29 = vadd.f32 %v313_v27, %v221_v26  ;;  %v355_v30 = vadd.f32 %v354_v28, %v221_v26 }
  0xec   : > { %v315_v31 = vpop.f32.mrf.mxu0  ;;  %v356_v32 = vpop.f32.mrf.mxu1 }
  0xed   : > { %v495_v33 = vmul.f32 -1.442695, %v314_v29  ;;  %v497_v34 = vmul.f32 -1.442695, %v355_v30  ;;  %v316_v35 = vadd.f32 %v315_v31, %v221_v26  ;;  %v357_v36 = vadd.f32 %v356_v32, %v221_v26 }
  0xee   : > { %v317_v37 = vpop.f32.mrf.mxu0  ;;  %v358_v38 = vpop.f32.mrf.mxu1 }
  0xef   : > { %542 = vpow2.f32 %v495_v33  ;;  %v496_v39 = vmul.f32 -1.442695, %v316_v35  ;;  %v498_v40 = vmul.f32 -1.442695, %v357_v36 }
  0xf0   : > { %544 = vpow2.f32 %v497_v34  ;;  %v318_v41 = vpop.f32.mrf.mxu0  ;;  %v359_v42 = vpop.f32.mrf.mxu1 }
  0xf1   : > { %546 = vpow2.f32 %v496_v39 }
  0xf2   : > { %548 = vpow2.f32 %v498_v40 }
  0xfc   : > { %v543_v43 = vpop.eup %542 }
  0xfd   : > { %v545_v44 = vpop.eup %544  ;;  %v373_v45 = vadd.f32 1.0, %v543_v43 }
  0xfe   : > { %v547_v46 = vpop.eup %546  ;;  %v375_v47 = vadd.f32 1.0, %v545_v44 }
  0xff   : > { %v549_v48 = vpop.eup %548  ;;  %550 = vrcp.f32 %v373_v45  ;;  %v374_v49 = vadd.f32 1.0, %v547_v46 }
 0x100   : > { %552 = vrcp.f32 %v375_v47  ;;  %v376_v50 = vadd.f32 1.0, %v549_v48 }
 0x101   : > { %554 = vrcp.f32 %v374_v49 }
 0x102   : > { %556 = vrcp.f32 %v376_v50 }
 0x10c   : > { %v551_v56 = vpop.eup %550 }
 0x10d   : > { %v553_v57 = vpop.eup %552  ;;  %v385_v60 = vmul.f32 %v551_v56, %v314_v29 }
 0x10e   : > { %v555_v58 = vpop.eup %554  ;;  %v387_v63 = vmul.f32 %v553_v57, %v355_v30 }
 0x10f   : > { %v557_v59 = vpop.eup %556  ;;  %v386_v61 = vmul.f32 %v555_v58, %v316_v35 }
 0x110   : > { %v388_v0 = vmul.f32 %v557_v59, %v357_v36 }
 0x111   : > { %v393_v1 = vcombine.low %v385_v60, %v386_v61 }
 0x112   : > { %v394_v2 = vcombine.low %v387_v63, %v388_v0 }
 0x113   : > { %v401_v3 = vrot.slane %v393_v1, %v400_v62 }
 0x114   : > { %v408_v4 = vrot.slane %v394_v2, %v400_v62 }
 0x116   : > { %v409_v5 = vcombine.low %v401_v3, %v408_v4 }
 0x118   : > { %411 = vst [vmem:[%s205_s11] sm:$0xff] %v409_v5 }
 0x119 PF: > { %p10_p9 = scmp.ge.s32.totalorder %s622_s16, 6   ;;  %s667_s12 = smov %s576_s13 }
 0x11a   : > { %s668_s13 = smov %s631_s19  ;;  %s669_s14 = smov %s622_s16 }
 0x11b   :  { %12 = sbr.rel (!%p10_p9) target bundleno = 2 (0x2), region = 90 }

// kernel: _lambda_.13
= control target key start
LH: loop header
LB: loop body
LE: loop exit
PB: predicated region body
PF: predicated region fallthrough
CT: control target
= control target key end

     0   :  { %vm62_vm0 = vcmask 1040384   ;;  %v243_v2 = vmov 0   ;;  %vm58_vm1 = vcmask 146432   ;;  %s298_s2 = inlined_call_operand.vmem [shape: bf16[18,512], index: 2, kind: input, shape index: {}]   ;;  %s299_s1 = inlined_call_operand.vmem [shape: f32[4,1], index: 1, kind: input, shape index: {}]   ;;  %s300_s0 = inlined_call_operand.vmem [shape: bf16[4,18], index: 0, kind: input, shape index: {}]   ;;  %s301_s3 = inlined_call_operand.vmem [shape: f32[4,512], index: 3, kind: output, shape index: {}]  }
   0x1   :  { %v19_v0 = vld [vmem:[%s298_s2 + $0x20] sm:$0x11]  ;;  %v20_v1 = vld [vmem:[%s298_s2 + $0x28] sm:$0x11]  ;;  %107 = vmatprep.mubr.bf16.mxu0 %v243_v2  ;;  %148 = vmatprep.mubr.bf16.mxu1 %v243_v2 }
   0x2   :  { %v204_v3 = vcombine.high %v19_v0, %v19_v0  ;;  %v206_v4 = vcombine.high %v20_v1, %v20_v1  ;;  %v203_v5 = vcombine.low %v19_v0, %v19_v0  ;;  %v205_v6 = vcombine.low %v20_v1, %v20_v1  ;;  %v221_v7 = vld [vmem:[%s298_s2 + $0x4] ss:$16 sps:$4 sm:$0xff]   ;;  %216 = vset.pattern.permute.xlu0 %v243_v2  ;;  %v223_v8 = vld [vmem:[%s298_s2 + $0xc] ss:$16 sps:$4 sm:$0xff]   ;;  %v225_v11 = vld [vmem:[%s298_s2] ss:$16 sps:$4 sm:$0xff]  }
   0x3   :  { %v226_v12 = vld [vmem:[%s298_s2 + $0x8] ss:$16 sps:$4 sm:$0xff]   ;;  %v22_v13 = vld [vmem:[%s299_s1] sm:$0xf] }
   0x4   :  { %207 = vmatprep.subr.msk.bf16.mxu0 %vm62_vm0, %v204_v3  ;;  %209 = vmatprep.subr.msk.bf16.mxu1 %vm62_vm0, %v206_v4  ;;  %v64_v9 = vsel %vm62_vm0, %v203_v5, 0  ;;  %v70_v10 = vsel %vm62_vm0, %v205_v6, 0  ;;  %v21_v14 = vld [vmem:[%s300_s0] sm:$0x3] }
   0x5   :  { %88 = vmatpush1.bf16.msra.mxu0 %v64_v9  ;;  %129 = vmatpush1.bf16.msra.mxu1 %v70_v10 }
   0x6   :  { %89 = vmatprep.subr.bf16.mxu0 %v221_v7  ;;  %130 = vmatprep.subr.bf16.mxu1 %v223_v8 }
   0x7   :  { %25 = vperm.xlu0 %216, %v22_v13  }
   0x9   :  { %90 = vmatpush1.bf16.msra.mxu0 %v225_v11  ;;  %131 = vmatpush1.bf16.msra.mxu1 %v226_v12 }
   0xc   :  { %208 = vmatmul.mubr.msk.bf16.vlgmr.msra.gmra.mxu0 %vm58_vm1, %v21_v14  ;;  %210 = vmatmul.mubr.msk.bf16.vlgmr.msra.gmra.mxu1 %vm58_vm1, %v21_v14 }
  0x82   :  { %v26_v15 = vpop.permute.xlu0 %25 }
  0xcc   :  { %v109_v16 = vpop.f32.mrf.mxu0  ;;  %v150_v17 = vpop.f32.mrf.mxu1 }
  0xcd   :  { %v110_v18 = vadd.f32 %v109_v16, %v26_v15  ;;  %v151_v19 = vadd.f32 %v150_v17, %v26_v15 }
  0xce   :  { %v111_v20 = vpop.f32.mrf.mxu0  ;;  %v152_v21 = vpop.f32.mrf.mxu1 }
  0xcf   :  { %v211_v22 = vmul.f32 -1.442695, %v110_v18  ;;  %v213_v23 = vmul.f32 -1.442695, %v151_v19  ;;  %v112_v24 = vadd.f32 %v111_v20, %v26_v15  ;;  %v153_v25 = vadd.f32 %v152_v21, %v26_v15 }
  0xd0   :  { %v113_v26 = vpop.f32.mrf.mxu0  ;;  %v154_v27 = vpop.f32.mrf.mxu1 }
  0xd1   :  { %227 = vpow2.f32 %v211_v22  ;;  %v212_v28 = vmul.f32 -1.442695, %v112_v24  ;;  %v214_v29 = vmul.f32 -1.442695, %v153_v25 }
  0xd2   :  { %229 = vpow2.f32 %v213_v23  ;;  %v114_v30 = vpop.f32.mrf.mxu0  ;;  %v155_v31 = vpop.f32.mrf.mxu1 }
  0xd3   :  { %231 = vpow2.f32 %v212_v28 }
  0xd4   :  { %233 = vpow2.f32 %v214_v29 }
  0xde   :  { %v228_v32 = vpop.eup %227 }
  0xdf   :  { %v230_v33 = vpop.eup %229  ;;  %v169_v34 = vadd.f32 1.0, %v228_v32 }
  0xe0   :  { %v232_v35 = vpop.eup %231  ;;  %v171_v36 = vadd.f32 1.0, %v230_v33 }
  0xe1   :  { %v234_v37 = vpop.eup %233  ;;  %235 = vrcp.f32 %v169_v34  ;;  %v170_v38 = vadd.f32 1.0, %v232_v35 }
  0xe2   :  { %237 = vrcp.f32 %v171_v36  ;;  %v172_v39 = vadd.f32 1.0, %v234_v37 }
  0xe3   :  { %239 = vrcp.f32 %v170_v38 }
  0xe4   :  { %241 = vrcp.f32 %v172_v39 }
  0xee   :  { %v236_v40 = vpop.eup %235 }
  0xef   :  { %v238_v41 = vpop.eup %237  ;;  %v181_v44 = vmul.f32 %v236_v40, %v110_v18 }
  0xf0   :  { %v240_v42 = vpop.eup %239  ;;  %v183_v46 = vmul.f32 %v238_v41, %v151_v19 }
  0xf1   :  { %v242_v43 = vpop.eup %241  ;;  %v182_v45 = vmul.f32 %v240_v42, %v112_v24 }
  0xf2   :  { %v184_v47 = vmul.f32 %v242_v43, %v153_v25 }
  0xf3   :  { %v189_v48 = vcombine.low %v181_v44, %v182_v45 }
  0xf4   :  { %v190_v49 = vcombine.low %v183_v46, %v184_v47 }
  0xf5   :  { %193 = vst [vmem:[%s301_s3] sm:$0xff] %v189_v48 }
  0xf6   :  { %194 = vst [vmem:[%s301_s3 + $0x8] sm:$0xff] %v190_v49 }

// kernel: _lambda_.14
= control target key start
LH: loop header
LB: loop body
LE: loop exit
PB: predicated region body
PF: predicated region fallthrough
CT: control target
= control target key end

     0   :  { %vm62_vm0 = vcmask 1041408   ;;  %v1066_v2 = vmov 0   ;;  %vm58_vm1 = vcmask 31744   ;;  %vm324_vm2 = vcmask 1040384   ;;  %s1293_s0 = inlined_call_operand.vmem [shape: f32[4,512], index: 0, kind: input, shape index: {}]   ;;  %s1294_s2 = inlined_call_operand.vmem [shape: f32[2,1], index: 2, kind: input, shape index: {}]   ;;  %s1295_s4 = inlined_call_operand.vmem [shape: f32[2,1], index: 4, kind: input, shape index: {}]   ;;  %s1296_s6 = inlined_call_operand.vmem [shape: f32[2,1], index: 6, kind: input, shape index: {}]   ;;  %s1297_s1 = inlined_call_operand.vmem [shape: bf16[2,4], index: 1, kind: input, shape index: {}]   ;;  %s1298_s10 = inlined_call_operand.vmem [shape: f32[4,1], index: 10, kind: input, shape index: {}]   ;;  %s1299_s3 = inlined_call_operand.vmem [shape: bf16[2,4], index: 3, kind: input, shape index: {}]   ;;  %s1300_s5 = inlined_call_operand.vmem [shape: bf16[2,2], index: 5, kind: input, shape index: {}]   ;;  %s1301_s8 = inlined_call_operand.vmem [shape: f32[2,1], index: 8, kind: input, shape index: {}]   ;;  %s1302_s7 = inlined_call_operand.vmem [shape: bf16[2,2], index: 7, kind: input, shape index: {}]   ;;  %s1303_s9 = inlined_call_operand.vmem [shape: bf16[3,4,2], index: 9, kind: input, shape index: {}]   ;;  %s1304_s11 = inlined_call_operand.vmem [shape: f32[4,512], index: 11, kind: output, shape index: {}]  }
   0x1   :  { %v39_v0 = vld [vmem:[%s1293_s0] sm:$0xff]  ;;  %v40_v1 = vld [vmem:[%s1293_s0 + $0x8] sm:$0xff]  ;;  %107 = vmatprep.mubr.bf16.mxu0 %v1066_v2  ;;  %148 = vmatprep.mubr.bf16.mxu1 %v1066_v2  ;;  %vm320_vm3 = vcmask 15360  }
   0x2   :  { %v43_v3 = vcombine.high %v39_v0, %v39_v0  ;;  %v44_v4 = vcombine.high %v40_v1, %v40_v1  ;;  %v47_v5 = vpack.c.bf16 %v39_v0, %v39_v0  ;;  %v49_v6 = vpack.c.bf16 %v40_v1, %v40_v1  ;;  %983 = vset.pattern.permute.xlu1 %v1066_v2  ;;  %v52_v7 = vld [vmem:[%s1294_s2] sm:$0x3] }
   0x3   :  { %v186_v8 = vld [vmem:[%s1295_s4] sm:$0x3]  ;;  %55 = vperm.xlu1 %983, %v52_v7   ;;  %982 = vset.pattern.permute.xlu0 %v1066_v2 }
   0x4   :  { %v48_v9 = vpack.c.bf16 %v43_v3, %v43_v3  ;;  %v50_v10 = vpack.c.bf16 %v44_v4, %v44_v4  ;;  %v64_v11 = vsel %vm62_vm0, %v47_v5, 0  ;;  %v70_v12 = vsel %vm62_vm0, %v49_v6, 0  ;;  %189 = vperm.xlu0 %982, %v186_v8   ;;  %v314_v13 = vld [vmem:[%s1296_s6] sm:$0x3] }
   0x5   :  { %v51_v14 = vld [vmem:[%s1297_s1] sm:$0x1] }
   0x6   :  { %931 = vmatprep.subr.msk.bf16.mxu0 %vm62_vm0, %v48_v9  ;;  %933 = vmatprep.subr.msk.bf16.mxu1 %vm62_vm0, %v50_v10  ;;  %v879_v15 = vld [vmem:[%s1298_s10] sm:$0xf] }
   0x7   :  { %90 = vmatpush1.bf16.msra.mxu0 %v64_v11  ;;  %131 = vmatpush1.bf16.msra.mxu1 %v70_v12  ;;  %v185_v16 = vld [vmem:[%s1299_s3] sm:$0x1] }
   0x8   :  { %939 = vmatprep.subr.msk.bf16.mxu0 %vm62_vm0, %v48_v9  ;;  %941 = vmatprep.subr.msk.bf16.mxu1 %vm62_vm0, %v50_v10  ;;  %v313_v0 = vld [vmem:[%s1300_s5] sm:$0x1] }
   0x9   :  { %317 = vperm.xlu0 %982, %v314_v13   ;;  %v452_v1 = vld [vmem:[%s1301_s8] sm:$0x3] }
   0xa   :  { %932 = vmatmul.mubr.msk.bf16.vlgmr.msra.gmra.mxu0 %vm58_vm1, %v51_v14  ;;  %934 = vmatmul.mubr.msk.bf16.vlgmr.msra.gmra.mxu1 %vm58_vm1, %v51_v14 }
   0xb   :  { %210 = vmatpush1.bf16.msra.mxu0 %v64_v11  ;;  %251 = vmatpush1.bf16.msra.mxu1 %v70_v12 }
   0xc   :  { %227 = vmatprep.mubr.bf16.mxu0 %v1066_v2  ;;  %268 = vmatprep.mubr.bf16.mxu1 %v1066_v2 }
   0xd   :  { %882 = vperm.xlu0 %982, %v879_v15   ;;  %455 = vperm.xlu1 %983, %v452_v1  }
  0x12   :  { %940 = vmatmul.mubr.msk.bf16.vlgmr.msra.gmra.mxu0 %vm58_vm1, %v185_v16  ;;  %942 = vmatmul.mubr.msk.bf16.vlgmr.msra.gmra.mxu1 %vm58_vm1, %v185_v16 }
  0x13   :  { %369 = vmatprep.mubr.bf16.mxu0 %v1066_v2  ;;  %410 = vmatprep.mubr.bf16.mxu1 %v1066_v2 }
  0x7e   :  { %v56_v3 = vpop.permute.xlu1 %55 }
  0x7f   :  { %v190_v25 = vpop.permute.xlu0 %189 }
  0x84   :  { %v318_v8 = vpop.permute.xlu0 %317 }
  0xca   :  { %v1169_v17 = vpop.f32.mrf.mxu0  ;;  %v1171_v18 = vpop.f32.mrf.mxu1 }
  0xcb   :  { %v1228_v10 = vadd.f32 %v1169_v17, %v56_v3  ;;  %v1231_v13 = vadd.f32 %v1171_v18, %v56_v3 }
  0xcc   :  { %v1173_v19 = vpop.f32.mrf.mxu0  ;;  %v1175_v20 = vpop.f32.mrf.mxu1 }
  0xcd   :  { %v1220_v4 = vadd.f32 %v1173_v19, %v56_v3  ;;  %v1223_v5 = vadd.f32 %v1175_v20, %v56_v3 }
  0xce   :  { %v113_v21 = vpop.f32.mrf.mxu0  ;;  %v154_v22 = vpop.f32.mrf.mxu1 }
  0xcf   :  { %v936_v6 = vmul.f32 -1.442695, %v1220_v4  ;;  %v938_v7 = vmul.f32 -1.442695, %v1223_v5 }
  0xd0   :  { %v114_v23 = vpop.f32.mrf.mxu0  ;;  %v155_v24 = vpop.f32.mrf.mxu1 }
  0xd1   :  { %v935_v24 = vmul.f32 -1.442695, %v1228_v10 }
  0xd2   :  { %v229_v26 = vpop.f32.mrf.mxu0  ;;  %v270_v27 = vpop.f32.mrf.mxu1 }
  0xd3   :  { %v230_v28 = vadd.f32 %v229_v26, %v190_v25  ;;  %v271_v29 = vadd.f32 %v270_v27, %v190_v25  ;;  %v937_v26 = vmul.f32 -1.442695, %v1231_v13 }
  0xd4   :  { %v231_v30 = vpop.f32.mrf.mxu0  ;;  %v272_v31 = vpop.f32.mrf.mxu1 }
  0xd5   :  { %v943_v32 = vmul.f32 -1.442695, %v230_v28  ;;  %v945_v33 = vmul.f32 -1.442695, %v271_v29  ;;  %v232_v34 = vadd.f32 %v231_v30, %v190_v25  ;;  %v273_v35 = vadd.f32 %v272_v31, %v190_v25 }
  0xd6   :  { %v233_v36 = vpop.f32.mrf.mxu0  ;;  %v274_v37 = vpop.f32.mrf.mxu1 }
  0xd7   :  { %986 = vpow2.f32 %v943_v32  ;;  %v944_v38 = vmul.f32 -1.442695, %v232_v34  ;;  %v946_v39 = vmul.f32 -1.442695, %v273_v35 }
  0xd8   :  { %988 = vpow2.f32 %v945_v33  ;;  %v234_v40 = vpop.f32.mrf.mxu0  ;;  %v275_v41 = vpop.f32.mrf.mxu1 }
  0xd9   :  { %990 = vpow2.f32 %v944_v38 }
  0xda   :  { %992 = vpow2.f32 %v946_v39 }
  0xe4   :  { %v987_v42 = vpop.eup %986 }
  0xe5   :  { %v989_v43 = vpop.eup %988  ;;  %v289_v44 = vadd.f32 1.0, %v987_v42 }
  0xe6   :  { %v991_v45 = vpop.eup %990  ;;  %v291_v46 = vadd.f32 1.0, %v989_v43 }
  0xe7   :  { %v993_v47 = vpop.eup %992  ;;  %994 = vrcp.f32 %v289_v44  ;;  %v290_v48 = vadd.f32 1.0, %v991_v45 }
  0xe8   :  { %996 = vrcp.f32 %v291_v46  ;;  %v292_v49 = vadd.f32 1.0, %v993_v47 }
  0xe9   :  { %998 = vrcp.f32 %v290_v48 }
  0xea   :  { %1000 = vrcp.f32 %v292_v49 }
  0xeb   :  { %1002 = vpow2.f32 %v936_v6 }
  0xec   :  { %1004 = vpow2.f32 %v938_v7 }
  0xf4   :  { %v995_v50 = vpop.eup %994 }
  0xf5   :  { %v997_v51 = vpop.eup %996  ;;  %v1177_v52 = vmul.f32 %v995_v50, %v230_v28 }
  0xf6   :  { %v999_v53 = vpop.eup %998  ;;  %v1179_v54 = vmul.f32 %v997_v51, %v271_v29 }
  0xf7   :  { %v1001_v55 = vpop.eup %1000  ;;  %v309_v56 = vpack.c.bf16 %v1177_v52, %v1177_v52  ;;  %v1183_v57 = vmul.f32 %v999_v53, %v232_v34 }
  0xf8   :  { %v311_v58 = vpack.c.bf16 %v1179_v54, %v1179_v54  ;;  %v1187_v59 = vmul.f32 %v1001_v55, %v273_v35  ;;  %v1003_v29 = vpop.eup %1002 }
  0xf9   :  { %v1191_v60 = vpack.c.bf16 %v1183_v57, %v1183_v57  ;;  %v1200_v62 = vsel %vm324_vm2, %v309_v56, 0  ;;  %v1005_v30 = vpop.eup %1004  ;;  %v170_v37 = vadd.f32 1.0, %v1003_v29 }
  0xfa   :  { %v1195_v61 = vpack.c.bf16 %v1187_v59, %v1187_v59  ;;  %v1206_v63 = vsel %vm324_vm2, %v311_v58, 0  ;;  %v172_v40 = vadd.f32 1.0, %v1005_v30 }
  0xfb   :  { %947 = vmatprep.subr.msk.bf16.mxu0 %vm324_vm2, %v1191_v60 }
  0xfc   :  { %949 = vmatprep.subr.msk.bf16.mxu1 %vm324_vm2, %v1195_v61  ;;  %352 = vmatpush1.bf16.msra.mxu0 %v1200_v62 }
  0xfd   :  { %393 = vmatpush1.bf16.msra.mxu1 %v1206_v63 }
  0xff   :  { %948 = vmatmul.mubr.msk.bf16.vlgmr.msra.gmra.mxu0 %vm320_vm3, %v313_v0 }
 0x100   :  { %950 = vmatmul.mubr.msk.bf16.vlgmr.msra.gmra.mxu1 %vm320_vm3, %v313_v0  ;;  %505 = vmatprep.mubr.bf16.mxu0 %v1066_v2 }
 0x101   :  { %546 = vmatprep.mubr.bf16.mxu1 %v1066_v2 }
 0x1bf   :  { %v371_v9 = vpop.f32.mrf.mxu0 }
 0x1c0   :  { %v372_v11 = vadd.f32 %v371_v9, %v318_v8  ;;  %v412_v12 = vpop.f32.mrf.mxu1 }
 0x1c1   :  { %v413_v14 = vadd.f32 %v412_v12, %v318_v8  ;;  %v373_v15 = vpop.f32.mrf.mxu0  ;;  %v451_v12 = vld [vmem:[%s1302_s7] sm:$0x1] }
 0x1c2   :  { %v951_v16 = vmul.f32 -1.442695, %v372_v11  ;;  %v374_v19 = vadd.f32 %v373_v15, %v318_v8  ;;  %v414_v20 = vpop.f32.mrf.mxu1 }
 0x1c3   :  { %v953_v21 = vmul.f32 -1.442695, %v413_v14  ;;  %v415_v22 = vadd.f32 %v414_v20, %v318_v8  ;;  %v375_v23 = vpop.f32.mrf.mxu0 }
 0x1c4   :  { %1006 = vpow2.f32 %v951_v16  ;;  %v952_v17 = vmul.f32 -1.442695, %v374_v19  ;;  %v416_v25 = vpop.f32.mrf.mxu1 }
 0x1c5   :  { %1008 = vpow2.f32 %v953_v21  ;;  %v954_v18 = vmul.f32 -1.442695, %v415_v22  ;;  %v376_v27 = vpop.f32.mrf.mxu0 }
 0x1c6   :  { %1010 = vpow2.f32 %v952_v17  ;;  %v417_v28 = vpop.f32.mrf.mxu1 }
 0x1c7   :  { %1012 = vpow2.f32 %v954_v18 }
 0x1c8   :  { %1014 = vpow2.f32 %v935_v24 }
 0x1c9   :  { %1016 = vpow2.f32 %v937_v26 }
 0x1d1   :  { %v1007_v31 = vpop.eup %1006 }
 0x1d2   :  { %v1009_v32 = vpop.eup %1008  ;;  %v431_v33 = vadd.f32 1.0, %v1007_v31 }
 0x1d3   :  { %v1011_v34 = vpop.eup %1010  ;;  %v433_v35 = vadd.f32 1.0, %v1009_v32 }
 0x1d4   :  { %v1013_v36 = vpop.eup %1012  ;;  %1018 = vrcp.f32 %v431_v33  ;;  %v432_v38 = vadd.f32 1.0, %v1011_v34 }
 0x1d5   :  { %v1015_v39 = vpop.eup %1014  ;;  %1020 = vrcp.f32 %v433_v35  ;;  %v434_v41 = vadd.f32 1.0, %v1013_v36 }
 0x1d6   :  { %v1017_v42 = vpop.eup %1016  ;;  %1022 = vrcp.f32 %v432_v38  ;;  %v169_v43 = vadd.f32 1.0, %v1015_v39 }
 0x1d7   :  { %1024 = vrcp.f32 %v434_v41  ;;  %v171_v44 = vadd.f32 1.0, %v1017_v42 }
 0x1d8   :  { %1026 = vrcp.f32 %v170_v37 }
 0x1d9   :  { %1028 = vrcp.f32 %v172_v40 }
 0x1da   :  { %1030 = vrcp.f32 %v169_v43 }
 0x1db   :  { %1032 = vrcp.f32 %v171_v44 }
 0x1e1   :  { %v1019_v45 = vpop.eup %1018 }
 0x1e2   :  { %v1021_v46 = vpop.eup %1020  ;;  %v443_v47 = vmul.f32 %v1019_v45, %v372_v11 }
 0x1e3   :  { %v1023_v48 = vpop.eup %1022  ;;  %v445_v49 = vmul.f32 %v1021_v46, %v413_v14 }
 0x1e4   :  { %v1025_v50 = vpop.eup %1024  ;;  %v447_v51 = vpack.c.bf16 %v443_v47, %v443_v47  ;;  %v444_v53 = vmul.f32 %v1023_v48, %v374_v19  ;;  %v456_v19 = vpop.permute.xlu1 %455 }
 0x1e5   :  { %v1027_v55 = vpop.eup %1026  ;;  %v449_v56 = vpack.c.bf16 %v445_v49, %v445_v49  ;;  %v446_v58 = vmul.f32 %v1025_v50, %v415_v22 }
 0x1e6   :  { %v1029_v0 = vpop.eup %1028  ;;  %v448_v1 = vpack.c.bf16 %v444_v53, %v444_v53  ;;  %v182_v6 = vmul.f32 %v1027_v55, %v1220_v4  ;;  %v462_v7 = vsel %vm324_vm2, %v447_v51, 0 }
 0x1e7   :  { %v450_v3 = vpack.c.bf16 %v446_v58, %v446_v58  ;;  %v1031_v8 = vpop.eup %1030  ;;  %v184_v9 = vmul.f32 %v1029_v0, %v1223_v5  ;;  %v468_v11 = vsel %vm324_vm2, %v449_v56, 0 }
 0x1e8   :  { %955 = vmatprep.subr.msk.bf16.mxu0 %vm324_vm2, %v448_v1  ;;  %v1033_v14 = vpop.eup %1032  ;;  %v181_v4 = vmul.f32 %v1031_v8, %v1228_v10  ;;  %v306_v5 = vpack.c.bf16 %v182_v6, %v182_v6  ;;  %v963_v10 = vld [vmem:[%s1303_s9 + $0x2] sm:$0x3] }
 0x1e9   :  { %957 = vmatprep.subr.msk.bf16.mxu1 %vm324_vm2, %v450_v3  ;;  %488 = vmatpush1.bf16.msra.mxu0 %v462_v7  ;;  %v183_v15 = vmul.f32 %v1033_v14, %v1231_v13  ;;  %v308_v16 = vpack.c.bf16 %v184_v9, %v184_v9  ;;  %v591_v13 = vld [vmem:[%s1303_s9] sm:$0x3] }
 0x1ea   :  { %529 = vmatpush1.bf16.msra.mxu1 %v468_v11  ;;  %964 = vmatprep.subr.msk.bf16.mxu0 %vm324_vm2, %v1191_v60  ;;  %v305_v60 = vpack.c.bf16 %v181_v4, %v181_v4 }
 0x1eb   :  { %966 = vmatprep.subr.msk.bf16.mxu1 %vm324_vm2, %v1195_v61  ;;  %v307_v61 = vpack.c.bf16 %v183_v15, %v183_v15 }
 0x1ec   :  { %956 = vmatmul.mubr.msk.bf16.vlgmr.msra.gmra.mxu0 %vm320_vm3, %v451_v12 }
 0x1ed   :  { %958 = vmatmul.mubr.msk.bf16.vlgmr.msra.gmra.mxu1 %vm320_vm3, %v451_v12  ;;  %612 = vmatpush1.bf16.msra.mxu0 %v1200_v62  ;;  %v683_v62 = vsel %vm324_vm2, %v305_v60, 0 }
 0x1ee   :  { %653 = vmatpush1.bf16.msra.mxu1 %v1206_v63  ;;  %968 = vmatprep.subr.msk.bf16.mxu0 %vm324_vm2, %v306_v5  ;;  %v689_v63 = vsel %vm324_vm2, %v307_v61, 0 }
 0x1ef   :  { %970 = vmatprep.subr.msk.bf16.mxu1 %vm324_vm2, %v308_v16  ;;  %629 = vmatprep.mubr.bf16.mxu0 %v1066_v2 }
 0x1f0   :  { %670 = vmatprep.mubr.bf16.mxu1 %v1066_v2 }
 0x1f4   :  { %965 = vmatmul.mubr.msk.bf16.vlgmr.msra.gmra.mxu0 %vm320_vm3, %v963_v10 }
 0x1f5   :  { %967 = vmatmul.mubr.msk.bf16.vlgmr.msra.gmra.mxu1 %vm320_vm3, %v963_v10  ;;  %709 = vmatpush1.bf16.msra.mxu0 %v683_v62 }
 0x1f6   :  { %750 = vmatpush1.bf16.msra.mxu1 %v689_v63  ;;  %726 = vmatprep.mubr.bf16.mxu0 %v1066_v2 }
 0x1f7   :  { %767 = vmatprep.mubr.bf16.mxu1 %v1066_v2 }
 0x1fc   :  { %969 = vmatmul.mubr.msk.bf16.vlgmr.msra.gmra.mxu0 %vm320_vm3, %v591_v13 }
 0x1fd   :  { %971 = vmatmul.mubr.msk.bf16.vlgmr.msra.gmra.mxu1 %vm320_vm3, %v591_v13  ;;  %825 = vmatprep.mubr.bf16.mxu0 %v1066_v2 }
 0x1fe   :  { %866 = vmatprep.mubr.bf16.mxu1 %v1066_v2 }
 0x2ac   :  { %v507_v20 = vpop.f32.mrf.mxu0 }
 0x2ad   :  { %v508_v21 = vadd.f32 %v507_v20, %v456_v19  ;;  %v548_v22 = vpop.f32.mrf.mxu1 }
 0x2ae   :  { %v549_v23 = vadd.f32 %v548_v22, %v456_v19  ;;  %v509_v24 = vpop.f32.mrf.mxu0 }
 0x2af   :  { %v959_v17 = vmul.f32 -1.442695, %v508_v21  ;;  %v510_v25 = vadd.f32 %v509_v24, %v456_v19  ;;  %v550_v26 = vpop.f32.mrf.mxu1 }
 0x2b0   :  { %v961_v18 = vmul.f32 -1.442695, %v549_v23  ;;  %v551_v27 = vadd.f32 %v550_v26, %v456_v19  ;;  %v511_v28 = vpop.f32.mrf.mxu0 }
 0x2b1   :  { %1034 = vpow2.f32 %v959_v17  ;;  %v960_v29 = vmul.f32 -1.442695, %v510_v25  ;;  %v552_v30 = vpop.f32.mrf.mxu1 }
 0x2b2   :  { %1036 = vpow2.f32 %v961_v18  ;;  %v962_v31 = vmul.f32 -1.442695, %v551_v27  ;;  %v512_v32 = vpop.f32.mrf.mxu0 }
 0x2b3   :  { %1038 = vpow2.f32 %v960_v29  ;;  %v553_v2 = vpop.f32.mrf.mxu1 }
 0x2b4   :  { %1040 = vpow2.f32 %v962_v31  ;;  %v631_v33 = vpop.f32.mrf.mxu0 }
 0x2b5   :  { %v672_v34 = vpop.f32.mrf.mxu1 }
 0x2b6   :  { %v633_v35 = vpop.f32.mrf.mxu0 }
 0x2b7   :  { %v674_v36 = vpop.f32.mrf.mxu1 }
 0x2b8   :  { %v635_v37 = vpop.f32.mrf.mxu0 }
 0x2b9   :  { %v676_v38 = vpop.f32.mrf.mxu1 }
 0x2ba   :  { %v636_v39 = vpop.f32.mrf.mxu0 }
 0x2bb   :  { %v677_v40 = vpop.f32.mrf.mxu1 }
 0x2be   :  { %v1035_v41 = vpop.eup %1034 }
 0x2bf   :  { %v1037_v42 = vpop.eup %1036  ;;  %v567_v43 = vadd.f32 1.0, %v1035_v41 }
 0x2c0   :  { %v1039_v44 = vpop.eup %1038  ;;  %v569_v45 = vadd.f32 1.0, %v1037_v42 }
 0x2c1   :  { %v1041_v46 = vpop.eup %1040  ;;  %1042 = vrcp.f32 %v567_v43  ;;  %v568_v47 = vadd.f32 1.0, %v1039_v44 }
 0x2c2   :  { %1044 = vrcp.f32 %v569_v45  ;;  %v570_v48 = vadd.f32 1.0, %v1041_v46 }
 0x2c3   :  { %1046 = vrcp.f32 %v568_v47 }
 0x2c4   :  { %1048 = vrcp.f32 %v570_v48 }
 0x2ce   :  { %v1043_v49 = vpop.eup %1042 }
 0x2cf   :  { %v1045_v50 = vpop.eup %1044  ;;  %v579_v51 = vmul.f32 %v1043_v49, %v508_v21  ;;  %v883_v21 = vpop.permute.xlu0 %882 }
 0x2d0   :  { %v1047_v53 = vpop.eup %1046  ;;  %v581_v55 = vmul.f32 %v1045_v50, %v549_v23 }
 0x2d1   :  { %v1049_v56 = vpop.eup %1048  ;;  %v583_v58 = vadd.f32 %v579_v51, %v1177_v52  ;;  %v580_v0 = vmul.f32 %v1047_v53, %v510_v25 }
 0x2d2   :  { %v585_v1 = vadd.f32 %v581_v55, %v1179_v54  ;;  %v582_v3 = vmul.f32 %v1049_v56, %v551_v27  ;;  %v972_v54 = vld [vmem:[%s1303_s9 + $0x4] sm:$0x3] }
 0x2d3   :  { %v587_v6 = vpack.c.bf16 %v583_v58, %v583_v58  ;;  %v584_v7 = vadd.f32 %v580_v0, %v1183_v57  ;;  %v728_v57 = vpop.f32.mrf.mxu0 }
 0x2d4   :  { %v589_v8 = vpack.c.bf16 %v585_v1, %v585_v1  ;;  %v586_v9 = vadd.f32 %v582_v3, %v1187_v59  ;;  %v769_v59 = vpop.f32.mrf.mxu1  ;;  %v729_v10 = vadd.f32 %v728_v57, %v631_v33 }
 0x2d5   :  { %v588_v11 = vpack.c.bf16 %v584_v7, %v584_v7  ;;  %v782_v14 = vsel %vm324_vm2, %v587_v6, 0  ;;  %v730_v4 = vpop.f32.mrf.mxu0  ;;  %v770_v62 = vadd.f32 %v769_v59, %v672_v34 }
 0x2d6   :  { %v590_v12 = vpack.c.bf16 %v586_v9, %v586_v9  ;;  %v788_v52 = vsel %vm324_vm2, %v589_v8, 0  ;;  %v771_v5 = vpop.f32.mrf.mxu1  ;;  %v731_v13 = vadd.f32 %v730_v4, %v633_v35 }
 0x2d7   :  { %973 = vmatprep.subr.msk.bf16.mxu0 %vm324_vm2, %v588_v11  ;;  %v732_v15 = vpop.f32.mrf.mxu0  ;;  %v772_v22 = vadd.f32 %v771_v5, %v674_v36 }
 0x2d8   :  { %975 = vmatprep.subr.msk.bf16.mxu1 %vm324_vm2, %v590_v12  ;;  %808 = vmatpush1.bf16.msra.mxu0 %v782_v14  ;;  %v773_v16 = vpop.f32.mrf.mxu1 }
 0x2d9   :  { %849 = vmatpush1.bf16.msra.mxu1 %v788_v52  ;;  %v733_v60 = vpop.f32.mrf.mxu0 }
 0x2da   :  { %v774_v61 = vpop.f32.mrf.mxu1 }
 0x2db   :  { %974 = vmatmul.mubr.msk.bf16.vlgmr.msra.gmra.mxu0 %vm320_vm3, %v972_v54 }
 0x2dc   :  { %976 = vmatmul.mubr.msk.bf16.vlgmr.msra.gmra.mxu1 %vm320_vm3, %v972_v54 }
 0x39b   :  { %v827_v63 = vpop.f32.mrf.mxu0 }
 0x39c   :  { %v875_v19 = vadd.f32 %v827_v63, %v729_v10  ;;  %v868_v20 = vpop.f32.mrf.mxu1 }
 0x39d   :  { %v877_v23 = vadd.f32 %v868_v20, %v770_v62  ;;  %v829_v24 = vpop.f32.mrf.mxu0 }
 0x39e   :  { %v885_v17 = vadd.f32 %v883_v21, %v875_v19  ;;  %v876_v25 = vadd.f32 %v829_v24, %v731_v13  ;;  %v870_v26 = vpop.f32.mrf.mxu1 }
 0x39f   :  { %v887_v18 = vadd.f32 %v883_v21, %v877_v23  ;;  %v878_v27 = vadd.f32 %v870_v26, %v772_v22  ;;  %v831_v28 = vpop.f32.mrf.mxu0 }
 0x3a0   :  { %v977_v29 = vmul.f32 -1.442695, %v885_v17  ;;  %v886_v30 = vadd.f32 %v883_v21, %v876_v25  ;;  %v872_v31 = vpop.f32.mrf.mxu1 }
 0x3a1   :  { %v979_v32 = vmul.f32 -1.442695, %v887_v18  ;;  %v888_v2 = vadd.f32 %v883_v21, %v878_v27  ;;  %v832_v33 = vpop.f32.mrf.mxu0 }
 0x3a2   :  { %1050 = vpow2.f32 %v977_v29  ;;  %v978_v34 = vmul.f32 -1.442695, %v886_v30  ;;  %v873_v35 = vpop.f32.mrf.mxu1 }
 0x3a3   :  { %1052 = vpow2.f32 %v979_v32  ;;  %v980_v37 = vmul.f32 -1.442695, %v888_v2 }
 0x3a4   :  { %1054 = vpow2.f32 %v978_v34 }
 0x3a5   :  { %1056 = vpow2.f32 %v980_v37 }
 0x3af   :  { %v1051_v36 = vpop.eup %1050 }
 0x3b0   :  { %v1053_v38 = vpop.eup %1052  ;;  %v901_v39 = vadd.f32 1.0, %v1051_v36 }
 0x3b1   :  { %v1055_v40 = vpop.eup %1054  ;;  %v903_v41 = vadd.f32 1.0, %v1053_v38 }
 0x3b2   :  { %v1057_v42 = vpop.eup %1056  ;;  %1058 = vrcp.f32 %v901_v39  ;;  %v902_v43 = vadd.f32 1.0, %v1055_v40 }
 0x3b3   :  { %1060 = vrcp.f32 %v903_v41  ;;  %v904_v44 = vadd.f32 1.0, %v1057_v42 }
 0x3b4   :  { %1062 = vrcp.f32 %v902_v43 }
 0x3b5   :  { %1064 = vrcp.f32 %v904_v44 }
 0x3bf   :  { %v1059_v45 = vpop.eup %1058 }
 0x3c0   :  { %v1061_v46 = vpop.eup %1060  ;;  %v913_v49 = vmul.f32 %v1059_v45, %v885_v17 }
 0x3c1   :  { %v1063_v47 = vpop.eup %1062  ;;  %v915_v51 = vmul.f32 %v1061_v46, %v887_v18 }
 0x3c2   :  { %v1065_v48 = vpop.eup %1064  ;;  %v914_v50 = vmul.f32 %v1063_v47, %v886_v30 }
 0x3c3   :  { %v916_v53 = vmul.f32 %v1065_v48, %v888_v2 }
 0x3c4   :  { %v921_v55 = vcombine.low %v913_v49, %v914_v50 }
 0x3c5   :  { %v922_v56 = vcombine.low %v915_v51, %v916_v53 }
 0x3c6   :  { %925 = vst [vmem:[%s1304_s11] sm:$0xff] %v921_v55 }
 0x3c7   :  { %926 = vst [vmem:[%s1304_s11 + $0x8] sm:$0xff] %v922_v56 }

// kernel: _lambda_.15
= control target key start
LH: loop header
LB: loop body
LE: loop exit
PB: predicated region body
PF: predicated region fallthrough
CT: control target
= control target key end

     0   :  { %vm46_vm0 = vcmask 1041408   ;;  %v132_v0 = vmov 0.0   ;;  %vm133_vm1 = vmmov 0   ;;  %v134_v5 = vmov 0   ;;  %s173_s2 = inlined_call_operand.vmem [shape: bf16[36,128], index: 2, kind: input, shape index: {}]   ;;  %s174_s1 = inlined_call_operand.vmem [shape: f32[8,1], index: 1, kind: input, shape index: {}]   ;;  %s175_s0 = inlined_call_operand.vmem [shape: bf16[8,36], index: 0, kind: input, shape index: {}]   ;;  %s176_s3 = inlined_call_operand.vmem [shape: f32[8,128], index: 3, kind: output, shape index: {}]  }
   0x1   :  { %111 = vmatprep.subr.bf16.mxu0 %v132_v0  ;;  %v125_v1 = vld [vmem:[%s173_s2 + $0x10] ss:$0 sps:$4 sm:$0x33]   ;;  %117 = vmatprep.mubr.msk.bf16.mxu0 %vm133_vm1, %v132_v0  ;;  %v126_v3 = vld [vmem:[%s173_s2 + $0x8] sm:$0xff]   ;;  %v21_v4 = vld [vmem:[%s174_s1] sm:$0xff]  ;;  %vm42_vm2 = vcmask 293888  }
   0x2   :  { %v48_v2 = vsel %vm46_vm0, %v125_v1, 0  ;;  %124 = vset.pattern.permute.xlu0 %v134_v5  ;;  %v127_v6 = vld [vmem:[%s173_s2] sm:$0xff]  }
   0x3   :  { %112 = vmatpush3.bf16.msra.mxu0 %v48_v2  ;;  %24 = vperm.xlu0 %124, %v21_v4   ;;  %v20_v7 = vld [vmem:[%s175_s0] sm:$0xf] }
   0x4   :  { %113 = vmatprep.subr.bf16.mxu0 %v132_v0 }
   0x7   :  { %114 = vmatpush3.bf16.msra.mxu0 %v126_v3 }
   0x8   :  { %115 = vmatprep.subr.bf16.mxu0 %v132_v0 }
   0xb   :  { %116 = vmatpush3.bf16.msra.mxu0 %v127_v6 }
   0xe   :  { %118 = vmatmul.mubr.msk.bf16.vlgmr.msra.gmra.mxu0 %vm42_vm2, %v20_v7 }
  0x7e   :  { %v25_v8 = vpop.permute.xlu0 %24 }
  0xce   :  { %v84_v9 = vpop.f32.mrf.mxu0 }
  0xcf   :  { %v85_v10 = vadd.f32 %v84_v9, %v25_v8 }
  0xd0   :  { %v119_v11 = vpop.f32.mrf.mxu0 }
  0xd1   :  { %v106_v12 = vmul.f32 -1.442695, %v85_v10 }
  0xd2   :  { %v87_v13 = vpop.f32.mrf.mxu0 }
  0xd3   :  { %128 = vpow2.f32 %v106_v12 }
  0xd4   :  { %v120_v14 = vpop.f32.mrf.mxu0 }
  0xe0   :  { %v129_v15 = vpop.eup %128 }
  0xe1   :  { %v93_v16 = vadd.f32 1.0, %v129_v15 }
  0xe3   :  { %130 = vrcp.f32 %v93_v16 }
  0xf0   :  { %v131_v17 = vpop.eup %130 }
  0xf1   :  { %v96_v18 = vmul.f32 %v131_v17, %v85_v10 }
  0xf3   :  { %97 = vst [vmem:[%s176_s3] sm:$0xff] %v96_v18 }

// kernel: _lambda_.16
= control target key start
LH: loop header
LB: loop body
LE: loop exit
PB: predicated region body
PF: predicated region fallthrough
CT: control target
= control target key end

     0   :  { %v566_v0 = vmov 0.0   ;;  %vm57_vm0 = vcmask 1043456   ;;  %vm567_vm1 = vmmov 0   ;;  %v568_v4 = vmov 0   ;;  %s723_s0 = inlined_call_operand.vmem [shape: f32[8,128], index: 0, kind: input, shape index: {}]   ;;  %s724_s4 = inlined_call_operand.vmem [shape: f32[4,1], index: 4, kind: input, shape index: {}]   ;;  %s725_s6 = inlined_call_operand.vmem [shape: f32[4,1], index: 6, kind: input, shape index: {}]   ;;  %s726_s3 = inlined_call_operand.vmem [shape: bf16[4,8], index: 3, kind: input, shape index: {}]   ;;  %s727_s10 = inlined_call_operand.vmem [shape: f32[8,1], index: 10, kind: input, shape index: {}]   ;;  %s728_s1 = inlined_call_operand.vmem [shape: bf16[4,8], index: 1, kind: input, shape index: {}]   ;;  %s729_s2 = inlined_call_operand.vmem [shape: f32[4,1], index: 2, kind: input, shape index: {}]   ;;  %s730_s5 = inlined_call_operand.vmem [shape: bf16[4,4], index: 5, kind: input, shape index: {}]   ;;  %s731_s8 = inlined_call_operand.vmem [shape: f32[4,1], index: 8, kind: input, shape index: {}]   ;;  %s732_s11 = inlined_call_operand.vmem [shape: f32[8,2], index: 11, kind: input, shape index: {}]   ;;  %s733_s7 = inlined_call_operand.vmem [shape: bf16[4,4], index: 7, kind: input, shape index: {}]   ;;  %s734_s9 = inlined_call_operand.vmem [shape: bf16[3,8,4], index: 9, kind: input, shape index: {}]   ;;  %s735_s12 = inlined_call_operand.vmem [shape: f32[8,128], index: 12, kind: output, shape index: {0}]   ;;  %s736_s13 = inlined_call_operand.vmem [shape: f32[8,128], index: 13, kind: output, shape index: {1}]  }
   0x1   :  { %503 = vmatprep.subr.bf16.mxu1 %v566_v0  ;;  %v44_v1 = vld [vmem:[%s723_s0] sm:$0xff]  ;;  %505 = vmatprep.mubr.msk.bf16.mxu1 %vm567_vm1, %v566_v0  ;;  %vm53_vm2 = vcmask 64512   ;;  %vm178_vm3 = vcmask 1041408   ;;  %vm174_vm4 = vcmask 31744   ;;  %v569_v56 = vmov 1  }
   0x2   :  { %v109_v2 = vld [vmem:[%s724_s4] sm:$0xf]  ;;  %v45_v3 = vpack.c.bf16 %v44_v1, %v44_v1  ;;  %543 = vset.pattern.permute.xlu0 %v568_v4  ;;  %497 = vmatprep.subr.bf16.mxu0 %v566_v0  ;;  %v477_v54 = vld [vmem:[%s734_s9 + $0x4] sm:$0xf] }
   0x3   :  { %112 = vperm.xlu0 %543, %v109_v2   ;;  %499 = vmatprep.mubr.msk.bf16.mxu0 %vm567_vm1, %v566_v0  ;;  %v168_v6 = vld [vmem:[%s725_s6] sm:$0xf] }
   0x4   :  { %v59_v5 = vsel %vm57_vm0, %v45_v3, 0  ;;  %544 = vset.pattern.permute.xlu1 %v568_v4  ;;  %v108_v7 = vld [vmem:[%s726_s3] sm:$0x3] }
   0x5   :  { %504 = vmatpush3.bf16.msra.mxu1 %v59_v5  ;;  %498 = vmatpush3.bf16.msra.mxu0 %v59_v5  ;;  %v433_v8 = vld [vmem:[%s727_s10] sm:$0xff] }
   0x6   :  { %509 = vmatprep.subr.bf16.mxu0 %v566_v0  ;;  %515 = vmatprep.subr.bf16.mxu1 %v566_v0  ;;  %v46_v9 = vld [vmem:[%s728_s1] sm:$0x3] }
   0x7   :  { %171 = vperm.xlu0 %543, %v168_v6   ;;  %v47_v10 = vld [vmem:[%s729_s2] sm:$0xf] }
   0x8   :  { %506 = vmatmul.mubr.msk.bf16.vlgmr.msra.gmra.mxu1 %vm53_vm2, %v108_v7  ;;  %500 = vmatmul.mubr.msk.bf16.vlgmr.msra.gmra.mxu0 %vm53_vm2, %v46_v9  ;;  %v167_v24 = vld [vmem:[%s730_s5] sm:$0x3]  ;;  %v480_v7 = vld [vmem:[%s734_s9 + $0x8] sm:$0xf] }
   0x9   :  { %517 = vmatprep.mubr.msk.bf16.mxu1 %vm567_vm1, %v566_v0  ;;  %511 = vmatprep.mubr.msk.bf16.mxu0 %vm567_vm1, %v566_v0  ;;  %v231_v29 = vld [vmem:[%s731_s8] sm:$0xf] }
   0xa   :  { %50 = vperm.xlu1 %544, %v47_v10   ;;  %v448_v30 = vld [vmem:[%s732_s11] sm:$0xff] }
   0xb   :  { %436 = vperm.xlu0 %543, %v433_v8   ;;  %v230_v52 = vld [vmem:[%s733_s7] sm:$0x3] }
   0xc   :  { %v292_v55 = vld [vmem:[%s734_s9] sm:$0xf] }
   0xe   :  { %234 = vperm.xlu1 %544, %v231_v29  }
   0xf   :  { %545 = vset.pattern.permute.xlu0 %v569_v56 }
  0x10   :  { %456 = vperm.xlu0 %545, %v448_v30  }
  0x12   :  { %451 = vperm.xlu1 %544, %v448_v30  }
  0x7e   :  { %v113_v11 = vpop.permute.xlu0 %112 }
  0x82   :  { %v172_v34 = vpop.permute.xlu0 %171 }
  0x85   :  { %v51_v31 = vpop.permute.xlu1 %50 }
  0x89   :  { %v235_v57 = vpop.permute.xlu1 %234 }
  0x8d   :  { %v452_v29 = vpop.permute.xlu1 %451 }
  0xc8   :  { %v152_v12 = vpop.f32.mrf.mxu1  ;;  %v95_v25 = vpop.f32.mrf.mxu0 }
  0xc9   :  { %v153_v13 = vadd.f32 %v152_v12, %v113_v11  ;;  %v96_v32 = vadd.f32 %v95_v25, %v51_v31 }
  0xca   :  { %v507_v14 = vpop.f32.mrf.mxu1  ;;  %v501_v26 = vpop.f32.mrf.mxu0 }
  0xcb   :  { %v472_v15 = vmul.f32 -1.442695, %v153_v13  ;;  %v470_v33 = vmul.f32 -1.442695, %v96_v32 }
  0xcc   :  { %v155_v16 = vpop.f32.mrf.mxu1  ;;  %v98_v27 = vpop.f32.mrf.mxu0 }
  0xcd   :  { %546 = vpow2.f32 %v472_v15 }
  0xce   :  { %v508_v17 = vpop.f32.mrf.mxu1  ;;  %v502_v28 = vpop.f32.mrf.mxu0 }
  0xda   :  { %v547_v18 = vpop.eup %546 }
  0xdb   :  { %v161_v19 = vadd.f32 1.0, %v547_v18 }
  0xdd   :  { %548 = vrcp.f32 %v161_v19  ;;  %v437_v19 = vpop.permute.xlu0 %436 }
  0xde   :  { %550 = vpow2.f32 %v470_v33 }
  0xe1   :  { %v457_v30 = vpop.permute.xlu0 %456 }
  0xea   :  { %v549_v20 = vpop.eup %548 }
  0xeb   :  { %v673_v21 = vmul.f32 %v549_v20, %v153_v13  ;;  %v551_v41 = vpop.eup %550 }
  0xec   :  { %v104_v42 = vadd.f32 1.0, %v551_v41 }
  0xed   :  { %v166_v22 = vpack.c.bf16 %v673_v21, %v673_v21 }
  0xef   :  { %v180_v23 = vsel %vm178_vm3, %v166_v22, 0 }
  0xf0   :  { %510 = vmatpush3.bf16.msra.mxu0 %v180_v23 }
  0xf1   :  { %521 = vmatprep.subr.bf16.mxu0 %v566_v0 }
  0xf3   :  { %512 = vmatmul.mubr.msk.bf16.vlgmr.msra.gmra.mxu0 %vm174_vm4, %v167_v24 }
  0xf4   :  { %522 = vmatpush3.bf16.msra.mxu0 %v180_v23  ;;  %523 = vmatprep.mubr.msk.bf16.mxu0 %vm567_vm1, %v566_v0 }
  0xf5   :  { %533 = vmatprep.subr.bf16.mxu0 %v566_v0 }
  0xfb   :  { %524 = vmatmul.mubr.msk.bf16.vlgmr.msra.gmra.mxu0 %vm174_vm4, %v477_v54 }
  0xfc   :  { %535 = vmatprep.mubr.msk.bf16.mxu0 %vm567_vm1, %v566_v0 }
 0x1b3   :  { %v216_v35 = vpop.f32.mrf.mxu0 }
 0x1b4   :  { %v217_v36 = vadd.f32 %v216_v35, %v172_v34 }
 0x1b5   :  { %v513_v37 = vpop.f32.mrf.mxu0 }
 0x1b6   :  { %v474_v38 = vmul.f32 -1.442695, %v217_v36 }
 0x1b7   :  { %v219_v39 = vpop.f32.mrf.mxu0 }
 0x1b8   :  { %552 = vpow2.f32 %v474_v38 }
 0x1b9   :  { %v514_v40 = vpop.f32.mrf.mxu0  ;;  %554 = vrcp.f32 %v104_v42 }
 0x1bb   :  { %v332_v8 = vpop.f32.mrf.mxu0 }
 0x1bd   :  { %v525_v9 = vpop.f32.mrf.mxu0 }
 0x1bf   :  { %v335_v10 = vpop.f32.mrf.mxu0 }
 0x1c1   :  { %v526_v11 = vpop.f32.mrf.mxu0 }
 0x1c5   :  { %v553_v43 = vpop.eup %552 }
 0x1c6   :  { %v225_v44 = vadd.f32 1.0, %v553_v43  ;;  %v555_v45 = vpop.eup %554 }
 0x1c7   :  { %v107_v47 = vmul.f32 %v555_v45, %v96_v32 }
 0x1c8   :  { %556 = vrcp.f32 %v225_v44 }
 0x1c9   :  { %v165_v50 = vpack.c.bf16 %v107_v47, %v107_v47 }
 0x1cb   :  { %v342_v53 = vsel %vm178_vm3, %v165_v50, 0 }
 0x1d5   :  { %v557_v46 = vpop.eup %556 }
 0x1d6   :  { %v228_v48 = vmul.f32 %v557_v46, %v217_v36 }
 0x1d8   :  { %v229_v49 = vpack.c.bf16 %v228_v48, %v228_v48 }
 0x1da   :  { %v241_v51 = vsel %vm178_vm3, %v229_v49, 0 }
 0x1db   :  { %516 = vmatpush3.bf16.msra.mxu1 %v241_v51 }
 0x1dc   :  { %527 = vmatprep.subr.bf16.mxu1 %v566_v0 }
 0x1de   :  { %518 = vmatmul.mubr.msk.bf16.vlgmr.msra.gmra.mxu1 %vm174_vm4, %v230_v52 }
 0x1df   :  { %528 = vmatpush3.bf16.msra.mxu1 %v342_v53  ;;  %529 = vmatprep.mubr.msk.bf16.mxu1 %vm567_vm1, %v566_v0 }
 0x1e6   :  { %530 = vmatmul.mubr.msk.bf16.vlgmr.msra.gmra.mxu1 %vm174_vm4, %v292_v55 }
 0x29e   :  { %v277_v58 = vpop.f32.mrf.mxu1 }
 0x29f   :  { %v278_v59 = vadd.f32 %v277_v58, %v235_v57 }
 0x2a0   :  { %v519_v60 = vpop.f32.mrf.mxu1 }
 0x2a1   :  { %v476_v61 = vmul.f32 -1.442695, %v278_v59 }
 0x2a2   :  { %v280_v62 = vpop.f32.mrf.mxu1 }
 0x2a3   :  { %558 = vpow2.f32 %v476_v61 }
 0x2a4   :  { %v520_v63 = vpop.f32.mrf.mxu1 }
 0x2a6   :  { %v378_v12 = vpop.f32.mrf.mxu1 }
 0x2a7   :  { %v379_v13 = vadd.f32 %v378_v12, %v332_v8 }
 0x2a8   :  { %v531_v14 = vpop.f32.mrf.mxu1 }
 0x2aa   :  { %v381_v15 = vpop.f32.mrf.mxu1 }
 0x2ac   :  { %v532_v16 = vpop.f32.mrf.mxu1 }
 0x2b0   :  { %v559_v1 = vpop.eup %558 }
 0x2b1   :  { %v286_v2 = vadd.f32 1.0, %v559_v1 }
 0x2b3   :  { %560 = vrcp.f32 %v286_v2 }
 0x2c0   :  { %v561_v0 = vpop.eup %560 }
 0x2c1   :  { %v289_v3 = vmul.f32 %v561_v0, %v278_v59 }
 0x2c3   :  { %v290_v4 = vadd.f32 %v289_v3, %v673_v21 }
 0x2c5   :  { %v291_v5 = vpack.c.bf16 %v290_v4, %v290_v4 }
 0x2c7   :  { %v390_v6 = vsel %vm178_vm3, %v291_v5, 0 }
 0x2c8   :  { %534 = vmatpush3.bf16.msra.mxu0 %v390_v6 }
 0x2cb   :  { %536 = vmatmul.mubr.msk.bf16.vlgmr.msra.gmra.mxu0 %vm174_vm4, %v480_v7 }
 0x38b   :  { %v426_v17 = vpop.f32.mrf.mxu0 }
 0x38c   :  { %v432_v18 = vadd.f32 %v426_v17, %v379_v13 }
 0x38d   :  { %v537_v20 = vpop.f32.mrf.mxu0 }
 0x38e   :  { %v439_v21 = vadd.f32 %v437_v19, %v432_v18 }
 0x38f   :  { %v429_v22 = vpop.f32.mrf.mxu0 }
 0x390   :  { %v482_v23 = vmul.f32 -1.442695, %v439_v21 }
 0x391   :  { %v538_v24 = vpop.f32.mrf.mxu0 }
 0x392   :  { %562 = vpow2.f32 %v482_v23 }
 0x39f   :  { %v563_v25 = vpop.eup %562 }
 0x3a0   :  { %v443_v26 = vadd.f32 1.0, %v563_v25 }
 0x3a2   :  { %564 = vrcp.f32 %v443_v26 }
 0x3af   :  { %v565_v27 = vpop.eup %564 }
 0x3b0   :  { %v446_v28 = vmul.f32 %v565_v27, %v439_v21 }
 0x3b2   :  { %447 = vst [vmem:[%s735_s12] sm:$0xff] %v446_v28  ;;  %v454_v31 = vmul.f32 %v452_v29, %v446_v28 }
 0x3b4   :  { %v459_v32 = vadd.f32 %v457_v30, %v454_v31 }
 0x3b6   :  { %460 = vst [vmem:[%s736_s13] sm:$0xff] %v459_v32 }

// kernel: _lambda_.17
= control target key start
LH: loop header
LB: loop body
LE: loop exit
PB: predicated region body
PF: predicated region fallthrough
CT: control target
= control target key end

     0   :  { %vm74_vm0 = vcmask 1043456   ;;  %v187_v0 = vmov 0.0   ;;  %vm188_vm1 = vmmov 0   ;;  %v189_v3 = vmov 0   ;;  %s240_s2 = inlined_call_operand.vmem [shape: bf16[72,32], index: 2, kind: input, shape index: {}]   ;;  %s241_s1 = inlined_call_operand.vmem [shape: f32[16,1], index: 1, kind: input, shape index: {}]   ;;  %s242_s0 = inlined_call_operand.vmem [shape: bf16[16,72], index: 0, kind: input, shape index: {}]   ;;  %s243_s3 = inlined_call_operand.vmem [shape: f32[16,32], index: 3, kind: output, shape index: {}]  }
   0x1   :  { %155 = vmatprep.subr.bf16.mxu0 %v187_v0  ;;  %v173_v1 = vld [vmem:[%s240_s2 + $0x20] ss:$0 sps:$4 sm:$0xff]   ;;  %165 = vmatprep.mubr.msk.bf16.mxu0 %vm188_vm1, %v187_v0  ;;  %v174_v4 = vld [vmem:[%s240_s2 + $0x18] sm:$0xff]   ;;  %v175_v6 = vld [vmem:[%s240_s2 + $0x10] sm:$0xff]   ;;  %vm70_vm2 = vcmask 588800   ;;  %vm133_vm3 = vcmask 261120  }
   0x2   :  { %v76_v2 = vsel %vm74_vm0, %v173_v1, 0  ;;  %172 = vset.pattern.permute.xlu0 %v189_v3  ;;  %v26_v5 = vld [vmem:[%s241_s1] sm:$0xff]  ;;  %v27_v7 = vld [vmem:[%s241_s1 + $0x8] sm:$0xff] }
   0x3   :  { %156 = vmatpush3.bf16.msra.mxu0 %v76_v2  ;;  %30 = vperm.xlu0 %172, %v26_v5   ;;  %v176_v8 = vld [vmem:[%s240_s2 + $0x8] sm:$0xff]   ;;  %v177_v9 = vld [vmem:[%s240_s2] sm:$0xff]  }
   0x4   :  { %157 = vmatprep.subr.bf16.mxu0 %v187_v0  ;;  %v178_v10 = vld [vmem:[%s242_s0] sm:$0xff]  }
   0x7   :  { %158 = vmatpush3.bf16.msra.mxu0 %v174_v4  ;;  %35 = vperm.xlu0 %172, %v27_v7  }
   0x8   :  { %159 = vmatprep.subr.bf16.mxu0 %v187_v0 }
   0xb   :  { %160 = vmatpush3.bf16.msra.mxu0 %v175_v6 }
   0xc   :  { %161 = vmatprep.subr.bf16.mxu0 %v187_v0 }
   0xf   :  { %162 = vmatpush3.bf16.msra.mxu0 %v176_v8 }
  0x10   :  { %163 = vmatprep.subr.bf16.mxu0 %v187_v0 }
  0x13   :  { %164 = vmatpush3.bf16.msra.mxu0 %v177_v9 }
  0x16   :  { %166 = vmatmul.mubr.msk.bf16.vlgmr.msra.gmra.mxu0 %vm70_vm2, %v178_v10 }
  0x7e   :  { %v31_v11 = vpop.permute.xlu0 %30 }
  0x82   :  { %v36_v16 = vpop.permute.xlu0 %35 }
  0xd6   :  { %v112_v12 = vpop.f32.mrf.mxu0 }
  0xd7   :  { %v113_v13 = vadd.f32 %v112_v12, %v31_v11 }
  0xd8   :  { %v167_v14 = vpop.f32.mrf.mxu0 }
  0xd9   :  { %v147_v15 = vmul.f32 -1.442695, %v113_v13 }
  0xda   :  { %v115_v17 = vpop.f32.mrf.mxu0 }
  0xdb   :  { %179 = vpow2.f32 %v147_v15  ;;  %v116_v18 = vadd.f32 %v115_v17, %v36_v16 }
  0xdc   :  { %v168_v19 = vpop.f32.mrf.mxu0 }
  0xdd   :  { %v148_v20 = vmul.f32 -1.442695, %v116_v18 }
  0xdf   :  { %181 = vpow2.f32 %v148_v20 }
  0xe8   :  { %v180_v21 = vpop.eup %179 }
  0xe9   :  { %v125_v22 = vadd.f32 1.0, %v180_v21 }
  0xeb   :  { %183 = vrcp.f32 %v125_v22 }
  0xec   :  { %v182_v23 = vpop.eup %181 }
  0xed   :  { %v126_v24 = vadd.f32 1.0, %v182_v23 }
  0xef   :  { %185 = vrcp.f32 %v126_v24 }
  0xf8   :  { %v184_v25 = vpop.eup %183 }
  0xf9   :  { %v131_v26 = vmul.f32 %v184_v25, %v113_v13 }
  0xfb   :  { %134 = vst.msk [vmem:[%s243_s3] sm:$0xff] %vm133_vm3, %v131_v26 }
  0xfc   :  { %v186_v27 = vpop.eup %185 }
  0xfd   :  { %v132_v28 = vmul.f32 %v186_v27, %v116_v18 }
  0xff   :  { %135 = vst.msk [vmem:[%s243_s3 + $0x8] sm:$0xff] %vm133_vm3, %v132_v28 }

// kernel: _lambda_.18
= control target key start
LH: loop header
LB: loop body
LE: loop exit
PB: predicated region body
PF: predicated region fallthrough
CT: control target
= control target key end

     0   :  { %v858_v0 = vmov 0.0   ;;  %vm859_vm0 = vmmov 0   ;;  %v860_v5 = vmov 0   ;;  %vm66_vm1 = vcmask 130048   ;;  %s1094_s0 = inlined_call_operand.vmem [shape: f32[16,32], index: 0, kind: input, shape index: {}]   ;;  %s1095_s4 = inlined_call_operand.vmem [shape: f32[8,1], index: 4, kind: input, shape index: {}]   ;;  %s1096_s1 = inlined_call_operand.vmem [shape: bf16[8,16], index: 1, kind: input, shape index: {}]   ;;  %s1097_s3 = inlined_call_operand.vmem [shape: bf16[8,16], index: 3, kind: input, shape index: {}]   ;;  %s1098_s6 = inlined_call_operand.vmem [shape: f32[8,1], index: 6, kind: input, shape index: {}]   ;;  %s1099_s2 = inlined_call_operand.vmem [shape: f32[8,1], index: 2, kind: input, shape index: {}]   ;;  %s1100_s14 = inlined_call_operand.vmem [shape: f32[16,1], index: 14, kind: input, shape index: {}]   ;;  %s1101_s15 = inlined_call_operand.vmem [shape: f32[16,2], index: 15, kind: input, shape index: {}]   ;;  %s1102_s5 = inlined_call_operand.vmem [shape: bf16[8,8], index: 5, kind: input, shape index: {}]   ;;  %s1103_s8 = inlined_call_operand.vmem [shape: f32[8,1], index: 8, kind: input, shape index: {}]   ;;  %s1104_s10 = inlined_call_operand.vmem [shape: f32[8,1], index: 10, kind: input, shape index: {}]   ;;  %s1105_s12 = inlined_call_operand.vmem [shape: f32[8,1], index: 12, kind: input, shape index: {}]   ;;  %s1106_s7 = inlined_call_operand.vmem [shape: bf16[8,8], index: 7, kind: input, shape index: {}]   ;;  %s1107_s13 = inlined_call_operand.vmem [shape: bf16[4,16,8], index: 13, kind: input, shape index: {}]   ;;  %s1108_s9 = inlined_call_operand.vmem [shape: bf16[8,8], index: 9, kind: input, shape index: {}]   ;;  %s1109_s11 = inlined_call_operand.vmem [shape: bf16[8,8], index: 11, kind: input, shape index: {}]   ;;  %s1110_s16 = inlined_call_operand.vmem [shape: f32[16,32], index: 16, kind: output, shape index: {0}]   ;;  %s1111_s17 = inlined_call_operand.vmem [shape: f32[16,32], index: 17, kind: output, shape index: {1}]  }
   0x1   :  { %1113 = sst [smem:[#allocation2_spill]] %s1094_s0  ;;  %754 = vmatprep.subr.bf16.mxu0 %v858_v0  ;;  %760 = vmatprep.subr.bf16.mxu1 %v858_v0  ;;  %v59_v6 = vld [vmem:[%s1096_s1] sm:$0xf]  ;;  %vm187_vm2 = vcmask 1043456   ;;  %vm183_vm3 = vcmask 64512   ;;  %v642_v33 = vld [vmem:[%s1100_s14 + $0x8] sm:$0xff] }
   0x2   :  { %1114 = sst [smem:[#allocation3_spill]] %s1095_s4  ;;  %756 = vmatprep.mubr.msk.bf16.mxu0 %vm859_vm0, %v858_v0  ;;  %762 = vmatprep.mubr.msk.bf16.mxu1 %vm859_vm0, %v858_v0  ;;  %v117_v7 = vld [vmem:[%s1097_s3] sm:$0xf]  ;;  %v1022_v34 = vld [vmem:[%s1101_s15 + $0x8] sm:$0xff]  ;;  %vm669_vm4 = vcmask 261120  }
   0x3   :  { %s1115_s26 = sld [smem:[#allocation2_spill]]  ;;  %818 = vset.pattern.permute.xlu0 %v860_v5  ;;  %819 = vset.pattern.permute.xlu1 %v860_v5  ;;  %v177_v8 = vld [vmem:[%s1098_s6] sm:$0xff] }
   0x4   :  { %s1116_s30 = sld [smem:[#allocation3_spill]]  ;;  %v60_v9 = vld [vmem:[%s1099_s2] sm:$0xff] }
   0x5   :  { %v641_v10 = vld [vmem:[%s1100_s14] sm:$0xff] }
   0x6   :  { %v991_v11 = vld [vmem:[%s1101_s15] sm:$0xff] }
   0x7   :  { %v176_v29 = vld [vmem:[%s1102_s5] sm:$0xf] }
   0x8   :  { %v240_v30 = vld [vmem:[%s1103_s8] sm:$0xff] }
   0x9   :  { %v56_v1 = vld [vmem:[%s1115_s26] sm:$0xff]  ;;  %v57_v2 = vld [vmem:[%s1115_s26 + $0x8] sm:$0xff]  ;;  %243 = vperm.xlu1 %819, %v240_v30  }
   0xa   :  { %v58_v3 = vpack.c.bf16 %v57_v2, %v56_v1  ;;  %v118_v4 = vld [vmem:[%s1116_s30] sm:$0xff]  ;;  %v822_v1 = vld [vmem:[%s1107_s13 + $0x8] sm:$0xff]  }
   0xb   :  { %121 = vperm.xlu0 %818, %v118_v4   ;;  %v302_v31 = vld [vmem:[%s1104_s10] sm:$0xff] }
   0xc   :  { %755 = vmatpush3.bf16.msra.mxu0 %v58_v3  ;;  %761 = vmatpush3.bf16.msra.mxu1 %v58_v3  ;;  %v363_v32 = vld [vmem:[%s1105_s12] sm:$0xff] }
   0xd   :  { %766 = vmatprep.subr.bf16.mxu0 %v858_v0  ;;  %772 = vmatprep.subr.bf16.mxu1 %v858_v0  ;;  %v239_v48 = vld [vmem:[%s1106_s7] sm:$0xf] }
   0xe   :  { %305 = vperm.xlu1 %819, %v302_v31   ;;  %v301_v63 = vld [vmem:[%s1108_s9] sm:$0xf] }
   0xf   :  { %757 = vmatmul.mubr.msk.bf16.vlgmr.msra.gmra.mxu0 %vm66_vm1, %v59_v6  ;;  %763 = vmatmul.mubr.msk.bf16.vlgmr.msra.gmra.mxu1 %vm66_vm1, %v117_v7 }
  0x10   :  { %768 = vmatprep.mubr.msk.bf16.mxu0 %vm859_vm0, %v858_v0  ;;  %774 = vmatprep.mubr.msk.bf16.mxu1 %vm859_vm0, %v858_v0 }
  0x11   :  { %180 = vperm.xlu0 %818, %v177_v8  }
  0x12   :  { %366 = vperm.xlu1 %819, %v363_v32  }
  0x15   :  { %63 = vperm.xlu0 %818, %v60_v9  }
  0x16   :  { %650 = vperm.xlu1 %819, %v642_v33  }
  0x19   :  { %645 = vperm.xlu0 %818, %v641_v10  }
  0x1a   :  { %681 = vperm.xlu1 %819, %v1022_v34  }
  0x1d   :  { %676 = vperm.xlu0 %818, %v991_v11  }
  0x84   :  { %v244_v49 = vpop.permute.xlu1 %243 }
  0x86   :  { %v122_v12 = vpop.permute.xlu0 %121 }
  0x89   :  { %v306_v5 = vpop.permute.xlu1 %305 }
  0x8c   :  { %v181_v35 = vpop.permute.xlu0 %180 }
  0x8d   :  { %v367_v33 = vpop.permute.xlu1 %366 }
  0x90   :  { %v64_v2 = vpop.permute.xlu0 %63 }
  0xcf   :  { %v994_v13 = vpop.f32.mrf.mxu0  ;;  %v161_v14 = vpop.f32.mrf.mxu1 }
  0xd0   :  { %v162_v15 = vadd.f32 %v161_v14, %v122_v12  ;;  %v105_v3 = vadd.f32 %v994_v13, %v64_v2 }
  0xd1   :  { %v764_v16 = vpop.f32.mrf.mxu1  ;;  %v758_v17 = vpop.f32.mrf.mxu0 }
  0xd2   :  { %v709_v18 = vmul.f32 -1.442695, %v162_v15  ;;  %v707_v4 = vmul.f32 -1.442695, %v105_v3 }
  0xd3   :  { %v164_v19 = vpop.f32.mrf.mxu1  ;;  %v107_v20 = vpop.f32.mrf.mxu0 }
  0xd4   :  { %826 = vpow2.f32 %v709_v18 }
  0xd5   :  { %v765_v21 = vpop.f32.mrf.mxu1  ;;  %v759_v22 = vpop.f32.mrf.mxu0 }
  0xe1   :  { %v827_v23 = vpop.eup %826 }
  0xe2   :  { %v170_v24 = vadd.f32 1.0, %v827_v23 }
  0xe4   :  { %828 = vrcp.f32 %v170_v24  ;;  %v362_v24 = vld [vmem:[%s1109_s11] sm:$0xf] }
  0xf1   :  { %v829_v25 = vpop.eup %828 }
  0xf2   :  { %v173_v26 = vmul.f32 %v829_v25, %v162_v15 }
  0xf4   :  { %v175_v27 = vpack.c.bf16 %v173_v26, %v173_v26 }
  0xf6   :  { %v997_v28 = vsel %vm187_vm2, %v175_v27, 0  ;;  %v824_v27 = vld [vmem:[%s1107_s13 + $0x10] sm:$0xff]  }
  0xf7   :  { %767 = vmatpush3.bf16.msra.mxu0 %v997_v28 }
  0xf8   :  { %778 = vmatprep.subr.bf16.mxu0 %v858_v0 }
  0xfa   :  { %769 = vmatmul.mubr.msk.bf16.vlgmr.msra.gmra.mxu0 %vm183_vm3, %v176_v29  ;;  %v861_v29 = vmov 1  }
  0xfb   :  { %780 = vmatprep.mubr.msk.bf16.mxu0 %vm859_vm0, %v858_v0  ;;  %820 = vset.pattern.permute.xlu0 %v861_v29 }
  0xfc   :  { %821 = vset.pattern.permute.xlu1 %v861_v29  ;;  %687 = vperm.xlu0 %820, %v991_v11  }
  0xfd   :  { %691 = vperm.xlu1 %821, %v1022_v34  }
 0x1ba   :  { %v225_v36 = vpop.f32.mrf.mxu0 }
 0x1bb   :  { %v226_v37 = vadd.f32 %v225_v36, %v181_v35 }
 0x1bc   :  { %v770_v38 = vpop.f32.mrf.mxu0 }
 0x1bd   :  { %v711_v39 = vmul.f32 -1.442695, %v226_v37 }
 0x1be   :  { %v228_v40 = vpop.f32.mrf.mxu0 }
 0x1bf   :  { %830 = vpow2.f32 %v711_v39 }
 0x1c0   :  { %v771_v41 = vpop.f32.mrf.mxu0 }
 0x1cc   :  { %v831_v42 = vpop.eup %830 }
 0x1cd   :  { %v234_v43 = vadd.f32 1.0, %v831_v42 }
 0x1cf   :  { %832 = vrcp.f32 %v234_v43 }
 0x1dc   :  { %v833_v44 = vpop.eup %832 }
 0x1dd   :  { %v237_v45 = vmul.f32 %v833_v44, %v226_v37 }
 0x1df   :  { %v238_v46 = vpack.c.bf16 %v237_v45, %v237_v45  ;;  %v825_v45 = vld [vmem:[%s1107_s13 + $0x18] sm:$0xff]  }
 0x1e1   :  { %v250_v47 = vsel %vm187_vm2, %v238_v46, 0 }
 0x1e2   :  { %773 = vmatpush3.bf16.msra.mxu1 %v250_v47 }
 0x1e3   :  { %784 = vmatprep.subr.bf16.mxu1 %v858_v0 }
 0x1e5   :  { %775 = vmatmul.mubr.msk.bf16.vlgmr.msra.gmra.mxu1 %vm183_vm3, %v239_v48 }
 0x1e6   :  { %786 = vmatprep.mubr.msk.bf16.mxu1 %vm859_vm0, %v858_v0 }
 0x2a5   :  { %v286_v50 = vpop.f32.mrf.mxu1 }
 0x2a6   :  { %v287_v51 = vadd.f32 %v286_v50, %v244_v49 }
 0x2a7   :  { %v776_v52 = vpop.f32.mrf.mxu1 }
 0x2a8   :  { %v713_v53 = vmul.f32 -1.442695, %v287_v51 }
 0x2a9   :  { %v289_v54 = vpop.f32.mrf.mxu1 }
 0x2aa   :  { %834 = vpow2.f32 %v713_v53 }
 0x2ab   :  { %v777_v55 = vpop.f32.mrf.mxu1 }
 0x2b7   :  { %v835_v56 = vpop.eup %834 }
 0x2b8   :  { %v295_v57 = vadd.f32 1.0, %v835_v56 }
 0x2ba   :  { %836 = vrcp.f32 %v295_v57 }
 0x2bb   :  { %838 = vpow2.f32 %v707_v4 }
 0x2c7   :  { %v837_v58 = vpop.eup %836 }
 0x2c8   :  { %v298_v59 = vmul.f32 %v837_v58, %v287_v51  ;;  %v839_v14 = vpop.eup %838 }
 0x2c9   :  { %v113_v15 = vadd.f32 1.0, %v839_v14 }
 0x2ca   :  { %v1033_v60 = vadd.f32 %v298_v59, %v173_v26  ;;  %v823_v26 = vld [vmem:[%s1107_s13] sm:$0xff]  }
 0x2cc   :  { %v300_v61 = vpack.c.bf16 %v1033_v60, %v1033_v60 }
 0x2ce   :  { %v312_v62 = vsel %vm187_vm2, %v300_v61, 0 }
 0x2cf   :  { %779 = vmatpush3.bf16.msra.mxu0 %v312_v62 }
 0x2d0   :  { %790 = vmatprep.subr.bf16.mxu0 %v858_v0 }
 0x2d2   :  { %781 = vmatmul.mubr.msk.bf16.vlgmr.msra.gmra.mxu0 %vm183_vm3, %v301_v63 }
 0x2d3   :  { %791 = vmatpush3.bf16.msra.mxu0 %v997_v28  ;;  %792 = vmatprep.mubr.msk.bf16.mxu0 %vm859_vm0, %v858_v0 }
 0x2d4   :  { %802 = vmatprep.subr.bf16.mxu0 %v858_v0 }
 0x2da   :  { %793 = vmatmul.mubr.msk.bf16.vlgmr.msra.gmra.mxu0 %vm183_vm3, %v822_v1 }
 0x2db   :  { %803 = vmatpush3.bf16.msra.mxu0 %v312_v62  ;;  %804 = vmatprep.mubr.msk.bf16.mxu0 %vm859_vm0, %v858_v0 }
 0x2e2   :  { %805 = vmatmul.mubr.msk.bf16.vlgmr.msra.gmra.mxu0 %vm183_vm3, %v824_v27 }
 0x392   :  { %v348_v6 = vpop.f32.mrf.mxu0 }
 0x393   :  { %v349_v7 = vadd.f32 %v348_v6, %v306_v5 }
 0x394   :  { %v782_v8 = vpop.f32.mrf.mxu0 }
 0x395   :  { %v715_v9 = vmul.f32 -1.442695, %v349_v7 }
 0x396   :  { %v351_v10 = vpop.f32.mrf.mxu0 }
 0x397   :  { %840 = vpow2.f32 %v715_v9 }
 0x398   :  { %v783_v12 = vpop.f32.mrf.mxu0  ;;  %842 = vrcp.f32 %v113_v15 }
 0x39a   :  { %v471_v28 = vpop.f32.mrf.mxu0 }
 0x39c   :  { %v794_v30 = vpop.f32.mrf.mxu0 }
 0x39e   :  { %v474_v31 = vpop.f32.mrf.mxu0 }
 0x3a0   :  { %v795_v32 = vpop.f32.mrf.mxu0 }
 0x3a2   :  { %v575_v49 = vpop.f32.mrf.mxu0 }
 0x3a4   :  { %v841_v16 = vpop.eup %840  ;;  %v806_v52 = vpop.f32.mrf.mxu0 }
 0x3a5   :  { %v357_v17 = vadd.f32 1.0, %v841_v16  ;;  %v843_v18 = vpop.eup %842 }
 0x3a6   :  { %v116_v20 = vmul.f32 %v843_v18, %v105_v3  ;;  %v578_v55 = vpop.f32.mrf.mxu0  ;;  %v651_v3 = vpop.permute.xlu1 %650 }
 0x3a7   :  { %844 = vrcp.f32 %v357_v17 }
 0x3a8   :  { %v174_v22 = vpack.c.bf16 %v116_v20, %v116_v20  ;;  %v807_v57 = vpop.f32.mrf.mxu0 }
 0x3aa   :  { %v487_v25 = vsel %vm187_vm2, %v174_v22, 0  ;;  %v682_v16 = vpop.permute.xlu1 %681 }
 0x3b4   :  { %v845_v19 = vpop.eup %844 }
 0x3b5   :  { %v360_v13 = vmul.f32 %v845_v19, %v349_v7 }
 0x3b7   :  { %v361_v21 = vpack.c.bf16 %v360_v13, %v360_v13 }
 0x3b9   :  { %v373_v23 = vsel %vm187_vm2, %v361_v21, 0  ;;  %v692_v21 = vpop.permute.xlu1 %691 }
 0x3ba   :  { %785 = vmatpush3.bf16.msra.mxu1 %v373_v23 }
 0x3bb   :  { %796 = vmatprep.subr.bf16.mxu1 %v858_v0 }
 0x3bd   :  { %787 = vmatmul.mubr.msk.bf16.vlgmr.msra.gmra.mxu1 %vm183_vm3, %v362_v24 }
 0x3be   :  { %797 = vmatpush3.bf16.msra.mxu1 %v487_v25  ;;  %798 = vmatprep.mubr.msk.bf16.mxu1 %vm859_vm0, %v858_v0 }
 0x3bf   :  { %808 = vmatprep.subr.bf16.mxu1 %v858_v0 }
 0x3c5   :  { %799 = vmatmul.mubr.msk.bf16.vlgmr.msra.gmra.mxu1 %vm183_vm3, %v823_v26 }
 0x3c6   :  { %810 = vmatprep.mubr.msk.bf16.mxu1 %vm859_vm0, %v858_v0 }
 0x47d   :  { %v409_v35 = vpop.f32.mrf.mxu1 }
 0x47e   :  { %v410_v36 = vadd.f32 %v409_v35, %v367_v33 }
 0x47f   :  { %v788_v37 = vpop.f32.mrf.mxu1 }
 0x480   :  { %v717_v38 = vmul.f32 -1.442695, %v410_v36 }
 0x481   :  { %v412_v39 = vpop.f32.mrf.mxu1 }
 0x482   :  { %846 = vpow2.f32 %v717_v38 }
 0x483   :  { %v789_v0 = vpop.f32.mrf.mxu1 }
 0x485   :  { %v523_v46 = vpop.f32.mrf.mxu1 }
 0x486   :  { %v524_v47 = vadd.f32 %v523_v46, %v471_v28 }
 0x487   :  { %v800_v48 = vpop.f32.mrf.mxu1 }
 0x488   :  { %v582_v50 = vadd.f32 %v575_v49, %v524_v47 }
 0x489   :  { %v526_v51 = vpop.f32.mrf.mxu1 }
 0x48a   :  { %v527_v53 = vadd.f32 %v526_v51, %v474_v31 }
 0x48b   :  { %v801_v54 = vpop.f32.mrf.mxu1 }
 0x48c   :  { %v583_v56 = vadd.f32 %v578_v55, %v527_v53 }
 0x48f   :  { %v847_v40 = vpop.eup %846 }
 0x490   :  { %v418_v41 = vadd.f32 1.0, %v847_v40 }
 0x492   :  { %848 = vrcp.f32 %v418_v41 }
 0x49f   :  { %v849_v42 = vpop.eup %848 }
 0x4a0   :  { %v421_v43 = vmul.f32 %v849_v42, %v410_v36 }
 0x4a2   :  { %v422_v11 = vadd.f32 %v421_v43, %v1033_v60  ;;  %v646_v60 = vpop.permute.xlu0 %645 }
 0x4a4   :  { %v423_v44 = vpack.c.bf16 %v422_v11, %v422_v11 }
 0x4a6   :  { %v596_v34 = vsel %vm187_vm2, %v423_v44, 0  ;;  %v677_v12 = vpop.permute.xlu0 %676 }
 0x4a7   :  { %809 = vmatpush3.bf16.msra.mxu1 %v596_v34 }
 0x4aa   :  { %811 = vmatmul.mubr.msk.bf16.vlgmr.msra.gmra.mxu1 %vm183_vm3, %v825_v45  ;;  %v688_v17 = vpop.permute.xlu0 %687 }
 0x56a   :  { %v632_v58 = vpop.f32.mrf.mxu1 }
 0x56b   :  { %v639_v59 = vadd.f32 %v632_v58, %v582_v50 }
 0x56c   :  { %v812_v61 = vpop.f32.mrf.mxu1 }
 0x56d   :  { %v653_v62 = vadd.f32 %v646_v60, %v639_v59 }
 0x56e   :  { %v635_v63 = vpop.f32.mrf.mxu1 }
 0x56f   :  { %v732_v1 = vmul.f32 -1.442695, %v653_v62  ;;  %v640_v2 = vadd.f32 %v635_v63, %v583_v56 }
 0x570   :  { %v813_v4 = vpop.f32.mrf.mxu1 }
 0x571   :  { %850 = vpow2.f32 %v732_v1  ;;  %v654_v5 = vadd.f32 %v651_v3, %v640_v2 }
 0x573   :  { %v733_v6 = vmul.f32 -1.442695, %v654_v5 }
 0x575   :  { %852 = vpow2.f32 %v733_v6 }
 0x57e   :  { %v851_v7 = vpop.eup %850 }
 0x57f   :  { %v661_v8 = vadd.f32 1.0, %v851_v7 }
 0x581   :  { %854 = vrcp.f32 %v661_v8 }
 0x582   :  { %v853_v9 = vpop.eup %852 }
 0x583   :  { %v662_v10 = vadd.f32 1.0, %v853_v9 }
 0x585   :  { %856 = vrcp.f32 %v662_v10 }
 0x58e   :  { %v855_v14 = vpop.eup %854 }
 0x58f   :  { %v667_v15 = vmul.f32 %v855_v14, %v653_v62 }
 0x591   :  { %670 = vst.msk [vmem:[%s1110_s16] sm:$0xff] %vm669_vm4, %v667_v15  ;;  %v684_v18 = vmul.f32 %v677_v12, %v667_v15 }
 0x592   :  { %v857_v19 = vpop.eup %856 }
 0x593   :  { %v694_v20 = vadd.f32 %v688_v17, %v684_v18  ;;  %v668_v13 = vmul.f32 %v857_v19, %v654_v5 }
 0x595   :  { %696 = vst.msk [vmem:[%s1111_s17] sm:$0xff] %vm669_vm4, %v694_v20  ;;  %671 = vst.msk [vmem:[%s1110_s16 + $0x8] sm:$0xff] %vm669_vm4, %v668_v13  ;;  %v685_v22 = vmul.f32 %v682_v16, %v668_v13 }
 0x597   :  { %v695_v23 = vadd.f32 %v692_v21, %v685_v22 }
 0x599   :  { %697 = vst.msk [vmem:[%s1111_s17 + $0x8] sm:$0xff] %vm669_vm4, %v695_v23 }

// kernel: _lambda_.19
= control target key start
LH: loop header
LB: loop body
LE: loop exit
PB: predicated region body
PF: predicated region fallthrough
CT: control target
= control target key end

     0   :  { %v297_v0 = vmov 0   ;;  %vm133_vm0 = vcmask 130048   ;;  %vm217_vm1 = vcmask 64512   ;;  %s381_s2 = inlined_call_operand.vmem [shape: bf16[144,8], index: 2, kind: input, shape index: {}]   ;;  %s382_s0 = inlined_call_operand.vmem [shape: bf16[32,144], index: 0, kind: input, shape index: {}]   ;;  %s383_s1 = inlined_call_operand.vmem [shape: f32[32,1], index: 1, kind: input, shape index: {}]   ;;  %s384_s3 = inlined_call_operand.vmem [shape: f32[32,8], index: 3, kind: output, shape index: {}]  }
   0x1   :  { %140 = vmatprep.subr.bf16.mxu0 %v297_v0  ;;  %245 = vmatprep.subr.bf16.mxu1 %v297_v0  ;;  %v266_v1 = vld [vmem:[%s381_s2 + $0x38] sm:$0xff]   ;;  %v267_v2 = vld [vmem:[%s381_s2 + $0x30] sm:$0xff]   ;;  %v268_v3 = vld [vmem:[%s381_s2 + $0x28] sm:$0xff]  }
   0x2   :  { %265 = vset.pattern.permute.xlu1 %v297_v0  ;;  %264 = vset.pattern.permute.xlu0 %v297_v0  ;;  %v269_v4 = vld [vmem:[%s381_s2 + $0x20] sm:$0xff]   ;;  %v280_v6 = vld [vmem:[%s382_s0 + $0x14] ss:$8 sps:$4 sm:$0xff]   ;;  %v38_v11 = vld [vmem:[%s383_s1 + $0x8] sm:$0xff] }
   0x3   :  { %141 = vmatpush1.bf16.msra.mxu0 %v266_v1  ;;  %254 = vmatpush1.bf16.msra.mxu1 %v266_v1  ;;  %v277_v5 = vld [vmem:[%s382_s0 + $0x4] ss:$8 sps:$4 sm:$0xff]   ;;  %v39_v7 = vld [vmem:[%s383_s1 + $0x10] sm:$0xff]  ;;  %v40_v9 = vld [vmem:[%s383_s1 + $0x18] sm:$0xff] }
   0x4   :  { %142 = vmatprep.subr.bf16.mxu0 %v297_v0  ;;  %246 = vmatprep.subr.bf16.mxu1 %v297_v0  ;;  %v37_v8 = vld [vmem:[%s383_s1] sm:$0xff]  ;;  %v270_v10 = vld [vmem:[%s381_s2 + $0x18] sm:$0xff]   ;;  %v271_v12 = vld [vmem:[%s381_s2 + $0x10] sm:$0xff]  }
   0x5   :  { %239 = vmatprep.mubr.msk.bf16.mxu0 %vm133_vm0, %v277_v5  ;;  %53 = vperm.xlu1 %265, %v39_v7   ;;  %v272_v13 = vld [vmem:[%s381_s2 + $0x8] sm:$0xff]   ;;  %v273_v14 = vld [vmem:[%s381_s2] sm:$0xff]   ;;  %v278_v17 = vld [vmem:[%s382_s0 + $0x10] ss:$8 sps:$4 sm:$0xff]  }
   0x6   :  { %240 = vmatprep.mubr.msk.bf16.mxu1 %vm133_vm0, %v280_v6  ;;  %43 = vperm.xlu0 %264, %v37_v8   ;;  %v274_v15 = vld [vmem:[%s381_s2 + $0x40] sm:$0xff]  }
   0x7   :  { %143 = vmatpush1.bf16.msra.mxu0 %v267_v2  ;;  %255 = vmatpush1.bf16.msra.mxu1 %v267_v2  ;;  %v275_v16 = vld [vmem:[%s382_s0] ss:$8 sps:$4 sm:$0xff]  }
   0x8   :  { %144 = vmatprep.subr.bf16.mxu0 %v297_v0  ;;  %247 = vmatprep.subr.bf16.mxu1 %v297_v0 }
   0x9   :  { %58 = vperm.xlu1 %265, %v40_v9  }
   0xa   :  { %48 = vperm.xlu0 %264, %v38_v11  }
   0xb   :  { %145 = vmatpush1.bf16.msra.mxu0 %v268_v3  ;;  %256 = vmatpush1.bf16.msra.mxu1 %v268_v3 }
   0xc   :  { %146 = vmatprep.subr.bf16.mxu0 %v297_v0  ;;  %248 = vmatprep.subr.bf16.mxu1 %v297_v0 }
   0xf   :  { %147 = vmatpush1.bf16.msra.mxu0 %v269_v4  ;;  %257 = vmatpush1.bf16.msra.mxu1 %v269_v4 }
  0x10   :  { %148 = vmatprep.subr.bf16.mxu0 %v297_v0  ;;  %249 = vmatprep.subr.bf16.mxu1 %v297_v0 }
  0x13   :  { %149 = vmatpush1.bf16.msra.mxu0 %v270_v10  ;;  %258 = vmatpush1.bf16.msra.mxu1 %v270_v10 }
  0x14   :  { %150 = vmatprep.subr.bf16.mxu0 %v297_v0  ;;  %250 = vmatprep.subr.bf16.mxu1 %v297_v0 }
  0x17   :  { %151 = vmatpush1.bf16.msra.mxu0 %v271_v12  ;;  %259 = vmatpush1.bf16.msra.mxu1 %v271_v12 }
  0x18   :  { %152 = vmatprep.subr.bf16.mxu0 %v297_v0  ;;  %251 = vmatprep.subr.bf16.mxu1 %v297_v0 }
  0x1b   :  { %153 = vmatpush1.bf16.msra.mxu0 %v272_v13  ;;  %260 = vmatpush1.bf16.msra.mxu1 %v272_v13 }
  0x1c   :  { %154 = vmatprep.subr.bf16.mxu0 %v297_v0  ;;  %252 = vmatprep.subr.bf16.mxu1 %v297_v0 }
  0x1f   :  { %155 = vmatpush1.bf16.msra.mxu0 %v273_v14  ;;  %261 = vmatpush1.bf16.msra.mxu1 %v273_v14 }
  0x20   :  { %170 = vmatprep.subr.bf16.mxu0 %v297_v0  ;;  %253 = vmatprep.subr.bf16.mxu1 %v297_v0 }
  0x23   :  { %171 = vmatpush2.bf16.msra.mxu0 %v274_v15  ;;  %262 = vmatpush2.bf16.msra.mxu1 %v274_v15 }
  0x26   :  { %173 = vmatmul.mubr.bf16.vlgmr.msra.gmra.mxu0 %v275_v16  ;;  %181 = vmatmul.mubr.bf16.vlgmr.msra.gmra.mxu1 %v278_v17 }
  0x80   :  { %v54_v18 = vpop.permute.xlu1 %53 }
  0x81   :  { %v44_v19 = vpop.permute.xlu0 %43 }
  0x84   :  { %v59_v26 = vpop.permute.xlu1 %58 }
  0x85   :  { %v49_v27 = vpop.permute.xlu0 %48 }
  0xe6   :  { %v174_v20 = vpop.f32.mrf.mxu0  ;;  %v182_v21 = vpop.f32.mrf.mxu1 }
  0xe7   :  { %v175_v22 = vadd.f32 %v174_v20, %v44_v19  ;;  %v183_v23 = vadd.f32 %v182_v21, %v54_v18 }
  0xe8   :  { %v176_v24 = vpop.f32.mrf.mxu0  ;;  %v184_v25 = vpop.f32.mrf.mxu1 }
  0xe9   :  { %v241_v28 = vmul.f32 -1.442695, %v175_v22  ;;  %v243_v29 = vmul.f32 -1.442695, %v183_v23 }
  0xea   :  { %v177_v30 = vpop.f32.mrf.mxu0  ;;  %v185_v31 = vpop.f32.mrf.mxu1 }
  0xeb   :  { %281 = vpow2.f32 %v241_v28  ;;  %v178_v32 = vadd.f32 %v177_v30, %v49_v27  ;;  %v186_v33 = vadd.f32 %v185_v31, %v59_v26 }
  0xec   :  { %283 = vpow2.f32 %v243_v29  ;;  %v179_v34 = vpop.f32.mrf.mxu0  ;;  %v187_v35 = vpop.f32.mrf.mxu1 }
  0xed   :  { %v242_v36 = vmul.f32 -1.442695, %v178_v32  ;;  %v244_v37 = vmul.f32 -1.442695, %v186_v33 }
  0xef   :  { %285 = vpow2.f32 %v242_v36 }
  0xf0   :  { %287 = vpow2.f32 %v244_v37 }
  0xf8   :  { %v282_v38 = vpop.eup %281 }
  0xf9   :  { %v284_v39 = vpop.eup %283  ;;  %v201_v40 = vadd.f32 1.0, %v282_v38 }
  0xfa   :  { %v203_v41 = vadd.f32 1.0, %v284_v39 }
  0xfb   :  { %289 = vrcp.f32 %v201_v40 }
  0xfc   :  { %v286_v42 = vpop.eup %285  ;;  %291 = vrcp.f32 %v203_v41 }
  0xfd   :  { %v288_v43 = vpop.eup %287  ;;  %v202_v44 = vadd.f32 1.0, %v286_v42 }
  0xfe   :  { %v204_v45 = vadd.f32 1.0, %v288_v43 }
  0xff   :  { %293 = vrcp.f32 %v202_v44 }
 0x100   :  { %295 = vrcp.f32 %v204_v45 }
 0x108   :  { %v290_v46 = vpop.eup %289 }
 0x109   :  { %v292_v47 = vpop.eup %291  ;;  %v213_v48 = vmul.f32 %v290_v46, %v175_v22 }
 0x10a   :  { %v215_v49 = vmul.f32 %v292_v47, %v183_v23 }
 0x10b   :  { %218 = vst.msk [vmem:[%s384_s3] sm:$0xff] %vm217_vm1, %v213_v48 }
 0x10c   :  { %v294_v50 = vpop.eup %293  ;;  %220 = vst.msk [vmem:[%s384_s3 + $0x10] sm:$0xff] %vm217_vm1, %v215_v49 }
 0x10d   :  { %v296_v51 = vpop.eup %295  ;;  %v214_v52 = vmul.f32 %v294_v50, %v178_v32 }
 0x10e   :  { %v216_v53 = vmul.f32 %v296_v51, %v186_v33 }
 0x10f   :  { %219 = vst.msk [vmem:[%s384_s3 + $0x8] sm:$0xff] %vm217_vm1, %v214_v52 }
 0x110   :  { %221 = vst.msk [vmem:[%s384_s3 + $0x18] sm:$0xff] %vm217_vm1, %v216_v53 }

// kernel: _lambda_.21
= control target key start
LH: loop header
LB: loop body
LE: loop exit
PB: predicated region body
PF: predicated region fallthrough
CT: control target
= control target key end

     0   :  { %v134_v0 = vmov 0.0   ;;  %vm135_vm0 = vmmov 0   ;;  %v136_v6 = vmov 0   ;;  %vm40_vm1 = vcmask 261120   ;;  %s184_s2 = inlined_call_operand.vmem [shape: f32[32,8], index: 2, kind: input, shape index: {}]   ;;  %s185_s1 = inlined_call_operand.vmem [shape: f32[16,1], index: 1, kind: input, shape index: {}]   ;;  %s186_s0 = inlined_call_operand.vmem [shape: bf16[16,32], index: 0, kind: input, shape index: {}]   ;;  %s187_s3 = inlined_call_operand.vmem [shape: f32[16,8], index: 3, kind: output, shape index: {}]  }
   0x1   :  { %113 = vmatprep.subr.bf16.mxu0 %v134_v0  ;;  %v17_v1 = vld [vmem:[%s184_s2 + $0x10] sm:$0xff]  ;;  %v18_v2 = vld [vmem:[%s184_s2 + $0x18] sm:$0xff]  ;;  %v15_v3 = vld [vmem:[%s184_s2] sm:$0xff]  ;;  %117 = vmatprep.mubr.msk.bf16.mxu0 %vm135_vm0, %v134_v0  ;;  %vm99_vm2 = vcmask 64512  }
   0x2   :  { %v20_v4 = vpack.c.bf16 %v18_v2, %v17_v1  ;;  %v16_v5 = vld [vmem:[%s184_s2 + $0x8] sm:$0xff]  ;;  %124 = vset.pattern.permute.xlu0 %v136_v6  ;;  %v23_v7 = vld [vmem:[%s185_s1] sm:$0xff] }
   0x3   :  { %v19_v8 = vpack.c.bf16 %v16_v5, %v15_v3  ;;  %27 = vperm.xlu0 %124, %v23_v7   ;;  %v24_v9 = vld [vmem:[%s185_s1 + $0x8] sm:$0xff]  ;;  %v125_v10 = vld [vmem:[%s186_s0] sm:$0xff]  }
   0x4   :  { %114 = vmatpush3.bf16.msra.mxu0 %v20_v4 }
   0x5   :  { %115 = vmatprep.subr.bf16.mxu0 %v134_v0 }
   0x7   :  { %32 = vperm.xlu0 %124, %v24_v9  }
   0x8   :  { %116 = vmatpush3.bf16.msra.mxu0 %v19_v8 }
   0xb   :  { %118 = vmatmul.mubr.msk.bf16.vlgmr.msra.gmra.mxu0 %vm40_vm1, %v125_v10 }
  0x7e   :  { %v28_v11 = vpop.permute.xlu0 %27 }
  0x82   :  { %v33_v16 = vpop.permute.xlu0 %32 }
  0xcb   :  { %v78_v12 = vpop.f32.mrf.mxu0 }
  0xcc   :  { %v79_v13 = vadd.f32 %v78_v12, %v28_v11 }
  0xcd   :  { %v119_v14 = vpop.f32.mrf.mxu0 }
  0xce   :  { %v108_v15 = vmul.f32 -1.442695, %v79_v13 }
  0xcf   :  { %v81_v17 = vpop.f32.mrf.mxu0 }
  0xd0   :  { %126 = vpow2.f32 %v108_v15  ;;  %v82_v18 = vadd.f32 %v81_v17, %v33_v16 }
  0xd1   :  { %v120_v19 = vpop.f32.mrf.mxu0 }
  0xd2   :  { %v109_v20 = vmul.f32 -1.442695, %v82_v18 }
  0xd4   :  { %128 = vpow2.f32 %v109_v20 }
  0xdd   :  { %v127_v21 = vpop.eup %126 }
  0xde   :  { %v91_v22 = vadd.f32 1.0, %v127_v21 }
  0xe0   :  { %130 = vrcp.f32 %v91_v22 }
  0xe1   :  { %v129_v23 = vpop.eup %128 }
  0xe2   :  { %v92_v24 = vadd.f32 1.0, %v129_v23 }
  0xe4   :  { %132 = vrcp.f32 %v92_v24 }
  0xed   :  { %v131_v25 = vpop.eup %130 }
  0xee   :  { %v97_v26 = vmul.f32 %v131_v25, %v79_v13 }
  0xf0   :  { %100 = vst.msk [vmem:[%s187_s3] sm:$0xff] %vm99_vm2, %v97_v26 }
  0xf1   :  { %v133_v27 = vpop.eup %132 }
  0xf2   :  { %v98_v28 = vmul.f32 %v133_v27, %v82_v18 }
  0xf4   :  { %101 = vst.msk [vmem:[%s187_s3 + $0x8] sm:$0xff] %vm99_vm2, %v98_v28 }

// kernel: _lambda_.20
= control target key start
LH: loop header
LB: loop body
LE: loop exit
PB: predicated region body
PF: predicated region fallthrough
CT: control target
= control target key end

     0   :  { %v807_v0 = vmov 0.0   ;;  %vm808_vm0 = vmmov 0   ;;  %v809_v6 = vmov 0   ;;  %vm64_vm1 = vcmask 261120   ;;  %s980_s0 = inlined_call_operand.vmem [shape: f32[32,8], index: 0, kind: input, shape index: {}]   ;;  %s981_s1 = inlined_call_operand.vmem [shape: bf16[16,32], index: 1, kind: input, shape index: {}]   ;;  %s982_s4 = inlined_call_operand.vmem [shape: f32[16,1], index: 4, kind: input, shape index: {}]   ;;  %s983_s3 = inlined_call_operand.vmem [shape: bf16[16,32], index: 3, kind: input, shape index: {}]   ;;  %s984_s6 = inlined_call_operand.vmem [shape: f32[16,1], index: 6, kind: input, shape index: {}]   ;;  %s985_s2 = inlined_call_operand.vmem [shape: f32[16,1], index: 2, kind: input, shape index: {}]   ;;  %s986_s8 = inlined_call_operand.vmem [shape: f32[16,1], index: 8, kind: input, shape index: {}]   ;;  %s987_s10 = inlined_call_operand.vmem [shape: f32[32,1], index: 10, kind: input, shape index: {}]   ;;  %s988_s5 = inlined_call_operand.vmem [shape: bf16[16,16], index: 5, kind: input, shape index: {}]   ;;  %s989_s7 = inlined_call_operand.vmem [shape: bf16[16,16], index: 7, kind: input, shape index: {}]   ;;  %s990_s9 = inlined_call_operand.vmem [shape: bf16[3,32,16], index: 9, kind: input, shape index: {}]   ;;  %s991_s11 = inlined_call_operand.vmem [shape: f32[32,8], index: 11, kind: output, shape index: {}]  }
   0x1   :  { %698 = vmatprep.subr.bf16.mxu0 %v807_v0  ;;  %706 = vmatprep.subr.bf16.mxu1 %v807_v0  ;;  %v41_v1 = vld [vmem:[%s980_s0 + $0x10] sm:$0xff]  ;;  %v42_v2 = vld [vmem:[%s980_s0 + $0x18] sm:$0xff]  ;;  %v39_v3 = vld [vmem:[%s980_s0] sm:$0xff]  ;;  %vm221_vm2 = vcmask 130048   ;;  %vm630_vm3 = vcmask 64512  }
   0x2   :  { %v44_v4 = vpack.c.bf16 %v42_v2, %v41_v1  ;;  %v40_v5 = vld [vmem:[%s980_s0 + $0x8] sm:$0xff]  ;;  %702 = vmatprep.mubr.msk.bf16.mxu0 %vm808_vm0, %v807_v0  ;;  %710 = vmatprep.mubr.msk.bf16.mxu1 %vm808_vm0, %v807_v0  ;;  %v125_v8 = vld [vmem:[%s982_s4] sm:$0xff]  ;;  %v576_v18 = vld [vmem:[%s987_s10 + $0x10] sm:$0xff] }
   0x3   :  { %747 = vset.pattern.permute.xlu0 %v809_v6  ;;  %748 = vset.pattern.permute.xlu1 %v809_v6  ;;  %v43_v7 = vpack.c.bf16 %v40_v5, %v39_v3  ;;  %v204_v9 = vld [vmem:[%s984_s6] sm:$0xff]  ;;  %v126_v12 = vld [vmem:[%s982_s4 + $0x8] sm:$0xff]  ;;  %v577_v21 = vld [vmem:[%s987_s10 + $0x18] sm:$0xff] }
   0x4   :  { %699 = vmatpush3.bf16.msra.mxu0 %v44_v4  ;;  %707 = vmatpush3.bf16.msra.mxu1 %v44_v4  ;;  %v749_v10 = vld [vmem:[%s981_s1] sm:$0xff]   ;;  %v205_v13 = vld [vmem:[%s984_s6 + $0x8] sm:$0xff] }
   0x5   :  { %700 = vmatprep.subr.bf16.mxu0 %v807_v0  ;;  %708 = vmatprep.subr.bf16.mxu1 %v807_v0  ;;  %v750_v11 = vld [vmem:[%s983_s3] sm:$0xff]   ;;  %v48_v15 = vld [vmem:[%s985_s2 + $0x8] sm:$0xff] }
   0x6   :  { %129 = vperm.xlu0 %747, %v125_v8   ;;  %208 = vperm.xlu1 %748, %v204_v9   ;;  %v47_v14 = vld [vmem:[%s985_s2] sm:$0xff]  ;;  %v284_v19 = vld [vmem:[%s986_s8 + $0x8] sm:$0xff] }
   0x7   :  { %v283_v16 = vld [vmem:[%s986_s8] sm:$0xff]  ;;  %v575_v20 = vld [vmem:[%s987_s10 + $0x8] sm:$0xff] }
   0x8   :  { %701 = vmatpush3.bf16.msra.mxu0 %v43_v7  ;;  %709 = vmatpush3.bf16.msra.mxu1 %v43_v7  ;;  %v574_v17 = vld [vmem:[%s987_s10] sm:$0xff] }
   0x9   :  { %714 = vmatprep.subr.bf16.mxu0 %v807_v0  ;;  %720 = vmatprep.subr.bf16.mxu1 %v807_v0  ;;  %v751_v62 = vld [vmem:[%s988_s5] sm:$0xff]  }
   0xa   :  { %134 = vperm.xlu0 %747, %v126_v12   ;;  %213 = vperm.xlu1 %748, %v205_v13  }
   0xb   :  { %703 = vmatmul.mubr.msk.bf16.vlgmr.msra.gmra.mxu0 %vm64_vm1, %v749_v10  ;;  %711 = vmatmul.mubr.msk.bf16.vlgmr.msra.gmra.mxu1 %vm64_vm1, %v750_v11 }
   0xc   :  { %716 = vmatprep.mubr.msk.bf16.mxu0 %vm808_vm0, %v807_v0  ;;  %722 = vmatprep.mubr.msk.bf16.mxu1 %vm808_vm0, %v807_v0 }
   0xe   :  { %51 = vperm.xlu0 %747, %v47_v14   ;;  %56 = vperm.xlu1 %748, %v48_v15  }
  0x12   :  { %287 = vperm.xlu0 %747, %v283_v16   ;;  %292 = vperm.xlu1 %748, %v284_v19   ;;  %v752_v16 = vld [vmem:[%s989_s7] sm:$0xff]   ;;  %v755_v19 = vld [vmem:[%s990_s9 + $0x18] sm:$0xff]  }
  0x16   :  { %580 = vperm.xlu0 %747, %v574_v17   ;;  %585 = vperm.xlu1 %748, %v575_v20   ;;  %v753_v17 = vld [vmem:[%s990_s9 + $0x10] sm:$0xff]   ;;  %v756_v20 = vld [vmem:[%s990_s9 + $0x8] sm:$0xff]  }
  0x1a   :  { %590 = vperm.xlu0 %747, %v576_v18   ;;  %595 = vperm.xlu1 %748, %v577_v21   ;;  %v754_v18 = vld [vmem:[%s990_s9] sm:$0xff]  }
  0x1b   :  { %v757_v21 = vld [vmem:[%s990_s9 + $0x20] sm:$0xff]  }
  0x81   :  { %v130_v22 = vpop.permute.xlu0 %129  ;;  %v209_v23 = vpop.permute.xlu1 %208 }
  0x85   :  { %v135_v24 = vpop.permute.xlu0 %134  ;;  %v214_v25 = vpop.permute.xlu1 %213 }
  0x89   :  { %v52_v26 = vpop.permute.xlu0 %51  ;;  %v57_v31 = vpop.permute.xlu1 %56 }
  0xcb   :  { %v102_v27 = vpop.f32.mrf.mxu0  ;;  %v179_v28 = vpop.f32.mrf.mxu1 }
  0xcc   :  { %v103_v29 = vadd.f32 %v102_v27, %v52_v26  ;;  %v180_v30 = vadd.f32 %v179_v28, %v130_v22  ;;  %v288_v22 = vpop.permute.xlu0 %287  ;;  %v293_v27 = vpop.permute.xlu1 %292 }
  0xcd   :  { %v704_v32 = vpop.f32.mrf.mxu0  ;;  %v712_v33 = vpop.f32.mrf.mxu1 }
  0xce   :  { %v641_v34 = vmul.f32 -1.442695, %v103_v29  ;;  %v645_v35 = vmul.f32 -1.442695, %v180_v30 }
  0xcf   :  { %v105_v36 = vpop.f32.mrf.mxu0  ;;  %v182_v37 = vpop.f32.mrf.mxu1 }
  0xd0   :  { %759 = vpow2.f32 %v641_v34  ;;  %v106_v38 = vadd.f32 %v105_v36, %v57_v31  ;;  %v183_v39 = vadd.f32 %v182_v37, %v135_v24 }
  0xd1   :  { %761 = vpow2.f32 %v645_v35  ;;  %v713_v40 = vpop.f32.mrf.mxu1  ;;  %v705_v41 = vpop.f32.mrf.mxu0 }
  0xd2   :  { %v642_v42 = vmul.f32 -1.442695, %v106_v38  ;;  %v646_v43 = vmul.f32 -1.442695, %v183_v39 }
  0xd4   :  { %763 = vpow2.f32 %v642_v42 }
  0xd5   :  { %765 = vpow2.f32 %v646_v43  ;;  %v758_v43 = vld [vmem:[%s990_s9 + $0x28] sm:$0xff]  }
  0xdd   :  { %v760_v44 = vpop.eup %759 }
  0xde   :  { %v762_v45 = vpop.eup %761  ;;  %v115_v46 = vadd.f32 1.0, %v760_v44 }
  0xdf   :  { %v192_v47 = vadd.f32 1.0, %v762_v45 }
  0xe0   :  { %767 = vrcp.f32 %v115_v46 }
  0xe1   :  { %v764_v48 = vpop.eup %763  ;;  %769 = vrcp.f32 %v192_v47 }
  0xe2   :  { %v766_v49 = vpop.eup %765  ;;  %v116_v50 = vadd.f32 1.0, %v764_v48 }
  0xe3   :  { %v193_v51 = vadd.f32 1.0, %v766_v49  ;;  %v581_v49 = vpop.permute.xlu0 %580 }
  0xe4   :  { %771 = vrcp.f32 %v116_v50 }
  0xe5   :  { %773 = vrcp.f32 %v193_v51 }
  0xed   :  { %v768_v52 = vpop.eup %767 }
  0xee   :  { %v770_v53 = vpop.eup %769  ;;  %v121_v56 = vmul.f32 %v768_v52, %v103_v29 }
  0xef   :  { %v928_v58 = vmul.f32 %v770_v53, %v180_v30  ;;  %v586_v53 = vpop.permute.xlu1 %585 }
  0xf1   :  { %v772_v54 = vpop.eup %771 }
  0xf2   :  { %v774_v55 = vpop.eup %773  ;;  %v122_v57 = vmul.f32 %v772_v54, %v106_v38 }
  0xf3   :  { %v930_v59 = vmul.f32 %v774_v55, %v183_v39  ;;  %v591_v55 = vpop.permute.xlu0 %590 }
  0xf4   :  { %v200_v60 = vpack.c.bf16 %v122_v57, %v121_v56 }
  0xf5   :  { %v201_v61 = vpack.c.bf16 %v930_v59, %v928_v58 }
  0xf7   :  { %715 = vmatpush3.bf16.msra.mxu0 %v201_v61 }
  0xf8   :  { %726 = vmatprep.subr.bf16.mxu0 %v201_v61 }
  0xfa   :  { %717 = vmatmul.mubr.msk.bf16.vlgmr.msra.gmra.mxu0 %vm221_vm2, %v751_v62 }
  0xfb   :  { %727 = vmatpush3.bf16.msra.mxu0 %v201_v61  ;;  %728 = vmatprep.mubr.msk.bf16.mxu0 %vm221_vm2, %v753_v17 }
 0x102   :  { %729 = vmatmul.mubr.msk.bf16.vlgmr.msra.gmra.mxu0 %vm221_vm2, %v755_v19 }
 0x103   :  { %740 = vmatprep.mubr.msk.bf16.mxu0 %vm221_vm2, %v757_v21 }
 0x1ba   :  { %v259_v63 = vpop.f32.mrf.mxu0 }
 0x1bb   :  { %v260_v0 = vadd.f32 %v259_v63, %v209_v23 }
 0x1bc   :  { %v718_v1 = vpop.f32.mrf.mxu0 }
 0x1bd   :  { %v649_v2 = vmul.f32 -1.442695, %v260_v0 }
 0x1be   :  { %v262_v3 = vpop.f32.mrf.mxu0 }
 0x1bf   :  { %775 = vpow2.f32 %v649_v2  ;;  %v263_v4 = vadd.f32 %v262_v3, %v214_v25 }
 0x1c0   :  { %v719_v5 = vpop.f32.mrf.mxu0 }
 0x1c1   :  { %v650_v6 = vmul.f32 -1.442695, %v263_v4 }
 0x1c2   :  { %v730_v44 = vpop.f32.mrf.mxu0 }
 0x1c3   :  { %777 = vpow2.f32 %v650_v6 }
 0x1c4   :  { %v420_v46 = vpop.f32.mrf.mxu0 }
 0x1c6   :  { %v731_v48 = vpop.f32.mrf.mxu0 }
 0x1c8   :  { %v423_v51 = vpop.f32.mrf.mxu0 }
 0x1cc   :  { %v776_v7 = vpop.eup %775 }
 0x1cd   :  { %v272_v8 = vadd.f32 1.0, %v776_v7 }
 0x1cf   :  { %779 = vrcp.f32 %v272_v8 }
 0x1d0   :  { %v778_v9 = vpop.eup %777 }
 0x1d1   :  { %v273_v10 = vadd.f32 1.0, %v778_v9 }
 0x1d3   :  { %781 = vrcp.f32 %v273_v10 }
 0x1dc   :  { %v780_v11 = vpop.eup %779 }
 0x1dd   :  { %v278_v13 = vmul.f32 %v780_v11, %v260_v0 }
 0x1e0   :  { %v782_v12 = vpop.eup %781 }
 0x1e1   :  { %v279_v14 = vmul.f32 %v782_v12, %v263_v4  ;;  %v596_v4 = vpop.permute.xlu1 %595 }
 0x1e3   :  { %v280_v15 = vpack.c.bf16 %v279_v14, %v278_v13 }
 0x1e5   :  { %721 = vmatpush3.bf16.msra.mxu1 %v280_v15 }
 0x1e6   :  { %732 = vmatprep.subr.bf16.mxu1 %v200_v60 }
 0x1e8   :  { %723 = vmatmul.mubr.msk.bf16.vlgmr.msra.gmra.mxu1 %vm221_vm2, %v752_v16 }
 0x1e9   :  { %733 = vmatpush3.bf16.msra.mxu1 %v200_v60  ;;  %734 = vmatprep.mubr.msk.bf16.mxu1 %vm221_vm2, %v754_v18 }
 0x1f0   :  { %735 = vmatmul.mubr.msk.bf16.vlgmr.msra.gmra.mxu1 %vm221_vm2, %v756_v20 }
 0x2a8   :  { %v337_v23 = vpop.f32.mrf.mxu1 }
 0x2a9   :  { %v338_v24 = vadd.f32 %v337_v23, %v288_v22 }
 0x2aa   :  { %v724_v25 = vpop.f32.mrf.mxu1 }
 0x2ab   :  { %v653_v26 = vmul.f32 -1.442695, %v338_v24 }
 0x2ac   :  { %v340_v28 = vpop.f32.mrf.mxu1 }
 0x2ad   :  { %783 = vpow2.f32 %v653_v26  ;;  %v341_v29 = vadd.f32 %v340_v28, %v293_v27 }
 0x2ae   :  { %v725_v30 = vpop.f32.mrf.mxu1 }
 0x2af   :  { %v654_v31 = vmul.f32 -1.442695, %v341_v29 }
 0x2b0   :  { %v736_v45 = vpop.f32.mrf.mxu1 }
 0x2b1   :  { %785 = vpow2.f32 %v654_v31  ;;  %v494_v52 = vadd.f32 %v736_v45, %v730_v44 }
 0x2b2   :  { %v485_v47 = vpop.f32.mrf.mxu1 }
 0x2b3   :  { %v486_v56 = vadd.f32 %v485_v47, %v420_v46 }
 0x2b4   :  { %v737_v50 = vpop.f32.mrf.mxu1 }
 0x2b5   :  { %v497_v60 = vadd.f32 %v737_v50, %v731_v48 }
 0x2ba   :  { %v784_v32 = vpop.eup %783 }
 0x2bb   :  { %v350_v33 = vadd.f32 1.0, %v784_v32 }
 0x2bd   :  { %787 = vrcp.f32 %v350_v33 }
 0x2be   :  { %v786_v34 = vpop.eup %785 }
 0x2bf   :  { %v351_v35 = vadd.f32 1.0, %v786_v34 }
 0x2c1   :  { %789 = vrcp.f32 %v351_v35 }
 0x2ca   :  { %v788_v36 = vpop.eup %787 }
 0x2cb   :  { %v356_v37 = vmul.f32 %v788_v36, %v338_v24 }
 0x2cd   :  { %v358_v40 = vadd.f32 %v356_v37, %v928_v58  ;;  %v488_v58 = vpop.f32.mrf.mxu1 }
 0x2ce   :  { %v790_v38 = vpop.eup %789  ;;  %v489_v0 = vadd.f32 %v488_v58, %v423_v51 }
 0x2cf   :  { %v357_v39 = vmul.f32 %v790_v38, %v341_v29 }
 0x2d1   :  { %v359_v41 = vadd.f32 %v357_v39, %v930_v59 }
 0x2d3   :  { %v360_v42 = vpack.c.bf16 %v359_v41, %v358_v40 }
 0x2d5   :  { %738 = vmatprep.subr.bf16.mxu0 %v360_v42 }
 0x2d6   :  { %739 = vmatpush3.bf16.msra.mxu0 %v360_v42 }
 0x2d9   :  { %741 = vmatmul.mubr.msk.bf16.vlgmr.msra.gmra.mxu0 %vm221_vm2, %v758_v43 }
 0x399   :  { %v742_v54 = vpop.f32.mrf.mxu0 }
 0x39a   :  { %v572_v57 = vadd.f32 %v742_v54, %v494_v52 }
 0x39b   :  { %v555_v59 = vpop.f32.mrf.mxu0 }
 0x39c   :  { %v600_v61 = vadd.f32 %v591_v55, %v572_v57  ;;  %v570_v62 = vadd.f32 %v555_v59, %v486_v56 }
 0x39d   :  { %v743_v63 = vpop.f32.mrf.mxu0 }
 0x39e   :  { %v677_v1 = vmul.f32 -1.442695, %v600_v61  ;;  %v598_v2 = vadd.f32 %v581_v49, %v570_v62  ;;  %v573_v3 = vadd.f32 %v743_v63, %v497_v60 }
 0x39f   :  { %v558_v5 = vpop.f32.mrf.mxu0 }
 0x3a0   :  { %791 = vpow2.f32 %v677_v1  ;;  %v675_v6 = vmul.f32 -1.442695, %v598_v2  ;;  %v601_v7 = vadd.f32 %v596_v4, %v573_v3  ;;  %v571_v8 = vadd.f32 %v558_v5, %v489_v0 }
 0x3a2   :  { %793 = vpow2.f32 %v675_v6  ;;  %v678_v9 = vmul.f32 -1.442695, %v601_v7  ;;  %v599_v10 = vadd.f32 %v586_v53, %v571_v8 }
 0x3a4   :  { %795 = vpow2.f32 %v678_v9  ;;  %v676_v11 = vmul.f32 -1.442695, %v599_v10 }
 0x3a6   :  { %797 = vpow2.f32 %v676_v11 }
 0x3ad   :  { %v792_v12 = vpop.eup %791 }
 0x3ae   :  { %v616_v13 = vadd.f32 1.0, %v792_v12 }
 0x3af   :  { %v794_v14 = vpop.eup %793 }
 0x3b0   :  { %799 = vrcp.f32 %v616_v13  ;;  %v614_v15 = vadd.f32 1.0, %v794_v14 }
 0x3b1   :  { %v796_v16 = vpop.eup %795 }
 0x3b2   :  { %801 = vrcp.f32 %v614_v15  ;;  %v617_v17 = vadd.f32 1.0, %v796_v16 }
 0x3b3   :  { %v798_v18 = vpop.eup %797 }
 0x3b4   :  { %803 = vrcp.f32 %v617_v17  ;;  %v615_v19 = vadd.f32 1.0, %v798_v18 }
 0x3b6   :  { %805 = vrcp.f32 %v615_v19 }
 0x3bd   :  { %v800_v20 = vpop.eup %799 }
 0x3be   :  { %v628_v21 = vmul.f32 %v800_v20, %v600_v61 }
 0x3bf   :  { %v802_v22 = vpop.eup %801 }
 0x3c0   :  { %633 = vst.msk [vmem:[%s991_s11 + $0x10] sm:$0xff] %vm630_vm3, %v628_v21  ;;  %v626_v23 = vmul.f32 %v802_v22, %v598_v2 }
 0x3c1   :  { %v804_v24 = vpop.eup %803 }
 0x3c2   :  { %631 = vst.msk [vmem:[%s991_s11] sm:$0xff] %vm630_vm3, %v626_v23  ;;  %v629_v25 = vmul.f32 %v804_v24, %v601_v7 }
 0x3c3   :  { %v806_v26 = vpop.eup %805 }
 0x3c4   :  { %634 = vst.msk [vmem:[%s991_s11 + $0x18] sm:$0xff] %vm630_vm3, %v629_v25  ;;  %v627_v27 = vmul.f32 %v806_v26, %v599_v10 }
 0x3c6   :  { %632 = vst.msk [vmem:[%s991_s11 + $0x8] sm:$0xff] %vm630_vm3, %v627_v27 }

// kernel: _lambda_.23
= control target key start
LH: loop header
LB: loop body
LE: loop exit
PB: predicated region body
PF: predicated region fallthrough
CT: control target
= control target key end

     0   :  { %v259_v3 = vmov 0   ;;  %vm68_vm0 = vcmask 523264   ;;  %v260_v23 = vmov 1   ;;  %vm200_vm1 = vcmask 64512   ;;  %s354_s2 = inlined_call_operand.vmem [shape: f32[64,8], index: 2, kind: input, shape index: {}]   ;;  %s355_s0 = inlined_call_operand.vmem [shape: bf16[32,64], index: 0, kind: input, shape index: {}]   ;;  %s356_s1 = inlined_call_operand.vmem [shape: f32[32,1], index: 1, kind: input, shape index: {}]   ;;  %s357_s3 = inlined_call_operand.vmem [shape: f32[32,2], index: 3, kind: input, shape index: {}]   ;;  %s358_s4 = inlined_call_operand.vmem [shape: f32[32,8], index: 4, kind: output, shape index: {}]  }
   0x1   :  { %v24_v0 = vld [vmem:[%s354_s2 + $0x30] sm:$0xff]  ;;  %v25_v1 = vld [vmem:[%s354_s2 + $0x38] sm:$0xff]  ;;  %v22_v2 = vld [vmem:[%s354_s2 + $0x20] sm:$0xff]  ;;  %238 = vset.pattern.permute.xlu1 %v259_v3  ;;  %237 = vset.pattern.permute.xlu0 %v259_v3 }
   0x2   :  { %v29_v4 = vpack.c.bf16 %v25_v1, %v24_v0  ;;  %v23_v5 = vld [vmem:[%s354_s2 + $0x28] sm:$0xff]  ;;  %v20_v7 = vld [vmem:[%s354_s2 + $0x10] sm:$0xff]  ;;  %v21_v8 = vld [vmem:[%s354_s2 + $0x18] sm:$0xff] }
   0x3   :  { %v28_v6 = vpack.c.bf16 %v23_v5, %v22_v2  ;;  %v241_v9 = vld [vmem:[%s355_s0] sm:$0xff]   ;;  %v36_v10 = vld [vmem:[%s356_s1 + $0x10] sm:$0xff]  ;;  %v27_v11 = vpack.c.bf16 %v21_v8, %v20_v7  ;;  %v19_v14 = vld [vmem:[%s354_s2 + $0x8] sm:$0xff] }
   0x4   :  { %223 = vmatprep.subr.bf16.mxu0 %v29_v4  ;;  %231 = vmatprep.mubr.msk.bf16.mxu0 %vm68_vm0, %v241_v9  ;;  %v34_v12 = vld [vmem:[%s356_s1] sm:$0xff]  ;;  %v37_v15 = vld [vmem:[%s356_s1 + $0x18] sm:$0xff]  ;;  %v35_v16 = vld [vmem:[%s356_s1 + $0x8] sm:$0xff] }
   0x5   :  { %224 = vmatpush3.bf16.msra.mxu0 %v29_v4  ;;  %v18_v13 = vld [vmem:[%s354_s2] sm:$0xff]  ;;  %50 = vperm.xlu1 %238, %v36_v10   ;;  %v153_v18 = vld [vmem:[%s357_s3 + $0x8] sm:$0xff]  ;;  %v155_v21 = vld [vmem:[%s357_s3 + $0x18] sm:$0xff] }
   0x6   :  { %225 = vmatprep.subr.bf16.mxu0 %v28_v6  ;;  %40 = vperm.xlu0 %237, %v34_v12   ;;  %v26_v17 = vpack.c.bf16 %v19_v14, %v18_v13  ;;  %v152_v19 = vld [vmem:[%s357_s3] sm:$0xff]  ;;  %v242_v20 = vld [vmem:[%s355_s0 + $0x8] sm:$0xff]   ;;  %v154_v22 = vld [vmem:[%s357_s3 + $0x10] sm:$0xff] }
   0x9   :  { %226 = vmatpush3.bf16.msra.mxu0 %v28_v6  ;;  %55 = vperm.xlu1 %238, %v37_v15  }
   0xa   :  { %227 = vmatprep.subr.bf16.mxu0 %v27_v11  ;;  %45 = vperm.xlu0 %237, %v35_v16  }
   0xd   :  { %228 = vmatpush3.bf16.msra.mxu0 %v27_v11  ;;  %163 = vperm.xlu1 %238, %v153_v18  }
   0xe   :  { %229 = vmatprep.subr.bf16.mxu0 %v26_v17  ;;  %158 = vperm.xlu0 %237, %v152_v19  }
  0x11   :  { %230 = vmatpush3.bf16.msra.mxu0 %v26_v17  ;;  %173 = vperm.xlu1 %238, %v155_v21  }
  0x12   :  { %168 = vperm.xlu0 %237, %v154_v22  }
  0x14   :  { %232 = vmatmul.mubr.msk.bf16.vlgmr.msra.gmra.mxu0 %vm68_vm0, %v242_v20 }
  0x15   :  { %240 = vset.pattern.permute.xlu1 %v260_v23 }
  0x16   :  { %239 = vset.pattern.permute.xlu0 %v260_v23  ;;  %185 = vperm.xlu1 %240, %v153_v18  }
  0x17   :  { %181 = vperm.xlu0 %239, %v152_v19  }
  0x1a   :  { %189 = vperm.xlu1 %240, %v154_v22  }
  0x1b   :  { %193 = vperm.xlu0 %239, %v155_v21  }
  0x80   :  { %v51_v24 = vpop.permute.xlu1 %50 }
  0x81   :  { %v41_v25 = vpop.permute.xlu0 %40 }
  0x84   :  { %v56_v31 = vpop.permute.xlu1 %55 }
  0x85   :  { %v46_v35 = vpop.permute.xlu0 %45 }
  0x88   :  { %v164_v43 = vpop.permute.xlu1 %163 }
  0x89   :  { %v159_v49 = vpop.permute.xlu0 %158 }
  0x8c   :  { %v174_v50 = vpop.permute.xlu1 %173 }
  0x8d   :  { %v169_v52 = vpop.permute.xlu0 %168 }
  0x91   :  { %v186_v51 = vpop.permute.xlu1 %185 }
  0x92   :  { %v182_v56 = vpop.permute.xlu0 %181 }
  0x95   :  { %v190_v57 = vpop.permute.xlu1 %189 }
  0x96   :  { %v194_v4 = vpop.permute.xlu0 %193 }
  0xd4   :  { %v233_v26 = vpop.f32.mrf.mxu0 }
  0xd5   :  { %v118_v27 = vadd.f32 %v233_v26, %v51_v24 }
  0xd6   :  { %v109_v28 = vpop.f32.mrf.mxu0 }
  0xd7   :  { %v215_v29 = vmul.f32 -1.442695, %v118_v27  ;;  %v110_v30 = vadd.f32 %v109_v28, %v41_v25 }
  0xd8   :  { %v234_v32 = vpop.f32.mrf.mxu0 }
  0xd9   :  { %243 = vpow2.f32 %v215_v29  ;;  %v213_v33 = vmul.f32 -1.442695, %v110_v30  ;;  %v121_v34 = vadd.f32 %v234_v32, %v56_v31 }
  0xda   :  { %v112_v36 = vpop.f32.mrf.mxu0 }
  0xdb   :  { %245 = vpow2.f32 %v213_v33  ;;  %v216_v37 = vmul.f32 -1.442695, %v121_v34  ;;  %v113_v38 = vadd.f32 %v112_v36, %v46_v35 }
  0xdd   :  { %247 = vpow2.f32 %v216_v37  ;;  %v214_v39 = vmul.f32 -1.442695, %v113_v38 }
  0xdf   :  { %249 = vpow2.f32 %v214_v39 }
  0xe6   :  { %v244_v40 = vpop.eup %243 }
  0xe7   :  { %v138_v41 = vadd.f32 1.0, %v244_v40 }
  0xe8   :  { %v246_v42 = vpop.eup %245 }
  0xe9   :  { %251 = vrcp.f32 %v138_v41  ;;  %v136_v44 = vadd.f32 1.0, %v246_v42 }
  0xea   :  { %v248_v45 = vpop.eup %247 }
  0xeb   :  { %253 = vrcp.f32 %v136_v44  ;;  %v139_v46 = vadd.f32 1.0, %v248_v45 }
  0xec   :  { %v250_v47 = vpop.eup %249 }
  0xed   :  { %255 = vrcp.f32 %v139_v46  ;;  %v137_v48 = vadd.f32 1.0, %v250_v47 }
  0xef   :  { %257 = vrcp.f32 %v137_v48 }
  0xf6   :  { %v252_v53 = vpop.eup %251 }
  0xf7   :  { %v150_v54 = vmul.f32 %v252_v53, %v118_v27 }
  0xf8   :  { %v254_v55 = vpop.eup %253 }
  0xf9   :  { %v178_v58 = vmul.f32 %v169_v52, %v150_v54  ;;  %v148_v59 = vmul.f32 %v254_v55, %v110_v30 }
  0xfa   :  { %v256_v60 = vpop.eup %255 }
  0xfb   :  { %v151_v61 = vmul.f32 %v256_v60, %v121_v34  ;;  %v176_v62 = vmul.f32 %v159_v49, %v148_v59  ;;  %v198_v63 = vadd.f32 %v190_v57, %v178_v58 }
  0xfc   :  { %v258_v0 = vpop.eup %257 }
  0xfd   :  { %v149_v1 = vmul.f32 %v258_v0, %v113_v38  ;;  %v196_v2 = vadd.f32 %v182_v56, %v176_v62  ;;  %203 = vst.msk [vmem:[%s358_s4 + $0x10] sm:$0xff] %vm200_vm1, %v198_v63  ;;  %v179_v3 = vmul.f32 %v174_v50, %v151_v61 }
  0xff   :  { %v177_v5 = vmul.f32 %v164_v43, %v149_v1  ;;  %201 = vst.msk [vmem:[%s358_s4] sm:$0xff] %vm200_vm1, %v196_v2  ;;  %v199_v6 = vadd.f32 %v194_v4, %v179_v3 }
 0x101   :  { %v197_v7 = vadd.f32 %v186_v51, %v177_v5  ;;  %204 = vst.msk [vmem:[%s358_s4 + $0x18] sm:$0xff] %vm200_vm1, %v199_v6 }
 0x103   :  { %202 = vst.msk [vmem:[%s358_s4 + $0x8] sm:$0xff] %vm200_vm1, %v197_v7 }

// kernel: _lambda_.22
= control target key start
LH: loop header
LB: loop body
LE: loop exit
PB: predicated region body
PF: predicated region fallthrough
CT: control target
= control target key end

     0   :  { %vm265_vm0 = vcmask 1046528   ;;  %vm490_vm1 = vcmask 1045504   ;;  %vm715_vm2 = vcmask 1044480   ;;  %vm940_vm3 = vcmask 1043456   ;;  %s3869_s12 = smov 122   ;;  %s3870_s22 = smov 127   ;;  %s8287_s0 = inlined_call_operand.vmem [shape: f32[32,14,14], index: 0, kind: input, shape index: {}]   ;;  %s8288_s1 = inlined_call_operand.vmem [shape: f32[4,32,2,2], index: 1, kind: output, shape index: {}]  }
   0x1   :  { %v12_v0 = vld [vmem:[%s8287_s0 + $0x20] sm:$0xff]  ;;  %v3891_v1 = vld [vmem:[%s8287_s0 + $0x28] sm:$0x3f]  ;;  %v14_v12 = vld [vmem:[%s8287_s0 + $0x30] sm:$0xff]  ;;  %vm200_vm4 = vcmask 15366   ;;  %s3871_s15 = smov 126  }
   0x2   :  { %8576 = vst [vmem:[#allocation2_spill] sm:$0xff] %v3891_v1  ;;  %v8_v2 = vld [vmem:[%s8287_s0] sm:$0xff]  ;;  %v8333_v3 = vrot.slane %v3891_v1, 1  ;;  %v8324_v4 = vrot.slane %v3891_v1, 2  ;;  %v8305_v5 = vrot.slane %v3891_v1, 3  ;;  %v8295_v6 = vrot.slane %v3891_v1, 4  ;;  %108 = vrot.lane.b32.xlu1 %v12_v0, %s3869_s12 }
   0x3   :  { %v3904_v7 = vld [vmem:[%s8287_s0 + $0x8] sm:$0x3f]  ;;  %104 = vrot.lane.b32.xlu0 %v8_v2, %s3869_s12  ;;  %v272_v8 = vrot.slane %v12_v0, 1  ;;  %v497_v9 = vrot.slane %v12_v0, 2  ;;  %v722_v10 = vrot.slane %v12_v0, 3  ;;  %v947_v11 = vrot.slane %v12_v0, 4 }
   0x4   :  { %8577 = vst [vmem:[#allocation3_spill] sm:$0xff] %v3904_v7  ;;  %v3913_v13 = vld [vmem:[%s8287_s0 + $0x10] sm:$0xff]  ;;  %v8345_v14 = vrot.slane %v3904_v7, 1  ;;  %v8338_v15 = vrot.slane %v3904_v7, 2  ;;  %v8325_v16 = vrot.slane %v3904_v7, 3  ;;  %v8310_v17 = vrot.slane %v3904_v7, 4 }
   0x5   :  { %v3922_v18 = vld [vmem:[%s8287_s0 + $0x38] sm:$0x3f]  ;;  %v274_v19 = vsel %vm265_vm0, %v272_v8, %v8333_v3  ;;  %v499_v20 = vsel %vm490_vm1, %v497_v9, %v8324_v4  ;;  %v724_v21 = vsel %vm715_vm2, %v722_v10, %v8305_v5  ;;  %v949_v22 = vsel %vm940_vm3, %v947_v11, %v8295_v6  ;;  %v3943_v31 = vld [vmem:[%s8287_s0 + $0x50] sm:$0xff]  ;;  %v3948_v32 = vld [vmem:[%s8287_s0 + $0x40] sm:$0xff]  ;;  %s3872_s4 = smov 125   ;;  %s3873_s5 = smov 124  }
   0x6   :  { %8578 = vst [vmem:[#allocation4_spill] sm:$0xff] %v3922_v18  ;;  %v430_v23 = vmax.f32 %v12_v0, %v274_v19  ;;  %v266_v24 = vrot.slane %v8_v2, 1  ;;  %v491_v25 = vrot.slane %v8_v2, 2  ;;  %v716_v26 = vrot.slane %v8_v2, 3  ;;  %110 = vrot.lane.b32.xlu1 %v14_v12, %s3869_s12  ;;  %v3970_v45 = vld [vmem:[%s8287_s0 + $0x18] sm:$0x3f] }
   0x7   :  { %106 = vrot.lane.b32.xlu0 %v3913_v13, %s3869_s12  ;;  %v941_v27 = vrot.slane %v8_v2, 4  ;;  %v275_v28 = vrot.slane %v14_v12, 1  ;;  %v8339_v29 = vrot.slane %v3922_v18, 1  ;;  %v500_v30 = vrot.slane %v14_v12, 2  ;;  %8579 = vst [vmem:[#allocation5_spill] sm:$0xff] %v3970_v45  ;;  %v3983_v50 = vld [vmem:[%s8287_s0 + $0x70] sm:$0xff] }
   0x8   :  { %v655_v33 = vmax.f32 %v430_v23, %v499_v20  ;;  %v268_v34 = vsel %vm265_vm0, %v266_v24, %v8345_v14  ;;  %v493_v35 = vsel %vm490_vm1, %v491_v25, %v8338_v15  ;;  %v718_v36 = vsel %vm715_vm2, %v716_v26, %v8325_v16  ;;  %v3988_v51 = vld [vmem:[%s8287_s0 + $0x60] sm:$0xff]  ;;  %v4007_v0 = vld [vmem:[%s8287_s0 + $0x58] sm:$0x3f]  ;;  %v4023_v11 = vld [vmem:[%s8287_s0 + $0x90] sm:$0xff] }
   0x9   :  { %v426_v37 = vmax.f32 %v8_v2, %v268_v34  ;;  %v943_v38 = vsel %vm940_vm3, %v941_v27, %v8310_v17  ;;  %v277_v39 = vsel %vm265_vm0, %v275_v28, %v8339_v29  ;;  %v8326_v40 = vrot.slane %v3922_v18, 2  ;;  %8580 = vst [vmem:[#allocation6_spill] sm:$0xff] %v4007_v0 }
   0xa   :  { %v880_v41 = vmax.f32 %v655_v33, %v724_v21  ;;  %v432_v42 = vmax.f32 %v14_v12, %v277_v39  ;;  %v725_v43 = vrot.slane %v14_v12, 3  ;;  %v8311_v44 = vrot.slane %v3922_v18, 3  ;;  %114 = vrot.lane.b32.xlu1 %v3943_v31, %s3869_s12  ;;  %v4051_v33 = vld [vmem:[%s8287_s0 + $0x48] sm:$0x3f]  ;;  %v4071_v39 = vld [vmem:[%s8287_s0 + $0xa0] sm:$0xff] }
   0xb   :  { %112 = vrot.lane.b32.xlu0 %v3948_v32, %s3869_s12  ;;  %v651_v46 = vmax.f32 %v426_v37, %v493_v35  ;;  %v502_v47 = vsel %vm490_vm1, %v500_v30, %v8326_v40  ;;  %v950_v48 = vrot.slane %v14_v12, 4  ;;  %v8296_v49 = vrot.slane %v3922_v18, 4  ;;  %v4028_v12 = vld [vmem:[%s8287_s0 + $0x80] sm:$0xff]  ;;  %8582 = vst [vmem:[#allocation8_spill] sm:$0xff] %v4051_v33 }
   0xc   :  { %v3990_v52 = vmax.f32 %v880_v41, %v949_v22  ;;  %v657_v53 = vmax.f32 %v432_v42, %v502_v47  ;;  %v727_v54 = vsel %vm715_vm2, %v725_v43, %v8311_v44  ;;  %v269_v55 = vrot.slane %v3913_v13, 1 }
   0xd   :  { %v876_v56 = vmax.f32 %v651_v46, %v718_v36  ;;  %v952_v57 = vsel %vm940_vm3, %v950_v48, %v8296_v49  ;;  %v8346_v58 = vrot.slane %v3970_v45, 1  ;;  %v494_v59 = vrot.slane %v3913_v13, 2 }
   0xe   :  { %v882_v60 = vmax.f32 %v657_v53, %v727_v54  ;;  %v8340_v61 = vrot.slane %v3970_v45, 2  ;;  %v719_v62 = vrot.slane %v3913_v13, 3  ;;  %v8331_v63 = vrot.slane %v3970_v45, 3  ;;  %118 = vrot.lane.b32.xlu1 %v3983_v50, %s3869_s12 }
   0xf   :  { %116 = vrot.lane.b32.xlu0 %v3988_v51, %s3869_s12  ;;  %v4013_v2 = vmax.f32 %v876_v56, %v943_v38  ;;  %v271_v8 = vsel %vm265_vm0, %v269_v55, %v8346_v58  ;;  %v944_v9 = vrot.slane %v3913_v13, 4  ;;  %v8312_v10 = vrot.slane %v3970_v45, 4  ;;  %v4066_v38 = vld [vmem:[%s8287_s0 + $0xb0] sm:$0xff] }
  0x10   :  { %v4030_v19 = vmax.f32 %v882_v60, %v952_v57  ;;  %v428_v20 = vmax.f32 %v3913_v13, %v271_v8  ;;  %v496_v21 = vsel %vm490_vm1, %v494_v59, %v8340_v61  ;;  %v721_v22 = vsel %vm715_vm2, %v719_v62, %v8331_v63  ;;  %v4093_v59 = vld [vmem:[%s8287_s0 + $0x78] sm:$0x3f] }
  0x11   :  { %v946_v23 = vsel %vm940_vm3, %v944_v9, %v8312_v10  ;;  %v281_v24 = vrot.slane %v3943_v31, 1  ;;  %v8332_v25 = vrot.slane %v4007_v0, 1  ;;  %v506_v26 = vrot.slane %v3943_v31, 2  ;;  %8584 = vst [vmem:[#allocation10_spill] sm:$0xff] %v4093_v59 }
  0x12   :  { %8581 = vst [vmem:[#allocation7_spill] sm:$0xff] %v4030_v19  ;;  %v653_v27 = vmax.f32 %v428_v20, %v496_v21  ;;  %v8318_v13 = vrot.slane %v4007_v0, 2  ;;  %v731_v28 = vrot.slane %v3943_v31, 3  ;;  %v8303_v30 = vrot.slane %v4007_v0, 3  ;;  %122 = vrot.lane.b32.xlu1 %v4023_v11, %s3869_s12  ;;  %v4110_v20 = vld [vmem:[%s8287_s0 + $0xd0] sm:$0xff]  ;;  %v4115_v21 = vld [vmem:[%s8287_s0 + $0xc0] sm:$0xff] }
  0x13   :  { %120 = vrot.lane.b32.xlu0 %v4028_v12, %s3869_s12  ;;  %v283_v34 = vsel %vm265_vm0, %v281_v24, %v8332_v25  ;;  %v956_v35 = vrot.slane %v3943_v31, 4  ;;  %v8290_v36 = vrot.slane %v4007_v0, 4  ;;  %v278_v37 = vrot.slane %v3948_v32, 1 }
  0x14   :  { %v878_v41 = vmax.f32 %v653_v27, %v721_v22  ;;  %v436_v42 = vmax.f32 %v3943_v31, %v283_v34  ;;  %v508_v43 = vsel %vm490_vm1, %v506_v26, %v8318_v13  ;;  %v733_v46 = vsel %vm715_vm2, %v731_v28, %v8303_v30 }
  0x15   :  { %v958_v47 = vsel %vm940_vm3, %v956_v35, %v8290_v36  ;;  %v8319_v48 = vrot.slane %v4051_v33, 1  ;;  %v503_v53 = vrot.slane %v3948_v32, 2  ;;  %v8304_v54 = vrot.slane %v4051_v33, 2 }
  0x16   :  { %v4086_v55 = vmax.f32 %v878_v41, %v946_v23  ;;  %v661_v31 = vmax.f32 %v436_v42, %v508_v43  ;;  %v728_v56 = vrot.slane %v3948_v32, 3  ;;  %v8291_v57 = vrot.slane %v4051_v33, 3  ;;  %126 = vrot.lane.b32.xlu1 %v4066_v38, %s3869_s12  ;;  %v4135_v43 = vld [vmem:[%s8287_s0 + $0x68] sm:$0x3f] }
  0x17   :  { %124 = vrot.lane.b32.xlu0 %v4071_v39, %s3869_s12  ;;  %v280_v60 = vsel %vm265_vm0, %v278_v37, %v8319_v48  ;;  %v505_v62 = vsel %vm490_vm1, %v503_v53, %v8304_v54  ;;  %v953_v8 = vrot.slane %v3948_v32, 4  ;;  %v8289_v9 = vrot.slane %v4051_v33, 4  ;;  %8585 = vst [vmem:[#allocation11_spill] sm:$0xff] %v4135_v43 }
  0x18   :  { %8583 = vst [vmem:[#allocation9_spill] sm:$0xff] %v4086_v55  ;;  %v886_v22 = vmax.f32 %v661_v31, %v733_v46  ;;  %v434_v23 = vmax.f32 %v3948_v32, %v280_v60  ;;  %v730_v24 = vsel %vm715_vm2, %v728_v56, %v8291_v57  ;;  %v287_v26 = vrot.slane %v3983_v50, 1  ;;  %v4152_v56 = vld [vmem:[%s8287_s0 + $0xf0] sm:$0xff]  ;;  %v4157_v60 = vld [vmem:[%s8287_s0 + $0xe0] sm:$0xff] }
  0x19   :  { %v955_v27 = vsel %vm940_vm3, %v953_v8, %v8289_v9  ;;  %v8317_v28 = vrot.slane %v4093_v59, 1  ;;  %v512_v34 = vrot.slane %v3983_v50, 2  ;;  %v8298_v35 = vrot.slane %v4093_v59, 2 }
  0x1a   :  { %v4128_v37 = vmax.f32 %v886_v22, %v958_v47  ;;  %v659_v41 = vmax.f32 %v434_v23, %v505_v62  ;;  %v737_v32 = vrot.slane %v3983_v50, 3  ;;  %v8294_v42 = vrot.slane %v4093_v59, 3  ;;  %130 = vrot.lane.b32.xlu1 %v4110_v20, %s3869_s12 }
  0x1b   :  { %128 = vrot.lane.b32.xlu0 %v4115_v21, %s3869_s12  ;;  %v289_v46 = vsel %vm265_vm0, %v287_v26, %v8317_v28  ;;  %v514_v47 = vsel %vm490_vm1, %v512_v34, %v8298_v35  ;;  %v962_v53 = vrot.slane %v3983_v50, 4  ;;  %v8292_v31 = vrot.slane %v4093_v59, 4 }
  0x1c   :  { %v884_v62 = vmax.f32 %v659_v41, %v730_v24  ;;  %v440_v8 = vmax.f32 %v3983_v50, %v289_v46  ;;  %v739_v22 = vsel %vm715_vm2, %v737_v32, %v8294_v42  ;;  %v284_v23 = vrot.slane %v3988_v51, 1  ;;  %v4177_v32 = vld [vmem:[%s8287_s0 + $0x98] sm:$0x3f] }
  0x1d   :  { %v964_v26 = vsel %vm940_vm3, %v962_v53, %v8292_v31  ;;  %v8297_v34 = vrot.slane %v4135_v43, 1  ;;  %v509_v9 = vrot.slane %v3988_v51, 2  ;;  %v8293_v36 = vrot.slane %v4135_v43, 2  ;;  %8586 = vst [vmem:[#allocation12_spill] sm:$0xff] %v4177_v32 }
  0x1e   :  { %v4170_v57 = vmax.f32 %v884_v62, %v955_v27  ;;  %v665_v24 = vmax.f32 %v440_v8, %v514_v47  ;;  %v734_v50 = vrot.slane %v3988_v51, 3  ;;  %v8300_v41 = vrot.slane %v4135_v43, 3  ;;  %134 = vrot.lane.b32.xlu1 %v4152_v56, %s3869_s12  ;;  %v4194_v62 = vld [vmem:[%s8287_s0 + $0x110] sm:$0xff]  ;;  %v4199_v8 = vld [vmem:[%s8287_s0 + $0x100] sm:$0xff] }
  0x1f   :  { %132 = vrot.lane.b32.xlu0 %v4157_v60, %s3869_s12  ;;  %v286_v27 = vsel %vm265_vm0, %v284_v23, %v8297_v34  ;;  %v511_v46 = vsel %vm490_vm1, %v509_v9, %v8293_v36  ;;  %v959_v47 = vrot.slane %v3988_v51, 4  ;;  %v8299_v53 = vrot.slane %v4135_v43, 4 }
  0x20   :  { %v890_v31 = vmax.f32 %v665_v24, %v739_v22  ;;  %v438_v23 = vmax.f32 %v3988_v51, %v286_v27  ;;  %v736_v9 = vsel %vm715_vm2, %v734_v50, %v8300_v41  ;;  %v293_v36 = vrot.slane %v4023_v11, 1  ;;  %v4219_v50 = vld [vmem:[%s8287_s0 + $0x88] sm:$0x3f] }
  0x21   :  { %v961_v42 = vsel %vm940_vm3, %v959_v47, %v8299_v53  ;;  %v8302_v6 = vrot.slane %v4177_v32, 1  ;;  %v518_v49 = vrot.slane %v4023_v11, 2  ;;  %v8301_v34 = vrot.slane %v4177_v32, 2  ;;  %8587 = vst [vmem:[#allocation13_spill] sm:$0xff] %v4219_v50  ;;  %v4236_v47 = vld [vmem:[%s8287_s0 + $0x130] sm:$0xff] }
  0x22   :  { %v4212_v35 = vmax.f32 %v890_v31, %v964_v26  ;;  %v663_v22 = vmax.f32 %v438_v23, %v511_v46  ;;  %v743_v51 = vrot.slane %v4023_v11, 3  ;;  %v8307_v24 = vrot.slane %v4177_v32, 3  ;;  %138 = vrot.lane.b32.xlu1 %v4194_v62, %s3869_s12  ;;  %v4241_v23 = vld [vmem:[%s8287_s0 + $0x120] sm:$0xff] }
  0x23   :  { %136 = vrot.lane.b32.xlu0 %v4199_v8, %s3869_s12  ;;  %v295_v31 = vsel %vm265_vm0, %v293_v36, %v8302_v6  ;;  %v520_v26 = vsel %vm490_vm1, %v518_v49, %v8301_v34  ;;  %v968_v27 = vrot.slane %v4023_v11, 4  ;;  %v8306_v46 = vrot.slane %v4177_v32, 4 }
  0x24   :  { %v888_v53 = vmax.f32 %v663_v22, %v736_v9  ;;  %v444_v36 = vmax.f32 %v4023_v11, %v295_v31  ;;  %v745_v49 = vsel %vm715_vm2, %v743_v51, %v8307_v24  ;;  %v290_v41 = vrot.slane %v4028_v12, 1  ;;  %v4261_v51 = vld [vmem:[%s8287_s0 + $0xb8] sm:$0x3f] }
  0x25   :  { %v970_v34 = vsel %vm940_vm3, %v968_v27, %v8306_v46  ;;  %v8309_v6 = vrot.slane %v4219_v50, 1  ;;  %v515_v30 = vrot.slane %v4028_v12, 2  ;;  %v8308_v54 = vrot.slane %v4219_v50, 2  ;;  %8588 = vst [vmem:[#allocation14_spill] sm:$0xff] %v4261_v51  ;;  %v4278_v27 = vld [vmem:[%s8287_s0 + $0x150] sm:$0xff] }
  0x26   :  { %v4254_v5 = vmax.f32 %v888_v53, %v961_v42  ;;  %v669_v9 = vmax.f32 %v444_v36, %v520_v26  ;;  %v740_v11 = vrot.slane %v4028_v12, 3  ;;  %v8314_v22 = vrot.slane %v4219_v50, 3  ;;  %142 = vrot.lane.b32.xlu1 %v4236_v47, %s3869_s12  ;;  %v4283_v36 = vld [vmem:[%s8287_s0 + $0x140] sm:$0xff] }
  0x27   :  { %140 = vrot.lane.b32.xlu0 %v4241_v23, %s3869_s12  ;;  %v292_v42 = vsel %vm265_vm0, %v290_v41, %v8309_v6  ;;  %v517_v53 = vsel %vm490_vm1, %v515_v30, %v8308_v54  ;;  %v965_v31 = vrot.slane %v4028_v12, 4  ;;  %v8313_v26 = vrot.slane %v4219_v50, 4 }
  0x28   :  { %v894_v46 = vmax.f32 %v669_v9, %v745_v49  ;;  %v442_v41 = vmax.f32 %v4028_v12, %v292_v42  ;;  %v742_v30 = vsel %vm715_vm2, %v740_v11, %v8314_v22  ;;  %v299_v24 = vrot.slane %v4066_v38, 1  ;;  %v4303_v11 = vld [vmem:[%s8287_s0 + $0xa8] sm:$0x3f] }
  0x29   :  { %v967_v54 = vsel %vm940_vm3, %v965_v31, %v8313_v26  ;;  %v8316_v6 = vrot.slane %v4261_v51, 1  ;;  %v524_v17 = vrot.slane %v4066_v38, 2  ;;  %v8315_v44 = vrot.slane %v4261_v51, 2  ;;  %8589 = vst [vmem:[#allocation15_spill] sm:$0xff] %v4303_v11  ;;  %v4320_v31 = vld [vmem:[%s8287_s0 + $0x170] sm:$0xff] }
  0x2a   :  { %v4296_v10 = vmax.f32 %v894_v46, %v970_v34  ;;  %v667_v49 = vmax.f32 %v442_v41, %v517_v53  ;;  %v749_v12 = vrot.slane %v4066_v38, 3  ;;  %v8321_v9 = vrot.slane %v4261_v51, 3  ;;  %146 = vrot.lane.b32.xlu1 %v4278_v27, %s3869_s12  ;;  %v4325_v41 = vld [vmem:[%s8287_s0 + $0x160] sm:$0xff] }
  0x2b   :  { %144 = vrot.lane.b32.xlu0 %v4283_v36, %s3869_s12  ;;  %v301_v34 = vsel %vm265_vm0, %v299_v24, %v8316_v6  ;;  %v526_v46 = vsel %vm490_vm1, %v524_v17, %v8315_v44  ;;  %v974_v42 = vrot.slane %v4066_v38, 4  ;;  %v8320_v53 = vrot.slane %v4261_v51, 4 }
  0x2c   :  { %v892_v26 = vmax.f32 %v667_v49, %v742_v30  ;;  %v448_v24 = vmax.f32 %v4066_v38, %v301_v34  ;;  %v751_v17 = vsel %vm715_vm2, %v749_v12, %v8321_v9  ;;  %v296_v22 = vrot.slane %v4071_v39, 1  ;;  %v4345_v12 = vld [vmem:[%s8287_s0 + $0xd8] sm:$0x3f] }
  0x2d   :  { %v976_v44 = vsel %vm940_vm3, %v974_v42, %v8320_v53  ;;  %v8323_v6 = vrot.slane %v4303_v11, 1  ;;  %v521_v28 = vrot.slane %v4071_v39, 2  ;;  %v8322_v13 = vrot.slane %v4303_v11, 2  ;;  %8590 = vst [vmem:[#allocation16_spill] sm:$0xff] %v4345_v12  ;;  %v4362_v42 = vld [vmem:[%s8287_s0 + $0x190] sm:$0xff] }
  0x2e   :  { %v4338_v48 = vmax.f32 %v892_v26, %v967_v54  ;;  %v673_v30 = vmax.f32 %v448_v24, %v526_v46  ;;  %v746_v38 = vrot.slane %v4071_v39, 3  ;;  %v8328_v49 = vrot.slane %v4303_v11, 3  ;;  %150 = vrot.lane.b32.xlu1 %v4320_v31, %s3869_s12  ;;  %v4367_v24 = vld [vmem:[%s8287_s0 + $0x180] sm:$0xff] }
  0x2f   :  { %148 = vrot.lane.b32.xlu0 %v4325_v41, %s3869_s12  ;;  %v298_v54 = vsel %vm265_vm0, %v296_v22, %v8323_v6  ;;  %v523_v26 = vsel %vm490_vm1, %v521_v28, %v8322_v13  ;;  %v971_v34 = vrot.slane %v4071_v39, 4  ;;  %v8327_v46 = vrot.slane %v4303_v11, 4 }
  0x30   :  { %v898_v53 = vmax.f32 %v673_v30, %v751_v17  ;;  %v446_v22 = vmax.f32 %v4071_v39, %v298_v54  ;;  %v748_v28 = vsel %vm715_vm2, %v746_v38, %v8328_v49  ;;  %v305_v9 = vrot.slane %v4110_v20, 1  ;;  %v4387_v38 = vld [vmem:[%s8287_s0 + $0xc8] sm:$0x3f] }
  0x31   :  { %v973_v13 = vsel %vm940_vm3, %v971_v34, %v8327_v46  ;;  %v8330_v6 = vrot.slane %v4345_v12, 1  ;;  %v530_v4 = vrot.slane %v4110_v20, 2  ;;  %v8329_v16 = vrot.slane %v4345_v12, 2  ;;  %8591 = vst [vmem:[#allocation17_spill] sm:$0xff] %v4387_v38  ;;  %v4404_v34 = vld [vmem:[%s8287_s0 + $0x1b0] sm:$0xff] }
  0x32   :  { %v4380_v40 = vmax.f32 %v898_v53, %v976_v44  ;;  %v671_v17 = vmax.f32 %v446_v22, %v523_v26  ;;  %v755_v39 = vrot.slane %v4110_v20, 3  ;;  %v8335_v30 = vrot.slane %v4345_v12, 3  ;;  %154 = vrot.lane.b32.xlu1 %v4362_v42, %s3869_s12  ;;  %v4409_v22 = vld [vmem:[%s8287_s0 + $0x1a0] sm:$0xff] }
  0x33   :  { %152 = vrot.lane.b32.xlu0 %v4367_v24, %s3869_s12  ;;  %v307_v44 = vsel %vm265_vm0, %v305_v9, %v8330_v6  ;;  %v532_v53 = vsel %vm490_vm1, %v530_v4, %v8329_v16  ;;  %v980_v54 = vrot.slane %v4110_v20, 4  ;;  %v8334_v26 = vrot.slane %v4345_v12, 4 }
  0x34   :  { %v896_v46 = vmax.f32 %v671_v17, %v748_v28  ;;  %v452_v9 = vmax.f32 %v4110_v20, %v307_v44  ;;  %v757_v4 = vsel %vm715_vm2, %v755_v39, %v8335_v30  ;;  %v302_v49 = vrot.slane %v4115_v21, 1  ;;  %v4429_v39 = vld [vmem:[%s8287_s0 + $0xf8] sm:$0x3f] }
  0x35   :  { %v982_v16 = vsel %vm940_vm3, %v980_v54, %v8334_v26  ;;  %v8337_v6 = vrot.slane %v4387_v38, 1  ;;  %v527_v63 = vrot.slane %v4115_v21, 2  ;;  %v8336_v25 = vrot.slane %v4387_v38, 2  ;;  %8592 = vst [vmem:[#allocation18_spill] sm:$0xff] %v4429_v39  ;;  %v4446_v54 = vld [vmem:[%s8287_s0 + $0x1d0] sm:$0xff] }
  0x36   :  { %v4422_v3 = vmax.f32 %v896_v46, %v973_v13  ;;  %v677_v28 = vmax.f32 %v452_v9, %v532_v53  ;;  %v752_v20 = vrot.slane %v4115_v21, 3  ;;  %v8342_v17 = vrot.slane %v4387_v38, 3  ;;  %158 = vrot.lane.b32.xlu1 %v4404_v34, %s3869_s12  ;;  %v4451_v9 = vld [vmem:[%s8287_s0 + $0x1c0] sm:$0xff] }
  0x37   :  { %156 = vrot.lane.b32.xlu0 %v4409_v22, %s3869_s12  ;;  %v304_v13 = vsel %vm265_vm0, %v302_v49, %v8337_v6  ;;  %v529_v46 = vsel %vm490_vm1, %v527_v63, %v8336_v25  ;;  %v977_v44 = vrot.slane %v4115_v21, 4  ;;  %v8341_v53 = vrot.slane %v4387_v38, 4 }
  0x38   :  { %v902_v26 = vmax.f32 %v677_v28, %v757_v4  ;;  %v450_v49 = vmax.f32 %v4115_v21, %v304_v13  ;;  %v754_v63 = vsel %vm715_vm2, %v752_v20, %v8342_v17  ;;  %v311_v30 = vrot.slane %v4152_v56, 1  ;;  %v4471_v20 = vld [vmem:[%s8287_s0 + $0xe8] sm:$0x3f] }
  0x39   :  { %v979_v25 = vsel %vm940_vm3, %v977_v44, %v8341_v53  ;;  %v8344_v6 = vrot.slane %v4429_v39, 1  ;;  %v536_v15 = vrot.slane %v4152_v56, 2  ;;  %v8343_v29 = vrot.slane %v4429_v39, 2  ;;  %8593 = vst [vmem:[#allocation19_spill] sm:$0xff] %v4471_v20  ;;  %v4488_v44 = vld [vmem:[%s8287_s0 + $0x1f0] sm:$0xff] }
  0x3a   :  { %v4464_v61 = vmax.f32 %v902_v26, %v982_v16  ;;  %v675_v4 = vmax.f32 %v450_v49, %v529_v46  ;;  %v761_v21 = vrot.slane %v4152_v56, 3  ;;  %v8350_v28 = vrot.slane %v4429_v39, 3  ;;  %162 = vrot.lane.b32.xlu1 %v4446_v54, %s3869_s12  ;;  %v4493_v49 = vld [vmem:[%s8287_s0 + $0x1e0] sm:$0xff] }
  0x3b   :  { %160 = vrot.lane.b32.xlu0 %v4451_v9, %s3869_s12  ;;  %v313_v16 = vsel %vm265_vm0, %v311_v30, %v8344_v6  ;;  %v538_v26 = vsel %vm490_vm1, %v536_v15, %v8343_v29  ;;  %v986_v13 = vrot.slane %v4152_v56, 4  ;;  %v8349_v46 = vrot.slane %v4429_v39, 4 }
  0x3c   :  { %v900_v53 = vmax.f32 %v675_v4, %v754_v63  ;;  %v456_v30 = vmax.f32 %v4152_v56, %v313_v16  ;;  %v763_v15 = vsel %vm715_vm2, %v761_v21, %v8350_v28  ;;  %v308_v17 = vrot.slane %v4157_v60, 1  ;;  %v4513_v21 = vld [vmem:[%s8287_s0 + $0x118] sm:$0x3f] }
  0x3d   :  { %v988_v29 = vsel %vm940_vm3, %v986_v13, %v8349_v46  ;;  %v8351_v6 = vrot.slane %v4471_v20, 1  ;;  %v533_v14 = vrot.slane %v4157_v60, 2  ;;  %v8352_v58 = vrot.slane %v4471_v20, 2  ;;  %8594 = vst [vmem:[#allocation20_spill] sm:$0xff] %v4513_v21 }
  0x3e   :  { %v4506_v38 = vmax.f32 %v900_v53, %v979_v25  ;;  %v681_v63 = vmax.f32 %v456_v30, %v538_v26  ;;  %v758_v56 = vrot.slane %v4157_v60, 3  ;;  %v8356_v4 = vrot.slane %v4471_v20, 3  ;;  %166 = vrot.lane.b32.xlu1 %v4488_v44, %s3869_s12 }
  0x3f   :  { %164 = vrot.lane.b32.xlu0 %v4493_v49, %s3869_s12  ;;  %v310_v25 = vsel %vm265_vm0, %v308_v17, %v8351_v6  ;;  %v535_v53 = vsel %vm490_vm1, %v533_v14, %v8352_v58  ;;  %v983_v16 = vrot.slane %v4157_v60, 4  ;;  %v8355_v26 = vrot.slane %v4471_v20, 4 }
  0x40   :  { %v906_v13 = vmax.f32 %v681_v63, %v763_v15  ;;  %v454_v30 = vmax.f32 %v4157_v60, %v310_v25  ;;  %v760_v46 = vsel %vm715_vm2, %v758_v56, %v8356_v4  ;;  %v317_v28 = vrot.slane %v4194_v62, 1  ;;  %v4545_v56 = vld [vmem:[%s8287_s0 + $0x108] sm:$0x3f] }
  0x41   :  { %v985_v17 = vsel %vm940_vm3, %v983_v16, %v8355_v26  ;;  %v8357_v6 = vrot.slane %v4513_v21, 1  ;;  %v542_v14 = vrot.slane %v4194_v62, 2  ;;  %v8358_v58 = vrot.slane %v4513_v21, 2  ;;  %8595 = vst [vmem:[#allocation21_spill] sm:$0xff] %v4545_v56 }
  0x42   :  { %v4538_v39 = vmax.f32 %v906_v13, %v988_v29  ;;  %v679_v15 = vmax.f32 %v454_v30, %v535_v53  ;;  %v767_v60 = vrot.slane %v4194_v62, 3  ;;  %v8362_v63 = vrot.slane %v4513_v21, 3  ;;  %1327 = vrot.lane.b32.xlu1 %v4086_v55, %s3870_s22 }
  0x43   :  { %1325 = vrot.lane.b32.xlu0 %v4013_v2, %s3870_s22  ;;  %v319_v29 = vsel %vm265_vm0, %v317_v28, %v8357_v6  ;;  %v544_v25 = vsel %vm490_vm1, %v542_v14, %v8358_v58  ;;  %v992_v53 = vrot.slane %v4194_v62, 4  ;;  %v8361_v16 = vrot.slane %v4513_v21, 4 }
  0x44   :  { %v904_v13 = vmax.f32 %v679_v15, %v760_v46  ;;  %v460_v30 = vmax.f32 %v4194_v62, %v319_v29  ;;  %v769_v26 = vsel %vm715_vm2, %v767_v60, %v8362_v63  ;;  %v314_v4 = vrot.slane %v4199_v8, 1  ;;  %v4577_v60 = vld [vmem:[%s8287_s0 + $0x138] sm:$0x3f] }
  0x45   :  { %v994_v28 = vsel %vm940_vm3, %v992_v53, %v8361_v16  ;;  %v8363_v6 = vrot.slane %v4545_v56, 1  ;;  %v539_v14 = vrot.slane %v4199_v8, 2  ;;  %v8364_v58 = vrot.slane %v4545_v56, 2  ;;  %8597 = vst [vmem:[#allocation23_spill] sm:$0xff] %v4577_v60 }
  0x46   :  { %v4570_v20 = vmax.f32 %v904_v13, %v985_v17  ;;  %v685_v46 = vmax.f32 %v460_v30, %v544_v25  ;;  %v764_v62 = vrot.slane %v4199_v8, 3  ;;  %v8368_v15 = vrot.slane %v4545_v56, 3  ;;  %1331 = vrot.lane.b32.xlu1 %v4030_v19, %s3870_s22 }
  0x47   :  { %1329 = vrot.lane.b32.xlu0 %v3990_v52, %s3870_s22  ;;  %v316_v17 = vsel %vm265_vm0, %v314_v4, %v8363_v6  ;;  %v541_v29 = vsel %vm490_vm1, %v539_v14, %v8364_v58  ;;  %v989_v25 = vrot.slane %v4199_v8, 4  ;;  %v8367_v53 = vrot.slane %v4545_v56, 4 }
  0x48   :  { %8596 = vst [vmem:[#allocation22_spill] sm:$0xff] %v4570_v20  ;;  %v910_v13 = vmax.f32 %v685_v46, %v769_v26  ;;  %v458_v30 = vmax.f32 %v4199_v8, %v316_v17  ;;  %v766_v16 = vsel %vm715_vm2, %v764_v62, %v8368_v15  ;;  %v323_v63 = vrot.slane %v4236_v47, 1  ;;  %v4609_v62 = vld [vmem:[%s8287_s0 + $0x128] sm:$0x3f] }
  0x49   :  { %v991_v4 = vsel %vm940_vm3, %v989_v25, %v8367_v53  ;;  %v8369_v6 = vrot.slane %v4577_v60, 1  ;;  %v548_v14 = vrot.slane %v4236_v47, 2  ;;  %v8370_v58 = vrot.slane %v4577_v60, 2  ;;  %8599 = vst [vmem:[#allocation25_spill] sm:$0xff] %v4609_v62 }
  0x4a   :  { %v4602_v21 = vmax.f32 %v910_v13, %v994_v28  ;;  %v683_v26 = vmax.f32 %v458_v30, %v541_v29  ;;  %v773_v8 = vrot.slane %v4236_v47, 3  ;;  %v8374_v46 = vrot.slane %v4577_v60, 3  ;;  %1335 = vrot.lane.b32.xlu1 %v4128_v37, %s3870_s22 }
  0x4b   :  { %1333 = vrot.lane.b32.xlu0 %v4170_v57, %s3870_s22  ;;  %v325_v28 = vsel %vm265_vm0, %v323_v63, %v8369_v6  ;;  %v550_v17 = vsel %vm490_vm1, %v548_v14, %v8370_v58  ;;  %v998_v29 = vrot.slane %v4236_v47, 4  ;;  %v8373_v25 = vrot.slane %v4577_v60, 4 }
  0x4c   :  { %8598 = vst [vmem:[#allocation24_spill] sm:$0xff] %v4602_v21  ;;  %v908_v13 = vmax.f32 %v683_v26, %v766_v16  ;;  %v464_v30 = vmax.f32 %v4236_v47, %v325_v28  ;;  %v775_v53 = vsel %vm715_vm2, %v773_v8, %v8374_v46  ;;  %v320_v15 = vrot.slane %v4241_v23, 1  ;;  %v4641_v8 = vld [vmem:[%s8287_s0 + $0x158] sm:$0x3f] }
  0x4d   :  { %v1000_v63 = vsel %vm940_vm3, %v998_v29, %v8373_v25  ;;  %v8375_v6 = vrot.slane %v4609_v62, 1  ;;  %v545_v14 = vrot.slane %v4241_v23, 2  ;;  %v8376_v58 = vrot.slane %v4609_v62, 2  ;;  %8601 = vst [vmem:[#allocation27_spill] sm:$0xff] %v4641_v8 }
  0x4e   :  { %v4634_v56 = vmax.f32 %v908_v13, %v991_v4  ;;  %v689_v16 = vmax.f32 %v464_v30, %v550_v17  ;;  %v770_v47 = vrot.slane %v4241_v23, 3  ;;  %v8380_v26 = vrot.slane %v4609_v62, 3  ;;  %1339 = vrot.lane.b32.xlu1 %v4212_v35, %s3870_s22 }
  0x4f   :  { %1337 = vrot.lane.b32.xlu0 %v4254_v5, %s3870_s22  ;;  %v322_v4 = vsel %vm265_vm0, %v320_v15, %v8375_v6  ;;  %v547_v28 = vsel %vm490_vm1, %v545_v14, %v8376_v58  ;;  %v995_v17 = vrot.slane %v4241_v23, 4  ;;  %v8379_v29 = vrot.slane %v4609_v62, 4 }
  0x50   :  { %8600 = vst [vmem:[#allocation26_spill] sm:$0xff] %v4634_v56  ;;  %v914_v13 = vmax.f32 %v689_v16, %v775_v53  ;;  %v462_v30 = vmax.f32 %v4241_v23, %v322_v4  ;;  %v772_v25 = vsel %vm715_vm2, %v770_v47, %v8380_v26  ;;  %v329_v46 = vrot.slane %v4278_v27, 1  ;;  %v4673_v47 = vld [vmem:[%s8287_s0 + $0x148] sm:$0x3f] }
  0x51   :  { %v997_v15 = vsel %vm940_vm3, %v995_v17, %v8379_v29  ;;  %v8381_v6 = vrot.slane %v4641_v8, 1  ;;  %v554_v14 = vrot.slane %v4278_v27, 2  ;;  %v8382_v58 = vrot.slane %v4641_v8, 2  ;;  %8603 = vst [vmem:[#allocation29_spill] sm:$0xff] %v4673_v47 }
  0x52   :  { %v4666_v60 = vmax.f32 %v914_v13, %v1000_v63  ;;  %v687_v53 = vmax.f32 %v462_v30, %v547_v28  ;;  %v779_v23 = vrot.slane %v4278_v27, 3  ;;  %v8386_v16 = vrot.slane %v4641_v8, 3  ;;  %1343 = vrot.lane.b32.xlu1 %v4296_v10, %s3870_s22 }
  0x53   :  { %1341 = vrot.lane.b32.xlu0 %v4338_v48, %s3870_s22  ;;  %v331_v63 = vsel %vm265_vm0, %v329_v46, %v8381_v6  ;;  %v556_v4 = vsel %vm490_vm1, %v554_v14, %v8382_v58  ;;  %v1004_v28 = vrot.slane %v4278_v27, 4  ;;  %v8385_v17 = vrot.slane %v4641_v8, 4 }
  0x54   :  { %8602 = vst [vmem:[#allocation28_spill] sm:$0xff] %v4666_v60  ;;  %v912_v13 = vmax.f32 %v687_v53, %v772_v25  ;;  %v468_v30 = vmax.f32 %v4278_v27, %v331_v63  ;;  %v781_v29 = vsel %vm715_vm2, %v779_v23, %v8386_v16  ;;  %v326_v26 = vrot.slane %v4283_v36, 1  ;;  %v4705_v23 = vld [vmem:[%s8287_s0 + $0x178] sm:$0x3f] }
  0x55   :  { %v1006_v46 = vsel %vm940_vm3, %v1004_v28, %v8385_v17  ;;  %v8387_v6 = vrot.slane %v4673_v47, 1  ;;  %v551_v14 = vrot.slane %v4283_v36, 2  ;;  %v8388_v58 = vrot.slane %v4673_v47, 2  ;;  %8605 = vst [vmem:[#allocation31_spill] sm:$0xff] %v4705_v23 }
  0x56   :  { %v4698_v62 = vmax.f32 %v912_v13, %v997_v15  ;;  %v693_v25 = vmax.f32 %v468_v30, %v556_v4  ;;  %v776_v27 = vrot.slane %v4283_v36, 3  ;;  %v8392_v53 = vrot.slane %v4673_v47, 3  ;;  %1347 = vrot.lane.b32.xlu1 %v4380_v40, %s3870_s22 }
  0x57   :  { %1345 = vrot.lane.b32.xlu0 %v4422_v3, %s3870_s22  ;;  %v328_v15 = vsel %vm265_vm0, %v326_v26, %v8387_v6  ;;  %v553_v63 = vsel %vm490_vm1, %v551_v14, %v8388_v58  ;;  %v1001_v4 = vrot.slane %v4283_v36, 4  ;;  %v8391_v28 = vrot.slane %v4673_v47, 4 }
  0x58   :  { %8604 = vst [vmem:[#allocation30_spill] sm:$0xff] %v4698_v62  ;;  %v918_v13 = vmax.f32 %v693_v25, %v781_v29  ;;  %v466_v30 = vmax.f32 %v4283_v36, %v328_v15  ;;  %v778_v17 = vsel %vm715_vm2, %v776_v27, %v8392_v53  ;;  %v335_v16 = vrot.slane %v4320_v31, 1  ;;  %v4737_v27 = vld [vmem:[%s8287_s0 + $0x168] sm:$0x3f] }
  0x59   :  { %v1003_v26 = vsel %vm940_vm3, %v1001_v4, %v8391_v28  ;;  %v8393_v6 = vrot.slane %v4705_v23, 1  ;;  %v560_v14 = vrot.slane %v4320_v31, 2  ;;  %v8394_v58 = vrot.slane %v4705_v23, 2  ;;  %8607 = vst [vmem:[#allocation33_spill] sm:$0xff] %v4737_v27 }
  0x5a   :  { %v4730_v8 = vmax.f32 %v918_v13, %v1006_v46  ;;  %v691_v29 = vmax.f32 %v466_v30, %v553_v63  ;;  %v785_v36 = vrot.slane %v4320_v31, 3  ;;  %v8398_v25 = vrot.slane %v4705_v23, 3  ;;  %1351 = vrot.lane.b32.xlu1 %v4464_v61, %s3870_s22 }
  0x5b   :  { %1349 = vrot.lane.b32.xlu0 %v4506_v38, %s3870_s22  ;;  %v337_v46 = vsel %vm265_vm0, %v335_v16, %v8393_v6  ;;  %v562_v15 = vsel %vm490_vm1, %v560_v14, %v8394_v58  ;;  %v1010_v63 = vrot.slane %v4320_v31, 4  ;;  %v8397_v4 = vrot.slane %v4705_v23, 4 }
  0x5c   :  { %8606 = vst [vmem:[#allocation32_spill] sm:$0xff] %v4730_v8  ;;  %v916_v13 = vmax.f32 %v691_v29, %v778_v17  ;;  %v472_v30 = vmax.f32 %v4320_v31, %v337_v46  ;;  %v787_v28 = vsel %vm715_vm2, %v785_v36, %v8398_v25  ;;  %v332_v53 = vrot.slane %v4325_v41, 1  ;;  %v4769_v36 = vld [vmem:[%s8287_s0 + $0x198] sm:$0x3f] }
  0x5d   :  { %v1012_v16 = vsel %vm940_vm3, %v1010_v63, %v8397_v4  ;;  %v8399_v6 = vrot.slane %v4737_v27, 1  ;;  %v557_v14 = vrot.slane %v4325_v41, 2  ;;  %v8400_v58 = vrot.slane %v4737_v27, 2  ;;  %8609 = vst [vmem:[#allocation35_spill] sm:$0xff] %v4769_v36 }
  0x5e   :  { %v4762_v47 = vmax.f32 %v916_v13, %v1003_v26  ;;  %v697_v17 = vmax.f32 %v472_v30, %v562_v15  ;;  %v782_v31 = vrot.slane %v4325_v41, 3  ;;  %v8404_v29 = vrot.slane %v4737_v27, 3  ;;  %1355 = vrot.lane.b32.xlu1 %v4538_v39, %s3870_s22 }
  0x5f   :  { %1353 = vrot.lane.b32.xlu0 %v4570_v20, %s3870_s22  ;;  %v334_v26 = vsel %vm265_vm0, %v332_v53, %v8399_v6  ;;  %v559_v46 = vsel %vm490_vm1, %v557_v14, %v8400_v58  ;;  %v1007_v15 = vrot.slane %v4325_v41, 4  ;;  %v8403_v63 = vrot.slane %v4737_v27, 4 }
  0x60   :  { %8608 = vst [vmem:[#allocation34_spill] sm:$0xff] %v4762_v47  ;;  %v922_v13 = vmax.f32 %v697_v17, %v787_v28  ;;  %v470_v30 = vmax.f32 %v4325_v41, %v334_v26  ;;  %v784_v4 = vsel %vm715_vm2, %v782_v31, %v8404_v29  ;;  %v341_v25 = vrot.slane %v4362_v42, 1  ;;  %v4801_v31 = vld [vmem:[%s8287_s0 + $0x188] sm:$0x3f] }
  0x61   :  { %v1009_v53 = vsel %vm940_vm3, %v1007_v15, %v8403_v63  ;;  %v8405_v6 = vrot.slane %v4769_v36, 1  ;;  %v566_v14 = vrot.slane %v4362_v42, 2  ;;  %v8406_v58 = vrot.slane %v4769_v36, 2  ;;  %8611 = vst [vmem:[#allocation37_spill] sm:$0xff] %v4801_v31 }
  0x62   :  { %v4794_v23 = vmax.f32 %v922_v13, %v1012_v16  ;;  %v695_v28 = vmax.f32 %v470_v30, %v559_v46  ;;  %v791_v41 = vrot.slane %v4362_v42, 3  ;;  %v8410_v17 = vrot.slane %v4769_v36, 3  ;;  %1359 = vrot.lane.b32.xlu1 %v4602_v21, %s3870_s22 }
  0x63   :  { %1357 = vrot.lane.b32.xlu0 %v4634_v56, %s3870_s22  ;;  %v343_v16 = vsel %vm265_vm0, %v341_v25, %v8405_v6  ;;  %v568_v26 = vsel %vm490_vm1, %v566_v14, %v8406_v58  ;;  %v1016_v46 = vrot.slane %v4362_v42, 4  ;;  %v8409_v15 = vrot.slane %v4769_v36, 4 }
  0x64   :  { %8610 = vst [vmem:[#allocation36_spill] sm:$0xff] %v4794_v23  ;;  %v920_v13 = vmax.f32 %v695_v28, %v784_v4  ;;  %v476_v30 = vmax.f32 %v4362_v42, %v343_v16  ;;  %v793_v63 = vsel %vm715_vm2, %v791_v41, %v8410_v17  ;;  %v338_v29 = vrot.slane %v4367_v24, 1  ;;  %v4833_v41 = vld [vmem:[%s8287_s0 + $0x1b8] sm:$0x3f] }
  0x65   :  { %v1018_v25 = vsel %vm940_vm3, %v1016_v46, %v8409_v15  ;;  %v8411_v6 = vrot.slane %v4801_v31, 1  ;;  %v563_v14 = vrot.slane %v4367_v24, 2  ;;  %v8412_v58 = vrot.slane %v4801_v31, 2  ;;  %8613 = vst [vmem:[#allocation39_spill] sm:$0xff] %v4833_v41 }
  0x66   :  { %v4826_v27 = vmax.f32 %v920_v13, %v1009_v53  ;;  %v701_v4 = vmax.f32 %v476_v30, %v568_v26  ;;  %v788_v42 = vrot.slane %v4367_v24, 3  ;;  %v8416_v28 = vrot.slane %v4801_v31, 3  ;;  %1363 = vrot.lane.b32.xlu1 %v4666_v60, %s3870_s22 }
  0x67   :  { %1361 = vrot.lane.b32.xlu0 %v4698_v62, %s3870_s22  ;;  %v340_v53 = vsel %vm265_vm0, %v338_v29, %v8411_v6  ;;  %v565_v16 = vsel %vm490_vm1, %v563_v14, %v8412_v58  ;;  %v1013_v26 = vrot.slane %v4367_v24, 4  ;;  %v8415_v46 = vrot.slane %v4801_v31, 4 }
  0x68   :  { %8612 = vst [vmem:[#allocation38_spill] sm:$0xff] %v4826_v27  ;;  %v926_v13 = vmax.f32 %v701_v4, %v793_v63  ;;  %v474_v30 = vmax.f32 %v4367_v24, %v340_v53  ;;  %v790_v15 = vsel %vm715_vm2, %v788_v42, %v8416_v28  ;;  %v347_v17 = vrot.slane %v4404_v34, 1  ;;  %v4865_v42 = vld [vmem:[%s8287_s0 + $0x1a8] sm:$0x3f] }
  0x69   :  { %v1015_v29 = vsel %vm940_vm3, %v1013_v26, %v8415_v46  ;;  %v8417_v6 = vrot.slane %v4833_v41, 1  ;;  %v572_v14 = vrot.slane %v4404_v34, 2  ;;  %v8418_v58 = vrot.slane %v4833_v41, 2  ;;  %8615 = vst [vmem:[#allocation41_spill] sm:$0xff] %v4865_v42 }
  0x6a   :  { %v4858_v36 = vmax.f32 %v926_v13, %v1018_v25  ;;  %v699_v63 = vmax.f32 %v474_v30, %v565_v16  ;;  %v797_v24 = vrot.slane %v4404_v34, 3  ;;  %v8422_v4 = vrot.slane %v4833_v41, 3  ;;  %1367 = vrot.lane.b32.xlu1 %v4730_v8, %s3870_s22 }
  0x6b   :  { %1365 = vrot.lane.b32.xlu0 %v4762_v47, %s3870_s22  ;;  %v349_v25 = vsel %vm265_vm0, %v347_v17, %v8417_v6  ;;  %v574_v53 = vsel %vm490_vm1, %v572_v14, %v8418_v58  ;;  %v1022_v16 = vrot.slane %v4404_v34, 4  ;;  %v8421_v26 = vrot.slane %v4833_v41, 4 }
  0x6c   :  { %8614 = vst [vmem:[#allocation40_spill] sm:$0xff] %v4858_v36  ;;  %v924_v13 = vmax.f32 %v699_v63, %v790_v15  ;;  %v480_v30 = vmax.f32 %v4404_v34, %v349_v25  ;;  %v799_v46 = vsel %vm715_vm2, %v797_v24, %v8422_v4  ;;  %v344_v28 = vrot.slane %v4409_v22, 1  ;;  %v4897_v24 = vld [vmem:[%s8287_s0 + $0x1d8] sm:$0x3f] }
  0x6d   :  { %v1024_v17 = vsel %vm940_vm3, %v1022_v16, %v8421_v26  ;;  %v8423_v6 = vrot.slane %v4865_v42, 1  ;;  %v569_v14 = vrot.slane %v4409_v22, 2  ;;  %v8424_v58 = vrot.slane %v4865_v42, 2  ;;  %8617 = vst [vmem:[#allocation43_spill] sm:$0xff] %v4897_v24 }
  0x6e   :  { %v4890_v31 = vmax.f32 %v924_v13, %v1015_v29  ;;  %v705_v15 = vmax.f32 %v480_v30, %v574_v53  ;;  %v794_v34 = vrot.slane %v4409_v22, 3  ;;  %v8428_v63 = vrot.slane %v4865_v42, 3  ;;  %1371 = vrot.lane.b32.xlu1 %v4794_v23, %s3870_s22 }
  0x6f   :  { %1369 = vrot.lane.b32.xlu0 %v4826_v27, %s3870_s22  ;;  %v346_v29 = vsel %vm265_vm0, %v344_v28, %v8423_v6  ;;  %v571_v25 = vsel %vm490_vm1, %v569_v14, %v8424_v58  ;;  %v1019_v53 = vrot.slane %v4409_v22, 4  ;;  %v8427_v16 = vrot.slane %v4865_v42, 4 }
  0x70   :  { %8616 = vst [vmem:[#allocation42_spill] sm:$0xff] %v4890_v31  ;;  %v930_v13 = vmax.f32 %v705_v15, %v799_v46  ;;  %v478_v30 = vmax.f32 %v4409_v22, %v346_v29  ;;  %v796_v26 = vsel %vm715_vm2, %v794_v34, %v8428_v63  ;;  %v353_v4 = vrot.slane %v4446_v54, 1  ;;  %v4929_v34 = vld [vmem:[%s8287_s0 + $0x1c8] sm:$0x3f] }
  0x71   :  { %v1021_v28 = vsel %vm940_vm3, %v1019_v53, %v8427_v16  ;;  %v8440_v6 = vrot.slane %v4897_v24, 1  ;;  %v578_v14 = vrot.slane %v4446_v54, 2  ;;  %v8433_v58 = vrot.slane %v4897_v24, 2  ;;  %8619 = vst [vmem:[#allocation45_spill] sm:$0xff] %v4929_v34 }
  0x72   :  { %v4922_v41 = vmax.f32 %v930_v13, %v1024_v17  ;;  %v703_v46 = vmax.f32 %v478_v30, %v571_v25  ;;  %v803_v22 = vrot.slane %v4446_v54, 3  ;;  %v8435_v15 = vrot.slane %v4897_v24, 3  ;;  %1375 = vrot.lane.b32.xlu1 %v4858_v36, %s3870_s22 }
  0x73   :  { %1373 = vrot.lane.b32.xlu0 %v4890_v31, %s3870_s22  ;;  %v355_v17 = vsel %vm265_vm0, %v353_v4, %v8440_v6  ;;  %v580_v29 = vsel %vm490_vm1, %v578_v14, %v8433_v58  ;;  %v1028_v25 = vrot.slane %v4446_v54, 4  ;;  %v8434_v53 = vrot.slane %v4897_v24, 4 }
  0x74   :  { %8618 = vst [vmem:[#allocation44_spill] sm:$0xff] %v4922_v41  ;;  %v928_v13 = vmax.f32 %v703_v46, %v796_v26  ;;  %v484_v30 = vmax.f32 %v4446_v54, %v355_v17  ;;  %v805_v16 = vsel %vm715_vm2, %v803_v22, %v8435_v15  ;;  %v350_v63 = vrot.slane %v4451_v9, 1  ;;  %v109_v42 = vpop.permute.xlu1 %108 }
  0x75   :  { %v105_v12 = vpop.permute.xlu0 %104  ;;  %v1030_v4 = vsel %vm940_vm3, %v1028_v25, %v8434_v53  ;;  %v8436_v14 = vrot.slane %v4929_v34, 1  ;;  %v575_v58 = vrot.slane %v4451_v9, 2  ;;  %v8437_v26 = vrot.slane %v4929_v34, 2  ;;  %203 = vst.msk [vmem:[%s8288_s1 - $0x2] sm:$0xc0] %vm200_vm4, %v109_v42 }
  0x76   :  { %201 = vst.msk [vmem:[%s8288_s1 - $0x6] sm:$0xc0] %vm200_vm4, %v105_v12  ;;  %v4962_v54 = vmax.f32 %v928_v13, %v1021_v28  ;;  %v709_v46 = vmax.f32 %v484_v30, %v580_v29  ;;  %v800_v22 = vrot.slane %v4451_v9, 3  ;;  %v8439_v17 = vrot.slane %v4929_v34, 3  ;;  %v4969_v25 = vld [vmem:[%s8287_s0 + $0x1f8] sm:$0x3f]  ;;  %1379 = vrot.lane.b32.xlu1 %v4922_v41, %s3870_s22 }
  0x77   :  { %8621 = vst [vmem:[#allocation47_spill] sm:$0xff] %v4969_v25  ;;  %v352_v42 = vsel %vm265_vm0, %v350_v63, %v8436_v14  ;;  %v577_v12 = vsel %vm490_vm1, %v575_v58, %v8437_v26  ;;  %v1025_v28 = vrot.slane %v4451_v9, 4  ;;  %v8438_v29 = vrot.slane %v4929_v34, 4 }
  0x78   :  { %8620 = vst [vmem:[#allocation46_spill] sm:$0xff] %v4962_v54  ;;  %v934_v13 = vmax.f32 %v709_v46, %v805_v16  ;;  %v482_v30 = vmax.f32 %v4451_v9, %v352_v42  ;;  %v802_v53 = vsel %vm715_vm2, %v800_v22, %v8439_v17  ;;  %v359_v15 = vrot.slane %v4488_v44, 1  ;;  %1377 = vrot.lane.b32.xlu0 %v4962_v54, %s3870_s22  ;;  %v111_v63 = vpop.permute.xlu1 %110 }
  0x79   :  { %v107_v14 = vpop.permute.xlu0 %106  ;;  %v1027_v58 = vsel %vm940_vm3, %v1025_v28, %v8438_v29  ;;  %v8441_v26 = vrot.slane %v4969_v25, 1  ;;  %v584_v16 = vrot.slane %v4488_v44, 2  ;;  %v8442_v9 = vrot.slane %v4969_v25, 2  ;;  %204 = vst.msk [vmem:[%s8288_s1] sm:$0xc0] %vm200_vm4, %v111_v63 }
  0x7a   :  { %202 = vst.msk [vmem:[%s8288_s1 - $0x4] sm:$0xc0] %vm200_vm4, %v107_v14  ;;  %v5002_v46 = vmax.f32 %v934_v13, %v1030_v4  ;;  %v707_v22 = vmax.f32 %v482_v30, %v577_v12  ;;  %v809_v42 = vrot.slane %v4488_v44, 3  ;;  %v8444_v28 = vrot.slane %v4969_v25, 3  ;;  %v5009_v29 = vld [vmem:[%s8287_s0 + $0x1e8] sm:$0x3f] }
  0x7b   :  { %8623 = vst [vmem:[#allocation49_spill] sm:$0xff] %v5009_v29  ;;  %v361_v63 = vsel %vm265_vm0, %v359_v15, %v8441_v26  ;;  %v586_v14 = vsel %vm490_vm1, %v584_v16, %v8442_v9  ;;  %v1034_v4 = vrot.slane %v4488_v44, 4  ;;  %v8443_v12 = vrot.slane %v4969_v25, 4 }
  0x7c   :  { %8622 = vst [vmem:[#allocation48_spill] sm:$0xff] %v5002_v46  ;;  %v932_v13 = vmax.f32 %v707_v22, %v802_v53  ;;  %v488_v30 = vmax.f32 %v4488_v44, %v361_v63  ;;  %v811_v17 = vsel %vm715_vm2, %v809_v42, %v8444_v28  ;;  %v356_v6 = vrot.slane %v4493_v49, 1  ;;  %1383 = vrot.lane.b32.xlu1 %v5002_v46, %s3870_s22  ;;  %v115_v15 = vpop.permute.xlu1 %114 }
  0x7d   :  { %v113_v26 = vpop.permute.xlu0 %112  ;;  %v1036_v16 = vsel %vm940_vm3, %v1034_v4, %v8443_v12  ;;  %v8450_v9 = vrot.slane %v5009_v29, 1  ;;  %v581_v53 = vrot.slane %v4493_v49, 2  ;;  %v8449_v44 = vrot.slane %v5009_v29, 2  ;;  %206 = vst.msk [vmem:[%s8288_s1 + $0x4] sm:$0xc0] %vm200_vm4, %v115_v15 }
  0x7e   :  { %205 = vst.msk [vmem:[%s8288_s1 + $0x2] sm:$0xc0] %vm200_vm4, %v113_v26  ;;  %v5040_v22 = vmax.f32 %v932_v13, %v1027_v58  ;;  %v713_v42 = vmax.f32 %v488_v30, %v586_v14  ;;  %v806_v63 = vrot.slane %v4493_v49, 3  ;;  %v8448_v4 = vrot.slane %v5009_v29, 3 }
  0x7f   :  { %v358_v12 = vsel %vm265_vm0, %v356_v6, %v8450_v9  ;;  %v583_v15 = vsel %vm490_vm1, %v581_v53, %v8449_v44  ;;  %v1031_v28 = vrot.slane %v4493_v49, 4  ;;  %v8447_v25 = vrot.slane %v5009_v29, 4 }
  0x80   :  { %8624 = vst [vmem:[#allocation50_spill] sm:$0xff] %v5040_v22  ;;  %v938_v26 = vmax.f32 %v713_v42, %v811_v17  ;;  %v486_v58 = vmax.f32 %v4493_v49, %v358_v12  ;;  %1381 = vrot.lane.b32.xlu0 %v5040_v22, %s3870_s22  ;;  %v119_v14 = vpop.permute.xlu1 %118  ;;  %v808_v6 = vsel %vm715_vm2, %v806_v63, %v8448_v4  ;;  %vm1966_vm5 = vcmask 13316  }
  0x81   :  { %v117_v13 = vpop.permute.xlu0 %116  ;;  %208 = vst.msk [vmem:[%s8288_s1 + $0x8] sm:$0xc0] %vm200_vm4, %v119_v14  ;;  %v1033_v12 = vsel %vm940_vm3, %v1031_v28, %v8447_v25  ;;  %vm2832_vm6 = vcmask 11266   ;;  %vm3698_vm7 = vcmask 9216  }
  0x82   :  { %207 = vst.msk [vmem:[%s8288_s1 + $0x6] sm:$0xc0] %vm200_vm4, %v117_v13  ;;  %v5066_v49 = vmax.f32 %v938_v26, %v1036_v16  ;;  %v711_v17 = vmax.f32 %v486_v58, %v583_v15 }
  0x84   :  { %8625 = vst [vmem:[#allocation51_spill] sm:$0xff] %v5066_v49  ;;  %v936_v30 = vmax.f32 %v711_v17, %v808_v6  ;;  %1387 = vrot.lane.b32.xlu1 %v5066_v49, %s3870_s22  ;;  %v123_v53 = vpop.permute.xlu1 %122 }
  0x85   :  { %v121_v42 = vpop.permute.xlu0 %120  ;;  %210 = vst.msk [vmem:[%s8288_s1 + $0xc] sm:$0xc0] %vm200_vm4, %v123_v53 }
  0x86   :  { %209 = vst.msk [vmem:[%s8288_s1 + $0xa] sm:$0xc0] %vm200_vm4, %v121_v42  ;;  %v5081_v16 = vmax.f32 %v936_v30, %v1033_v12 }
  0x88   :  { %8626 = vst [vmem:[#allocation52_spill] sm:$0xff] %v5081_v16  ;;  %1385 = vrot.lane.b32.xlu0 %v5081_v16, %s3870_s22  ;;  %1455 = vrot.lane.b32.xlu1 %v4086_v55, %s3871_s15  ;;  %v127_v28 = vpop.permute.xlu1 %126 }
  0x89   :  { %v125_v63 = vpop.permute.xlu0 %124  ;;  %212 = vst.msk [vmem:[%s8288_s1 + $0x10] sm:$0xc0] %vm200_vm4, %v127_v28 }
  0x8a   :  { %211 = vst.msk [vmem:[%s8288_s1 + $0xe] sm:$0xc0] %vm200_vm4, %v125_v63 }
  0x8c   :  { %1453 = vrot.lane.b32.xlu0 %v4013_v2, %s3871_s15  ;;  %1459 = vrot.lane.b32.xlu1 %v4030_v19, %s3871_s15  ;;  %v131_v15 = vpop.permute.xlu1 %130 }
  0x8d   :  { %v129_v26 = vpop.permute.xlu0 %128  ;;  %214 = vst.msk [vmem:[%s8288_s1 + $0x14] sm:$0xc0] %vm200_vm4, %v131_v15 }
  0x8e   :  { %213 = vst.msk [vmem:[%s8288_s1 + $0x12] sm:$0xc0] %vm200_vm4, %v129_v26 }
  0x90   :  { %1457 = vrot.lane.b32.xlu0 %v3990_v52, %s3871_s15  ;;  %1463 = vrot.lane.b32.xlu1 %v4128_v37, %s3871_s15  ;;  %v135_v58 = vpop.permute.xlu1 %134 }
  0x91   :  { %v133_v14 = vpop.permute.xlu0 %132  ;;  %216 = vst.msk [vmem:[%s8288_s1 + $0x18] sm:$0xc0] %vm200_vm4, %v135_v58 }
  0x92   :  { %215 = vst.msk [vmem:[%s8288_s1 + $0x16] sm:$0xc0] %vm200_vm4, %v133_v14 }
  0x94   :  { %1461 = vrot.lane.b32.xlu0 %v4170_v57, %s3871_s15  ;;  %1467 = vrot.lane.b32.xlu1 %v4212_v35, %s3871_s15  ;;  %v139_v13 = vpop.permute.xlu1 %138 }
  0x95   :  { %v137_v6 = vpop.permute.xlu0 %136  ;;  %218 = vst.msk [vmem:[%s8288_s1 + $0x1c] sm:$0xc0] %vm200_vm4, %v139_v13 }
  0x96   :  { %217 = vst.msk [vmem:[%s8288_s1 + $0x1a] sm:$0xc0] %vm200_vm4, %v137_v6 }
  0x98   :  { %1465 = vrot.lane.b32.xlu0 %v4254_v5, %s3871_s15  ;;  %1471 = vrot.lane.b32.xlu1 %v4296_v10, %s3871_s15  ;;  %v143_v17 = vpop.permute.xlu1 %142 }
  0x99   :  { %v141_v12 = vpop.permute.xlu0 %140  ;;  %220 = vst.msk [vmem:[%s8288_s1 + $0x20] sm:$0xc0] %vm200_vm4, %v143_v17 }
  0x9a   :  { %219 = vst.msk [vmem:[%s8288_s1 + $0x1e] sm:$0xc0] %vm200_vm4, %v141_v12 }
  0x9c   :  { %1469 = vrot.lane.b32.xlu0 %v4338_v48, %s3871_s15  ;;  %1475 = vrot.lane.b32.xlu1 %v4380_v40, %s3871_s15  ;;  %v147_v30 = vpop.permute.xlu1 %146 }
  0x9d   :  { %v145_v53 = vpop.permute.xlu0 %144  ;;  %222 = vst.msk [vmem:[%s8288_s1 + $0x24] sm:$0xc0] %vm200_vm4, %v147_v30 }
  0x9e   :  { %221 = vst.msk [vmem:[%s8288_s1 + $0x22] sm:$0xc0] %vm200_vm4, %v145_v53 }
  0xa0   :  { %1473 = vrot.lane.b32.xlu0 %v4422_v3, %s3871_s15  ;;  %1479 = vrot.lane.b32.xlu1 %v4464_v61, %s3871_s15  ;;  %v151_v42 = vpop.permute.xlu1 %150 }
  0xa1   :  { %v149_v28 = vpop.permute.xlu0 %148  ;;  %224 = vst.msk [vmem:[%s8288_s1 + $0x28] sm:$0xc0] %vm200_vm4, %v151_v42 }
  0xa2   :  { %223 = vst.msk [vmem:[%s8288_s1 + $0x26] sm:$0xc0] %vm200_vm4, %v149_v28 }
  0xa4   :  { %1477 = vrot.lane.b32.xlu0 %v4506_v38, %s3871_s15  ;;  %1483 = vrot.lane.b32.xlu1 %v4538_v39, %s3871_s15  ;;  %v155_v63 = vpop.permute.xlu1 %154 }
  0xa5   :  { %v153_v15 = vpop.permute.xlu0 %152  ;;  %226 = vst.msk [vmem:[%s8288_s1 + $0x2c] sm:$0xc0] %vm200_vm4, %v155_v63 }
  0xa6   :  { %225 = vst.msk [vmem:[%s8288_s1 + $0x2a] sm:$0xc0] %vm200_vm4, %v153_v15 }
  0xa8   :  { %1481 = vrot.lane.b32.xlu0 %v4570_v20, %s3871_s15  ;;  %1487 = vrot.lane.b32.xlu1 %v4602_v21, %s3871_s15  ;;  %v159_v26 = vpop.permute.xlu1 %158 }
  0xa9   :  { %v157_v58 = vpop.permute.xlu0 %156  ;;  %228 = vst.msk [vmem:[%s8288_s1 + $0x30] sm:$0xc0] %vm200_vm4, %v159_v26 }
  0xaa   :  { %227 = vst.msk [vmem:[%s8288_s1 + $0x2e] sm:$0xc0] %vm200_vm4, %v157_v58 }
  0xac   :  { %1485 = vrot.lane.b32.xlu0 %v4634_v56, %s3871_s15  ;;  %1491 = vrot.lane.b32.xlu1 %v4666_v60, %s3871_s15  ;;  %v163_v14 = vpop.permute.xlu1 %162 }
  0xad   :  { %v161_v13 = vpop.permute.xlu0 %160  ;;  %230 = vst.msk [vmem:[%s8288_s1 + $0x34] sm:$0xc0] %vm200_vm4, %v163_v14 }
  0xae   :  { %229 = vst.msk [vmem:[%s8288_s1 + $0x32] sm:$0xc0] %vm200_vm4, %v161_v13 }
  0xb0   :  { %1489 = vrot.lane.b32.xlu0 %v4698_v62, %s3871_s15  ;;  %1495 = vrot.lane.b32.xlu1 %v4730_v8, %s3871_s15  ;;  %v167_v6 = vpop.permute.xlu1 %166 }
  0xb1   :  { %v165_v17 = vpop.permute.xlu0 %164  ;;  %232 = vst.msk [vmem:[%s8288_s1 + $0x38] sm:$0xc0] %vm200_vm4, %v167_v6 }
  0xb2   :  { %231 = vst.msk [vmem:[%s8288_s1 + $0x36] sm:$0xc0] %vm200_vm4, %v165_v17 }
  0xb4   :  { %1493 = vrot.lane.b32.xlu0 %v4762_v47, %s3871_s15  ;;  %1499 = vrot.lane.b32.xlu1 %v4794_v23, %s3871_s15  ;;  %v5219_v12 = vpop.permute.xlu1 %1327 }
  0xb5   :  { %v5221_v30 = vpop.permute.xlu0 %1325 }
  0xb8   :  { %1497 = vrot.lane.b32.xlu0 %v4826_v27, %s3871_s15  ;;  %1503 = vrot.lane.b32.xlu1 %v4858_v36, %s3871_s15  ;;  %v5227_v53 = vpop.permute.xlu1 %1331 }
  0xb9   :  { %v5229_v42 = vpop.permute.xlu0 %1329 }
  0xbc   :  { %1501 = vrot.lane.b32.xlu0 %v4890_v31, %s3871_s15  ;;  %1507 = vrot.lane.b32.xlu1 %v4922_v41, %s3871_s15  ;;  %v5235_v28 = vpop.permute.xlu1 %1335 }
  0xbd   :  { %v5237_v63 = vpop.permute.xlu0 %1333 }
  0xc0   :  { %1505 = vrot.lane.b32.xlu0 %v4962_v54, %s3871_s15  ;;  %1511 = vrot.lane.b32.xlu1 %v5002_v46, %s3871_s15  ;;  %v5243_v15 = vpop.permute.xlu1 %1339 }
  0xc1   :  { %v5245_v26 = vpop.permute.xlu0 %1337 }
  0xc4   :  { %1509 = vrot.lane.b32.xlu0 %v5040_v22, %s3871_s15  ;;  %1515 = vrot.lane.b32.xlu1 %v5066_v49, %s3871_s15  ;;  %v5251_v58 = vpop.permute.xlu1 %1343 }
  0xc5   :  { %v5253_v14 = vpop.permute.xlu0 %1341 }
  0xc8   :  { %1513 = vrot.lane.b32.xlu0 %v5081_v16, %s3871_s15  ;;  %1583 = vrot.lane.b32.xlu1 %v4086_v55, %s3872_s4  ;;  %v5259_v13 = vpop.permute.xlu1 %1347 }
  0xc9   :  { %v5261_v6 = vpop.permute.xlu0 %1345 }
  0xcc   :  { %1581 = vrot.lane.b32.xlu0 %v4013_v2, %s3872_s4  ;;  %1587 = vrot.lane.b32.xlu1 %v4030_v19, %s3872_s4  ;;  %v5267_v17 = vpop.permute.xlu1 %1351 }
  0xcd   :  { %v5269_v25 = vpop.permute.xlu0 %1349 }
  0xd0   :  { %1585 = vrot.lane.b32.xlu0 %v3990_v52, %s3872_s4  ;;  %1591 = vrot.lane.b32.xlu1 %v4128_v37, %s3872_s4  ;;  %v5275_v4 = vpop.permute.xlu1 %1355 }
  0xd1   :  { %8627 = vst [vmem:[#allocation53_spill] sm:$0xff] %v5275_v4  ;;  %v5277_v44 = vpop.permute.xlu0 %1353 }
  0xd2   :  { %8628 = vst [vmem:[#allocation54_spill] sm:$0xff] %v5277_v44 }
  0xd4   :  { %1589 = vrot.lane.b32.xlu0 %v4170_v57, %s3872_s4  ;;  %1595 = vrot.lane.b32.xlu1 %v4212_v35, %s3872_s4  ;;  %v5283_v9 = vpop.permute.xlu1 %1359 }
  0xd5   :  { %8629 = vst [vmem:[#allocation55_spill] sm:$0xff] %v5283_v9  ;;  %v5285_v29 = vpop.permute.xlu0 %1357 }
  0xd6   :  { %8630 = vst [vmem:[#allocation56_spill] sm:$0xff] %v5285_v29 }
  0xd8   :  { %1593 = vrot.lane.b32.xlu0 %v4254_v5, %s3872_s4  ;;  %1599 = vrot.lane.b32.xlu1 %v4296_v10, %s3872_s4  ;;  %v5291_v34 = vpop.permute.xlu1 %1363 }
  0xd9   :  { %8631 = vst [vmem:[#allocation57_spill] sm:$0xff] %v5291_v34  ;;  %v5293_v24 = vpop.permute.xlu0 %1361 }
  0xda   :  { %8632 = vst [vmem:[#allocation58_spill] sm:$0xff] %v5293_v24 }
  0xdc   :  { %1597 = vrot.lane.b32.xlu0 %v4338_v48, %s3872_s4  ;;  %1603 = vrot.lane.b32.xlu1 %v4380_v40, %s3872_s4  ;;  %v5299_v11 = vpop.permute.xlu1 %1367 }
  0xdd   :  { %8633 = vst [vmem:[#allocation59_spill] sm:$0xff] %v5299_v11  ;;  %v5301_v51 = vpop.permute.xlu0 %1365 }
  0xde   :  { %8634 = vst [vmem:[#allocation60_spill] sm:$0xff] %v5301_v51 }
  0xe0   :  { %1601 = vrot.lane.b32.xlu0 %v4422_v3, %s3872_s4  ;;  %1607 = vrot.lane.b32.xlu1 %v4464_v61, %s3872_s4  ;;  %v5307_v50 = vpop.permute.xlu1 %1371 }
  0xe1   :  { %8635 = vst [vmem:[#allocation61_spill] sm:$0xff] %v5307_v50  ;;  %v5309_v32 = vpop.permute.xlu0 %1369 }
  0xe2   :  { %8636 = vst [vmem:[#allocation62_spill] sm:$0xff] %v5309_v32 }
  0xe4   :  { %1605 = vrot.lane.b32.xlu0 %v4506_v38, %s3872_s4  ;;  %1611 = vrot.lane.b32.xlu1 %v4538_v39, %s3872_s4  ;;  %v5315_v43 = vpop.permute.xlu1 %1375 }
  0xe5   :  { %8637 = vst [vmem:[#allocation63_spill] sm:$0xff] %v5315_v43  ;;  %v5321_v59 = vpop.permute.xlu0 %1373 }
  0xe6   :  { %8638 = vst [vmem:[#allocation64_spill] sm:$0xff] %v5321_v59 }
  0xe8   :  { %1609 = vrot.lane.b32.xlu0 %v4570_v20, %s3872_s4  ;;  %1615 = vrot.lane.b32.xlu1 %v4602_v21, %s3872_s4  ;;  %v5323_v33 = vpop.permute.xlu1 %1379 }
  0xe9   :  { %8639 = vst [vmem:[#allocation65_spill] sm:$0xff] %v5323_v33 }
  0xea   :  { %v5329_v0 = vpop.permute.xlu0 %1377 }
  0xeb   :  { %8640 = vst [vmem:[#allocation66_spill] sm:$0xff] %v5329_v0 }
  0xec   :  { %1613 = vrot.lane.b32.xlu0 %v4634_v56, %s3872_s4  ;;  %1619 = vrot.lane.b32.xlu1 %v4666_v60, %s3872_s4 }
  0xee   :  { %v5335_v1 = vpop.permute.xlu1 %1383 }
  0xef   :  { %8641 = vst [vmem:[#allocation67_spill] sm:$0xff] %v5335_v1 }
  0xf0   :  { %1617 = vrot.lane.b32.xlu0 %v4698_v62, %s3872_s4  ;;  %1623 = vrot.lane.b32.xlu1 %v4730_v8, %s3872_s4 }
  0xf2   :  { %v5339_v18 = vpop.permute.xlu0 %1381 }
  0xf3   :  { %8642 = vst [vmem:[#allocation68_spill] sm:$0xff] %v5339_v18 }
  0xf4   :  { %1621 = vrot.lane.b32.xlu0 %v4762_v47, %s3872_s4  ;;  %1627 = vrot.lane.b32.xlu1 %v4794_v23, %s3872_s4 }
  0xf6   :  { %v5343_v7 = vpop.permute.xlu1 %1387 }
  0xf7   :  { %8643 = vst [vmem:[#allocation69_spill] sm:$0xff] %v5343_v7 }
  0xf8   :  { %1625 = vrot.lane.b32.xlu0 %v4826_v27, %s3872_s4  ;;  %1631 = vrot.lane.b32.xlu1 %v4858_v36, %s3872_s4 }
  0xfa   :  { %v5349_v45 = vpop.permute.xlu0 %1385  ;;  %v5351_v0 = vpop.permute.xlu1 %1455 }
  0xfb   :  { %8644 = vst [vmem:[#allocation70_spill] sm:$0xff] %v5349_v45 }
  0xfc   :  { %1629 = vrot.lane.b32.xlu0 %v4890_v31, %s3872_s4  ;;  %1635 = vrot.lane.b32.xlu1 %v4922_v41, %s3872_s4 }
  0xfe   :  { %v5357_v18 = vpop.permute.xlu0 %1453  ;;  %v5359_v1 = vpop.permute.xlu1 %1459 }
 0x100   :  { %1633 = vrot.lane.b32.xlu0 %v4962_v54, %s3872_s4  ;;  %1639 = vrot.lane.b32.xlu1 %v5002_v46, %s3872_s4 }
 0x102   :  { %v5365_v7 = vpop.permute.xlu0 %1457  ;;  %v5367_v45 = vpop.permute.xlu1 %1463 }
 0x104   :  { %1637 = vrot.lane.b32.xlu0 %v5040_v22, %s3872_s4  ;;  %1643 = vrot.lane.b32.xlu1 %v5066_v49, %s3872_s4 }
 0x106   :  { %v5373_v33 = vpop.permute.xlu0 %1461  ;;  %v5375_v59 = vpop.permute.xlu1 %1467 }
 0x108   :  { %1641 = vrot.lane.b32.xlu0 %v5081_v16, %s3872_s4  ;;  %1711 = vrot.lane.b32.xlu1 %v4086_v55, %s3873_s5 }
 0x10a   :  { %v5381_v43 = vpop.permute.xlu0 %1465  ;;  %v5383_v32 = vpop.permute.xlu1 %1471 }
 0x10c   :  { %1709 = vrot.lane.b32.xlu0 %v4013_v2, %s3873_s5  ;;  %1715 = vrot.lane.b32.xlu1 %v4030_v19, %s3873_s5 }
 0x10e   :  { %v5389_v50 = vpop.permute.xlu0 %1469  ;;  %v5391_v51 = vpop.permute.xlu1 %1475 }
 0x110   :  { %1713 = vrot.lane.b32.xlu0 %v3990_v52, %s3873_s5  ;;  %1719 = vrot.lane.b32.xlu1 %v4128_v37, %s3873_s5 }
 0x112   :  { %v5397_v11 = vpop.permute.xlu0 %1473  ;;  %v5399_v24 = vpop.permute.xlu1 %1479 }
 0x114   :  { %1717 = vrot.lane.b32.xlu0 %v4170_v57, %s3873_s5  ;;  %1723 = vrot.lane.b32.xlu1 %v4212_v35, %s3873_s5 }
 0x116   :  { %v5405_v34 = vpop.permute.xlu0 %1477  ;;  %v5407_v29 = vpop.permute.xlu1 %1483 }
 0x117   :  { %8645 = vst [vmem:[#allocation71_spill] sm:$0xff] %v5405_v34  ;;  %8646 = vst [vmem:[#allocation72_spill] sm:$0xff] %v5407_v29 }
 0x118   :  { %1721 = vrot.lane.b32.xlu0 %v4254_v5, %s3873_s5  ;;  %1727 = vrot.lane.b32.xlu1 %v4296_v10, %s3873_s5 }
 0x11a   :  { %v5413_v9 = vpop.permute.xlu0 %1481  ;;  %v5415_v44 = vpop.permute.xlu1 %1487 }
 0x11b   :  { %8647 = vst [vmem:[#allocation73_spill] sm:$0xff] %v5413_v9  ;;  %8648 = vst [vmem:[#allocation74_spill] sm:$0xff] %v5415_v44 }
 0x11c   :  { %1725 = vrot.lane.b32.xlu0 %v4338_v48, %s3873_s5  ;;  %1731 = vrot.lane.b32.xlu1 %v4380_v40, %s3873_s5 }
 0x11e   :  { %v5421_v4 = vpop.permute.xlu0 %1485  ;;  %v5423_v34 = vpop.permute.xlu1 %1491 }
 0x11f   :  { %8649 = vst [vmem:[#allocation75_spill] sm:$0xff] %v5421_v4  ;;  %8650 = vst [vmem:[#allocation76_spill] sm:$0xff] %v5423_v34 }
 0x120   :  { %1729 = vrot.lane.b32.xlu0 %v4422_v3, %s3873_s5  ;;  %1735 = vrot.lane.b32.xlu1 %v4464_v61, %s3873_s5 }
 0x122   :  { %v5429_v29 = vpop.permute.xlu0 %1489  ;;  %v5431_v9 = vpop.permute.xlu1 %1495 }
 0x123   :  { %8651 = vst [vmem:[#allocation77_spill] sm:$0xff] %v5429_v29  ;;  %8652 = vst [vmem:[#allocation78_spill] sm:$0xff] %v5431_v9 }
 0x124   :  { %1733 = vrot.lane.b32.xlu0 %v4506_v38, %s3873_s5  ;;  %1739 = vrot.lane.b32.xlu1 %v4538_v39, %s3873_s5 }
 0x126   :  { %v5437_v44 = vpop.permute.xlu0 %1493  ;;  %v5439_v4 = vpop.permute.xlu1 %1499 }
 0x127   :  { %8653 = vst [vmem:[#allocation79_spill] sm:$0xff] %v5437_v44  ;;  %8654 = vst [vmem:[#allocation80_spill] sm:$0xff] %v5439_v4 }
 0x128   :  { %1737 = vrot.lane.b32.xlu0 %v4570_v20, %s3873_s5  ;;  %1743 = vrot.lane.b32.xlu1 %v4602_v21, %s3873_s5 }
 0x12a   :  { %v5445_v34 = vpop.permute.xlu0 %1497  ;;  %v5447_v29 = vpop.permute.xlu1 %1503 }
 0x12b   :  { %8655 = vst [vmem:[#allocation81_spill] sm:$0xff] %v5445_v34  ;;  %8656 = vst [vmem:[#allocation82_spill] sm:$0xff] %v5447_v29 }
 0x12c   :  { %1741 = vrot.lane.b32.xlu0 %v4634_v56, %s3873_s5  ;;  %1747 = vrot.lane.b32.xlu1 %v4666_v60, %s3873_s5 }
 0x12e   :  { %v5453_v9 = vpop.permute.xlu0 %1501  ;;  %v5455_v44 = vpop.permute.xlu1 %1507 }
 0x12f   :  { %8657 = vst [vmem:[#allocation83_spill] sm:$0xff] %v5453_v9  ;;  %8658 = vst [vmem:[#allocation84_spill] sm:$0xff] %v5455_v44 }
 0x130   :  { %1745 = vrot.lane.b32.xlu0 %v4698_v62, %s3873_s5  ;;  %1751 = vrot.lane.b32.xlu1 %v4730_v8, %s3873_s5 }
 0x132   :  { %v5461_v4 = vpop.permute.xlu0 %1505  ;;  %v5463_v34 = vpop.permute.xlu1 %1511 }
 0x133   :  { %8659 = vst [vmem:[#allocation85_spill] sm:$0xff] %v5461_v4  ;;  %8660 = vst [vmem:[#allocation86_spill] sm:$0xff] %v5463_v34 }
 0x134   :  { %1749 = vrot.lane.b32.xlu0 %v4762_v47, %s3873_s5  ;;  %1755 = vrot.lane.b32.xlu1 %v4794_v23, %s3873_s5 }
 0x136   :  { %v5469_v29 = vpop.permute.xlu0 %1509  ;;  %v5471_v9 = vpop.permute.xlu1 %1515 }
 0x137   :  { %8661 = vst [vmem:[#allocation87_spill] sm:$0xff] %v5469_v29  ;;  %8662 = vst [vmem:[#allocation88_spill] sm:$0xff] %v5471_v9 }
 0x138   :  { %1753 = vrot.lane.b32.xlu0 %v4826_v27, %s3873_s5  ;;  %1759 = vrot.lane.b32.xlu1 %v4858_v36, %s3873_s5 }
 0x13a   :  { %v5477_v44 = vpop.permute.xlu0 %1513  ;;  %v1584_v4 = vpop.permute.xlu1 %1583 }
 0x13b   :  { %8663 = vst [vmem:[#allocation89_spill] sm:$0xff] %v5477_v44 }
 0x13c   :  { %1757 = vrot.lane.b32.xlu0 %v4890_v31, %s3873_s5  ;;  %1763 = vrot.lane.b32.xlu1 %v4922_v41, %s3873_s5 }
 0x13e   :  { %v1582_v34 = vpop.permute.xlu0 %1581  ;;  %v1588_v23 = vpop.permute.xlu1 %1587 }
 0x140   :  { %1761 = vrot.lane.b32.xlu0 %v4962_v54, %s3873_s5  ;;  %1767 = vrot.lane.b32.xlu1 %v5002_v46, %s3873_s5 }
 0x142   :  { %v5487_v9 = vpop.permute.xlu0 %1585  ;;  %v5489_v29 = vpop.permute.xlu1 %1591 }
 0x144   :  { %1765 = vrot.lane.b32.xlu0 %v5040_v22, %s3873_s5  ;;  %1771 = vrot.lane.b32.xlu1 %v5066_v49, %s3873_s5 }
 0x146   :  { %v5495_v44 = vpop.permute.xlu0 %1589  ;;  %v5497_v41 = vpop.permute.xlu1 %1595 }
 0x148   :  { %1769 = vrot.lane.b32.xlu0 %v5081_v16, %s3873_s5 }
 0x14a   :  { %v5501_v54 = vpop.permute.xlu0 %1593  ;;  %v5503_v46 = vpop.permute.xlu1 %1599 }
 0x14e   :  { %v5505_v31 = vpop.permute.xlu0 %1597  ;;  %v5507_v36 = vpop.permute.xlu1 %1603 }
 0x152   :  { %v5509_v27 = vpop.permute.xlu0 %1601  ;;  %v5511_v22 = vpop.permute.xlu1 %1607 }
 0x153   :  { %8664 = vst [vmem:[#allocation90_spill] sm:$0xff] %v5509_v27  ;;  %8665 = vst [vmem:[#allocation91_spill] sm:$0xff] %v5511_v22 }
 0x156   :  { %v5513_v49 = vpop.permute.xlu0 %1605  ;;  %v5515_v47 = vpop.permute.xlu1 %1611 }
 0x157   :  { %8666 = vst [vmem:[#allocation92_spill] sm:$0xff] %v5513_v49  ;;  %8667 = vst [vmem:[#allocation93_spill] sm:$0xff] %v5515_v47 }
 0x15a   :  { %v5517_v8 = vpop.permute.xlu0 %1609  ;;  %v5519_v62 = vpop.permute.xlu1 %1615 }
 0x15b   :  { %8668 = vst [vmem:[#allocation94_spill] sm:$0xff] %v5517_v8  ;;  %8669 = vst [vmem:[#allocation95_spill] sm:$0xff] %v5519_v62 }
 0x15e   :  { %v5521_v16 = vpop.permute.xlu0 %1613  ;;  %v5523_v60 = vpop.permute.xlu1 %1619 }
 0x15f   :  { %8670 = vst [vmem:[#allocation96_spill] sm:$0xff] %v5521_v16 }
 0x162   :  { %v5525_v56 = vpop.permute.xlu0 %1617  ;;  %v5527_v21 = vpop.permute.xlu1 %1623 }
 0x163   :  { %8671 = vst [vmem:[#allocation97_spill] sm:$0xff] %v5525_v56  ;;  %8672 = vst [vmem:[#allocation98_spill] sm:$0xff] %v5527_v21  ;;  %v1422_v56 = vmax.f32 %v4086_v55, %v5219_v12 }
 0x166   :  { %v5529_v20 = vpop.permute.xlu0 %1621  ;;  %v5531_v27 = vpop.permute.xlu1 %1627 }
 0x167   :  { %8673 = vst [vmem:[#allocation99_spill] sm:$0xff] %v5529_v20  ;;  %8674 = vst [vmem:[#allocation100_spill] sm:$0xff] %v5531_v27  ;;  %v1550_v27 = vmax.f32 %v1422_v56, %v5351_v0  ;;  %v1426_v0 = vmax.f32 %v4128_v37, %v5235_v28 }
 0x16a   :  { %v5533_v22 = vpop.permute.xlu0 %1625  ;;  %v5535_v49 = vpop.permute.xlu1 %1631 }
 0x16b   :  { %8675 = vst [vmem:[#allocation101_spill] sm:$0xff] %v5533_v22  ;;  %8676 = vst [vmem:[#allocation102_spill] sm:$0xff] %v5535_v49  ;;  %v1421_v49 = vmax.f32 %v4013_v2, %v5221_v30 }
 0x16e   :  { %v5537_v47 = vpop.permute.xlu0 %1629  ;;  %v5539_v8 = vpop.permute.xlu1 %1635 }
 0x16f   :  { %8677 = vst [vmem:[#allocation103_spill] sm:$0xff] %v5537_v47  ;;  %8678 = vst [vmem:[#allocation104_spill] sm:$0xff] %v5539_v8  ;;  %v1424_v47 = vmax.f32 %v4030_v19, %v5227_v53  ;;  %v1678_v8 = vmax.f32 %v1550_v27, %v1584_v4  ;;  %v1554_v19 = vmax.f32 %v1426_v0, %v5367_v45 }
 0x171   :  { %v1552_v12 = vmax.f32 %v1424_v47, %v5359_v1  ;;  %v1425_v1 = vmax.f32 %v4170_v57, %v5237_v63  ;;  %v1682_v47 = vmax.f32 %v1554_v19, %v5489_v29 }
 0x172   :  { %v5541_v62 = vpop.permute.xlu0 %1633  ;;  %v5543_v16 = vpop.permute.xlu1 %1639 }
 0x173   :  { %8679 = vst [vmem:[#allocation105_spill] sm:$0xff] %v5541_v62  ;;  %8680 = vst [vmem:[#allocation106_spill] sm:$0xff] %v5543_v16  ;;  %v1549_v16 = vmax.f32 %v1421_v49, %v5357_v18  ;;  %v1680_v30 = vmax.f32 %v1552_v12, %v1588_v23  ;;  %v1553_v45 = vmax.f32 %v1425_v1, %v5373_v33  ;;  %v8684_v1 = vld [vmem:[#allocation91_spill] sm:$0xff] }
 0x175   :  { %v1677_v56 = vmax.f32 %v1549_v16, %v1582_v34  ;;  %v1427_v16 = vmax.f32 %v4254_v5, %v5245_v26  ;;  %v1681_v19 = vmax.f32 %v1553_v45, %v5495_v44  ;;  %v1429_v26 = vmax.f32 %v4338_v48, %v5253_v14 }
 0x176   :  { %v5547_v21 = vpop.permute.xlu0 %1637  ;;  %v5549_v20 = vpop.permute.xlu1 %1643  ;;  %v1432_v44 = vmax.f32 %v4380_v40, %v5259_v13  ;;  %v1431_v14 = vmax.f32 %v4422_v3, %v5261_v6  ;;  %v1433_v6 = vmax.f32 %v4506_v38, %v5269_v25  ;;  %v8687_v25 = vld [vmem:[#allocation54_spill] sm:$0xff] }
 0x177   :  { %8681 = vst [vmem:[#allocation107_spill] sm:$0xff] %v5549_v20  ;;  %v1423_v20 = vmax.f32 %v3990_v52, %v5229_v42 }
 0x178   :  { %v1560_v0 = vmax.f32 %v1432_v44, %v5391_v51  ;;  %v1559_v51 = vmax.f32 %v1431_v14, %v5397_v11  ;;  %v8694_v44 = vld [vmem:[#allocation74_spill] sm:$0xff] }
 0x179   :  { %v1551_v4 = vmax.f32 %v1423_v20, %v5365_v7 }
 0x17a   :  { %v5556_v22 = vpop.permute.xlu0 %1641  ;;  %v1712_v62 = vpop.permute.xlu1 %1711  ;;  %v1688_v13 = vmax.f32 %v1560_v0, %v5507_v36 }
 0x17b   :  { %v1806_v55 = vmax.f32 %v1678_v8, %v1712_v62  ;;  %v1428_v62 = vmax.f32 %v4212_v35, %v5243_v15  ;;  %v1679_v8 = vmax.f32 %v1551_v4, %v5487_v9  ;;  %v1430_v9 = vmax.f32 %v4296_v10, %v5251_v58 }
 0x17d   :  { %1871 = vrot.lane.b32.xlu1 %v1806_v55, %s3873_s5  ;;  %v1556_v20 = vmax.f32 %v1428_v62, %v5375_v59  ;;  %v1555_v59 = vmax.f32 %v1427_v16, %v5381_v43  ;;  %v1558_v28 = vmax.f32 %v1430_v9, %v5383_v32  ;;  %v1557_v32 = vmax.f32 %v1429_v26, %v5389_v50  ;;  %v8689_v16 = vld [vmem:[#allocation55_spill] sm:$0xff]  ;;  %v8690_v9 = vld [vmem:[#allocation24_spill] sm:$0xff] }
 0x17e   :  { %v1710_v53 = vpop.permute.xlu0 %1709  ;;  %v1716_v27 = vpop.permute.xlu1 %1715 }
 0x17f   :  { %v1805_v18 = vmax.f32 %v1677_v56, %v1710_v53  ;;  %v1808_v49 = vmax.f32 %v1680_v30, %v1716_v27  ;;  %v1684_v29 = vmax.f32 %v1556_v20, %v5497_v41  ;;  %v1683_v41 = vmax.f32 %v1555_v59, %v5501_v54 }
 0x180   :  { %v1686_v58 = vmax.f32 %v1558_v28, %v5503_v46  ;;  %v1434_v54 = vmax.f32 %v4464_v61, %v5267_v17  ;;  %v1685_v46 = vmax.f32 %v1557_v32, %v5505_v31  ;;  %v8682_v17 = vld [vmem:[#allocation53_spill] sm:$0xff]  ;;  %v8696_v32 = vld [vmem:[#allocation26_spill] sm:$0xff] }
 0x181   :  { %1869 = vrot.lane.b32.xlu0 %v1805_v18, %s3873_s5  ;;  %1875 = vrot.lane.b32.xlu1 %v1808_v49, %s3873_s5  ;;  %v1436_v31 = vmax.f32 %v4538_v39, %v8682_v17  ;;  %v8683_v49 = vld [vmem:[#allocation90_spill] sm:$0xff] }
 0x182   :  { %v1714_v55 = vpop.permute.xlu0 %1713  ;;  %v1720_v7 = vpop.permute.xlu1 %1719  ;;  %v1562_v27 = vmax.f32 %v1434_v54, %v5399_v24  ;;  %v1687_v36 = vmax.f32 %v1559_v51, %v8683_v49  ;;  %v8699_v54 = vld [vmem:[#allocation94_spill] sm:$0xff] }
 0x183   :  { %v1807_v23 = vmax.f32 %v1679_v8, %v1714_v55  ;;  %v1810_v34 = vmax.f32 %v1682_v47, %v1720_v7  ;;  %v8685_v47 = vld [vmem:[#allocation71_spill] sm:$0xff]  ;;  %v8686_v55 = vld [vmem:[#allocation72_spill] sm:$0xff]  ;;  %v8703_v49 = vld [vmem:[#allocation58_spill] sm:$0xff] }
 0x184   :  { %v1690_v62 = vmax.f32 %v1562_v27, %v8684_v1  ;;  %v1561_v24 = vmax.f32 %v1433_v6, %v8685_v47  ;;  %v1564_v7 = vmax.f32 %v1436_v31, %v8686_v55  ;;  %v8701_v27 = vld [vmem:[#allocation75_spill] sm:$0xff]  ;;  %v8707_v47 = vld [vmem:[#allocation96_spill] sm:$0xff] }
 0x185   :  { %1873 = vrot.lane.b32.xlu0 %v1807_v23, %s3873_s5  ;;  %1879 = vrot.lane.b32.xlu1 %v1810_v34, %s3873_s5  ;;  %v8688_v23 = vld [vmem:[#allocation22_spill] sm:$0xff] }
 0x186   :  { %v1718_v42 = vpop.permute.xlu0 %1717  ;;  %v1724_v33 = vpop.permute.xlu1 %1723  ;;  %v1435_v34 = vmax.f32 %v8688_v23, %v8687_v25 }
 0x187   :  { %v1809_v63 = vmax.f32 %v1681_v19, %v1718_v42  ;;  %v1812_v15 = vmax.f32 %v1684_v29, %v1724_v33  ;;  %v1438_v19 = vmax.f32 %v8690_v9, %v8689_v16  ;;  %v8691_v29 = vld [vmem:[#allocation92_spill] sm:$0xff]  ;;  %v8692_v33 = vld [vmem:[#allocation93_spill] sm:$0xff] }
 0x188   :  { %v1689_v42 = vmax.f32 %v1561_v24, %v8691_v29  ;;  %v1692_v59 = vmax.f32 %v1564_v7, %v8692_v33  ;;  %v8711_v33 = vld [vmem:[#allocation34_spill] sm:$0xff] }
 0x189   :  { %1877 = vrot.lane.b32.xlu0 %v1809_v63, %s3873_s5  ;;  %1883 = vrot.lane.b32.xlu1 %v1812_v15, %s3873_s5  ;;  %v8693_v15 = vld [vmem:[#allocation73_spill] sm:$0xff] }
 0x18a   :  { %v1722_v12 = vpop.permute.xlu0 %1721  ;;  %v1728_v43 = vpop.permute.xlu1 %1727  ;;  %v1563_v26 = vmax.f32 %v1435_v34, %v8693_v15  ;;  %v8709_v34 = vld [vmem:[#allocation78_spill] sm:$0xff] }
 0x18b   :  { %v1811_v56 = vmax.f32 %v1683_v41, %v1722_v12  ;;  %v1814_v30 = vmax.f32 %v1686_v58, %v1728_v43  ;;  %v1566_v41 = vmax.f32 %v1438_v19, %v8694_v44  ;;  %v8695_v43 = vld [vmem:[#allocation56_spill] sm:$0xff]  ;;  %v8715_v44 = vld [vmem:[#allocation98_spill] sm:$0xff] }
 0x18c   :  { %v1437_v0 = vmax.f32 %v8696_v32, %v8695_v43  ;;  %v8716_v43 = vld [vmem:[#allocation79_spill] sm:$0xff] }
 0x18d   :  { %1881 = vrot.lane.b32.xlu0 %v1811_v56, %s3873_s5  ;;  %1887 = vrot.lane.b32.xlu1 %v1814_v30, %s3873_s5  ;;  %v8697_v56 = vld [vmem:[#allocation57_spill] sm:$0xff]  ;;  %v8698_v30 = vld [vmem:[#allocation28_spill] sm:$0xff] }
 0x18e   :  { %v1726_v53 = vpop.permute.xlu0 %1725  ;;  %v1732_v50 = vpop.permute.xlu1 %1731  ;;  %v1440_v14 = vmax.f32 %v8698_v30, %v8697_v56  ;;  %v8717_v56 = vld [vmem:[#allocation80_spill] sm:$0xff] }
 0x18f   :  { %v1813_v4 = vmax.f32 %v1685_v46, %v1726_v53  ;;  %v1816_v18 = vmax.f32 %v1688_v13, %v1732_v50  ;;  %v1691_v46 = vmax.f32 %v1563_v26, %v8699_v54  ;;  %v8700_v13 = vld [vmem:[#allocation95_spill] sm:$0xff]  ;;  %v8714_v26 = vld [vmem:[#allocation97_spill] sm:$0xff] }
 0x190   :  { %v1694_v53 = vmax.f32 %v1566_v41, %v8700_v13  ;;  %v8718_v13 = vld [vmem:[#allocation62_spill] sm:$0xff] }
 0x191   :  { %1885 = vrot.lane.b32.xlu0 %v1813_v4, %s3873_s5  ;;  %1891 = vrot.lane.b32.xlu1 %v1816_v18, %s3873_s5  ;;  %v1565_v4 = vmax.f32 %v1437_v0, %v8701_v27  ;;  %v8702_v18 = vld [vmem:[#allocation76_spill] sm:$0xff] }
 0x192   :  { %v1730_v8 = vpop.permute.xlu0 %1729  ;;  %v1736_v11 = vpop.permute.xlu1 %1735  ;;  %v1568_v6 = vmax.f32 %v1440_v14, %v8702_v18  ;;  %v8721_v27 = vld [vmem:[#allocation40_spill] sm:$0xff]  ;;  %v8722_v18 = vld [vmem:[#allocation99_spill] sm:$0xff] }
 0x193   :  { %v1815_v45 = vmax.f32 %v1687_v36, %v1730_v8  ;;  %v1818_v20 = vmax.f32 %v1690_v62, %v1736_v11  ;;  %v8704_v36 = vld [vmem:[#allocation30_spill] sm:$0xff]  ;;  %v8705_v62 = vld [vmem:[#allocation59_spill] sm:$0xff]  ;;  %v8706_v8 = vld [vmem:[#allocation32_spill] sm:$0xff]  ;;  %v1693_v24 = vmax.f32 %v1565_v4, %v8707_v47 }
 0x194   :  { %v1439_v1 = vmax.f32 %v8704_v36, %v8703_v49  ;;  %v1442_v11 = vmax.f32 %v8706_v8, %v8705_v62  ;;  %v1696_v55 = vmax.f32 %v1568_v6, %v5523_v60  ;;  %v8724_v62 = vld [vmem:[#allocation81_spill] sm:$0xff]  ;;  %v8725_v47 = vld [vmem:[#allocation82_spill] sm:$0xff] }
 0x195   :  { %1889 = vrot.lane.b32.xlu0 %v1815_v45, %s3873_s5  ;;  %1895 = vrot.lane.b32.xlu1 %v1818_v20, %s3873_s5  ;;  %v8708_v20 = vld [vmem:[#allocation77_spill] sm:$0xff] }
 0x196   :  { %v1734_v28 = vpop.permute.xlu0 %1733  ;;  %v1740_v63 = vpop.permute.xlu1 %1739  ;;  %v1567_v25 = vmax.f32 %v1439_v1, %v8708_v20  ;;  %v1570_v16 = vmax.f32 %v1442_v11, %v8709_v34  ;;  %v8727_v20 = vld [vmem:[#allocation42_spill] sm:$0xff]  ;;  %v8728_v34 = vld [vmem:[#allocation65_spill] sm:$0xff] }
 0x197   :  { %v1817_v58 = vmax.f32 %v1689_v42, %v1734_v28  ;;  %v1820_v12 = vmax.f32 %v1692_v59, %v1740_v63  ;;  %v8710_v42 = vld [vmem:[#allocation60_spill] sm:$0xff]  ;;  %v8712_v28 = vld [vmem:[#allocation61_spill] sm:$0xff] }
 0x198   :  { %v1441_v59 = vmax.f32 %v8711_v33, %v8710_v42  ;;  %v8713_v63 = vld [vmem:[#allocation36_spill] sm:$0xff]  ;;  %v1695_v60 = vmax.f32 %v1567_v25, %v8714_v26  ;;  %v1698_v41 = vmax.f32 %v1570_v16, %v8715_v44 }
 0x199   :  { %1893 = vrot.lane.b32.xlu0 %v1817_v58, %s3873_s5  ;;  %1899 = vrot.lane.b32.xlu1 %v1820_v12, %s3873_s5  ;;  %v1444_v15 = vmax.f32 %v8713_v63, %v8712_v28  ;;  %v8729_v16 = vld [vmem:[#allocation44_spill] sm:$0xff] }
 0x19a   :  { %v1738_v50 = vpop.permute.xlu0 %1737  ;;  %v1744_v51 = vpop.permute.xlu1 %1743  ;;  %v1569_v0 = vmax.f32 %v1441_v59, %v8716_v43  ;;  %v8731_v59 = vld [vmem:[#allocation102_spill] sm:$0xff] }
 0x19b   :  { %v1819_v17 = vmax.f32 %v1691_v46, %v1738_v50  ;;  %v1822_v31 = vmax.f32 %v1694_v53, %v1744_v51  ;;  %v1572_v14 = vmax.f32 %v1444_v15, %v8717_v56  ;;  %v8719_v53 = vld [vmem:[#allocation38_spill] sm:$0xff]  ;;  %v8720_v51 = vld [vmem:[#allocation63_spill] sm:$0xff] }
 0x19c   :  { %v1443_v50 = vmax.f32 %v8719_v53, %v8718_v13  ;;  %v1446_v4 = vmax.f32 %v8721_v27, %v8720_v51  ;;  %v1697_v6 = vmax.f32 %v1569_v0, %v8722_v18  ;;  %v8734_v0 = vld [vmem:[#allocation66_spill] sm:$0xff] }
 0x19d   :  { %1897 = vrot.lane.b32.xlu0 %v1819_v17, %s3873_s5  ;;  %1903 = vrot.lane.b32.xlu1 %v1822_v31, %s3873_s5  ;;  %v8723_v17 = vld [vmem:[#allocation100_spill] sm:$0xff]  ;;  %v8735_v56 = vld [vmem:[#allocation46_spill] sm:$0xff] }
 0x19e   :  { %v1742_v7 = vpop.permute.xlu0 %1741  ;;  %v1748_v45 = vpop.permute.xlu1 %1747  ;;  %v1700_v31 = vmax.f32 %v1572_v14, %v8723_v17  ;;  %v1571_v11 = vmax.f32 %v1443_v50, %v8724_v62  ;;  %v1447_v14 = vmax.f32 %v8735_v56, %v8734_v0  ;;  %v8738_v50 = vld [vmem:[#allocation103_spill] sm:$0xff]  ;;  %v8751_v0 = vld [vmem:[#allocation52_spill] sm:$0xff] }
 0x19f   :  { %v1821_v19 = vmax.f32 %v1693_v24, %v1742_v7  ;;  %v1824_v29 = vmax.f32 %v1696_v55, %v1748_v45  ;;  %v1574_v24 = vmax.f32 %v1446_v4, %v8725_v47  ;;  %v8726_v45 = vld [vmem:[#allocation64_spill] sm:$0xff] }
 0x1a0   :  { %v1445_v25 = vmax.f32 %v8727_v20, %v8726_v45  ;;  %v8739_v4 = vld [vmem:[#allocation104_spill] sm:$0xff]  ;;  %v8744_v45 = vld [vmem:[#allocation69_spill] sm:$0xff] }
 0x1a1   :  { %1901 = vrot.lane.b32.xlu0 %v1821_v19, %s3873_s5  ;;  %1907 = vrot.lane.b32.xlu1 %v1824_v29, %s3873_s5  ;;  %v1448_v19 = vmax.f32 %v8729_v16, %v8728_v34  ;;  %v8730_v29 = vld [vmem:[#allocation101_spill] sm:$0xff]  ;;  %v1702_v28 = vmax.f32 %v1574_v24, %v8731_v59  ;;  %v8742_v24 = vld [vmem:[#allocation68_spill] sm:$0xff] }
 0x1a2   :  { %v1746_v58 = vpop.permute.xlu0 %1745  ;;  %v1752_v12 = vpop.permute.xlu1 %1751  ;;  %v1699_v42 = vmax.f32 %v1571_v11, %v8730_v29 }
 0x1a3   :  { %v1823_v54 = vmax.f32 %v1695_v60, %v1746_v58  ;;  %v1826_v46 = vmax.f32 %v1698_v41, %v1752_v12  ;;  %v8732_v60 = vld [vmem:[#allocation83_spill] sm:$0xff]  ;;  %v8733_v41 = vld [vmem:[#allocation84_spill] sm:$0xff] }
 0x1a4   :  { %v1573_v44 = vmax.f32 %v1445_v25, %v8732_v60  ;;  %v1576_v58 = vmax.f32 %v1448_v19, %v8733_v41  ;;  %v8745_v25 = vld [vmem:[#allocation51_spill] sm:$0xff]  ;;  %v8746_v19 = vld [vmem:[#allocation105_spill] sm:$0xff] }
 0x1a5   :  { %1905 = vrot.lane.b32.xlu0 %v1823_v54, %s3873_s5  ;;  %1911 = vrot.lane.b32.xlu1 %v1826_v46, %s3873_s5  ;;  %v8736_v54 = vld [vmem:[#allocation67_spill] sm:$0xff]  ;;  %v8737_v46 = vld [vmem:[#allocation48_spill] sm:$0xff]  ;;  %v1452_v34 = vmax.f32 %v8745_v25, %v8744_v45 }
 0x1a6   :  { %v1750_v49 = vpop.permute.xlu0 %1749  ;;  %v1756_v1 = vpop.permute.xlu1 %1755  ;;  %v1450_v13 = vmax.f32 %v8737_v46, %v8736_v54  ;;  %v1701_v51 = vmax.f32 %v1573_v44, %v8738_v50  ;;  %v1704_v18 = vmax.f32 %v1576_v58, %v8739_v4  ;;  %v8749_v44 = vld [vmem:[#allocation88_spill] sm:$0xff] }
 0x1a7   :  { %v1825_v55 = vmax.f32 %v1697_v6, %v1750_v49  ;;  %v1828_v7 = vmax.f32 %v1700_v31, %v1756_v1  ;;  %v8740_v31 = vld [vmem:[#allocation85_spill] sm:$0xff]  ;;  %v8741_v1 = vld [vmem:[#allocation86_spill] sm:$0xff]  ;;  %v1580_v41 = vmax.f32 %v1452_v34, %v8749_v44 }
 0x1a8   :  { %v1575_v49 = vmax.f32 %v1447_v14, %v8740_v31  ;;  %v1578_v62 = vmax.f32 %v1450_v13, %v8741_v1  ;;  %v8752_v13 = vld [vmem:[#allocation107_spill] sm:$0xff] }
 0x1a9   :  { %1909 = vrot.lane.b32.xlu0 %v1825_v55, %s3873_s5  ;;  %1915 = vrot.lane.b32.xlu1 %v1828_v7, %s3873_s5  ;;  %v8743_v55 = vld [vmem:[#allocation50_spill] sm:$0xff]  ;;  %v1708_v50 = vmax.f32 %v1580_v41, %v8752_v13 }
 0x1aa   :  { %v1754_v15 = vpop.permute.xlu0 %1753  ;;  %v1760_v26 = vpop.permute.xlu1 %1759  ;;  %v1449_v7 = vmax.f32 %v8743_v55, %v8742_v24  ;;  %v1703_v29 = vmax.f32 %v1575_v49, %v8746_v19  ;;  %v1199_v19 = vrot.slane %v3990_v52, 4 }
 0x1ab   :  { %v1827_v12 = vmax.f32 %v1699_v42, %v1754_v15  ;;  %v1830_v43 = vmax.f32 %v1702_v28, %v1760_v26  ;;  %v8747_v42 = vld [vmem:[#allocation106_spill] sm:$0xff]  ;;  %v8748_v26 = vld [vmem:[#allocation87_spill] sm:$0xff] }
 0x1ac   :  { %v1706_v59 = vmax.f32 %v1578_v62, %v8747_v42  ;;  %v1577_v60 = vmax.f32 %v1449_v7, %v8748_v26  ;;  %v5729_v42 = vmax.f32 %v3990_v52, %v1199_v19  ;;  %v1203_v52 = vrot.slane %v4254_v5, 4 }
 0x1ad   :  { %1913 = vrot.lane.b32.xlu0 %v1827_v12, %s3873_s5  ;;  %1919 = vrot.lane.b32.xlu1 %v1830_v43, %s3873_s5  ;;  %v8750_v43 = vld [vmem:[#allocation70_spill] sm:$0xff] }
 0x1ae   :  { %v1758_v6 = vpop.permute.xlu0 %1757  ;;  %v1764_v17 = vpop.permute.xlu1 %1763  ;;  %v1451_v14 = vmax.f32 %v8751_v0, %v8750_v43  ;;  %v1705_v54 = vmax.f32 %v1577_v60, %v5547_v21  ;;  %v5753_v60 = vmax.f32 %v4254_v5, %v1203_v52  ;;  %v1207_v5 = vrot.slane %v4422_v3, 4 }
 0x1af   :  { %v1829_v11 = vmax.f32 %v1701_v51, %v1758_v6  ;;  %v1832_v47 = vmax.f32 %v1704_v18, %v1764_v17  ;;  %v8753_v51 = vld [vmem:[#allocation9_spill] sm:$0xff] }
 0x1b0   :  { %v1198_v4 = vrot.slane %v8753_v51, 4  ;;  %v8754_v17 = vld [vmem:[#allocation89_spill] sm:$0xff] }
 0x1b1   :  { %1917 = vrot.lane.b32.xlu0 %v1829_v11, %s3873_s5  ;;  %1923 = vrot.lane.b32.xlu1 %v1832_v47, %s3873_s5  ;;  %v1579_v31 = vmax.f32 %v1451_v14, %v8754_v17  ;;  %v1197_v11 = vrot.slane %v4013_v2, 4  ;;  %v8756_v47 = vld [vmem:[#allocation7_spill] sm:$0xff] }
 0x1b2   :  { %v1762_v28 = vpop.permute.xlu0 %1761  ;;  %v1768_v15 = vpop.permute.xlu1 %1767  ;;  %v5709_v21 = vmax.f32 %v8753_v51, %v1198_v4  ;;  %v1200_v24 = vrot.slane %v8756_v47, 4 }
 0x1b3   :  { %v1831_v58 = vmax.f32 %v1703_v29, %v1762_v28  ;;  %v1834_v12 = vmax.f32 %v1706_v59, %v1768_v15  ;;  %v1707_v62 = vmax.f32 %v1579_v31, %v5556_v22  ;;  %v5717_v22 = vmax.f32 %v4013_v2, %v1197_v11 }
 0x1b4   :  { %8755 = vst [vmem:[#allocation53_spill] sm:$0xff] %v5709_v21  ;;  %v5720_v34 = vmax.f32 %v8756_v47, %v1200_v24  ;;  %v1202_v29 = vrot.slane %v4128_v37, 4  ;;  %v1201_v2 = vrot.slane %v4170_v57, 4  ;;  %v1204_v28 = vrot.slane %v4212_v35, 4 }
 0x1b5   :  { %1921 = vrot.lane.b32.xlu0 %v1831_v58, %s3873_s5  ;;  %1927 = vrot.lane.b32.xlu1 %v1834_v12, %s3873_s5  ;;  %v5777_v12 = vmax.f32 %v4422_v3, %v1207_v5  ;;  %v1211_v3 = vrot.slane %v8688_v23, 4  ;;  %v1225_v24 = vrot.slane %v8743_v55, 4 }
 0x1b6   :  { %v1766_v18 = vpop.permute.xlu0 %1765  ;;  %v1772_v6 = vpop.permute.xlu1 %1771  ;;  %v5732_v59 = vmax.f32 %v4128_v37, %v1202_v29  ;;  %v5741_v15 = vmax.f32 %v4170_v57, %v1201_v2  ;;  %v5744_v26 = vmax.f32 %v4212_v35, %v1204_v28  ;;  %v1206_v37 = vrot.slane %v4296_v10, 4 }
 0x1b7   :  { %v1833_v49 = vmax.f32 %v1705_v54, %v1766_v18  ;;  %v1836_v1 = vmax.f32 %v1708_v50, %v1772_v6  ;;  %v1205_v57 = vrot.slane %v4338_v48, 4  ;;  %v1208_v35 = vrot.slane %v4380_v40, 4 }
 0x1b8   :  { %v5756_v44 = vmax.f32 %v4296_v10, %v1206_v37  ;;  %v1210_v10 = vrot.slane %v4464_v61, 4  ;;  %v5801_v13 = vmax.f32 %v8688_v23, %v1211_v3  ;;  %v1215_v23 = vrot.slane %v8704_v36, 4 }
 0x1b9   :  { %1925 = vrot.lane.b32.xlu0 %v1833_v49, %s3873_s5  ;;  %1931 = vrot.lane.b32.xlu1 %v1836_v1, %s3873_s5  ;;  %v5765_v41 = vmax.f32 %v4338_v48, %v1205_v57  ;;  %v5768_v58 = vmax.f32 %v4380_v40, %v1208_v35  ;;  %v1209_v48 = vrot.slane %v4506_v38, 4  ;;  %v1212_v40 = vrot.slane %v4538_v39, 4 }
 0x1ba   :  { %v1770_v7 = vpop.permute.xlu0 %1769  ;;  %v5780_v43 = vmax.f32 %v4464_v61, %v1210_v10  ;;  %v1214_v61 = vrot.slane %v8690_v9, 4  ;;  %8757 = vst [vmem:[#allocation90_spill] sm:$0xff] %v5801_v13  ;;  %v5825_v18 = vmax.f32 %v8704_v36, %v1215_v23  ;;  %v1219_v36 = vrot.slane %v8719_v53, 4 }
 0x1bb   :  { %v1835_v45 = vmax.f32 %v1707_v62, %v1770_v7  ;;  %v5789_v14 = vmax.f32 %v4506_v38, %v1209_v48  ;;  %v5792_v54 = vmax.f32 %v4538_v39, %v1212_v40  ;;  %v1213_v38 = vrot.slane %v8696_v32, 4 }
 0x1bc   :  { %v5804_v50 = vmax.f32 %v8690_v9, %v1214_v61  ;;  %v1216_v39 = vrot.slane %v8698_v30, 4  ;;  %v1218_v9 = vrot.slane %v8706_v8, 4  ;;  %8761 = vst [vmem:[#allocation54_spill] sm:$0xff] %v5825_v18  ;;  %v1221_v49 = vrot.slane %v8727_v20, 4 }
 0x1bd   :  { %1929 = vrot.lane.b32.xlu0 %v1835_v45, %s3873_s5  ;;  %2033 = vrot.lane.b32.xlu1 %v5709_v21, %s3870_s22  ;;  %v5813_v51 = vmax.f32 %v8696_v32, %v1213_v38  ;;  %v1217_v32 = vrot.slane %v8711_v33, 4  ;;  %v5850_v1 = vmax.f32 %v8719_v53, %v1219_v36  ;;  %v1223_v53 = vrot.slane %v8735_v56, 4 }
 0x1be   :  { %8758 = vst [vmem:[#allocation91_spill] sm:$0xff] %v5804_v50  ;;  %v5816_v4 = vmax.f32 %v8698_v30, %v1216_v39  ;;  %v5828_v6 = vmax.f32 %v8706_v8, %v1218_v9  ;;  %v1220_v30 = vrot.slane %v8713_v63, 4  ;;  %v1222_v8 = vrot.slane %v8721_v27, 4 }
 0x1bf   :  { %8759 = vst [vmem:[#allocation71_spill] sm:$0xff] %v5813_v51  ;;  %v5837_v17 = vmax.f32 %v8711_v33, %v1217_v32  ;;  %8765 = vst [vmem:[#allocation92_spill] sm:$0xff] %v5850_v1  ;;  %v5857_v62 = vmax.f32 %v8727_v20, %v1221_v49  ;;  %v5877_v20 = vmax.f32 %v8735_v56, %v1223_v53  ;;  %v1228_v7 = vrot.slane %v8745_v25, 4 }
 0x1c0   :  { %8760 = vst [vmem:[#allocation72_spill] sm:$0xff] %v5816_v4  ;;  %8762 = vst [vmem:[#allocation22_spill] sm:$0xff] %v5828_v6  ;;  %v5840_v31 = vmax.f32 %v8713_v63, %v1220_v30  ;;  %v5853_v33 = vmax.f32 %v8721_v27, %v1222_v8  ;;  %v1224_v63 = vrot.slane %v8729_v16, 4  ;;  %v1226_v27 = vrot.slane %v8737_v46, 4 }
 0x1c1   :  { %2031 = vrot.lane.b32.xlu0 %v5717_v22, %s3870_s22  ;;  %2037 = vrot.lane.b32.xlu1 %v5720_v34, %s3870_s22  ;;  %8763 = vst [vmem:[#allocation55_spill] sm:$0xff] %v5837_v17  ;;  %8767 = vst [vmem:[#allocation73_spill] sm:$0xff] %v5857_v62  ;;  %v5897_v56 = vmax.f32 %v8743_v55, %v1225_v24  ;;  %v1227_v29 = vrot.slane %v8751_v0, 4 }
 0x1c2   :  { %8764 = vst [vmem:[#allocation24_spill] sm:$0xff] %v5840_v31  ;;  %8766 = vst [vmem:[#allocation93_spill] sm:$0xff] %v5853_v33  ;;  %v5864_v11 = vmax.f32 %v8729_v16, %v1224_v63  ;;  %v5880_v16 = vmax.f32 %v8737_v46, %v1226_v27  ;;  %v5900_v46 = vmax.f32 %v8745_v25, %v1228_v7 }
 0x1c3   :  { %8769 = vst [vmem:[#allocation56_spill] sm:$0xff] %v5877_v20  ;;  %8771 = vst [vmem:[#allocation57_spill] sm:$0xff] %v5897_v56  ;;  %v5916_v55 = vmax.f32 %v8751_v0, %v1227_v29 }
 0x1c4   :  { %8768 = vst [vmem:[#allocation74_spill] sm:$0xff] %v5864_v11  ;;  %8770 = vst [vmem:[#allocation26_spill] sm:$0xff] %v5880_v16 }
 0x1c5   :  { %2035 = vrot.lane.b32.xlu0 %v5729_v42, %s3870_s22  ;;  %2041 = vrot.lane.b32.xlu1 %v5732_v59, %s3870_s22  ;;  %8772 = vst [vmem:[#allocation28_spill] sm:$0xff] %v5900_v46  ;;  %8773 = vst [vmem:[#allocation94_spill] sm:$0xff] %v5916_v55 }
 0x1c9   :  { %2039 = vrot.lane.b32.xlu0 %v5741_v15, %s3870_s22  ;;  %2045 = vrot.lane.b32.xlu1 %v5744_v26, %s3870_s22 }
 0x1cd   :  { %2043 = vrot.lane.b32.xlu0 %v5753_v60, %s3870_s22  ;;  %2049 = vrot.lane.b32.xlu1 %v5756_v44, %s3870_s22 }
 0x1d1   :  { %2047 = vrot.lane.b32.xlu0 %v5765_v41, %s3870_s22  ;;  %2053 = vrot.lane.b32.xlu1 %v5768_v58, %s3870_s22 }
 0x1d5   :  { %2051 = vrot.lane.b32.xlu0 %v5777_v12, %s3870_s22  ;;  %2057 = vrot.lane.b32.xlu1 %v5780_v43, %s3870_s22 }
 0x1d9   :  { %2055 = vrot.lane.b32.xlu0 %v5789_v14, %s3870_s22  ;;  %2061 = vrot.lane.b32.xlu1 %v5792_v54, %s3870_s22 }
 0x1dd   :  { %2059 = vrot.lane.b32.xlu0 %v5801_v13, %s3870_s22  ;;  %2065 = vrot.lane.b32.xlu1 %v5804_v50, %s3870_s22 }
 0x1e1   :  { %2063 = vrot.lane.b32.xlu0 %v5813_v51, %s3870_s22  ;;  %2069 = vrot.lane.b32.xlu1 %v5816_v4, %s3870_s22 }
 0x1e5   :  { %2067 = vrot.lane.b32.xlu0 %v5825_v18, %s3870_s22  ;;  %2073 = vrot.lane.b32.xlu1 %v5828_v6, %s3870_s22 }
 0x1e9   :  { %2071 = vrot.lane.b32.xlu0 %v5837_v17, %s3870_s22  ;;  %2077 = vrot.lane.b32.xlu1 %v5840_v31, %s3870_s22 }
 0x1ed   :  { %2075 = vrot.lane.b32.xlu0 %v5850_v1, %s3870_s22  ;;  %2081 = vrot.lane.b32.xlu1 %v5853_v33, %s3870_s22 }
 0x1ef   :  { %v1872_v47 = vpop.permute.xlu1 %1871 }
 0x1f0   :  { %3736 = vst.msk [vmem:[%s8288_s1 + $0x3e] sm:$0x30] %vm1966_vm5, %v1872_v47 }
 0x1f1   :  { %2079 = vrot.lane.b32.xlu0 %v5857_v62, %s3870_s22  ;;  %2085 = vrot.lane.b32.xlu1 %v5864_v11, %s3870_s22 }
 0x1f3   :  { %v1870_v45 = vpop.permute.xlu0 %1869  ;;  %v1876_v19 = vpop.permute.xlu1 %1875 }
 0x1f4   :  { %3735 = vst.msk [vmem:[%s8288_s1 + $0x3c] sm:$0x30] %vm1966_vm5, %v1870_v45  ;;  %3738 = vst.msk [vmem:[%s8288_s1 + $0x42] sm:$0x30] %vm1966_vm5, %v1876_v19 }
 0x1f5   :  { %2083 = vrot.lane.b32.xlu0 %v5877_v20, %s3870_s22  ;;  %2089 = vrot.lane.b32.xlu1 %v5880_v16, %s3870_s22 }
 0x1f7   :  { %v1874_v2 = vpop.permute.xlu0 %1873  ;;  %v1880_v28 = vpop.permute.xlu1 %1879 }
 0x1f8   :  { %3737 = vst.msk [vmem:[%s8288_s1 + $0x40] sm:$0x30] %vm1966_vm5, %v1874_v2  ;;  %3740 = vst.msk [vmem:[%s8288_s1 + $0x46] sm:$0x30] %vm1966_vm5, %v1880_v28 }
 0x1f9   :  { %2087 = vrot.lane.b32.xlu0 %v5897_v56, %s3870_s22  ;;  %2093 = vrot.lane.b32.xlu1 %v5900_v46, %s3870_s22 }
 0x1fb   :  { %v1878_v25 = vpop.permute.xlu0 %1877  ;;  %v1884_v52 = vpop.permute.xlu1 %1883 }
 0x1fc   :  { %3739 = vst.msk [vmem:[%s8288_s1 + $0x44] sm:$0x30] %vm1966_vm5, %v1878_v25  ;;  %3742 = vst.msk [vmem:[%s8288_s1 + $0x4a] sm:$0x30] %vm1966_vm5, %v1884_v52 }
 0x1fd   :  { %2091 = vrot.lane.b32.xlu0 %v5916_v55, %s3870_s22  ;;  %2161 = vrot.lane.b32.xlu1 %v5709_v21, %s3871_s15 }
 0x1ff   :  { %v1882_v0 = vpop.permute.xlu0 %1881  ;;  %v1888_v37 = vpop.permute.xlu1 %1887 }
 0x200   :  { %3741 = vst.msk [vmem:[%s8288_s1 + $0x48] sm:$0x30] %vm1966_vm5, %v1882_v0  ;;  %3744 = vst.msk [vmem:[%s8288_s1 + $0x4e] sm:$0x30] %vm1966_vm5, %v1888_v37 }
 0x201   :  { %2159 = vrot.lane.b32.xlu0 %v5717_v22, %s3871_s15  ;;  %2165 = vrot.lane.b32.xlu1 %v5720_v34, %s3871_s15 }
 0x203   :  { %v1886_v57 = vpop.permute.xlu0 %1885  ;;  %v1892_v35 = vpop.permute.xlu1 %1891 }
 0x204   :  { %3743 = vst.msk [vmem:[%s8288_s1 + $0x4c] sm:$0x30] %vm1966_vm5, %v1886_v57  ;;  %3746 = vst.msk [vmem:[%s8288_s1 + $0x52] sm:$0x30] %vm1966_vm5, %v1892_v35 }
 0x205   :  { %2163 = vrot.lane.b32.xlu0 %v5729_v42, %s3871_s15  ;;  %2169 = vrot.lane.b32.xlu1 %v5732_v59, %s3871_s15 }
 0x207   :  { %v1890_v5 = vpop.permute.xlu0 %1889  ;;  %v1896_v10 = vpop.permute.xlu1 %1895 }
 0x208   :  { %3745 = vst.msk [vmem:[%s8288_s1 + $0x50] sm:$0x30] %vm1966_vm5, %v1890_v5  ;;  %3748 = vst.msk [vmem:[%s8288_s1 + $0x56] sm:$0x30] %vm1966_vm5, %v1896_v10 }
 0x209   :  { %2167 = vrot.lane.b32.xlu0 %v5741_v15, %s3871_s15  ;;  %2173 = vrot.lane.b32.xlu1 %v5744_v26, %s3871_s15 }
 0x20b   :  { %v1894_v48 = vpop.permute.xlu0 %1893  ;;  %v1900_v40 = vpop.permute.xlu1 %1899 }
 0x20c   :  { %3747 = vst.msk [vmem:[%s8288_s1 + $0x54] sm:$0x30] %vm1966_vm5, %v1894_v48  ;;  %3750 = vst.msk [vmem:[%s8288_s1 + $0x5a] sm:$0x30] %vm1966_vm5, %v1900_v40 }
 0x20d   :  { %2171 = vrot.lane.b32.xlu0 %v5753_v60, %s3871_s15  ;;  %2177 = vrot.lane.b32.xlu1 %v5756_v44, %s3871_s15 }
 0x20f   :  { %v1898_v3 = vpop.permute.xlu0 %1897  ;;  %v1904_v61 = vpop.permute.xlu1 %1903 }
 0x210   :  { %3749 = vst.msk [vmem:[%s8288_s1 + $0x58] sm:$0x30] %vm1966_vm5, %v1898_v3  ;;  %3752 = vst.msk [vmem:[%s8288_s1 + $0x5e] sm:$0x30] %vm1966_vm5, %v1904_v61 }
 0x211   :  { %2175 = vrot.lane.b32.xlu0 %v5765_v41, %s3871_s15  ;;  %2181 = vrot.lane.b32.xlu1 %v5768_v58, %s3871_s15 }
 0x213   :  { %v1902_v38 = vpop.permute.xlu0 %1901  ;;  %v1908_v39 = vpop.permute.xlu1 %1907 }
 0x214   :  { %3751 = vst.msk [vmem:[%s8288_s1 + $0x5c] sm:$0x30] %vm1966_vm5, %v1902_v38  ;;  %3754 = vst.msk [vmem:[%s8288_s1 + $0x62] sm:$0x30] %vm1966_vm5, %v1908_v39 }
 0x215   :  { %2179 = vrot.lane.b32.xlu0 %v5777_v12, %s3871_s15  ;;  %2185 = vrot.lane.b32.xlu1 %v5780_v43, %s3871_s15 }
 0x217   :  { %v1906_v23 = vpop.permute.xlu0 %1905  ;;  %v1912_v9 = vpop.permute.xlu1 %1911 }
 0x218   :  { %3753 = vst.msk [vmem:[%s8288_s1 + $0x60] sm:$0x30] %vm1966_vm5, %v1906_v23  ;;  %3756 = vst.msk [vmem:[%s8288_s1 + $0x66] sm:$0x30] %vm1966_vm5, %v1912_v9 }
 0x219   :  { %2183 = vrot.lane.b32.xlu0 %v5789_v14, %s3871_s15  ;;  %2189 = vrot.lane.b32.xlu1 %v5792_v54, %s3871_s15 }
 0x21b   :  { %v1910_v32 = vpop.permute.xlu0 %1909  ;;  %v1916_v30 = vpop.permute.xlu1 %1915 }
 0x21c   :  { %3755 = vst.msk [vmem:[%s8288_s1 + $0x64] sm:$0x30] %vm1966_vm5, %v1910_v32  ;;  %3758 = vst.msk [vmem:[%s8288_s1 + $0x6a] sm:$0x30] %vm1966_vm5, %v1916_v30 }
 0x21d   :  { %2187 = vrot.lane.b32.xlu0 %v5801_v13, %s3871_s15  ;;  %2193 = vrot.lane.b32.xlu1 %v5804_v50, %s3871_s15 }
 0x21f   :  { %v1914_v36 = vpop.permute.xlu0 %1913  ;;  %v1920_v8 = vpop.permute.xlu1 %1919 }
 0x220   :  { %3757 = vst.msk [vmem:[%s8288_s1 + $0x68] sm:$0x30] %vm1966_vm5, %v1914_v36  ;;  %3760 = vst.msk [vmem:[%s8288_s1 + $0x6e] sm:$0x30] %vm1966_vm5, %v1920_v8 }
 0x221   :  { %2191 = vrot.lane.b32.xlu0 %v5813_v51, %s3871_s15  ;;  %2197 = vrot.lane.b32.xlu1 %v5816_v4, %s3871_s15 }
 0x223   :  { %v1918_v49 = vpop.permute.xlu0 %1917  ;;  %v1924_v63 = vpop.permute.xlu1 %1923 }
 0x224   :  { %3759 = vst.msk [vmem:[%s8288_s1 + $0x6c] sm:$0x30] %vm1966_vm5, %v1918_v49  ;;  %3762 = vst.msk [vmem:[%s8288_s1 + $0x72] sm:$0x30] %vm1966_vm5, %v1924_v63 }
 0x225   :  { %2195 = vrot.lane.b32.xlu0 %v5825_v18, %s3871_s15  ;;  %2201 = vrot.lane.b32.xlu1 %v5828_v6, %s3871_s15 }
 0x227   :  { %v1922_v53 = vpop.permute.xlu0 %1921  ;;  %v1928_v27 = vpop.permute.xlu1 %1927 }
 0x228   :  { %3761 = vst.msk [vmem:[%s8288_s1 + $0x70] sm:$0x30] %vm1966_vm5, %v1922_v53  ;;  %3764 = vst.msk [vmem:[%s8288_s1 + $0x76] sm:$0x30] %vm1966_vm5, %v1928_v27 }
 0x229   :  { %2199 = vrot.lane.b32.xlu0 %v5837_v17, %s3871_s15  ;;  %2205 = vrot.lane.b32.xlu1 %v5840_v31, %s3871_s15 }
 0x22b   :  { %v1926_v47 = vpop.permute.xlu0 %1925  ;;  %v1932_v24 = vpop.permute.xlu1 %1931 }
 0x22c   :  { %3763 = vst.msk [vmem:[%s8288_s1 + $0x74] sm:$0x30] %vm1966_vm5, %v1926_v47  ;;  %3766 = vst.msk [vmem:[%s8288_s1 + $0x7a] sm:$0x30] %vm1966_vm5, %v1932_v24 }
 0x22d   :  { %2203 = vrot.lane.b32.xlu0 %v5850_v1, %s3871_s15  ;;  %2209 = vrot.lane.b32.xlu1 %v5853_v33, %s3871_s15 }
 0x22f   :  { %v1930_v7 = vpop.permute.xlu0 %1929  ;;  %v6074_v45 = vpop.permute.xlu1 %2033 }
 0x230   :  { %3765 = vst.msk [vmem:[%s8288_s1 + $0x78] sm:$0x30] %vm1966_vm5, %v1930_v7 }
 0x231   :  { %2207 = vrot.lane.b32.xlu0 %v5857_v62, %s3871_s15  ;;  %2213 = vrot.lane.b32.xlu1 %v5864_v11, %s3871_s15 }
 0x233   :  { %v6084_v19 = vpop.permute.xlu0 %2031  ;;  %v6086_v29 = vpop.permute.xlu1 %2037 }
 0x235   :  { %2211 = vrot.lane.b32.xlu0 %v5877_v20, %s3871_s15  ;;  %2217 = vrot.lane.b32.xlu1 %v5880_v16, %s3871_s15 }
 0x237   :  { %v6092_v2 = vpop.permute.xlu0 %2035  ;;  %v6094_v28 = vpop.permute.xlu1 %2041 }
 0x239   :  { %2215 = vrot.lane.b32.xlu0 %v5897_v56, %s3871_s15  ;;  %2221 = vrot.lane.b32.xlu1 %v5900_v46, %s3871_s15 }
 0x23b   :  { %v6100_v25 = vpop.permute.xlu0 %2039  ;;  %v6102_v52 = vpop.permute.xlu1 %2045 }
 0x23d   :  { %2219 = vrot.lane.b32.xlu0 %v5916_v55, %s3871_s15  ;;  %2289 = vrot.lane.b32.xlu1 %v5709_v21, %s3872_s4 }
 0x23f   :  { %v6108_v0 = vpop.permute.xlu0 %2043  ;;  %v6110_v37 = vpop.permute.xlu1 %2049 }
 0x241   :  { %2287 = vrot.lane.b32.xlu0 %v5717_v22, %s3872_s4  ;;  %2293 = vrot.lane.b32.xlu1 %v5720_v34, %s3872_s4 }
 0x243   :  { %v6116_v57 = vpop.permute.xlu0 %2047  ;;  %v6118_v35 = vpop.permute.xlu1 %2053 }
 0x245   :  { %2291 = vrot.lane.b32.xlu0 %v5729_v42, %s3872_s4  ;;  %2297 = vrot.lane.b32.xlu1 %v5732_v59, %s3872_s4 }
 0x247   :  { %v6124_v5 = vpop.permute.xlu0 %2051  ;;  %v6126_v10 = vpop.permute.xlu1 %2057 }
 0x249   :  { %2295 = vrot.lane.b32.xlu0 %v5741_v15, %s3872_s4  ;;  %2301 = vrot.lane.b32.xlu1 %v5744_v26, %s3872_s4 }
 0x24b   :  { %v6132_v48 = vpop.permute.xlu0 %2055  ;;  %v6134_v40 = vpop.permute.xlu1 %2061 }
 0x24c   :  { %8774 = vst [vmem:[#allocation95_spill] sm:$0xff] %v6134_v40 }
 0x24d   :  { %2299 = vrot.lane.b32.xlu0 %v5753_v60, %s3872_s4  ;;  %2305 = vrot.lane.b32.xlu1 %v5756_v44, %s3872_s4 }
 0x24f   :  { %v6140_v3 = vpop.permute.xlu0 %2059  ;;  %v6142_v61 = vpop.permute.xlu1 %2065 }
 0x250   :  { %8775 = vst [vmem:[#allocation75_spill] sm:$0xff] %v6140_v3  ;;  %8776 = vst [vmem:[#allocation76_spill] sm:$0xff] %v6142_v61 }
 0x251   :  { %2303 = vrot.lane.b32.xlu0 %v5765_v41, %s3872_s4  ;;  %2309 = vrot.lane.b32.xlu1 %v5768_v58, %s3872_s4 }
 0x253   :  { %v6148_v38 = vpop.permute.xlu0 %2063  ;;  %v6150_v39 = vpop.permute.xlu1 %2069 }
 0x254   :  { %8777 = vst [vmem:[#allocation58_spill] sm:$0xff] %v6148_v38  ;;  %8778 = vst [vmem:[#allocation30_spill] sm:$0xff] %v6150_v39 }
 0x255   :  { %2307 = vrot.lane.b32.xlu0 %v5777_v12, %s3872_s4  ;;  %2313 = vrot.lane.b32.xlu1 %v5780_v43, %s3872_s4 }
 0x257   :  { %v6156_v23 = vpop.permute.xlu0 %2067  ;;  %v6158_v9 = vpop.permute.xlu1 %2073 }
 0x258   :  { %8779 = vst [vmem:[#allocation59_spill] sm:$0xff] %v6156_v23  ;;  %8780 = vst [vmem:[#allocation32_spill] sm:$0xff] %v6158_v9 }
 0x259   :  { %2311 = vrot.lane.b32.xlu0 %v5789_v14, %s3872_s4  ;;  %2317 = vrot.lane.b32.xlu1 %v5792_v54, %s3872_s4 }
 0x25b   :  { %v6164_v32 = vpop.permute.xlu0 %2071  ;;  %v6166_v30 = vpop.permute.xlu1 %2077 }
 0x25c   :  { %8781 = vst [vmem:[#allocation96_spill] sm:$0xff] %v6164_v32  ;;  %8782 = vst [vmem:[#allocation77_spill] sm:$0xff] %v6166_v30 }
 0x25d   :  { %2315 = vrot.lane.b32.xlu0 %v5801_v13, %s3872_s4  ;;  %2321 = vrot.lane.b32.xlu1 %v5804_v50, %s3872_s4 }
 0x25f   :  { %v6172_v36 = vpop.permute.xlu0 %2075  ;;  %v6174_v8 = vpop.permute.xlu1 %2081 }
 0x260   :  { %8783 = vst [vmem:[#allocation78_spill] sm:$0xff] %v6172_v36  ;;  %8784 = vst [vmem:[#allocation60_spill] sm:$0xff] %v6174_v8 }
 0x261   :  { %2319 = vrot.lane.b32.xlu0 %v5813_v51, %s3872_s4  ;;  %2325 = vrot.lane.b32.xlu1 %v5816_v4, %s3872_s4 }
 0x263   :  { %v6180_v49 = vpop.permute.xlu0 %2079  ;;  %v6182_v63 = vpop.permute.xlu1 %2085 }
 0x264   :  { %8785 = vst [vmem:[#allocation34_spill] sm:$0xff] %v6180_v49  ;;  %8786 = vst [vmem:[#allocation61_spill] sm:$0xff] %v6182_v63 }
 0x265   :  { %2323 = vrot.lane.b32.xlu0 %v5825_v18, %s3872_s4  ;;  %2329 = vrot.lane.b32.xlu1 %v5828_v6, %s3872_s4 }
 0x267   :  { %v6188_v53 = vpop.permute.xlu0 %2083  ;;  %v6190_v27 = vpop.permute.xlu1 %2089 }
 0x268   :  { %8787 = vst [vmem:[#allocation36_spill] sm:$0xff] %v6188_v53  ;;  %8788 = vst [vmem:[#allocation97_spill] sm:$0xff] %v6190_v27 }
 0x269   :  { %2327 = vrot.lane.b32.xlu0 %v5837_v17, %s3872_s4  ;;  %2333 = vrot.lane.b32.xlu1 %v5840_v31, %s3872_s4 }
 0x26b   :  { %v6196_v47 = vpop.permute.xlu0 %2087  ;;  %v6198_v24 = vpop.permute.xlu1 %2093 }
 0x26c   :  { %8789 = vst [vmem:[#allocation98_spill] sm:$0xff] %v6196_v47  ;;  %8790 = vst [vmem:[#allocation79_spill] sm:$0xff] %v6198_v24 }
 0x26d   :  { %2331 = vrot.lane.b32.xlu0 %v5850_v1, %s3872_s4  ;;  %2337 = vrot.lane.b32.xlu1 %v5853_v33, %s3872_s4 }
 0x26f   :  { %v6204_v7 = vpop.permute.xlu0 %2091  ;;  %v6206_v53 = vpop.permute.xlu1 %2161 }
 0x270   :  { %8791 = vst [vmem:[#allocation80_spill] sm:$0xff] %v6204_v7 }
 0x271   :  { %2335 = vrot.lane.b32.xlu0 %v5857_v62, %s3872_s4  ;;  %2341 = vrot.lane.b32.xlu1 %v5864_v11, %s3872_s4 }
 0x273   :  { %v6212_v27 = vpop.permute.xlu0 %2159  ;;  %v6214_v47 = vpop.permute.xlu1 %2165 }
 0x275   :  { %2339 = vrot.lane.b32.xlu0 %v5877_v20, %s3872_s4  ;;  %2345 = vrot.lane.b32.xlu1 %v5880_v16, %s3872_s4 }
 0x277   :  { %v6220_v24 = vpop.permute.xlu0 %2163  ;;  %v6222_v7 = vpop.permute.xlu1 %2169 }
 0x279   :  { %2343 = vrot.lane.b32.xlu0 %v5897_v56, %s3872_s4  ;;  %2349 = vrot.lane.b32.xlu1 %v5900_v46, %s3872_s4 }
 0x27b   :  { %v6228_v63 = vpop.permute.xlu0 %2167  ;;  %v6230_v49 = vpop.permute.xlu1 %2173 }
 0x27d   :  { %2347 = vrot.lane.b32.xlu0 %v5916_v55, %s3872_s4  ;;  %2417 = vrot.lane.b32.xlu1 %v5709_v21, %s3873_s5 }
 0x27f   :  { %v6236_v8 = vpop.permute.xlu0 %2171  ;;  %v6238_v36 = vpop.permute.xlu1 %2177 }
 0x281   :  { %2415 = vrot.lane.b32.xlu0 %v5717_v22, %s3873_s5  ;;  %2421 = vrot.lane.b32.xlu1 %v5720_v34, %s3873_s5 }
 0x283   :  { %v6244_v30 = vpop.permute.xlu0 %2175  ;;  %v6246_v32 = vpop.permute.xlu1 %2181 }
 0x285   :  { %2419 = vrot.lane.b32.xlu0 %v5729_v42, %s3873_s5  ;;  %2425 = vrot.lane.b32.xlu1 %v5732_v59, %s3873_s5 }
 0x287   :  { %v6252_v9 = vpop.permute.xlu0 %2179  ;;  %v6254_v23 = vpop.permute.xlu1 %2185 }
 0x289   :  { %2423 = vrot.lane.b32.xlu0 %v5741_v15, %s3873_s5  ;;  %2429 = vrot.lane.b32.xlu1 %v5744_v26, %s3873_s5 }
 0x28b   :  { %v6260_v39 = vpop.permute.xlu0 %2183  ;;  %v6262_v38 = vpop.permute.xlu1 %2189 }
 0x28c   :  { %8792 = vst [vmem:[#allocation62_spill] sm:$0xff] %v6260_v39  ;;  %8793 = vst [vmem:[#allocation38_spill] sm:$0xff] %v6262_v38 }
 0x28d   :  { %2427 = vrot.lane.b32.xlu0 %v5753_v60, %s3873_s5  ;;  %2433 = vrot.lane.b32.xlu1 %v5756_v44, %s3873_s5 }
 0x28f   :  { %v6268_v61 = vpop.permute.xlu0 %2187  ;;  %v6270_v3 = vpop.permute.xlu1 %2193 }
 0x290   :  { %8794 = vst [vmem:[#allocation63_spill] sm:$0xff] %v6268_v61  ;;  %8795 = vst [vmem:[#allocation40_spill] sm:$0xff] %v6270_v3 }
 0x291   :  { %2431 = vrot.lane.b32.xlu0 %v5765_v41, %s3873_s5  ;;  %2437 = vrot.lane.b32.xlu1 %v5768_v58, %s3873_s5 }
 0x293   :  { %v6276_v40 = vpop.permute.xlu0 %2191  ;;  %v6278_v39 = vpop.permute.xlu1 %2197 }
 0x294   :  { %8796 = vst [vmem:[#allocation99_spill] sm:$0xff] %v6276_v40  ;;  %8797 = vst [vmem:[#allocation100_spill] sm:$0xff] %v6278_v39 }
 0x295   :  { %2435 = vrot.lane.b32.xlu0 %v5777_v12, %s3873_s5  ;;  %2441 = vrot.lane.b32.xlu1 %v5780_v43, %s3873_s5 }
 0x297   :  { %v6284_v38 = vpop.permute.xlu0 %2195  ;;  %v6286_v61 = vpop.permute.xlu1 %2201 }
 0x298   :  { %8798 = vst [vmem:[#allocation81_spill] sm:$0xff] %v6284_v38  ;;  %8799 = vst [vmem:[#allocation82_spill] sm:$0xff] %v6286_v61 }
 0x299   :  { %2439 = vrot.lane.b32.xlu0 %v5789_v14, %s3873_s5  ;;  %2445 = vrot.lane.b32.xlu1 %v5792_v54, %s3873_s5 }
 0x29b   :  { %v6292_v3 = vpop.permute.xlu0 %2199  ;;  %v6294_v40 = vpop.permute.xlu1 %2205 }
 0x29c   :  { %8800 = vst [vmem:[#allocation64_spill] sm:$0xff] %v6292_v3  ;;  %8801 = vst [vmem:[#allocation42_spill] sm:$0xff] %v6294_v40 }
 0x29d   :  { %2443 = vrot.lane.b32.xlu0 %v5801_v13, %s3873_s5  ;;  %2449 = vrot.lane.b32.xlu1 %v5804_v50, %s3873_s5 }
 0x29f   :  { %v6300_v39 = vpop.permute.xlu0 %2203  ;;  %v6302_v38 = vpop.permute.xlu1 %2209 }
 0x2a0   :  { %8802 = vst [vmem:[#allocation65_spill] sm:$0xff] %v6300_v39  ;;  %8803 = vst [vmem:[#allocation44_spill] sm:$0xff] %v6302_v38 }
 0x2a1   :  { %2447 = vrot.lane.b32.xlu0 %v5813_v51, %s3873_s5  ;;  %2453 = vrot.lane.b32.xlu1 %v5816_v4, %s3873_s5 }
 0x2a3   :  { %v6308_v61 = vpop.permute.xlu0 %2207  ;;  %v6310_v3 = vpop.permute.xlu1 %2213 }
 0x2a4   :  { %8804 = vst [vmem:[#allocation101_spill] sm:$0xff] %v6308_v61  ;;  %8805 = vst [vmem:[#allocation102_spill] sm:$0xff] %v6310_v3 }
 0x2a5   :  { %2451 = vrot.lane.b32.xlu0 %v5825_v18, %s3873_s5  ;;  %2457 = vrot.lane.b32.xlu1 %v5828_v6, %s3873_s5 }
 0x2a7   :  { %v6316_v40 = vpop.permute.xlu0 %2211  ;;  %v6318_v39 = vpop.permute.xlu1 %2217 }
 0x2a8   :  { %8806 = vst [vmem:[#allocation83_spill] sm:$0xff] %v6316_v40  ;;  %8807 = vst [vmem:[#allocation84_spill] sm:$0xff] %v6318_v39 }
 0x2a9   :  { %2455 = vrot.lane.b32.xlu0 %v5837_v17, %s3873_s5  ;;  %2461 = vrot.lane.b32.xlu1 %v5840_v31, %s3873_s5 }
 0x2ab   :  { %v6324_v38 = vpop.permute.xlu0 %2215  ;;  %v6326_v61 = vpop.permute.xlu1 %2221 }
 0x2ac   :  { %8808 = vst [vmem:[#allocation66_spill] sm:$0xff] %v6324_v38  ;;  %8809 = vst [vmem:[#allocation46_spill] sm:$0xff] %v6326_v61 }
 0x2ad   :  { %2459 = vrot.lane.b32.xlu0 %v5850_v1, %s3873_s5  ;;  %2465 = vrot.lane.b32.xlu1 %v5853_v33, %s3873_s5 }
 0x2af   :  { %v6332_v3 = vpop.permute.xlu0 %2219  ;;  %v2290_v40 = vpop.permute.xlu1 %2289 }
 0x2b0   :  { %8810 = vst [vmem:[#allocation67_spill] sm:$0xff] %v6332_v3 }
 0x2b1   :  { %2463 = vrot.lane.b32.xlu0 %v5857_v62, %s3873_s5  ;;  %2469 = vrot.lane.b32.xlu1 %v5864_v11, %s3873_s5 }
 0x2b3   :  { %v2288_v39 = vpop.permute.xlu0 %2287  ;;  %v2294_v31 = vpop.permute.xlu1 %2293 }
 0x2b5   :  { %2467 = vrot.lane.b32.xlu0 %v5877_v20, %s3873_s5  ;;  %2473 = vrot.lane.b32.xlu1 %v5880_v16, %s3873_s5 }
 0x2b7   :  { %v6342_v61 = vpop.permute.xlu0 %2291  ;;  %v6344_v38 = vpop.permute.xlu1 %2297 }
 0x2b9   :  { %2471 = vrot.lane.b32.xlu0 %v5897_v56, %s3873_s5  ;;  %2477 = vrot.lane.b32.xlu1 %v5900_v46, %s3873_s5 }
 0x2bb   :  { %v6350_v3 = vpop.permute.xlu0 %2295  ;;  %v6352_v11 = vpop.permute.xlu1 %2301 }
 0x2bd   :  { %2475 = vrot.lane.b32.xlu0 %v5916_v55, %s3873_s5 }
 0x2bf   :  { %v6356_v20 = vpop.permute.xlu0 %2299  ;;  %v6358_v16 = vpop.permute.xlu1 %2305 }
 0x2c3   :  { %v6360_v62 = vpop.permute.xlu0 %2303  ;;  %v6362_v33 = vpop.permute.xlu1 %2309 }
 0x2c7   :  { %v6364_v1 = vpop.permute.xlu0 %2307  ;;  %v6366_v56 = vpop.permute.xlu1 %2313 }
 0x2c8   :  { %8811 = vst [vmem:[#allocation48_spill] sm:$0xff] %v6364_v1  ;;  %8812 = vst [vmem:[#allocation103_spill] sm:$0xff] %v6366_v56 }
 0x2cb   :  { %v6368_v46 = vpop.permute.xlu0 %2311  ;;  %v6370_v17 = vpop.permute.xlu1 %2317 }
 0x2cc   :  { %8813 = vst [vmem:[#allocation104_spill] sm:$0xff] %v6368_v46  ;;  %8814 = vst [vmem:[#allocation85_spill] sm:$0xff] %v6370_v17 }
 0x2cf   :  { %v6372_v6 = vpop.permute.xlu0 %2315  ;;  %v6374_v18 = vpop.permute.xlu1 %2321 }
 0x2d0   :  { %8815 = vst [vmem:[#allocation86_spill] sm:$0xff] %v6372_v6  ;;  %8816 = vst [vmem:[#allocation68_spill] sm:$0xff] %v6374_v18 }
 0x2d3   :  { %v6376_v55 = vpop.permute.xlu0 %2319  ;;  %v6378_v4 = vpop.permute.xlu1 %2325 }
 0x2d4   :  { %8817 = vst [vmem:[#allocation50_spill] sm:$0xff] %v6376_v55 }
 0x2d7   :  { %v6380_v51 = vpop.permute.xlu0 %2323  ;;  %v6382_v50 = vpop.permute.xlu1 %2329 }
 0x2d8   :  { %8818 = vst [vmem:[#allocation69_spill] sm:$0xff] %v6380_v51  ;;  %8819 = vst [vmem:[#allocation51_spill] sm:$0xff] %v6382_v50  ;;  %v2128_v51 = vmax.f32 %v5709_v21, %v6074_v45 }
 0x2db   :  { %v6384_v13 = vpop.permute.xlu0 %2327  ;;  %v6386_v1 = vpop.permute.xlu1 %2333 }
 0x2dc   :  { %8820 = vst [vmem:[#allocation105_spill] sm:$0xff] %v6384_v13  ;;  %8821 = vst [vmem:[#allocation106_spill] sm:$0xff] %v6386_v1  ;;  %v2256_v1 = vmax.f32 %v2128_v51, %v6206_v53  ;;  %v2132_v51 = vmax.f32 %v5732_v59, %v6094_v28 }
 0x2df   :  { %v6388_v56 = vpop.permute.xlu0 %2331  ;;  %v6390_v46 = vpop.permute.xlu1 %2337 }
 0x2e0   :  { %8822 = vst [vmem:[#allocation87_spill] sm:$0xff] %v6388_v56  ;;  %8823 = vst [vmem:[#allocation88_spill] sm:$0xff] %v6390_v46  ;;  %v2127_v46 = vmax.f32 %v5717_v22, %v6084_v19 }
 0x2e3   :  { %v6392_v17 = vpop.permute.xlu0 %2335  ;;  %v6394_v6 = vpop.permute.xlu1 %2341 }
 0x2e4   :  { %8824 = vst [vmem:[#allocation70_spill] sm:$0xff] %v6392_v17  ;;  %8825 = vst [vmem:[#allocation52_spill] sm:$0xff] %v6394_v6  ;;  %v2130_v17 = vmax.f32 %v5720_v34, %v6086_v29  ;;  %v2384_v6 = vmax.f32 %v2256_v1, %v2290_v40 }
 0x2e6   :  { %v2258_v45 = vmax.f32 %v2130_v17, %v6214_v47 }
 0x2e7   :  { %v6396_v18 = vpop.permute.xlu0 %2339  ;;  %v6398_v55 = vpop.permute.xlu1 %2345 }
 0x2e8   :  { %8826 = vst [vmem:[#allocation107_spill] sm:$0xff] %v6396_v18  ;;  %8827 = vst [vmem:[#allocation9_spill] sm:$0xff] %v6398_v55  ;;  %v2255_v55 = vmax.f32 %v2127_v46, %v6212_v27  ;;  %v2386_v53 = vmax.f32 %v2258_v45, %v2294_v31  ;;  %v2260_v46 = vmax.f32 %v2132_v51, %v6222_v7 }
 0x2ea   :  { %v2383_v19 = vmax.f32 %v2255_v55, %v2288_v39  ;;  %v2134_v55 = vmax.f32 %v5744_v26, %v6102_v52  ;;  %v2133_v52 = vmax.f32 %v5753_v60, %v6108_v0 }
 0x2eb   :  { %v6402_v50 = vpop.permute.xlu0 %2343  ;;  %v6404_v13 = vpop.permute.xlu1 %2349 }
 0x2ec   :  { %8828 = vst [vmem:[#allocation89_spill] sm:$0xff] %v6404_v13  ;;  %v2129_v13 = vmax.f32 %v5729_v42, %v6092_v2  ;;  %v2388_v2 = vmax.f32 %v2260_v46, %v6344_v38  ;;  %v2262_v27 = vmax.f32 %v2134_v55, %v6230_v49  ;;  %v2261_v7 = vmax.f32 %v2133_v52, %v6236_v8  ;;  %v8833_v52 = vld [vmem:[#allocation38_spill] sm:$0xff] }
 0x2ee   :  { %v2257_v40 = vmax.f32 %v2129_v13, %v6220_v24  ;;  %v2390_v24 = vmax.f32 %v2262_v27, %v6352_v11  ;;  %v2138_v11 = vmax.f32 %v5768_v58, %v6118_v35 }
 0x2ef   :  { %v6411_v56 = vpop.permute.xlu0 %2347  ;;  %v2418_v18 = vpop.permute.xlu1 %2417 }
 0x2f0   :  { %v6415_v21 = vmax.f32 %v2384_v6, %v2418_v18  ;;  %v2131_v6 = vmax.f32 %v5741_v15, %v6100_v25  ;;  %v2385_v31 = vmax.f32 %v2257_v40, %v6342_v61  ;;  %v2136_v61 = vmax.f32 %v5756_v44, %v6110_v37 }
 0x2f1   :  { %v2135_v37 = vmax.f32 %v5765_v41, %v6116_v57 }
 0x2f2   :  { %2577 = vrot.lane.b32.xlu1 %v6415_v21, %s3873_s5  ;;  %v2259_v39 = vmax.f32 %v2131_v6, %v6228_v63  ;;  %v2264_v45 = vmax.f32 %v2136_v61, %v6238_v36 }
 0x2f3   :  { %v2416_v1 = vpop.permute.xlu0 %2415  ;;  %v2422_v29 = vpop.permute.xlu1 %2421 }
 0x2f4   :  { %v6425_v17 = vmax.f32 %v2383_v19, %v2416_v1  ;;  %v6427_v18 = vmax.f32 %v2386_v53, %v2422_v29  ;;  %v2387_v38 = vmax.f32 %v2259_v39, %v6350_v3  ;;  %v2389_v3 = vmax.f32 %v2261_v7, %v6356_v20  ;;  %v8832_v39 = vld [vmem:[#allocation62_spill] sm:$0xff]  ;;  %v8836_v7 = vld [vmem:[#allocation76_spill] sm:$0xff] }
 0x2f5   :  { %v2392_v19 = vmax.f32 %v2264_v45, %v6358_v16  ;;  %v2263_v53 = vmax.f32 %v2135_v37, %v6244_v30  ;;  %v2266_v1 = vmax.f32 %v2138_v11, %v6246_v32  ;;  %v2137_v20 = vmax.f32 %v5777_v12, %v6124_v5  ;;  %v8837_v45 = vld [vmem:[#allocation91_spill] sm:$0xff]  ;;  %v8838_v11 = vld [vmem:[#allocation104_spill] sm:$0xff] }
 0x2f6   :  { %2575 = vrot.lane.b32.xlu0 %v6425_v17, %s3873_s5  ;;  %2581 = vrot.lane.b32.xlu1 %v6427_v18, %s3873_s5  ;;  %v2140_v16 = vmax.f32 %v5780_v43, %v6126_v10  ;;  %v2144_v37 = vmax.f32 %v8837_v45, %v8836_v7  ;;  %v8850_v7 = vld [vmem:[#allocation59_spill] sm:$0xff] }
 0x2f7   :  { %v2420_v13 = vpop.permute.xlu0 %2419  ;;  %v2426_v28 = vpop.permute.xlu1 %2425  ;;  %v2391_v35 = vmax.f32 %v2263_v53, %v6360_v62  ;;  %v2394_v40 = vmax.f32 %v2266_v1, %v6362_v33  ;;  %v2265_v46 = vmax.f32 %v2137_v20, %v6252_v9  ;;  %v2139_v62 = vmax.f32 %v5789_v14, %v6132_v48  ;;  %v8829_v33 = vld [vmem:[#allocation95_spill] sm:$0xff] }
 0x2f8   :  { %v6441_v25 = vmax.f32 %v2385_v31, %v2420_v13  ;;  %v6443_v47 = vmax.f32 %v2388_v2, %v2426_v28  ;;  %v2268_v6 = vmax.f32 %v2140_v16, %v6254_v23  ;;  %v2142_v10 = vmax.f32 %v5792_v54, %v8829_v33  ;;  %v8830_v31 = vld [vmem:[#allocation48_spill] sm:$0xff]  ;;  %v8831_v13 = vld [vmem:[#allocation103_spill] sm:$0xff] }
 0x2f9   :  { %v2393_v2 = vmax.f32 %v2265_v46, %v8830_v31  ;;  %v2267_v27 = vmax.f32 %v2139_v62, %v8832_v39  ;;  %v8840_v1 = vld [vmem:[#allocation63_spill] sm:$0xff]  ;;  %v8841_v16 = vld [vmem:[#allocation40_spill] sm:$0xff]  ;;  %v8844_v62 = vld [vmem:[#allocation30_spill] sm:$0xff] }
 0x2fa   :  { %2579 = vrot.lane.b32.xlu0 %v6441_v25, %s3873_s5  ;;  %2585 = vrot.lane.b32.xlu1 %v6443_v47, %s3873_s5  ;;  %v2396_v28 = vmax.f32 %v2268_v6, %v8831_v13  ;;  %v2270_v61 = vmax.f32 %v2142_v10, %v8833_v52  ;;  %v8843_v46 = vld [vmem:[#allocation71_spill] sm:$0xff]  ;;  %v8845_v33 = vld [vmem:[#allocation72_spill] sm:$0xff]  ;;  %v8846_v31 = vld [vmem:[#allocation86_spill] sm:$0xff] }
 0x2fb   :  { %v2424_v49 = vpop.permute.xlu0 %2423  ;;  %v2430_v63 = vpop.permute.xlu1 %2429  ;;  %v2146_v10 = vmax.f32 %v8845_v33, %v8844_v62  ;;  %v8847_v13 = vld [vmem:[#allocation68_spill] sm:$0xff]  ;;  %v8848_v39 = vld [vmem:[#allocation99_spill] sm:$0xff] }
 0x2fc   :  { %v6457_v0 = vmax.f32 %v2387_v38, %v2424_v49  ;;  %v6459_v51 = vmax.f32 %v2390_v24, %v2430_v63  ;;  %v8834_v24 = vld [vmem:[#allocation75_spill] sm:$0xff]  ;;  %v8835_v49 = vld [vmem:[#allocation90_spill] sm:$0xff]  ;;  %v8849_v52 = vld [vmem:[#allocation100_spill] sm:$0xff] }
 0x2fd   :  { %v2141_v63 = vmax.f32 %v8835_v49, %v8834_v24 }
 0x2fe   :  { %2583 = vrot.lane.b32.xlu0 %v6457_v0, %s3873_s5  ;;  %2589 = vrot.lane.b32.xlu1 %v6459_v51, %s3873_s5 }
 0x2ff   :  { %v2428_v36 = vpop.permute.xlu0 %2427  ;;  %v2434_v8 = vpop.permute.xlu1 %2433  ;;  %v2269_v20 = vmax.f32 %v2141_v63, %v8840_v1 }
 0x300   :  { %v6473_v57 = vmax.f32 %v2389_v3, %v2428_v36  ;;  %v6475_v29 = vmax.f32 %v2392_v19, %v2434_v8  ;;  %v2395_v3 = vmax.f32 %v2267_v27, %v8838_v11  ;;  %v8839_v19 = vld [vmem:[#allocation85_spill] sm:$0xff] }
 0x301   :  { %v2398_v36 = vmax.f32 %v2270_v61, %v8839_v19  ;;  %v2274_v61 = vmax.f32 %v2146_v10, %v8849_v52  ;;  %v8853_v19 = vld [vmem:[#allocation22_spill] sm:$0xff]  ;;  %v8862_v52 = vld [vmem:[#allocation51_spill] sm:$0xff] }
 0x302   :  { %2587 = vrot.lane.b32.xlu0 %v6473_v57, %s3873_s5  ;;  %2593 = vrot.lane.b32.xlu1 %v6475_v29, %s3873_s5 }
 0x303   :  { %v2432_v32 = vpop.permute.xlu0 %2431  ;;  %v2438_v30 = vpop.permute.xlu1 %2437  ;;  %v2402_v1 = vmax.f32 %v2274_v61, %v6378_v4  ;;  %v8859_v4 = vld [vmem:[#allocation77_spill] sm:$0xff] }
 0x304   :  { %v6489_v5 = vmax.f32 %v2391_v35, %v2432_v32  ;;  %v6491_v55 = vmax.f32 %v2394_v40, %v2438_v30  ;;  %v2272_v35 = vmax.f32 %v2144_v37, %v8841_v16  ;;  %v8842_v30 = vld [vmem:[#allocation58_spill] sm:$0xff] }
 0x305   :  { %v2143_v6 = vmax.f32 %v8843_v46, %v8842_v30  ;;  %v8851_v37 = vld [vmem:[#allocation54_spill] sm:$0xff]  ;;  %v8894_v46 = vld [vmem:[#allocation9_spill] sm:$0xff] }
 0x306   :  { %2591 = vrot.lane.b32.xlu0 %v6489_v5, %s3873_s5  ;;  %2597 = vrot.lane.b32.xlu1 %v6491_v55, %s3873_s5  ;;  %v2145_v11 = vmax.f32 %v8851_v37, %v8850_v7  ;;  %v8886_v37 = vld [vmem:[#allocation52_spill] sm:$0xff] }
 0x307   :  { %v2436_v23 = vpop.permute.xlu0 %2435  ;;  %v2442_v9 = vpop.permute.xlu1 %2441  ;;  %v2271_v27 = vmax.f32 %v2143_v6, %v8848_v39  ;;  %v8856_v6 = vld [vmem:[#allocation82_spill] sm:$0xff]  ;;  %v8861_v39 = vld [vmem:[#allocation69_spill] sm:$0xff] }
 0x308   :  { %v6505_v48 = vmax.f32 %v2393_v2, %v2436_v23  ;;  %v6507_v38 = vmax.f32 %v2396_v28, %v2442_v9  ;;  %v2397_v2 = vmax.f32 %v2269_v20, %v8846_v31  ;;  %v2400_v28 = vmax.f32 %v2272_v35, %v8847_v13  ;;  %v8855_v35 = vld [vmem:[#allocation81_spill] sm:$0xff]  ;;  %v8858_v13 = vld [vmem:[#allocation55_spill] sm:$0xff] }
 0x309   :  { %v2273_v30 = vmax.f32 %v2145_v11, %v8855_v35  ;;  %v8866_v35 = vld [vmem:[#allocation92_spill] sm:$0xff] }
 0x30a   :  { %2595 = vrot.lane.b32.xlu0 %v6505_v48, %s3873_s5  ;;  %2601 = vrot.lane.b32.xlu1 %v6507_v38, %s3873_s5 }
 0x30b   :  { %v2440_v8 = vpop.permute.xlu0 %2439  ;;  %v2446_v53 = vpop.permute.xlu1 %2445 }
 0x30c   :  { %v6521_v40 = vmax.f32 %v2395_v3, %v2440_v8  ;;  %v6523_v32 = vmax.f32 %v2398_v36, %v2446_v53  ;;  %v8852_v3 = vld [vmem:[#allocation32_spill] sm:$0xff]  ;;  %v8854_v8 = vld [vmem:[#allocation50_spill] sm:$0xff] }
 0x30d   :  { %v2148_v36 = vmax.f32 %v8853_v19, %v8852_v3  ;;  %v2399_v53 = vmax.f32 %v2271_v27, %v8854_v8  ;;  %v2401_v27 = vmax.f32 %v2273_v30, %v8861_v39  ;;  %v8863_v3 = vld [vmem:[#allocation64_spill] sm:$0xff]  ;;  %v8864_v8 = vld [vmem:[#allocation42_spill] sm:$0xff] }
 0x30e   :  { %2599 = vrot.lane.b32.xlu0 %v6521_v40, %s3873_s5  ;;  %2605 = vrot.lane.b32.xlu1 %v6523_v32, %s3873_s5 }
 0x30f   :  { %v2444_v23 = vpop.permute.xlu0 %2443  ;;  %v2450_v9 = vpop.permute.xlu1 %2449  ;;  %v2276_v62 = vmax.f32 %v2148_v36, %v8856_v6  ;;  %v8867_v6 = vld [vmem:[#allocation60_spill] sm:$0xff] }
 0x310   :  { %v6537_v24 = vmax.f32 %v2397_v2, %v2444_v23  ;;  %v6539_v63 = vmax.f32 %v2400_v28, %v2450_v9  ;;  %v8857_v2 = vld [vmem:[#allocation96_spill] sm:$0xff] }
 0x311   :  { %v2147_v28 = vmax.f32 %v8858_v13, %v8857_v2  ;;  %v8860_v23 = vld [vmem:[#allocation24_spill] sm:$0xff]  ;;  %v2404_v61 = vmax.f32 %v2276_v62, %v8862_v52  ;;  %v8868_v62 = vld [vmem:[#allocation93_spill] sm:$0xff]  ;;  %v8870_v52 = vld [vmem:[#allocation106_spill] sm:$0xff] }
 0x312   :  { %2603 = vrot.lane.b32.xlu0 %v6537_v24, %s3873_s5  ;;  %2609 = vrot.lane.b32.xlu1 %v6539_v63, %s3873_s5  ;;  %v2150_v9 = vmax.f32 %v8860_v23, %v8859_v4  ;;  %v2152_v2 = vmax.f32 %v8868_v62, %v8867_v6  ;;  %v8869_v4 = vld [vmem:[#allocation105_spill] sm:$0xff]  ;;  %v8877_v62 = vld [vmem:[#allocation87_spill] sm:$0xff]  ;;  %v8878_v13 = vld [vmem:[#allocation88_spill] sm:$0xff] }
 0x313   :  { %v2448_v20 = vpop.permute.xlu0 %2447  ;;  %v2454_v16 = vpop.permute.xlu1 %2453  ;;  %v2275_v36 = vmax.f32 %v2147_v28, %v8863_v3 }
 0x314   :  { %v6553_v10 = vmax.f32 %v2399_v53, %v2448_v20  ;;  %v6555_v31 = vmax.f32 %v2402_v1, %v2454_v16  ;;  %v2278_v53 = vmax.f32 %v2150_v9, %v8864_v8  ;;  %v8865_v16 = vld [vmem:[#allocation78_spill] sm:$0xff] }
 0x315   :  { %v2149_v30 = vmax.f32 %v8866_v35, %v8865_v16  ;;  %v2403_v39 = vmax.f32 %v2275_v36, %v8869_v4  ;;  %v8873_v16 = vld [vmem:[#allocation34_spill] sm:$0xff]  ;;  %v8874_v36 = vld [vmem:[#allocation73_spill] sm:$0xff] }
 0x316   :  { %2607 = vrot.lane.b32.xlu0 %v6553_v10, %s3873_s5  ;;  %2613 = vrot.lane.b32.xlu1 %v6555_v31, %s3873_s5  ;;  %v2406_v23 = vmax.f32 %v2278_v53, %v8870_v52  ;;  %v2151_v6 = vmax.f32 %v8874_v36, %v8873_v16  ;;  %v8875_v53 = vld [vmem:[#allocation61_spill] sm:$0xff]  ;;  %v8876_v4 = vld [vmem:[#allocation74_spill] sm:$0xff]  ;;  %v8881_v16 = vld [vmem:[#allocation36_spill] sm:$0xff] }
 0x317   :  { %v2452_v7 = vpop.permute.xlu0 %2451  ;;  %v2458_v11 = vpop.permute.xlu1 %2457  ;;  %v2154_v52 = vmax.f32 %v8876_v4, %v8875_v53  ;;  %v8885_v4 = vld [vmem:[#allocation70_spill] sm:$0xff] }
 0x318   :  { %v6569_v1 = vmax.f32 %v2401_v27, %v2452_v7  ;;  %v6571_v20 = vmax.f32 %v2404_v61, %v2458_v11  ;;  %v8871_v27 = vld [vmem:[#allocation65_spill] sm:$0xff]  ;;  %v8872_v7 = vld [vmem:[#allocation44_spill] sm:$0xff] }
 0x319   :  { %v2277_v61 = vmax.f32 %v2149_v30, %v8871_v27  ;;  %v2280_v11 = vmax.f32 %v2152_v2, %v8872_v7 }
 0x31a   :  { %2611 = vrot.lane.b32.xlu0 %v6569_v1, %s3873_s5  ;;  %2617 = vrot.lane.b32.xlu1 %v6571_v20, %s3873_s5 }
 0x31b   :  { %v2456_v28 = vpop.permute.xlu0 %2455  ;;  %v2462_v9 = vpop.permute.xlu1 %2461  ;;  %v2405_v35 = vmax.f32 %v2277_v61, %v8877_v62  ;;  %v2408_v19 = vmax.f32 %v2280_v11, %v8878_v13  ;;  %v8882_v62 = vld [vmem:[#allocation56_spill] sm:$0xff]  ;;  %v8883_v13 = vld [vmem:[#allocation97_spill] sm:$0xff]  ;;  %v8884_v11 = vld [vmem:[#allocation26_spill] sm:$0xff] }
 0x31c   :  { %v6585_v3 = vmax.f32 %v2403_v39, %v2456_v28  ;;  %v6587_v8 = vmax.f32 %v2406_v23, %v2462_v9  ;;  %v8879_v23 = vld [vmem:[#allocation101_spill] sm:$0xff]  ;;  %v8880_v28 = vld [vmem:[#allocation102_spill] sm:$0xff]  ;;  %v2153_v61 = vmax.f32 %v8882_v62, %v8881_v16  ;;  %v2156_v53 = vmax.f32 %v8884_v11, %v8883_v13  ;;  %v8893_v11 = vld [vmem:[#allocation107_spill] sm:$0xff] }
 0x31d   :  { %v2279_v39 = vmax.f32 %v2151_v6, %v8879_v23  ;;  %v2282_v9 = vmax.f32 %v2154_v52, %v8880_v28  ;;  %v8889_v16 = vld [vmem:[#allocation98_spill] sm:$0xff] }
 0x31e   :  { %2615 = vrot.lane.b32.xlu0 %v6585_v3, %s3873_s5  ;;  %2621 = vrot.lane.b32.xlu1 %v6587_v8, %s3873_s5 }
 0x31f   :  { %v2460_v30 = vpop.permute.xlu0 %2459  ;;  %v2466_v2 = vpop.permute.xlu1 %2465  ;;  %v2407_v36 = vmax.f32 %v2279_v39, %v8885_v4  ;;  %v2410_v33 = vmax.f32 %v2282_v9, %v8886_v37  ;;  %v8890_v4 = vld [vmem:[#allocation57_spill] sm:$0xff]  ;;  %v8891_v37 = vld [vmem:[#allocation79_spill] sm:$0xff]  ;;  %v8892_v9 = vld [vmem:[#allocation28_spill] sm:$0xff] }
 0x320   :  { %v6601_v27 = vmax.f32 %v2405_v35, %v2460_v30  ;;  %v6603_v7 = vmax.f32 %v2408_v19, %v2466_v2  ;;  %v8887_v19 = vld [vmem:[#allocation83_spill] sm:$0xff]  ;;  %v8888_v30 = vld [vmem:[#allocation84_spill] sm:$0xff]  ;;  %v2155_v39 = vmax.f32 %v8890_v4, %v8889_v16  ;;  %v2158_v13 = vmax.f32 %v8892_v9, %v8891_v37 }
 0x321   :  { %v2281_v52 = vmax.f32 %v2153_v61, %v8887_v19  ;;  %v2284_v2 = vmax.f32 %v2156_v53, %v8888_v30  ;;  %v8897_v16 = vld [vmem:[#allocation80_spill] sm:$0xff] }
 0x322   :  { %2619 = vrot.lane.b32.xlu0 %v6601_v27, %s3873_s5  ;;  %2625 = vrot.lane.b32.xlu1 %v6603_v7, %s3873_s5 }
 0x323   :  { %v2464_v35 = vpop.permute.xlu0 %2463  ;;  %v2470_v6 = vpop.permute.xlu1 %2469  ;;  %v2409_v62 = vmax.f32 %v2281_v52, %v8893_v11  ;;  %v2412_v45 = vmax.f32 %v2284_v2, %v8894_v46  ;;  %v8898_v11 = vld [vmem:[#allocation94_spill] sm:$0xff]  ;;  %v8899_v2 = vld [vmem:[#allocation89_spill] sm:$0xff] }
 0x324   :  { %v6617_v23 = vmax.f32 %v2407_v36, %v2464_v35  ;;  %v6619_v28 = vmax.f32 %v2410_v33, %v2470_v6  ;;  %v8895_v33 = vld [vmem:[#allocation66_spill] sm:$0xff]  ;;  %v2157_v52 = vmax.f32 %v8898_v11, %v8897_v16 }
 0x325   :  { %v2283_v53 = vmax.f32 %v2155_v39, %v8895_v33  ;;  %v8896_v35 = vld [vmem:[#allocation46_spill] sm:$0xff] }
 0x326   :  { %2623 = vrot.lane.b32.xlu0 %v6617_v23, %s3873_s5  ;;  %2629 = vrot.lane.b32.xlu1 %v6619_v28, %s3873_s5  ;;  %v2286_v6 = vmax.f32 %v2158_v13, %v8896_v35  ;;  %v8900_v13 = vld [vmem:[#allocation67_spill] sm:$0xff] }
 0x327   :  { %v2468_v36 = vpop.permute.xlu0 %2467  ;;  %v2474_v61 = vpop.permute.xlu1 %2473  ;;  %v2411_v46 = vmax.f32 %v2283_v53, %v6402_v50 }
 0x328   :  { %v6633_v19 = vmax.f32 %v2409_v62, %v2468_v36  ;;  %v6635_v30 = vmax.f32 %v2412_v45, %v2474_v61  ;;  %v2414_v37 = vmax.f32 %v2286_v6, %v8899_v2  ;;  %v2285_v62 = vmax.f32 %v2157_v52, %v8900_v13 }
 0x32a   :  { %2627 = vrot.lane.b32.xlu0 %v6633_v19, %s3873_s5  ;;  %2633 = vrot.lane.b32.xlu1 %v6635_v30, %s3873_s5  ;;  %v2413_v61 = vmax.f32 %v2285_v62, %v6411_v56 }
 0x32b   :  { %v2472_v39 = vpop.permute.xlu0 %2471  ;;  %v2478_v33 = vpop.permute.xlu1 %2477 }
 0x32c   :  { %v6646_v36 = vmax.f32 %v2411_v46, %v2472_v39  ;;  %v6648_v45 = vmax.f32 %v2414_v37, %v2478_v33 }
 0x32e   :  { %2631 = vrot.lane.b32.xlu0 %v6646_v36, %s3873_s5  ;;  %2637 = vrot.lane.b32.xlu1 %v6648_v45, %s3873_s5 }
 0x32f   :  { %v2476_v50 = vpop.permute.xlu0 %2475 }
 0x330   :  { %v6655_v53 = vmax.f32 %v2413_v61, %v2476_v50 }
 0x332   :  { %2635 = vrot.lane.b32.xlu0 %v6655_v53, %s3873_s5 }
 0x364   :  { %v2578_v35 = vpop.permute.xlu1 %2577 }
 0x365   :  { %v2672_v6 = vmax.f32 %v6415_v21, %v2578_v35 }
 0x367   :  { %2737 = vrot.lane.b32.xlu1 %v2672_v6, %s3871_s15 }
 0x368   :  { %v2576_v16 = vpop.permute.xlu0 %2575  ;;  %v2582_v52 = vpop.permute.xlu1 %2581 }
 0x369   :  { %v2671_v56 = vmax.f32 %v6425_v17, %v2576_v16  ;;  %v2674_v46 = vmax.f32 %v6427_v18, %v2582_v52 }
 0x36b   :  { %2735 = vrot.lane.b32.xlu0 %v2671_v56, %s3871_s15  ;;  %2741 = vrot.lane.b32.xlu1 %v2674_v46, %s3871_s15 }
 0x36c   :  { %v2580_v2 = vpop.permute.xlu0 %2579  ;;  %v2586_v37 = vpop.permute.xlu1 %2585 }
 0x36d   :  { %v2673_v39 = vmax.f32 %v6441_v25, %v2580_v2  ;;  %v2676_v33 = vmax.f32 %v6443_v47, %v2586_v37 }
 0x36f   :  { %2739 = vrot.lane.b32.xlu0 %v2673_v39, %s3871_s15  ;;  %2745 = vrot.lane.b32.xlu1 %v2676_v33, %s3871_s15 }
 0x370   :  { %v2584_v21 = vpop.permute.xlu0 %2583  ;;  %v2590_v13 = vpop.permute.xlu1 %2589 }
 0x371   :  { %v2675_v17 = vmax.f32 %v6457_v0, %v2584_v21  ;;  %v2678_v18 = vmax.f32 %v6459_v51, %v2590_v13 }
 0x373   :  { %2743 = vrot.lane.b32.xlu0 %v2675_v17, %s3871_s15  ;;  %2749 = vrot.lane.b32.xlu1 %v2678_v18, %s3871_s15  ;;  %v8901_v18 = vld [vmem:[#allocation5_spill] sm:$0xff] }
 0x374   :  { %v2588_v62 = vpop.permute.xlu0 %2587  ;;  %v2594_v61 = vpop.permute.xlu1 %2593 }
 0x375   :  { %v2677_v25 = vmax.f32 %v6473_v57, %v2588_v62  ;;  %v2680_v47 = vmax.f32 %v6475_v29, %v2594_v61 }
 0x377   :  { %2747 = vrot.lane.b32.xlu0 %v2677_v25, %s3871_s15  ;;  %2753 = vrot.lane.b32.xlu1 %v2680_v47, %s3871_s15  ;;  %v3838_v47 = vld [vmem:[%s8287_s0 + $0x8] sm:$0x3f] }
 0x378   :  { %v2592_v50 = vpop.permute.xlu0 %2591  ;;  %v2598_v35 = vpop.permute.xlu1 %2597 }
 0x379   :  { %v2679_v0 = vmax.f32 %v6489_v5, %v2592_v50  ;;  %v2682_v51 = vmax.f32 %v6491_v55, %v2598_v35 }
 0x37b   :  { %2751 = vrot.lane.b32.xlu0 %v2679_v0, %s3871_s15  ;;  %2757 = vrot.lane.b32.xlu1 %v2682_v51, %s3871_s15  ;;  %v8905_v51 = vrot.slane %v8901_v18, 2 }
 0x37c   :  { %v2596_v6 = vpop.permute.xlu0 %2595  ;;  %v2602_v16 = vpop.permute.xlu1 %2601 }
 0x37d   :  { %v2681_v57 = vmax.f32 %v6505_v48, %v2596_v6  ;;  %v2684_v29 = vmax.f32 %v6507_v38, %v2602_v16  ;;  %v3839_v16 = vld [vmem:[%s8287_s0 + $0x38] sm:$0x3f] }
 0x37f   :  { %2755 = vrot.lane.b32.xlu0 %v2681_v57, %s3871_s15  ;;  %2761 = vrot.lane.b32.xlu1 %v2684_v29, %s3871_s15  ;;  %v8906_v57 = vld [vmem:[#allocation4_spill] sm:$0xff] }
 0x380   :  { %v2600_v52 = vpop.permute.xlu0 %2599  ;;  %v2606_v56 = vpop.permute.xlu1 %2605  ;;  %v8907_v29 = vrot.slane %v8906_v57, 1 }
 0x381   :  { %v2683_v5 = vmax.f32 %v6521_v40, %v2600_v52  ;;  %v2686_v55 = vmax.f32 %v6523_v32, %v2606_v56 }
 0x382   :  { %v433_v52 = vmax.f32 %v3839_v16, %v8907_v29  ;;  %v8923_v29 = vrot.slane %v8906_v57, 3 }
 0x383   :  { %2759 = vrot.lane.b32.xlu0 %v2683_v5, %s3871_s15  ;;  %2765 = vrot.lane.b32.xlu1 %v2686_v55, %s3871_s15 }
 0x384   :  { %v2604_v46 = vpop.permute.xlu0 %2603  ;;  %v2610_v2 = vpop.permute.xlu1 %2609 }
 0x385   :  { %v2685_v48 = vmax.f32 %v6537_v24, %v2604_v46  ;;  %v2688_v38 = vmax.f32 %v6539_v63, %v2610_v2  ;;  %v3840_v2 = vld [vmem:[%s8287_s0 + $0x28] sm:$0x3f] }
 0x387   :  { %2763 = vrot.lane.b32.xlu0 %v2685_v48, %s3871_s15  ;;  %2769 = vrot.lane.b32.xlu1 %v2688_v38, %s3871_s15  ;;  %v8909_v48 = vld [vmem:[#allocation2_spill] sm:$0xff] }
 0x388   :  { %v2608_v37 = vpop.permute.xlu0 %2607  ;;  %v2614_v39 = vpop.permute.xlu1 %2613  ;;  %v8910_v38 = vrot.slane %v8909_v48, 1 }
 0x389   :  { %v2687_v40 = vmax.f32 %v6553_v10, %v2608_v37  ;;  %v2690_v32 = vmax.f32 %v6555_v31, %v2614_v39  ;;  %v3841_v39 = vld [vmem:[%s8287_s0 + $0x58] sm:$0x3f] }
 0x38a   :  { %v431_v37 = vmax.f32 %v3840_v2, %v8910_v38  ;;  %v8925_v2 = vrot.slane %v8909_v48, 3 }
 0x38b   :  { %2767 = vrot.lane.b32.xlu0 %v2687_v40, %s3871_s15  ;;  %2773 = vrot.lane.b32.xlu1 %v2690_v32, %s3871_s15  ;;  %v8911_v40 = vld [vmem:[#allocation6_spill] sm:$0xff] }
 0x38c   :  { %v2612_v33 = vpop.permute.xlu0 %2611  ;;  %v2618_v21 = vpop.permute.xlu1 %2617  ;;  %v8912_v32 = vrot.slane %v8911_v40, 1 }
 0x38d   :  { %v2689_v24 = vmax.f32 %v6569_v1, %v2612_v33  ;;  %v2692_v63 = vmax.f32 %v6571_v20, %v2618_v21  ;;  %v3837_v1 = vld [vmem:[%s8287_s0 + $0x18] sm:$0x3f]  ;;  %v8902_v20 = vrot.slane %v8901_v18, 1  ;;  %v8914_v21 = vrot.slane %v8906_v57, 2 }
 0x38e   :  { %v437_v33 = vmax.f32 %v3841_v39, %v8912_v32 }
 0x38f   :  { %2771 = vrot.lane.b32.xlu0 %v2689_v24, %s3871_s15  ;;  %2777 = vrot.lane.b32.xlu1 %v2692_v63, %s3871_s15  ;;  %v429_v62 = vmax.f32 %v3837_v1, %v8902_v20  ;;  %v658_v24 = vmax.f32 %v433_v52, %v8914_v21  ;;  %v8916_v20 = vrot.slane %v8909_v48, 2 }
 0x390   :  { %v2616_v13 = vpop.permute.xlu0 %2615  ;;  %v2622_v17 = vpop.permute.xlu1 %2621 }
 0x391   :  { %v2691_v10 = vmax.f32 %v6585_v3, %v2616_v13  ;;  %v2694_v31 = vmax.f32 %v6587_v8, %v2622_v17  ;;  %v8903_v3 = vld [vmem:[#allocation3_spill] sm:$0xff]  ;;  %v654_v6 = vmax.f32 %v429_v62, %v8905_v51  ;;  %v656_v62 = vmax.f32 %v431_v37, %v8916_v20 }
 0x392   :  { %v8904_v50 = vrot.slane %v8903_v3, 1  ;;  %v8915_v17 = vrot.slane %v8903_v3, 3  ;;  %v883_v52 = vmax.f32 %v658_v24, %v8923_v29 }
 0x393   :  { %2775 = vrot.lane.b32.xlu0 %v2691_v10, %s3871_s15  ;;  %2781 = vrot.lane.b32.xlu1 %v2694_v31, %s3871_s15  ;;  %v881_v38 = vmax.f32 %v656_v62, %v8925_v2 }
 0x394   :  { %v2620_v61 = vpop.permute.xlu0 %2619  ;;  %v2626_v25 = vpop.permute.xlu1 %2625  ;;  %v427_v8 = vmax.f32 %v3838_v47, %v8904_v50 }
 0x395   :  { %v2693_v35 = vmax.f32 %v6601_v27, %v2620_v61  ;;  %v2696_v0 = vmax.f32 %v6603_v7, %v2626_v25  ;;  %v8908_v27 = vrot.slane %v8903_v3, 2  ;;  %v3842_v61 = vld [vmem:[%s8287_s0 + $0x48] sm:$0x3f]  ;;  %v8917_v25 = vld [vmem:[#allocation8_spill] sm:$0xff] }
 0x396   :  { %v8918_v47 = vrot.slane %v8917_v25, 1  ;;  %v8926_v37 = vrot.slane %v8917_v25, 2  ;;  %v8945_v2 = vrot.slane %v8917_v25, 4 }
 0x397   :  { %2779 = vrot.lane.b32.xlu0 %v2693_v35, %s3871_s15  ;;  %2785 = vrot.lane.b32.xlu1 %v2696_v0, %s3871_s15  ;;  %v652_v55 = vmax.f32 %v427_v8, %v8908_v27  ;;  %v8919_v8 = vrot.slane %v8911_v40, 2  ;;  %v3843_v0 = vld [vmem:[%s8287_s0 + $0x78] sm:$0x3f]  ;;  %v8924_v27 = vrot.slane %v8903_v3, 4  ;;  %v3844_v3 = vld [vmem:[%s8287_s0 + $0x68] sm:$0x3f] }
 0x398   :  { %v2624_v56 = vpop.permute.xlu0 %2623  ;;  %v2630_v5 = vpop.permute.xlu1 %2629  ;;  %v435_v50 = vmax.f32 %v3842_v61, %v8918_v47  ;;  %v8935_v47 = vrot.slane %v8909_v48, 4 }
 0x399   :  { %v2695_v7 = vmax.f32 %v6617_v23, %v2624_v56  ;;  %v2698_v46 = vmax.f32 %v6619_v28, %v2630_v5  ;;  %v8913_v23 = vrot.slane %v8901_v18, 3  ;;  %v877_v10 = vmax.f32 %v652_v55, %v8915_v17  ;;  %v3845_v17 = vld [vmem:[%s8287_s0 + $0x98] sm:$0x3f] }
 0x39a   :  { %v662_v35 = vmax.f32 %v437_v33, %v8919_v8  ;;  %v660_v39 = vmax.f32 %v435_v50, %v8926_v37  ;;  %v1106_v50 = vmax.f32 %v881_v38, %v8935_v47  ;;  %v8936_v8 = vrot.slane %v8917_v25, 3  ;;  %v8946_v37 = vld [vmem:[#allocation15_spill] sm:$0xff] }
 0x39b   :  { %2783 = vrot.lane.b32.xlu0 %v2695_v7, %s3871_s15  ;;  %2789 = vrot.lane.b32.xlu1 %v2698_v46, %s3871_s15  ;;  %v879_v28 = vmax.f32 %v654_v6, %v8913_v23  ;;  %v8922_v6 = vrot.slane %v8901_v18, 4  ;;  %v1102_v55 = vmax.f32 %v877_v10, %v8924_v27  ;;  %v8927_v18 = vrot.slane %v8911_v40, 3  ;;  %v8933_v10 = vld [vmem:[#allocation12_spill] sm:$0xff]  ;;  %v8943_v27 = vld [vmem:[#allocation14_spill] sm:$0xff]  ;;  %v3850_v47 = vld [vmem:[%s8287_s0 + $0xc8] sm:$0x3f] }
 0x39c   :  { %v2628_v63 = vpop.permute.xlu0 %2627  ;;  %v2634_v13 = vpop.permute.xlu1 %2633 }
 0x39d   :  { %v2697_v31 = vmax.f32 %v6633_v19, %v2628_v63  ;;  %v2700_v1 = vmax.f32 %v6635_v30, %v2634_v13  ;;  %v8920_v19 = vld [vmem:[#allocation10_spill] sm:$0xff]  ;;  %v1104_v16 = vmax.f32 %v879_v28, %v8922_v6  ;;  %v887_v32 = vmax.f32 %v662_v35, %v8927_v18  ;;  %v8929_v28 = vld [vmem:[#allocation11_spill] sm:$0xff] }
 0x39e   :  { %v8921_v51 = vrot.slane %v8920_v19, 1  ;;  %v8928_v33 = vrot.slane %v8920_v19, 2  ;;  %v8932_v63 = vrot.slane %v8906_v57, 4  ;;  %v6801_v61 = vmax.f32 %v5717_v22, %v1102_v55  ;;  %v3846_v22 = vld [vmem:[%s8287_s0 + $0x88] sm:$0x3f] }
 0x39f   :  { %2787 = vrot.lane.b32.xlu0 %v2697_v31, %s3871_s15  ;;  %2793 = vrot.lane.b32.xlu1 %v2700_v1, %s3871_s15  ;;  %v8934_v31 = vrot.slane %v8933_v10, 1  ;;  %v885_v57 = vmax.f32 %v660_v39, %v8936_v8  ;;  %v8937_v35 = vrot.slane %v8911_v40, 4  ;;  %v8939_v6 = vrot.slane %v8929_v28, 2 }
 0x3a0   :  { %v441_v30 = vmax.f32 %v3843_v0, %v8921_v51  ;;  %v2632_v56 = vpop.permute.xlu0 %2631  ;;  %v2638_v5 = vpop.permute.xlu1 %2637  ;;  %v1108_v13 = vmax.f32 %v883_v52, %v8932_v63  ;;  %v8938_v51 = vrot.slane %v8920_v19, 3  ;;  %v8942_v52 = vrot.slane %v8933_v10, 2 }
 0x3a1   :  { %v2699_v7 = vmax.f32 %v6646_v36, %v2632_v56  ;;  %v2702_v46 = vmax.f32 %v6648_v45, %v2638_v5  ;;  %v8930_v36 = vrot.slane %v8929_v28, 1  ;;  %v8931_v45 = vld [vmem:[#allocation53_spill] sm:$0xff]  ;;  %v445_v1 = vmax.f32 %v3845_v17, %v8934_v31 }
 0x3a2   :  { %v666_v23 = vmax.f32 %v441_v30, %v8928_v33  ;;  %v6790_v24 = vmax.f32 %v8931_v45, %v1104_v16  ;;  %v1112_v0 = vmax.f32 %v887_v32, %v8937_v35  ;;  %v6822_v40 = vmax.f32 %v5720_v34, %v1108_v13  ;;  %v3847_v5 = vld [vmem:[%s8287_s0 + $0xb8] sm:$0x3f]  ;;  %v3848_v34 = vld [vmem:[%s8287_s0 + $0xa8] sm:$0x3f]  ;;  %v8953_v13 = vld [vmem:[#allocation16_spill] sm:$0xff] }
 0x3a3   :  { %v439_v21 = vmax.f32 %v3844_v3, %v8930_v36  ;;  %2791 = vrot.lane.b32.xlu0 %v2699_v7, %s3871_s15  ;;  %2797 = vrot.lane.b32.xlu1 %v2702_v46, %s3871_s15  ;;  %v670_v56 = vmax.f32 %v445_v1, %v8942_v52  ;;  %v8944_v55 = vrot.slane %v8943_v27, 1  ;;  %v6832_v46 = vmax.f32 %v5729_v42, %v1106_v50  ;;  %v8956_v50 = vld [vmem:[#allocation17_spill] sm:$0xff] }
 0x3a4   :  { %v2636_v20 = vpop.permute.xlu0 %2635  ;;  %v891_v30 = vmax.f32 %v666_v23, %v8938_v51  ;;  %v1110_v38 = vmax.f32 %v885_v57, %v8945_v2  ;;  %v8947_v39 = vrot.slane %v8946_v37, 1  ;;  %v6842_v32 = vmax.f32 %v5732_v59, %v1112_v0 }
 0x3a5   :  { %v2701_v62 = vmax.f32 %v6655_v53, %v2636_v20  ;;  %v664_v16 = vmax.f32 %v439_v21, %v8939_v6  ;;  %v8940_v53 = vld [vmem:[#allocation13_spill] sm:$0xff]  ;;  %v449_v7 = vmax.f32 %v3847_v5, %v8944_v55  ;;  %v8948_v33 = vrot.slane %v8920_v19, 4 }
 0x3a6   :  { %v8941_v29 = vrot.slane %v8940_v53, 1  ;;  %v447_v18 = vmax.f32 %v3848_v34, %v8947_v39  ;;  %v8949_v3 = vrot.slane %v8929_v28, 3  ;;  %v8950_v36 = vrot.slane %v8940_v53, 2  ;;  %v3849_v19 = vld [vmem:[%s8287_s0 + $0xd8] sm:$0x3f]  ;;  %v8967_v39 = vld [vmem:[#allocation19_spill] sm:$0xff] }
 0x3a7   :  { %2795 = vrot.lane.b32.xlu0 %v2701_v62, %s3871_s15  ;;  %2899 = vrot.lane.b32.xlu1 %v6790_v24, %s3870_s22  ;;  %v1116_v23 = vmax.f32 %v891_v30, %v8948_v33  ;;  %v8951_v21 = vrot.slane %v8933_v10, 3  ;;  %v8952_v59 = vrot.slane %v8943_v27, 2  ;;  %v8954_v17 = vrot.slane %v8953_v13, 1  ;;  %v3851_v6 = vld [vmem:[%s8287_s0 + $0xf8] sm:$0x3f] }
 0x3a8   :  { %v443_v48 = vmax.f32 %v3846_v22, %v8941_v29  ;;  %v889_v42 = vmax.f32 %v664_v16, %v8949_v3  ;;  %v6864_v1 = vmax.f32 %v5741_v15, %v1110_v38  ;;  %v8955_v20 = vrot.slane %v8946_v37, 2  ;;  %v8960_v16 = vld [vmem:[#allocation18_spill] sm:$0xff]  ;;  %v3852_v34 = vld [vmem:[%s8287_s0 + $0xe8] sm:$0x3f] }
 0x3a9   :  { %v895_v45 = vmax.f32 %v670_v56, %v8951_v21  ;;  %v674_v63 = vmax.f32 %v449_v7, %v8952_v59  ;;  %v453_v31 = vmax.f32 %v3849_v19, %v8954_v17  ;;  %v8957_v8 = vrot.slane %v8956_v50, 1  ;;  %v8971_v21 = vld [vmem:[#allocation20_spill] sm:$0xff] }
 0x3aa   :  { %v668_v25 = vmax.f32 %v443_v48, %v8950_v36  ;;  %v672_v62 = vmax.f32 %v447_v18, %v8955_v20  ;;  %v6874_v35 = vmax.f32 %v5744_v26, %v1116_v23  ;;  %v8958_v0 = vrot.slane %v8929_v28, 4 }
 0x3ab   :  { %2897 = vrot.lane.b32.xlu0 %v6801_v61, %s3870_s22  ;;  %2903 = vrot.lane.b32.xlu1 %v6822_v40, %s3870_s22  ;;  %v451_v57 = vmax.f32 %v3850_v47, %v8957_v8  ;;  %v8959_v30 = vrot.slane %v8940_v53, 3  ;;  %v8961_v22 = vrot.slane %v8960_v16, 1  ;;  %v8962_v26 = vrot.slane %v8933_v10, 4 }
 0x3ac   :  { %v1114_v51 = vmax.f32 %v889_v42, %v8958_v0  ;;  %v8963_v48 = vrot.slane %v8943_v27, 3  ;;  %v8964_v56 = vrot.slane %v8953_v13, 2  ;;  %v8965_v55 = vrot.slane %v8946_v37, 3 }
 0x3ad   :  { %v893_v15 = vmax.f32 %v668_v25, %v8959_v30  ;;  %v457_v29 = vmax.f32 %v3851_v6, %v8961_v22  ;;  %v1120_v28 = vmax.f32 %v895_v45, %v8962_v26  ;;  %v8966_v2 = vrot.slane %v8956_v50, 2  ;;  %v3853_v25 = vld [vmem:[%s8287_s0 + $0x118] sm:$0x3f] }
 0x3ae   :  { %v899_v52 = vmax.f32 %v674_v63, %v8963_v48  ;;  %v678_v5 = vmax.f32 %v453_v31, %v8964_v56  ;;  %v897_v7 = vmax.f32 %v672_v62, %v8965_v55  ;;  %v8968_v18 = vrot.slane %v8967_v39, 1  ;;  %v8983_v48 = vld [vmem:[#allocation23_spill] sm:$0xff] }
 0x3af   :  { %2901 = vrot.lane.b32.xlu0 %v6832_v46, %s3870_s22  ;;  %2907 = vrot.lane.b32.xlu1 %v6842_v32, %s3870_s22  ;;  %v676_v38 = vmax.f32 %v451_v57, %v8966_v2  ;;  %v6905_v33 = vmax.f32 %v5753_v60, %v1114_v51  ;;  %v8969_v23 = vrot.slane %v8940_v53, 4  ;;  %v8970_v42 = vrot.slane %v8960_v16, 2 }
 0x3b0   :  { %v455_v10 = vmax.f32 %v3852_v34, %v8968_v18  ;;  %v8972_v45 = vrot.slane %v8971_v21, 1  ;;  %v6921_v60 = vmax.f32 %v5756_v44, %v1120_v28  ;;  %v8973_v53 = vrot.slane %v8943_v27, 4  ;;  %v3855_v28 = vld [vmem:[%s8287_s0 + $0x138] sm:$0x3f] }
 0x3b1   :  { %v1118_v3 = vmax.f32 %v893_v15, %v8969_v23  ;;  %v682_v36 = vmax.f32 %v457_v29, %v8970_v42  ;;  %v8974_v19 = vrot.slane %v8953_v13, 3  ;;  %v8975_v31 = vrot.slane %v8946_v37, 4  ;;  %v3854_v37 = vld [vmem:[%s8287_s0 + $0x108] sm:$0x3f]  ;;  %v8980_v15 = vld [vmem:[#allocation21_spill] sm:$0xff] }
 0x3b2   :  { %v461_v59 = vmax.f32 %v3853_v25, %v8972_v45  ;;  %v1124_v63 = vmax.f32 %v899_v52, %v8973_v53  ;;  %v8976_v62 = vrot.slane %v8956_v50, 3  ;;  %v8977_v8 = vrot.slane %v8967_v39, 2  ;;  %v3857_v45 = vld [vmem:[%s8287_s0 + $0x158] sm:$0x3f] }
 0x3b3   :  { %2905 = vrot.lane.b32.xlu0 %v6864_v1, %s3870_s22  ;;  %2911 = vrot.lane.b32.xlu1 %v6874_v35, %s3870_s22  ;;  %v903_v17 = vmax.f32 %v678_v5, %v8974_v19  ;;  %v1122_v20 = vmax.f32 %v897_v7, %v8975_v31  ;;  %v6934_v0 = vmax.f32 %v5765_v41, %v1118_v3  ;;  %v8978_v44 = vrot.slane %v8960_v16, 3  ;;  %v8990_v3 = vld [vmem:[#allocation25_spill] sm:$0xff] }
 0x3b4   :  { %v901_v47 = vmax.f32 %v676_v38, %v8976_v62  ;;  %v680_v57 = vmax.f32 %v455_v10, %v8977_v8  ;;  %v8979_v27 = vrot.slane %v8971_v21, 2  ;;  %v8981_v6 = vrot.slane %v8980_v15, 1 }
 0x3b5   :  { %v907_v51 = vmax.f32 %v682_v36, %v8978_v44  ;;  %v6950_v41 = vmax.f32 %v5768_v58, %v1124_v63  ;;  %v8982_v29 = vrot.slane %v8953_v13, 4  ;;  %v8984_v52 = vrot.slane %v8983_v48, 1 }
 0x3b6   :  { %v686_v30 = vmax.f32 %v461_v59, %v8979_v27  ;;  %v459_v22 = vmax.f32 %v3854_v37, %v8981_v6  ;;  %v6960_v5 = vmax.f32 %v5777_v12, %v1122_v20  ;;  %v8985_v55 = vrot.slane %v8956_v50, 4  ;;  %v3856_v12 = vld [vmem:[%s8287_s0 + $0x128] sm:$0x3f]  ;;  %v8996_v20 = vld [vmem:[#allocation29_spill] sm:$0xff] }
 0x3b7   :  { %2909 = vrot.lane.b32.xlu0 %v6905_v33, %s3870_s22  ;;  %2915 = vrot.lane.b32.xlu1 %v6921_v60, %s3870_s22  ;;  %v1128_v26 = vmax.f32 %v903_v17, %v8982_v29  ;;  %v465_v56 = vmax.f32 %v3855_v28, %v8984_v52  ;;  %v8986_v2 = vrot.slane %v8967_v39, 3  ;;  %v8987_v38 = vrot.slane %v8960_v16, 4  ;;  %v8993_v59 = vld [vmem:[#allocation27_spill] sm:$0xff] }
 0x3b8   :  { %v1126_v7 = vmax.f32 %v901_v47, %v8985_v55  ;;  %v8988_v34 = vrot.slane %v8971_v21, 3  ;;  %v8989_v10 = vrot.slane %v8980_v15, 2  ;;  %v8991_v42 = vrot.slane %v8990_v3, 1  ;;  %v3860_v55 = vld [vmem:[%s8287_s0 + $0x168] sm:$0x3f] }
 0x3b9   :  { %v905_v58 = vmax.f32 %v680_v57, %v8986_v2  ;;  %v1132_v13 = vmax.f32 %v907_v51, %v8987_v38  ;;  %v6982_v16 = vmax.f32 %v5780_v43, %v1128_v26  ;;  %v8992_v36 = vrot.slane %v8983_v48, 2  ;;  %v3858_v43 = vld [vmem:[%s8287_s0 + $0x148] sm:$0x3f] }
 0x3ba   :  { %v911_v18 = vmax.f32 %v686_v30, %v8988_v34  ;;  %v684_v23 = vmax.f32 %v459_v22, %v8989_v10  ;;  %v463_v50 = vmax.f32 %v3856_v12, %v8991_v42  ;;  %v8994_v53 = vrot.slane %v8993_v59, 1  ;;  %v9003_v22 = vld [vmem:[#allocation31_spill] sm:$0xff] }
 0x3bb   :  { %2913 = vrot.lane.b32.xlu0 %v6934_v0, %s3870_s22  ;;  %2919 = vrot.lane.b32.xlu1 %v6950_v41, %s3870_s22  ;;  %v690_v25 = vmax.f32 %v465_v56, %v8992_v36  ;;  %v6992_v19 = vmax.f32 %v5789_v14, %v1126_v7  ;;  %v8995_v17 = vrot.slane %v8967_v39, 4  ;;  %v8997_v62 = vrot.slane %v8996_v20, 1  ;;  %v9007_v7 = vld [vmem:[#allocation33_spill] sm:$0xff]  ;;  %v9009_v38 = vld [vmem:[#allocation91_spill] sm:$0xff] }
 0x3bc   :  { %v469_v63 = vmax.f32 %v3857_v45, %v8994_v53  ;;  %v7002_v8 = vmax.f32 %v5792_v54, %v1132_v13  ;;  %v8998_v57 = vrot.slane %v8971_v21, 4  ;;  %v8999_v51 = vrot.slane %v8980_v15, 3  ;;  %v3859_v21 = vld [vmem:[%s8287_s0 + $0x178] sm:$0x3f]  ;;  %v9013_v12 = vld [vmem:[#allocation35_spill] sm:$0xff] }
 0x3bd   :  { %v1130_v31 = vmax.f32 %v905_v58, %v8995_v17  ;;  %v467_v47 = vmax.f32 %v3858_v43, %v8997_v62  ;;  %v9000_v27 = vrot.slane %v8990_v3, 2  ;;  %v9001_v30 = vrot.slane %v8983_v48, 3 }
 0x3be   :  { %v1136_v44 = vmax.f32 %v911_v18, %v8998_v57  ;;  %v909_v14 = vmax.f32 %v684_v23, %v8999_v51  ;;  %v9002_v54 = vrot.slane %v8993_v59, 2  ;;  %v9004_v29 = vrot.slane %v9003_v22, 1  ;;  %v3861_v23 = vld [vmem:[%s8287_s0 + $0x198] sm:$0x3f]  ;;  %v9022_v51 = vld [vmem:[#allocation71_spill] sm:$0xff] }
 0x3bf   :  { %v688_v39 = vmax.f32 %v463_v50, %v9000_v27  ;;  %2917 = vrot.lane.b32.xlu0 %v6960_v5, %s3870_s22  ;;  %2923 = vrot.lane.b32.xlu1 %v6982_v16, %s3870_s22  ;;  %v915_v37 = vmax.f32 %v690_v25, %v9001_v30  ;;  %v7024_v28 = vmax.f32 %v8835_v49, %v1130_v31  ;;  %v9006_v52 = vrot.slane %v8996_v20, 2  ;;  %v9020_v57 = vld [vmem:[#allocation37_spill] sm:$0xff] }
 0x3c0   :  { %v694_v6 = vmax.f32 %v469_v63, %v9002_v54  ;;  %v473_v26 = vmax.f32 %v3859_v21, %v9004_v29  ;;  %v9008_v2 = vrot.slane %v9007_v7, 1  ;;  %v7034_v13 = vmax.f32 %v9009_v38, %v1136_v44  ;;  %v3863_v54 = vld [vmem:[%s8287_s0 + $0x1b8] sm:$0x3f] }
 0x3c1   :  { %9005 = vst [vmem:[#allocation7_spill] sm:$0xff] %v7024_v28  ;;  %v692_v56 = vmax.f32 %v467_v47, %v9006_v52  ;;  %v9011_v34 = vrot.slane %v8980_v15, 4  ;;  %v9012_v10 = vrot.slane %v8990_v3, 3  ;;  %v9014_v42 = vrot.slane %v9013_v12, 1  ;;  %v3862_v47 = vld [vmem:[%s8287_s0 + $0x188] sm:$0x3f] }
 0x3c2   :  { %v471_v58 = vmax.f32 %v3860_v55, %v9008_v2  ;;  %9010 = vst [vmem:[#allocation95_spill] sm:$0xff] %v7034_v13  ;;  %v9015_v36 = vrot.slane %v8983_v48, 4  ;;  %v9016_v25 = vrot.slane %v8993_v59, 3  ;;  %v9017_v53 = vrot.slane %v9003_v22, 2 }
 0x3c3   :  { %v1134_v18 = vmax.f32 %v909_v14, %v9011_v34  ;;  %v913_v49 = vmax.f32 %v688_v39, %v9012_v10  ;;  %v477_v50 = vmax.f32 %v3861_v23, %v9014_v42  ;;  %2921 = vrot.lane.b32.xlu0 %v6992_v19, %s3870_s22  ;;  %2927 = vrot.lane.b32.xlu1 %v7002_v8, %s3870_s22  ;;  %v9018_v17 = vrot.slane %v8996_v20, 3  ;;  %v9035_v23 = vld [vmem:[#allocation54_spill] sm:$0xff] }
 0x3c4   :  { %v1140_v15 = vmax.f32 %v915_v37, %v9015_v36  ;;  %v919_v45 = vmax.f32 %v694_v6, %v9016_v25  ;;  %v698_v63 = vmax.f32 %v473_v26, %v9017_v53  ;;  %v9019_v43 = vrot.slane %v9007_v7, 2  ;;  %v9026_v6 = vld [vmem:[#allocation39_spill] sm:$0xff]  ;;  %v9028_v26 = vld [vmem:[#allocation72_spill] sm:$0xff]  ;;  %v9039_v25 = vld [vmem:[#allocation41_spill] sm:$0xff] }
 0x3c5   :  { %v917_v31 = vmax.f32 %v692_v56, %v9018_v17  ;;  %v9021_v44 = vrot.slane %v9020_v57, 1  ;;  %v7065_v14 = vmax.f32 %v9022_v51, %v1134_v18  ;;  %v9024_v27 = vrot.slane %v8990_v3, 4  ;;  %v9046_v51 = vld [vmem:[#allocation55_spill] sm:$0xff] }
 0x3c6   :  { %v696_v62 = vmax.f32 %v471_v58, %v9019_v43  ;;  %v9025_v30 = vrot.slane %v9013_v12, 2  ;;  %v9027_v21 = vrot.slane %v9026_v6, 1  ;;  %v7081_v52 = vmax.f32 %v9028_v26, %v1140_v15 }
 0x3c7   :  { %v475_v48 = vmax.f32 %v3862_v47, %v9021_v44  ;;  %9023 = vst [vmem:[#allocation48_spill] sm:$0xff] %v7065_v14  ;;  %v1138_v39 = vmax.f32 %v913_v49, %v9024_v27  ;;  %2925 = vrot.lane.b32.xlu0 %v7024_v28, %s3870_s22  ;;  %2931 = vrot.lane.b32.xlu1 %v7034_v13, %s3870_s22  ;;  %v9030_v3 = vrot.slane %v8993_v59, 4  ;;  %v9031_v55 = vrot.slane %v9003_v22, 3  ;;  %v9044_v47 = vld [vmem:[#allocation43_spill] sm:$0xff] }
 0x3c8   :  { %v702_v37 = vmax.f32 %v477_v50, %v9025_v30  ;;  %v481_v29 = vmax.f32 %v3863_v54, %v9027_v21  ;;  %9029 = vst [vmem:[#allocation103_spill] sm:$0xff] %v7081_v52  ;;  %v9032_v58 = vrot.slane %v8996_v20, 4  ;;  %v9033_v34 = vrot.slane %v9007_v7, 3  ;;  %v3864_v20 = vld [vmem:[%s8287_s0 + $0x1a8] sm:$0x3f] }
 0x3c9   :  { %v1144_v56 = vmax.f32 %v919_v45, %v9030_v3  ;;  %v923_v2 = vmax.f32 %v698_v63, %v9031_v55  ;;  %v9034_v10 = vrot.slane %v9020_v57, 2  ;;  %v7094_v42 = vmax.f32 %v9035_v23, %v1138_v39  ;;  %v9041_v63 = vld [vmem:[#allocation22_spill] sm:$0xff]  ;;  %v3866_v55 = vld [vmem:[%s8287_s0 + $0x1c8] sm:$0x3f] }
 0x3ca   :  { %v1142_v38 = vmax.f32 %v917_v31, %v9032_v58  ;;  %v921_v18 = vmax.f32 %v696_v62, %v9033_v34  ;;  %v9037_v50 = vrot.slane %v9013_v12, 3  ;;  %v9038_v59 = vrot.slane %v9026_v6, 2  ;;  %v3865_v62 = vld [vmem:[%s8287_s0 + $0x1d8] sm:$0x3f] }
 0x3cb   :  { %v700_v49 = vmax.f32 %v475_v48, %v9034_v10  ;;  %9036 = vst [vmem:[#allocation62_spill] sm:$0xff] %v7094_v42  ;;  %v9040_v45 = vrot.slane %v9039_v25, 1  ;;  %2929 = vrot.lane.b32.xlu0 %v7065_v14, %s3870_s22  ;;  %2935 = vrot.lane.b32.xlu1 %v7081_v52, %s3870_s22  ;;  %v7110_v17 = vmax.f32 %v9041_v63, %v1144_v56  ;;  %v9043_v31 = vrot.slane %v9003_v22, 4  ;;  %v3867_v10 = vld [vmem:[%s8287_s0 + $0x1f8] sm:$0x3f] }
 0x3cc   :  { %v927_v36 = vmax.f32 %v702_v37, %v9037_v50  ;;  %v706_v15 = vmax.f32 %v481_v29, %v9038_v59  ;;  %v9045_v44 = vrot.slane %v9044_v47, 1  ;;  %v7120_v27 = vmax.f32 %v9046_v51, %v1142_v38 }
 0x3cd   :  { %v479_v53 = vmax.f32 %v3864_v20, %v9040_v45  ;;  %9042 = vst [vmem:[#allocation38_spill] sm:$0xff] %v7110_v17  ;;  %v1148_v43 = vmax.f32 %v923_v2, %v9043_v31  ;;  %v9048_v39 = vrot.slane %v9007_v7, 4  ;;  %v9049_v37 = vrot.slane %v9020_v57, 3  ;;  %v9053_v2 = vld [vmem:[#allocation45_spill] sm:$0xff] }
 0x3ce   :  { %v485_v48 = vmax.f32 %v3865_v62, %v9045_v44  ;;  %9047 = vst [vmem:[#allocation75_spill] sm:$0xff] %v7120_v27  ;;  %v9050_v21 = vrot.slane %v9013_v12, 4  ;;  %v9051_v29 = vrot.slane %v9026_v6, 3  ;;  %v9052_v3 = vrot.slane %v9039_v25, 2  ;;  %v9055_v12 = vld [vmem:[#allocation24_spill] sm:$0xff]  ;;  %v9063_v45 = vld [vmem:[#allocation93_spill] sm:$0xff] }
 0x3cf   :  { %v1146_v30 = vmax.f32 %v921_v18, %v9048_v39  ;;  %v925_v54 = vmax.f32 %v700_v49, %v9049_v37  ;;  %v9054_v58 = vrot.slane %v9053_v2, 1  ;;  %2933 = vrot.lane.b32.xlu0 %v7094_v42, %s3870_s22  ;;  %2939 = vrot.lane.b32.xlu1 %v7110_v17, %s3870_s22  ;;  %v7142_v38 = vmax.f32 %v9055_v12, %v1148_v43  ;;  %v9058_v49 = vld [vmem:[#allocation47_spill] sm:$0xff]  ;;  %v9070_v37 = vld [vmem:[#allocation49_spill] sm:$0xff] }
 0x3d0   :  { %v1152_v22 = vmax.f32 %v927_v36, %v9050_v21  ;;  %v931_v26 = vmax.f32 %v706_v15, %v9051_v29  ;;  %v704_v56 = vmax.f32 %v479_v53, %v9052_v3  ;;  %v9057_v34 = vrot.slane %v9044_v47, 2  ;;  %v9060_v36 = vld [vmem:[#allocation92_spill] sm:$0xff] }
 0x3d1   :  { %v483_v7 = vmax.f32 %v3866_v55, %v9054_v58  ;;  %9056 = vst [vmem:[#allocation90_spill] sm:$0xff] %v7142_v38  ;;  %v9059_v23 = vrot.slane %v9058_v49, 1  ;;  %v7152_v59 = vmax.f32 %v9060_v36, %v1146_v30  ;;  %v9062_v15 = vrot.slane %v9020_v57, 4  ;;  %v9081_v36 = vld [vmem:[#allocation56_spill] sm:$0xff] }
 0x3d2   :  { %v710_v18 = vmax.f32 %v485_v48, %v9057_v34  ;;  %v7157_v53 = vmax.f32 %v9063_v45, %v1152_v22  ;;  %v9065_v63 = vrot.slane %v9026_v6, 4  ;;  %v9066_v43 = vrot.slane %v9039_v25, 3  ;;  %v3868_v6 = vld [vmem:[%s8287_s0 + $0x1e8] sm:$0x3f]  ;;  %v9072_v22 = vld [vmem:[#allocation73_spill] sm:$0xff] }
 0x3d3   :  { %v489_v50 = vmax.f32 %v3867_v10, %v9059_v23  ;;  %9061 = vst [vmem:[#allocation76_spill] sm:$0xff] %v7152_v59  ;;  %v1150_v20 = vmax.f32 %v925_v54, %v9062_v15  ;;  %v9067_v44 = vrot.slane %v9053_v2, 2  ;;  %2937 = vrot.lane.b32.xlu0 %v7120_v27, %s3870_s22  ;;  %2943 = vrot.lane.b32.xlu1 %v7142_v38, %s3870_s22  ;;  %v9068_v57 = vrot.slane %v9044_v47, 3 }
 0x3d4   :  { %9064 = vst [vmem:[#allocation104_spill] sm:$0xff] %v7157_v53  ;;  %v1156_v31 = vmax.f32 %v931_v26, %v9065_v63  ;;  %v929_v62 = vmax.f32 %v704_v56, %v9066_v43  ;;  %v9069_v39 = vrot.slane %v9058_v49, 2  ;;  %v9071_v54 = vrot.slane %v9070_v37, 1  ;;  %v9074_v26 = vld [vmem:[#allocation74_spill] sm:$0xff] }
 0x3d5   :  { %v708_v48 = vmax.f32 %v483_v7, %v9067_v44  ;;  %v935_v51 = vmax.f32 %v710_v18, %v9068_v57  ;;  %v7179_v29 = vmax.f32 %v9072_v22, %v1150_v20  ;;  %v9076_v56 = vrot.slane %v9039_v25, 4 }
 0x3d6   :  { %v714_v30 = vmax.f32 %v489_v50, %v9069_v39  ;;  %v487_v21 = vmax.f32 %v3868_v6, %v9071_v54  ;;  %v7182_v3 = vmax.f32 %v9074_v26, %v1156_v31  ;;  %v9077_v58 = vrot.slane %v9053_v2, 3 }
 0x3d7   :  { %9073 = vst [vmem:[#allocation85_spill] sm:$0xff] %v7179_v29  ;;  %v1154_v55 = vmax.f32 %v929_v62, %v9076_v56  ;;  %2941 = vrot.lane.b32.xlu0 %v7152_v59, %s3870_s22  ;;  %2947 = vrot.lane.b32.xlu1 %v7157_v53, %s3870_s22  ;;  %v9078_v12 = vrot.slane %v9044_v47, 4  ;;  %v9079_v18 = vrot.slane %v9058_v49, 3  ;;  %v9080_v23 = vrot.slane %v9070_v37, 2  ;;  %v9084_v47 = vld [vmem:[#allocation26_spill] sm:$0xff] }
 0x3d8   :  { %9075 = vst [vmem:[#allocation63_spill] sm:$0xff] %v7182_v3  ;;  %v933_v7 = vmax.f32 %v708_v48, %v9077_v58  ;;  %v9083_v20 = vrot.slane %v9053_v2, 4  ;;  %v9086_v31 = vrot.slane %v9058_v49, 4  ;;  %v9087_v62 = vrot.slane %v9070_v37, 3 }
 0x3d9   :  { %v1160_v34 = vmax.f32 %v935_v51, %v9078_v12  ;;  %v939_v10 = vmax.f32 %v714_v30, %v9079_v18  ;;  %v712_v25 = vmax.f32 %v487_v21, %v9080_v23  ;;  %v2738_v50 = vpop.permute.xlu1 %2737  ;;  %v7203_v15 = vmax.f32 %v9081_v36, %v1154_v55 }
 0x3da   :  { %3768 = vst.msk [vmem:[%s8288_s1 + $0x80] sm:$0xc] %vm2832_vm6, %v2738_v50  ;;  %v1158_v45 = vmax.f32 %v933_v7, %v9083_v20  ;;  %v9090_v51 = vrot.slane %v9070_v37, 4 }
 0x3db   :  { %9082 = vst [vmem:[#allocation40_spill] sm:$0xff] %v7203_v15  ;;  %2945 = vrot.lane.b32.xlu0 %v7179_v29, %s3870_s22  ;;  %2951 = vrot.lane.b32.xlu1 %v7182_v3, %s3870_s22  ;;  %v7212_v63 = vmax.f32 %v9084_v47, %v1160_v34  ;;  %v1164_v43 = vmax.f32 %v939_v10, %v9086_v31 }
 0x3dc   :  { %v937_v44 = vmax.f32 %v712_v25, %v9087_v62  ;;  %v7231_v2 = vmax.f32 %v8890_v4, %v1158_v45 }
 0x3dd   :  { %9085 = vst [vmem:[#allocation58_spill] sm:$0xff] %v7212_v63  ;;  %v2736_v48 = vpop.permute.xlu0 %2735  ;;  %v2742_v57 = vpop.permute.xlu1 %2741  ;;  %v7234_v49 = vmax.f32 %v8892_v9, %v1164_v43 }
 0x3de   :  { %3767 = vst.msk [vmem:[%s8288_s1 + $0x7e] sm:$0xc] %vm2832_vm6, %v2736_v48  ;;  %3770 = vst.msk [vmem:[%s8288_s1 + $0x84] sm:$0xc] %vm2832_vm6, %v2742_v57  ;;  %v1162_v39 = vmax.f32 %v937_v44, %v9090_v51 }
 0x3df   :  { %2949 = vrot.lane.b32.xlu0 %v7203_v15, %s3870_s22  ;;  %2955 = vrot.lane.b32.xlu1 %v7212_v63, %s3870_s22  ;;  %9088 = vst [vmem:[#allocation30_spill] sm:$0xff] %v7231_v2  ;;  %9089 = vst [vmem:[#allocation86_spill] sm:$0xff] %v7234_v49 }
 0x3e0   :  { %v7251_v4 = vmax.f32 %v8898_v11, %v1162_v39 }
 0x3e1   :  { %v2740_v30 = vpop.permute.xlu0 %2739  ;;  %v2746_v6 = vpop.permute.xlu1 %2745 }
 0x3e2   :  { %3769 = vst.msk [vmem:[%s8288_s1 + $0x82] sm:$0xc] %vm2832_vm6, %v2740_v30  ;;  %3772 = vst.msk [vmem:[%s8288_s1 + $0x88] sm:$0xc] %vm2832_vm6, %v2746_v6 }
 0x3e3   :  { %2953 = vrot.lane.b32.xlu0 %v7231_v2, %s3870_s22  ;;  %2959 = vrot.lane.b32.xlu1 %v7234_v49, %s3870_s22  ;;  %9091 = vst [vmem:[#allocation68_spill] sm:$0xff] %v7251_v4 }
 0x3e5   :  { %v2744_v9 = vpop.permute.xlu0 %2743  ;;  %v2750_v37 = vpop.permute.xlu1 %2749 }
 0x3e6   :  { %3771 = vst.msk [vmem:[%s8288_s1 + $0x86] sm:$0xc] %vm2832_vm6, %v2744_v9  ;;  %3774 = vst.msk [vmem:[%s8288_s1 + $0x8c] sm:$0xc] %vm2832_vm6, %v2750_v37 }
 0x3e7   :  { %2957 = vrot.lane.b32.xlu0 %v7251_v4, %s3870_s22  ;;  %3027 = vrot.lane.b32.xlu1 %v6790_v24, %s3871_s15 }
 0x3e9   :  { %v2748_v11 = vpop.permute.xlu0 %2747  ;;  %v2754_v54 = vpop.permute.xlu1 %2753 }
 0x3ea   :  { %3773 = vst.msk [vmem:[%s8288_s1 + $0x8a] sm:$0xc] %vm2832_vm6, %v2748_v11  ;;  %3776 = vst.msk [vmem:[%s8288_s1 + $0x90] sm:$0xc] %vm2832_vm6, %v2754_v54 }
 0x3eb   :  { %3025 = vrot.lane.b32.xlu0 %v6801_v61, %s3871_s15  ;;  %3031 = vrot.lane.b32.xlu1 %v6822_v40, %s3871_s15 }
 0x3ed   :  { %v2752_v21 = vpop.permute.xlu0 %2751  ;;  %v2758_v22 = vpop.permute.xlu1 %2757 }
 0x3ee   :  { %3775 = vst.msk [vmem:[%s8288_s1 + $0x8e] sm:$0xc] %vm2832_vm6, %v2752_v21  ;;  %3778 = vst.msk [vmem:[%s8288_s1 + $0x94] sm:$0xc] %vm2832_vm6, %v2758_v22 }
 0x3ef   :  { %3029 = vrot.lane.b32.xlu0 %v6832_v46, %s3871_s15  ;;  %3035 = vrot.lane.b32.xlu1 %v6842_v32, %s3871_s15 }
 0x3f1   :  { %v2756_v26 = vpop.permute.xlu0 %2755  ;;  %v2762_v56 = vpop.permute.xlu1 %2761 }
 0x3f2   :  { %3777 = vst.msk [vmem:[%s8288_s1 + $0x92] sm:$0xc] %vm2832_vm6, %v2756_v26  ;;  %3780 = vst.msk [vmem:[%s8288_s1 + $0x98] sm:$0xc] %vm2832_vm6, %v2762_v56 }
 0x3f3   :  { %3033 = vrot.lane.b32.xlu0 %v6864_v1, %s3871_s15  ;;  %3039 = vrot.lane.b32.xlu1 %v6874_v35, %s3871_s15 }
 0x3f5   :  { %v2760_v55 = vpop.permute.xlu0 %2759  ;;  %v2766_v58 = vpop.permute.xlu1 %2765 }
 0x3f6   :  { %3779 = vst.msk [vmem:[%s8288_s1 + $0x96] sm:$0xc] %vm2832_vm6, %v2760_v55  ;;  %3782 = vst.msk [vmem:[%s8288_s1 + $0x9c] sm:$0xc] %vm2832_vm6, %v2766_v58 }
 0x3f7   :  { %3037 = vrot.lane.b32.xlu0 %v6905_v33, %s3871_s15  ;;  %3043 = vrot.lane.b32.xlu1 %v6921_v60, %s3871_s15 }
 0x3f9   :  { %v2764_v7 = vpop.permute.xlu0 %2763  ;;  %v2770_v12 = vpop.permute.xlu1 %2769 }
 0x3fa   :  { %3781 = vst.msk [vmem:[%s8288_s1 + $0x9a] sm:$0xc] %vm2832_vm6, %v2764_v7  ;;  %3784 = vst.msk [vmem:[%s8288_s1 + $0xa0] sm:$0xc] %vm2832_vm6, %v2770_v12 }
 0x3fb   :  { %3041 = vrot.lane.b32.xlu0 %v6934_v0, %s3871_s15  ;;  %3047 = vrot.lane.b32.xlu1 %v6950_v41, %s3871_s15 }
 0x3fd   :  { %v2768_v34 = vpop.permute.xlu0 %2767  ;;  %v2774_v18 = vpop.permute.xlu1 %2773 }
 0x3fe   :  { %3783 = vst.msk [vmem:[%s8288_s1 + $0x9e] sm:$0xc] %vm2832_vm6, %v2768_v34  ;;  %3786 = vst.msk [vmem:[%s8288_s1 + $0xa4] sm:$0xc] %vm2832_vm6, %v2774_v18 }
 0x3ff   :  { %3045 = vrot.lane.b32.xlu0 %v6960_v5, %s3871_s15  ;;  %3051 = vrot.lane.b32.xlu1 %v6982_v16, %s3871_s15 }
 0x401   :  { %v2772_v10 = vpop.permute.xlu0 %2771  ;;  %v2778_v23 = vpop.permute.xlu1 %2777 }
 0x402   :  { %3785 = vst.msk [vmem:[%s8288_s1 + $0xa2] sm:$0xc] %vm2832_vm6, %v2772_v10  ;;  %3788 = vst.msk [vmem:[%s8288_s1 + $0xa8] sm:$0xc] %vm2832_vm6, %v2778_v23 }
 0x403   :  { %3049 = vrot.lane.b32.xlu0 %v6992_v19, %s3871_s15  ;;  %3055 = vrot.lane.b32.xlu1 %v7002_v8, %s3871_s15 }
 0x405   :  { %v2776_v25 = vpop.permute.xlu0 %2775  ;;  %v2782_v50 = vpop.permute.xlu1 %2781 }
 0x406   :  { %3787 = vst.msk [vmem:[%s8288_s1 + $0xa6] sm:$0xc] %vm2832_vm6, %v2776_v25  ;;  %3790 = vst.msk [vmem:[%s8288_s1 + $0xac] sm:$0xc] %vm2832_vm6, %v2782_v50 }
 0x407   :  { %3053 = vrot.lane.b32.xlu0 %v7024_v28, %s3871_s15  ;;  %3059 = vrot.lane.b32.xlu1 %v7034_v13, %s3871_s15 }
 0x409   :  { %v2780_v36 = vpop.permute.xlu0 %2779  ;;  %v2786_v20 = vpop.permute.xlu1 %2785 }
 0x40a   :  { %3789 = vst.msk [vmem:[%s8288_s1 + $0xaa] sm:$0xc] %vm2832_vm6, %v2780_v36  ;;  %3792 = vst.msk [vmem:[%s8288_s1 + $0xb0] sm:$0xc] %vm2832_vm6, %v2786_v20 }
 0x40b   :  { %3057 = vrot.lane.b32.xlu0 %v7065_v14, %s3871_s15  ;;  %3063 = vrot.lane.b32.xlu1 %v7081_v52, %s3871_s15 }
 0x40d   :  { %v2784_v45 = vpop.permute.xlu0 %2783  ;;  %v2790_v47 = vpop.permute.xlu1 %2789 }
 0x40e   :  { %3791 = vst.msk [vmem:[%s8288_s1 + $0xae] sm:$0xc] %vm2832_vm6, %v2784_v45  ;;  %3794 = vst.msk [vmem:[%s8288_s1 + $0xb4] sm:$0xc] %vm2832_vm6, %v2790_v47 }
 0x40f   :  { %3061 = vrot.lane.b32.xlu0 %v7094_v42, %s3871_s15  ;;  %3067 = vrot.lane.b32.xlu1 %v7110_v17, %s3871_s15 }
 0x411   :  { %v2788_v31 = vpop.permute.xlu0 %2787  ;;  %v2794_v43 = vpop.permute.xlu1 %2793 }
 0x412   :  { %3793 = vst.msk [vmem:[%s8288_s1 + $0xb2] sm:$0xc] %vm2832_vm6, %v2788_v31  ;;  %3796 = vst.msk [vmem:[%s8288_s1 + $0xb8] sm:$0xc] %vm2832_vm6, %v2794_v43 }
 0x413   :  { %3065 = vrot.lane.b32.xlu0 %v7120_v27, %s3871_s15  ;;  %3071 = vrot.lane.b32.xlu1 %v7142_v38, %s3871_s15 }
 0x415   :  { %v2792_v62 = vpop.permute.xlu0 %2791  ;;  %v2798_v44 = vpop.permute.xlu1 %2797 }
 0x416   :  { %3795 = vst.msk [vmem:[%s8288_s1 + $0xb6] sm:$0xc] %vm2832_vm6, %v2792_v62  ;;  %3798 = vst.msk [vmem:[%s8288_s1 + $0xbc] sm:$0xc] %vm2832_vm6, %v2798_v44 }
 0x417   :  { %3069 = vrot.lane.b32.xlu0 %v7152_v59, %s3871_s15  ;;  %3075 = vrot.lane.b32.xlu1 %v7157_v53, %s3871_s15 }
 0x419   :  { %v2796_v48 = vpop.permute.xlu0 %2795  ;;  %v7409_v57 = vpop.permute.xlu1 %2899 }
 0x41a   :  { %3797 = vst.msk [vmem:[%s8288_s1 + $0xba] sm:$0xc] %vm2832_vm6, %v2796_v48 }
 0x41b   :  { %3073 = vrot.lane.b32.xlu0 %v7179_v29, %s3871_s15  ;;  %3079 = vrot.lane.b32.xlu1 %v7182_v3, %s3871_s15 }
 0x41d   :  { %v7419_v51 = vpop.permute.xlu0 %2897  ;;  %v7421_v39 = vpop.permute.xlu1 %2903 }
 0x41f   :  { %3077 = vrot.lane.b32.xlu0 %v7203_v15, %s3871_s15  ;;  %3083 = vrot.lane.b32.xlu1 %v7212_v63, %s3871_s15 }
 0x421   :  { %v7427_v30 = vpop.permute.xlu0 %2901  ;;  %v7429_v6 = vpop.permute.xlu1 %2907 }
 0x423   :  { %3081 = vrot.lane.b32.xlu0 %v7231_v2, %s3871_s15  ;;  %3087 = vrot.lane.b32.xlu1 %v7234_v49, %s3871_s15 }
 0x425   :  { %v7435_v9 = vpop.permute.xlu0 %2905  ;;  %v7437_v37 = vpop.permute.xlu1 %2911 }
 0x427   :  { %3085 = vrot.lane.b32.xlu0 %v7251_v4, %s3871_s15  ;;  %3155 = vrot.lane.b32.xlu1 %v6790_v24, %s3872_s4  ;;  %s3874_s15 = smov 120  }
 0x429   :  { %v7443_v11 = vpop.permute.xlu0 %2909  ;;  %v7445_v54 = vpop.permute.xlu1 %2915 }
 0x42b   :  { %3153 = vrot.lane.b32.xlu0 %v6801_v61, %s3872_s4  ;;  %3159 = vrot.lane.b32.xlu1 %v6822_v40, %s3872_s4 }
 0x42d   :  { %v7451_v21 = vpop.permute.xlu0 %2913  ;;  %v7453_v22 = vpop.permute.xlu1 %2919 }
 0x42f   :  { %3157 = vrot.lane.b32.xlu0 %v6832_v46, %s3872_s4  ;;  %3163 = vrot.lane.b32.xlu1 %v6842_v32, %s3872_s4 }
 0x431   :  { %v7459_v26 = vpop.permute.xlu0 %2917  ;;  %v7461_v56 = vpop.permute.xlu1 %2923 }
 0x433   :  { %3161 = vrot.lane.b32.xlu0 %v6864_v1, %s3872_s4  ;;  %3167 = vrot.lane.b32.xlu1 %v6874_v35, %s3872_s4 }
 0x435   :  { %v7467_v55 = vpop.permute.xlu0 %2921  ;;  %v7469_v58 = vpop.permute.xlu1 %2927 }
 0x436   :  { %9092 = vst [vmem:[#allocation99_spill] sm:$0xff] %v7469_v58 }
 0x437   :  { %3165 = vrot.lane.b32.xlu0 %v6905_v33, %s3872_s4  ;;  %3171 = vrot.lane.b32.xlu1 %v6921_v60, %s3872_s4 }
 0x439   :  { %v7475_v7 = vpop.permute.xlu0 %2925  ;;  %v7477_v12 = vpop.permute.xlu1 %2931 }
 0x43a   :  { %9093 = vst [vmem:[#allocation100_spill] sm:$0xff] %v7475_v7  ;;  %9094 = vst [vmem:[#allocation59_spill] sm:$0xff] %v7477_v12 }
 0x43b   :  { %3169 = vrot.lane.b32.xlu0 %v6934_v0, %s3872_s4  ;;  %3175 = vrot.lane.b32.xlu1 %v6950_v41, %s3872_s4 }
 0x43d   :  { %v7483_v34 = vpop.permute.xlu0 %2929  ;;  %v7485_v18 = vpop.permute.xlu1 %2935 }
 0x43e   :  { %9095 = vst [vmem:[#allocation32_spill] sm:$0xff] %v7483_v34  ;;  %9096 = vst [vmem:[#allocation50_spill] sm:$0xff] %v7485_v18 }
 0x43f   :  { %3173 = vrot.lane.b32.xlu0 %v6960_v5, %s3872_s4  ;;  %3179 = vrot.lane.b32.xlu1 %v6982_v16, %s3872_s4 }
 0x441   :  { %v7491_v10 = vpop.permute.xlu0 %2933  ;;  %v7493_v23 = vpop.permute.xlu1 %2939 }
 0x442   :  { %9097 = vst [vmem:[#allocation81_spill] sm:$0xff] %v7491_v10  ;;  %9098 = vst [vmem:[#allocation82_spill] sm:$0xff] %v7493_v23 }
 0x443   :  { %3177 = vrot.lane.b32.xlu0 %v6992_v19, %s3872_s4  ;;  %3183 = vrot.lane.b32.xlu1 %v7002_v8, %s3872_s4 }
 0x445   :  { %v7499_v25 = vpop.permute.xlu0 %2937  ;;  %v7501_v50 = vpop.permute.xlu1 %2943 }
 0x446   :  { %9099 = vst [vmem:[#allocation96_spill] sm:$0xff] %v7499_v25  ;;  %9100 = vst [vmem:[#allocation77_spill] sm:$0xff] %v7501_v50 }
 0x447   :  { %3181 = vrot.lane.b32.xlu0 %v7024_v28, %s3872_s4  ;;  %3187 = vrot.lane.b32.xlu1 %v7034_v13, %s3872_s4 }
 0x449   :  { %v7507_v36 = vpop.permute.xlu0 %2941  ;;  %v7509_v20 = vpop.permute.xlu1 %2947 }
 0x44a   :  { %9101 = vst [vmem:[#allocation69_spill] sm:$0xff] %v7507_v36  ;;  %9102 = vst [vmem:[#allocation51_spill] sm:$0xff] %v7509_v20 }
 0x44b   :  { %3185 = vrot.lane.b32.xlu0 %v7065_v14, %s3872_s4  ;;  %3191 = vrot.lane.b32.xlu1 %v7081_v52, %s3872_s4 }
 0x44d   :  { %v7515_v45 = vpop.permute.xlu0 %2945  ;;  %v7517_v47 = vpop.permute.xlu1 %2951 }
 0x44e   :  { %9103 = vst [vmem:[#allocation64_spill] sm:$0xff] %v7515_v45  ;;  %9104 = vst [vmem:[#allocation42_spill] sm:$0xff] %v7517_v47 }
 0x44f   :  { %3189 = vrot.lane.b32.xlu0 %v7094_v42, %s3872_s4  ;;  %3195 = vrot.lane.b32.xlu1 %v7110_v17, %s3872_s4 }
 0x451   :  { %v7523_v31 = vpop.permute.xlu0 %2949  ;;  %v7525_v43 = vpop.permute.xlu1 %2955 }
 0x452   :  { %9105 = vst [vmem:[#allocation78_spill] sm:$0xff] %v7523_v31  ;;  %9106 = vst [vmem:[#allocation60_spill] sm:$0xff] %v7525_v43 }
 0x453   :  { %3193 = vrot.lane.b32.xlu0 %v7120_v27, %s3872_s4  ;;  %3199 = vrot.lane.b32.xlu1 %v7142_v38, %s3872_s4 }
 0x455   :  { %v7531_v62 = vpop.permute.xlu0 %2953  ;;  %v7533_v44 = vpop.permute.xlu1 %2959 }
 0x456   :  { %9107 = vst [vmem:[#allocation105_spill] sm:$0xff] %v7531_v62  ;;  %9108 = vst [vmem:[#allocation106_spill] sm:$0xff] %v7533_v44 }
 0x457   :  { %3197 = vrot.lane.b32.xlu0 %v7152_v59, %s3872_s4  ;;  %3203 = vrot.lane.b32.xlu1 %v7157_v53, %s3872_s4 }
 0x459   :  { %v7539_v48 = vpop.permute.xlu0 %2957  ;;  %v7541_v31 = vpop.permute.xlu1 %3027 }
 0x45a   :  { %9109 = vst [vmem:[#allocation65_spill] sm:$0xff] %v7539_v48 }
 0x45b   :  { %3201 = vrot.lane.b32.xlu0 %v7179_v29, %s3872_s4  ;;  %3207 = vrot.lane.b32.xlu1 %v7182_v3, %s3872_s4 }
 0x45d   :  { %v7547_v43 = vpop.permute.xlu0 %3025  ;;  %v7549_v62 = vpop.permute.xlu1 %3031 }
 0x45f   :  { %3205 = vrot.lane.b32.xlu0 %v7203_v15, %s3872_s4  ;;  %3211 = vrot.lane.b32.xlu1 %v7212_v63, %s3872_s4 }
 0x461   :  { %v7555_v44 = vpop.permute.xlu0 %3029  ;;  %v7557_v48 = vpop.permute.xlu1 %3035 }
 0x463   :  { %3209 = vrot.lane.b32.xlu0 %v7231_v2, %s3872_s4  ;;  %3215 = vrot.lane.b32.xlu1 %v7234_v49, %s3872_s4 }
 0x465   :  { %v7563_v47 = vpop.permute.xlu0 %3033  ;;  %v7565_v45 = vpop.permute.xlu1 %3039 }
 0x467   :  { %3213 = vrot.lane.b32.xlu0 %v7251_v4, %s3872_s4  ;;  %3283 = vrot.lane.b32.xlu1 %v6790_v24, %s3873_s5 }
 0x469   :  { %v7571_v20 = vpop.permute.xlu0 %3037  ;;  %v7573_v36 = vpop.permute.xlu1 %3043 }
 0x46b   :  { %3281 = vrot.lane.b32.xlu0 %v6801_v61, %s3873_s5  ;;  %3287 = vrot.lane.b32.xlu1 %v6822_v40, %s3873_s5 }
 0x46d   :  { %v7579_v50 = vpop.permute.xlu0 %3041  ;;  %v7581_v25 = vpop.permute.xlu1 %3047 }
 0x46f   :  { %3285 = vrot.lane.b32.xlu0 %v6832_v46, %s3873_s5  ;;  %3291 = vrot.lane.b32.xlu1 %v6842_v32, %s3873_s5 }
 0x471   :  { %v7587_v23 = vpop.permute.xlu0 %3045  ;;  %v7589_v10 = vpop.permute.xlu1 %3051 }
 0x473   :  { %3289 = vrot.lane.b32.xlu0 %v6864_v1, %s3873_s5  ;;  %3295 = vrot.lane.b32.xlu1 %v6874_v35, %s3873_s5 }
 0x475   :  { %v7595_v18 = vpop.permute.xlu0 %3049  ;;  %v7597_v34 = vpop.permute.xlu1 %3055 }
 0x476   :  { %9110 = vst [vmem:[#allocation44_spill] sm:$0xff] %v7595_v18  ;;  %9111 = vst [vmem:[#allocation34_spill] sm:$0xff] %v7597_v34 }
 0x477   :  { %3293 = vrot.lane.b32.xlu0 %v6905_v33, %s3873_s5  ;;  %3299 = vrot.lane.b32.xlu1 %v6921_v60, %s3873_s5 }
 0x479   :  { %v7603_v12 = vpop.permute.xlu0 %3053  ;;  %v7605_v7 = vpop.permute.xlu1 %3059 }
 0x47a   :  { %9112 = vst [vmem:[#allocation61_spill] sm:$0xff] %v7603_v12  ;;  %9113 = vst [vmem:[#allocation87_spill] sm:$0xff] %v7605_v7 }
 0x47b   :  { %3297 = vrot.lane.b32.xlu0 %v6934_v0, %s3873_s5  ;;  %3303 = vrot.lane.b32.xlu1 %v6950_v41, %s3873_s5 }
 0x47d   :  { %v7611_v58 = vpop.permute.xlu0 %3057  ;;  %v7613_v18 = vpop.permute.xlu1 %3063 }
 0x47e   :  { %9114 = vst [vmem:[#allocation88_spill] sm:$0xff] %v7611_v58  ;;  %9115 = vst [vmem:[#allocation101_spill] sm:$0xff] %v7613_v18 }
 0x47f   :  { %3301 = vrot.lane.b32.xlu0 %v6960_v5, %s3873_s5  ;;  %3307 = vrot.lane.b32.xlu1 %v6982_v16, %s3873_s5 }
 0x481   :  { %v7619_v34 = vpop.permute.xlu0 %3061  ;;  %v7621_v12 = vpop.permute.xlu1 %3067 }
 0x482   :  { %9116 = vst [vmem:[#allocation102_spill] sm:$0xff] %v7619_v34  ;;  %9117 = vst [vmem:[#allocation36_spill] sm:$0xff] %v7621_v12 }
 0x483   :  { %3305 = vrot.lane.b32.xlu0 %v6992_v19, %s3873_s5  ;;  %3311 = vrot.lane.b32.xlu1 %v7002_v8, %s3873_s5 }
 0x485   :  { %v7627_v7 = vpop.permute.xlu0 %3065  ;;  %v7629_v58 = vpop.permute.xlu1 %3071 }
 0x486   :  { %9118 = vst [vmem:[#allocation97_spill] sm:$0xff] %v7627_v7  ;;  %9119 = vst [vmem:[#allocation70_spill] sm:$0xff] %v7629_v58 }
 0x487   :  { %3309 = vrot.lane.b32.xlu0 %v7024_v28, %s3873_s5  ;;  %3315 = vrot.lane.b32.xlu1 %v7034_v13, %s3873_s5 }
 0x489   :  { %v7635_v18 = vpop.permute.xlu0 %3069  ;;  %v7637_v34 = vpop.permute.xlu1 %3075 }
 0x48a   :  { %9120 = vst [vmem:[#allocation52_spill] sm:$0xff] %v7635_v18  ;;  %9121 = vst [vmem:[#allocation83_spill] sm:$0xff] %v7637_v34 }
 0x48b   :  { %3313 = vrot.lane.b32.xlu0 %v7065_v14, %s3873_s5  ;;  %3319 = vrot.lane.b32.xlu1 %v7081_v52, %s3873_s5 }
 0x48d   :  { %v7643_v12 = vpop.permute.xlu0 %3073  ;;  %v7645_v7 = vpop.permute.xlu1 %3079 }
 0x48e   :  { %9122 = vst [vmem:[#allocation84_spill] sm:$0xff] %v7643_v12  ;;  %9123 = vst [vmem:[#allocation98_spill] sm:$0xff] %v7645_v7 }
 0x48f   :  { %3317 = vrot.lane.b32.xlu0 %v7094_v42, %s3873_s5  ;;  %3323 = vrot.lane.b32.xlu1 %v7110_v17, %s3873_s5 }
 0x491   :  { %v7651_v58 = vpop.permute.xlu0 %3077  ;;  %v7653_v18 = vpop.permute.xlu1 %3083 }
 0x492   :  { %9124 = vst [vmem:[#allocation57_spill] sm:$0xff] %v7651_v58  ;;  %9125 = vst [vmem:[#allocation79_spill] sm:$0xff] %v7653_v18 }
 0x493   :  { %3321 = vrot.lane.b32.xlu0 %v7120_v27, %s3873_s5  ;;  %3327 = vrot.lane.b32.xlu1 %v7142_v38, %s3873_s5 }
 0x495   :  { %v7659_v34 = vpop.permute.xlu0 %3081  ;;  %v7661_v12 = vpop.permute.xlu1 %3087 }
 0x496   :  { %9126 = vst [vmem:[#allocation28_spill] sm:$0xff] %v7659_v34  ;;  %9127 = vst [vmem:[#allocation107_spill] sm:$0xff] %v7661_v12 }
 0x497   :  { %3325 = vrot.lane.b32.xlu0 %v7152_v59, %s3873_s5  ;;  %3331 = vrot.lane.b32.xlu1 %v7157_v53, %s3873_s5 }
 0x499   :  { %v7667_v7 = vpop.permute.xlu0 %3085  ;;  %v3156_v58 = vpop.permute.xlu1 %3155 }
 0x49a   :  { %9128 = vst [vmem:[#allocation9_spill] sm:$0xff] %v7667_v7 }
 0x49b   :  { %3329 = vrot.lane.b32.xlu0 %v7179_v29, %s3873_s5  ;;  %3335 = vrot.lane.b32.xlu1 %v7182_v3, %s3873_s5 }
 0x49d   :  { %v3154_v18 = vpop.permute.xlu0 %3153  ;;  %v3160_v38 = vpop.permute.xlu1 %3159 }
 0x49f   :  { %3333 = vrot.lane.b32.xlu0 %v7203_v15, %s3873_s5  ;;  %3339 = vrot.lane.b32.xlu1 %v7212_v63, %s3873_s5 }
 0x4a1   :  { %v7677_v12 = vpop.permute.xlu0 %3157  ;;  %v7679_v34 = vpop.permute.xlu1 %3163 }
 0x4a3   :  { %3337 = vrot.lane.b32.xlu0 %v7231_v2, %s3873_s5  ;;  %3343 = vrot.lane.b32.xlu1 %v7234_v49, %s3873_s5 }
 0x4a5   :  { %v7685_v7 = vpop.permute.xlu0 %3161  ;;  %v7687_v3 = vpop.permute.xlu1 %3167 }
 0x4a7   :  { %3341 = vrot.lane.b32.xlu0 %v7251_v4, %s3873_s5 }
 0x4a9   :  { %v7691_v15 = vpop.permute.xlu0 %3165  ;;  %v7693_v63 = vpop.permute.xlu1 %3171 }
 0x4ad   :  { %v7695_v29 = vpop.permute.xlu0 %3169  ;;  %v7697_v53 = vpop.permute.xlu1 %3175 }
 0x4b1   :  { %v7699_v59 = vpop.permute.xlu0 %3173  ;;  %v7701_v2 = vpop.permute.xlu1 %3179 }
 0x4b2   :  { %9129 = vst [vmem:[#allocation66_spill] sm:$0xff] %v7699_v59  ;;  %9130 = vst [vmem:[#allocation46_spill] sm:$0xff] %v7701_v2 }
 0x4b5   :  { %v7703_v49 = vpop.permute.xlu0 %3177  ;;  %v7705_v27 = vpop.permute.xlu1 %3183 }
 0x4b6   :  { %9131 = vst [vmem:[#allocation80_spill] sm:$0xff] %v7703_v49  ;;  %9132 = vst [vmem:[#allocation94_spill] sm:$0xff] %v7705_v27 }
 0x4b9   :  { %v7707_v17 = vpop.permute.xlu0 %3181  ;;  %v7709_v42 = vpop.permute.xlu1 %3187 }
 0x4ba   :  { %9133 = vst [vmem:[#allocation89_spill] sm:$0xff] %v7707_v17  ;;  %9134 = vst [vmem:[#allocation67_spill] sm:$0xff] %v7709_v42 }
 0x4bd   :  { %v7711_v4 = vpop.permute.xlu0 %3185  ;;  %v7713_v52 = vpop.permute.xlu1 %3191 }
 0x4be   :  { %9135 = vst [vmem:[#allocation5_spill] sm:$0xff] %v7711_v4 }
 0x4c1   :  { %v7715_v14 = vpop.permute.xlu0 %3189  ;;  %v7717_v13 = vpop.permute.xlu1 %3195 }
 0x4c2   :  { %9136 = vst [vmem:[#allocation3_spill] sm:$0xff] %v7715_v14  ;;  %9137 = vst [vmem:[#allocation4_spill] sm:$0xff] %v7717_v13  ;;  %v2994_v14 = vmax.f32 %v6790_v24, %v7409_v57 }
 0x4c5   :  { %v7719_v28 = vpop.permute.xlu0 %3193  ;;  %v7721_v59 = vpop.permute.xlu1 %3199 }
 0x4c6   :  { %9138 = vst [vmem:[#allocation2_spill] sm:$0xff] %v7719_v28  ;;  %9139 = vst [vmem:[#allocation6_spill] sm:$0xff] %v7721_v59  ;;  %v3122_v59 = vmax.f32 %v2994_v14, %v7541_v31  ;;  %v2998_v14 = vmax.f32 %v6842_v32, %v7429_v6  ;;  %v3000_v32 = vmax.f32 %v6874_v35, %v7437_v37 }
 0x4c7   :  { %v2999_v35 = vmax.f32 %v6905_v33, %v7443_v11  ;;  %v3002_v37 = vmax.f32 %v6921_v60, %v7445_v54  ;;  %v3001_v60 = vmax.f32 %v6934_v0, %v7451_v21 }
 0x4c8   :  { %v3128_v6 = vmax.f32 %v3000_v32, %v7565_v45  ;;  %v9155_v32 = vld [vmem:[#allocation95_spill] sm:$0xff] }
 0x4c9   :  { %v7723_v2 = vpop.permute.xlu0 %3197  ;;  %v7725_v49 = vpop.permute.xlu1 %3203  ;;  %v3127_v45 = vmax.f32 %v2999_v35, %v7571_v20  ;;  %v3129_v31 = vmax.f32 %v3001_v60, %v7579_v50  ;;  %v9161_v60 = vld [vmem:[#allocation48_spill] sm:$0xff] }
 0x4ca   :  { %9140 = vst [vmem:[#allocation8_spill] sm:$0xff] %v7723_v2  ;;  %9141 = vst [vmem:[#allocation10_spill] sm:$0xff] %v7725_v49  ;;  %v2993_v49 = vmax.f32 %v6801_v61, %v7419_v51 }
 0x4cb   :  { %v3255_v54 = vmax.f32 %v3127_v45, %v7691_v15  ;;  %v3006_v15 = vmax.f32 %v6982_v16, %v7461_v56  ;;  %v3005_v16 = vmax.f32 %v6992_v19, %v7467_v55  ;;  %v9148_v56 = vld [vmem:[#allocation66_spill] sm:$0xff] }
 0x4cd   :  { %v7727_v27 = vpop.permute.xlu0 %3201  ;;  %v7729_v17 = vpop.permute.xlu1 %3207 }
 0x4ce   :  { %9142 = vst [vmem:[#allocation11_spill] sm:$0xff] %v7727_v27  ;;  %9143 = vst [vmem:[#allocation53_spill] sm:$0xff] %v7729_v17  ;;  %v2996_v27 = vmax.f32 %v6822_v40, %v7421_v39  ;;  %v3250_v17 = vmax.f32 %v3122_v59, %v3156_v58 }
 0x4d0   :  { %v3124_v24 = vmax.f32 %v2996_v27, %v7549_v62 }
 0x4d1   :  { %v7731_v42 = vpop.permute.xlu0 %3205  ;;  %v7733_v4 = vpop.permute.xlu1 %3211 }
 0x4d2   :  { %9144 = vst [vmem:[#allocation12_spill] sm:$0xff] %v7731_v42  ;;  %9145 = vst [vmem:[#allocation13_spill] sm:$0xff] %v7733_v4  ;;  %v3121_v4 = vmax.f32 %v2993_v49, %v7547_v43  ;;  %v3252_v51 = vmax.f32 %v3124_v24, %v3160_v38  ;;  %v3126_v49 = vmax.f32 %v2998_v14, %v7557_v48  ;;  %v9149_v24 = vld [vmem:[#allocation46_spill] sm:$0xff] }
 0x4d4   :  { %v3249_v61 = vmax.f32 %v3121_v4, %v3154_v18  ;;  %v3254_v38 = vmax.f32 %v3126_v49, %v7679_v34 }
 0x4d5   :  { %v7737_v13 = vpop.permute.xlu0 %3209  ;;  %v7739_v28 = vpop.permute.xlu1 %3215 }
 0x4d6   :  { %9146 = vst [vmem:[#allocation14_spill] sm:$0xff] %v7739_v28  ;;  %v2995_v28 = vmax.f32 %v6832_v46, %v7427_v30  ;;  %v2997_v46 = vmax.f32 %v6864_v1, %v7435_v9 }
 0x4d8   :  { %v3123_v39 = vmax.f32 %v2995_v28, %v7555_v44  ;;  %v3125_v30 = vmax.f32 %v2997_v46, %v7563_v47  ;;  %v3130_v47 = vmax.f32 %v3002_v37, %v7573_v36  ;;  %v3134_v44 = vmax.f32 %v3006_v15, %v7589_v10  ;;  %v9154_v46 = vld [vmem:[#allocation59_spill] sm:$0xff]  ;;  %v9158_v37 = vld [vmem:[#allocation61_spill] sm:$0xff] }
 0x4d9   :  { %v7746_v2 = vpop.permute.xlu0 %3213  ;;  %v3284_v42 = vpop.permute.xlu1 %3283 }
 0x4da   :  { %v7750_v57 = vmax.f32 %v3250_v17, %v3284_v42  ;;  %v3251_v17 = vmax.f32 %v3123_v39, %v7677_v12  ;;  %v3253_v58 = vmax.f32 %v3125_v30, %v7685_v7  ;;  %v3256_v12 = vmax.f32 %v3128_v6, %v7687_v3  ;;  %v9153_v39 = vld [vmem:[#allocation7_spill] sm:$0xff] }
 0x4db   :  { %v3004_v3 = vmax.f32 %v6950_v41, %v7453_v22  ;;  %v3258_v7 = vmax.f32 %v3130_v47, %v7693_v63  ;;  %v3003_v41 = vmax.f32 %v6960_v5, %v7459_v26  ;;  %v3257_v63 = vmax.f32 %v3129_v31, %v7695_v29  ;;  %v9160_v47 = vld [vmem:[#allocation32_spill] sm:$0xff] }
 0x4dc   :  { %3443 = vrot.lane.b32.xlu1 %v7750_v57, %s3873_s5  ;;  %v3262_v14 = vmax.f32 %v3134_v44, %v9149_v24  ;;  %v9171_v24 = vld [vmem:[#allocation38_spill] sm:$0xff] }
 0x4dd   :  { %v3282_v40 = vpop.permute.xlu0 %3281  ;;  %v3288_v59 = vpop.permute.xlu1 %3287  ;;  %v3132_v43 = vmax.f32 %v3004_v3, %v7581_v25  ;;  %v3131_v62 = vmax.f32 %v3003_v41, %v7587_v23  ;;  %v3009_v3 = vmax.f32 %v9161_v60, %v9160_v47  ;;  %v9181_v47 = vld [vmem:[#allocation97_spill] sm:$0xff] }
 0x4de   :  { %v7760_v27 = vmax.f32 %v3249_v61, %v3282_v40  ;;  %v7762_v42 = vmax.f32 %v3252_v51, %v3288_v59  ;;  %v9150_v61 = vld [vmem:[#allocation44_spill] sm:$0xff]  ;;  %v9151_v40 = vld [vmem:[#allocation34_spill] sm:$0xff] }
 0x4df   :  { %v3260_v22 = vmax.f32 %v3132_v43, %v7697_v53  ;;  %v9147_v53 = vld [vmem:[#allocation99_spill] sm:$0xff]  ;;  %v3259_v48 = vmax.f32 %v3131_v62, %v9148_v56  ;;  %v3133_v51 = vmax.f32 %v3005_v16, %v9150_v61 }
 0x4e0   :  { %3441 = vrot.lane.b32.xlu0 %v7760_v27, %s3873_s5  ;;  %3447 = vrot.lane.b32.xlu1 %v7762_v42, %s3873_s5  ;;  %v3008_v29 = vmax.f32 %v7002_v8, %v9147_v53  ;;  %v9152_v8 = vld [vmem:[#allocation100_spill] sm:$0xff]  ;;  %v9165_v43 = vld [vmem:[#allocation67_spill] sm:$0xff]  ;;  %v9168_v53 = vld [vmem:[#allocation81_spill] sm:$0xff] }
 0x4e1   :  { %v3286_v28 = vpop.permute.xlu0 %3285  ;;  %v3292_v4 = vpop.permute.xlu1 %3291  ;;  %v3007_v49 = vmax.f32 %v9153_v39, %v9152_v8  ;;  %v9174_v39 = vld [vmem:[#allocation36_spill] sm:$0xff] }
 0x4e2   :  { %v7776_v1 = vmax.f32 %v3251_v17, %v3286_v28  ;;  %v7778_v9 = vmax.f32 %v3254_v38, %v3292_v4  ;;  %v3136_v59 = vmax.f32 %v3008_v29, %v9151_v40  ;;  %v3010_v17 = vmax.f32 %v9155_v32, %v9154_v46  ;;  %v9156_v38 = vld [vmem:[#allocation80_spill] sm:$0xff]  ;;  %v9157_v4 = vld [vmem:[#allocation94_spill] sm:$0xff] }
 0x4e3   :  { %v3261_v28 = vmax.f32 %v3133_v51, %v9156_v38  ;;  %v9169_v29 = vld [vmem:[#allocation62_spill] sm:$0xff]  ;;  %v9176_v38 = vld [vmem:[#allocation75_spill] sm:$0xff] }
 0x4e4   :  { %3445 = vrot.lane.b32.xlu0 %v7776_v1, %s3873_s5  ;;  %3451 = vrot.lane.b32.xlu1 %v7778_v9, %s3873_s5  ;;  %v3264_v30 = vmax.f32 %v3136_v59, %v9157_v4  ;;  %v3011_v56 = vmax.f32 %v9169_v29, %v9168_v53  ;;  %v9173_v59 = vld [vmem:[#allocation102_spill] sm:$0xff] }
 0x4e5   :  { %v3290_v34 = vpop.permute.xlu0 %3289  ;;  %v3296_v18 = vpop.permute.xlu1 %3295  ;;  %v9178_v4 = vld [vmem:[#allocation90_spill] sm:$0xff] }
 0x4e6   :  { %v7792_v33 = vmax.f32 %v3253_v58, %v3290_v34  ;;  %v7794_v11 = vmax.f32 %v3256_v12, %v3296_v18  ;;  %v3135_v58 = vmax.f32 %v3007_v49, %v9158_v37  ;;  %v9159_v12 = vld [vmem:[#allocation87_spill] sm:$0xff]  ;;  %v3139_v8 = vmax.f32 %v3011_v56, %v9173_v59  ;;  %v9180_v37 = vld [vmem:[#allocation4_spill] sm:$0xff]  ;;  %v9193_v59 = vld [vmem:[#allocation42_spill] sm:$0xff] }
 0x4e7   :  { %v3138_v34 = vmax.f32 %v3010_v17, %v9159_v12  ;;  %v9175_v17 = vld [vmem:[#allocation96_spill] sm:$0xff] }
 0x4e8   :  { %3449 = vrot.lane.b32.xlu0 %v7792_v33, %s3873_s5  ;;  %3455 = vrot.lane.b32.xlu1 %v7794_v11, %s3873_s5  ;;  %v9189_v56 = vld [vmem:[#allocation52_spill] sm:$0xff] }
 0x4e9   :  { %v3294_v36 = vpop.permute.xlu0 %3293  ;;  %v3300_v20 = vpop.permute.xlu1 %3299  ;;  %v3266_v41 = vmax.f32 %v3138_v34, %v9165_v43 }
 0x4ea   :  { %v7808_v0 = vmax.f32 %v3255_v54, %v3294_v36  ;;  %v7810_v21 = vmax.f32 %v3258_v7, %v3300_v20  ;;  %v9162_v54 = vld [vmem:[#allocation50_spill] sm:$0xff]  ;;  %v9163_v7 = vld [vmem:[#allocation103_spill] sm:$0xff]  ;;  %v9164_v20 = vld [vmem:[#allocation89_spill] sm:$0xff] }
 0x4eb   :  { %v3012_v36 = vmax.f32 %v9163_v7, %v9162_v54  ;;  %v3263_v31 = vmax.f32 %v3135_v58, %v9164_v20  ;;  %v9183_v20 = vld [vmem:[#allocation69_spill] sm:$0xff] }
 0x4ec   :  { %3453 = vrot.lane.b32.xlu0 %v7808_v0, %s3873_s5  ;;  %3459 = vrot.lane.b32.xlu1 %v7810_v21, %s3873_s5 }
 0x4ed   :  { %v3298_v25 = vpop.permute.xlu0 %3297  ;;  %v3304_v50 = vpop.permute.xlu1 %3303 }
 0x4ee   :  { %v7824_v5 = vmax.f32 %v3257_v63, %v3298_v25  ;;  %v7826_v26 = vmax.f32 %v3260_v22, %v3304_v50  ;;  %v9166_v22 = vld [vmem:[#allocation88_spill] sm:$0xff]  ;;  %v9167_v50 = vld [vmem:[#allocation101_spill] sm:$0xff] }
 0x4ef   :  { %v3137_v25 = vmax.f32 %v3009_v3, %v9166_v22  ;;  %v3140_v62 = vmax.f32 %v3012_v36, %v9167_v50  ;;  %v9182_v3 = vld [vmem:[#allocation70_spill] sm:$0xff] }
 0x4f0   :  { %3457 = vrot.lane.b32.xlu0 %v7824_v5, %s3873_s5  ;;  %3463 = vrot.lane.b32.xlu1 %v7826_v26, %s3873_s5  ;;  %v9187_v22 = vld [vmem:[#allocation2_spill] sm:$0xff] }
 0x4f1   :  { %v3302_v10 = vpop.permute.xlu0 %3301  ;;  %v3308_v23 = vpop.permute.xlu1 %3307  ;;  %v3268_v61 = vmax.f32 %v3140_v62, %v7713_v52  ;;  %v9177_v52 = vld [vmem:[#allocation77_spill] sm:$0xff]  ;;  %v9188_v50 = vld [vmem:[#allocation6_spill] sm:$0xff] }
 0x4f2   :  { %v7840_v19 = vmax.f32 %v3259_v48, %v3302_v10  ;;  %v7842_v55 = vmax.f32 %v3262_v14, %v3308_v23  ;;  %v9170_v48 = vld [vmem:[#allocation82_spill] sm:$0xff]  ;;  %v9172_v10 = vld [vmem:[#allocation5_spill] sm:$0xff] }
 0x4f3   :  { %v3014_v14 = vmax.f32 %v9171_v24, %v9170_v48  ;;  %v3265_v23 = vmax.f32 %v3137_v25, %v9172_v10  ;;  %v9190_v24 = vld [vmem:[#allocation83_spill] sm:$0xff] }
 0x4f4   :  { %3461 = vrot.lane.b32.xlu0 %v7840_v19, %s3873_s5  ;;  %3467 = vrot.lane.b32.xlu1 %v7842_v55, %s3873_s5 }
 0x4f5   :  { %v3306_v6 = vpop.permute.xlu0 %3305  ;;  %v3312_v35 = vpop.permute.xlu1 %3311  ;;  %v3142_v49 = vmax.f32 %v3014_v14, %v9174_v39 }
 0x4f6   :  { %v7856_v18 = vmax.f32 %v3261_v28, %v3306_v6  ;;  %v7858_v45 = vmax.f32 %v3264_v30, %v3312_v35  ;;  %v3013_v28 = vmax.f32 %v9176_v38, %v9175_v17  ;;  %v3016_v30 = vmax.f32 %v9178_v4, %v9177_v52  ;;  %v9179_v6 = vld [vmem:[#allocation3_spill] sm:$0xff]  ;;  %v9196_v38 = vld [vmem:[#allocation10_spill] sm:$0xff] }
 0x4f7   :  { %v3267_v35 = vmax.f32 %v3139_v8, %v9179_v6  ;;  %v3270_v58 = vmax.f32 %v3142_v49, %v9180_v37  ;;  %v9194_v8 = vld [vmem:[#allocation63_spill] sm:$0xff]  ;;  %v9195_v49 = vld [vmem:[#allocation8_spill] sm:$0xff] }
 0x4f8   :  { %3465 = vrot.lane.b32.xlu0 %v7856_v18, %s3873_s5  ;;  %3471 = vrot.lane.b32.xlu1 %v7858_v45, %s3873_s5  ;;  %v3141_v60 = vmax.f32 %v3013_v28, %v9181_v47  ;;  %v3144_v54 = vmax.f32 %v3016_v30, %v9182_v3  ;;  %v3020_v39 = vmax.f32 %v9194_v8, %v9193_v59  ;;  %v9197_v30 = vld [vmem:[#allocation84_spill] sm:$0xff] }
 0x4f9   :  { %v3310_v15 = vpop.permute.xlu0 %3309  ;;  %v3316_v63 = vpop.permute.xlu1 %3315  ;;  %v9200_v47 = vld [vmem:[#allocation40_spill] sm:$0xff] }
 0x4fa   :  { %v7872_v44 = vmax.f32 %v3263_v31, %v3310_v15  ;;  %v7874_v16 = vmax.f32 %v3266_v41, %v3316_v63  ;;  %v9184_v31 = vld [vmem:[#allocation76_spill] sm:$0xff]  ;;  %v9185_v41 = vld [vmem:[#allocation51_spill] sm:$0xff]  ;;  %v3269_v25 = vmax.f32 %v3141_v60, %v9187_v22  ;;  %v3272_v62 = vmax.f32 %v3144_v54, %v9188_v50  ;;  %v9202_v54 = vld [vmem:[#allocation58_spill] sm:$0xff] }
 0x4fb   :  { %v3015_v43 = vmax.f32 %v9184_v31, %v9183_v20  ;;  %v9186_v15 = vld [vmem:[#allocation104_spill] sm:$0xff]  ;;  %v9203_v31 = vld [vmem:[#allocation11_spill] sm:$0xff] }
 0x4fc   :  { %3469 = vrot.lane.b32.xlu0 %v7872_v44, %s3873_s5  ;;  %3475 = vrot.lane.b32.xlu1 %v7874_v16, %s3873_s5  ;;  %v3018_v63 = vmax.f32 %v9186_v15, %v9185_v41  ;;  %v9201_v3 = vld [vmem:[#allocation60_spill] sm:$0xff]  ;;  %v9204_v41 = vld [vmem:[#allocation53_spill] sm:$0xff] }
 0x4fd   :  { %v3314_v51 = vpop.permute.xlu0 %3313  ;;  %v3320_v40 = vpop.permute.xlu1 %3319  ;;  %v3143_v48 = vmax.f32 %v3015_v43, %v9189_v56  ;;  %v3022_v20 = vmax.f32 %v9202_v54, %v9201_v3  ;;  %v9211_v59 = vld [vmem:[#allocation12_spill] sm:$0xff]  ;;  %v9219_v3 = vld [vmem:[#allocation14_spill] sm:$0xff] }
 0x4fe   :  { %v7888_v46 = vmax.f32 %v3265_v23, %v3314_v51  ;;  %v7890_v32 = vmax.f32 %v3268_v61, %v3320_v40  ;;  %v3146_v14 = vmax.f32 %v3018_v63, %v9190_v24  ;;  %v9191_v61 = vld [vmem:[#allocation64_spill] sm:$0xff]  ;;  %v9192_v51 = vld [vmem:[#allocation85_spill] sm:$0xff]  ;;  %v9208_v24 = vld [vmem:[#allocation30_spill] sm:$0xff] }
 0x4ff   :  { %v3017_v40 = vmax.f32 %v9192_v51, %v9191_v61  ;;  %v3271_v17 = vmax.f32 %v3143_v48, %v9195_v49  ;;  %v9207_v48 = vld [vmem:[#allocation105_spill] sm:$0xff]  ;;  %v9209_v61 = vld [vmem:[#allocation106_spill] sm:$0xff] }
 0x500   :  { %3473 = vrot.lane.b32.xlu0 %v7888_v46, %s3873_s5  ;;  %3479 = vrot.lane.b32.xlu1 %v7890_v32, %s3873_s5  ;;  %v3274_v28 = vmax.f32 %v3146_v14, %v9196_v38  ;;  %v3021_v14 = vmax.f32 %v9208_v24, %v9207_v48  ;;  %v9210_v51 = vld [vmem:[#allocation86_spill] sm:$0xff] }
 0x501   :  { %v3318_v12 = vpop.permute.xlu0 %3317  ;;  %v3324_v34 = vpop.permute.xlu1 %3323  ;;  %v3145_v6 = vmax.f32 %v3017_v40, %v9197_v30  ;;  %v3024_v40 = vmax.f32 %v9210_v51, %v9209_v61 }
 0x502   :  { %v7904_v7 = vmax.f32 %v3267_v35, %v3318_v12  ;;  %v7906_v36 = vmax.f32 %v3270_v58, %v3324_v34  ;;  %v9198_v35 = vld [vmem:[#allocation98_spill] sm:$0xff] }
 0x503   :  { %v3148_v37 = vmax.f32 %v3020_v39, %v9198_v35  ;;  %v9199_v34 = vld [vmem:[#allocation78_spill] sm:$0xff]  ;;  %v3273_v43 = vmax.f32 %v3145_v6, %v9203_v31  ;;  %v9212_v39 = vld [vmem:[#allocation13_spill] sm:$0xff] }
 0x504   :  { %3477 = vrot.lane.b32.xlu0 %v7904_v7, %s3873_s5  ;;  %3483 = vrot.lane.b32.xlu1 %v7906_v36, %s3873_s5  ;;  %v3019_v60 = vmax.f32 %v9200_v47, %v9199_v34  ;;  %v9218_v34 = vld [vmem:[#allocation68_spill] sm:$0xff] }
 0x505   :  { %v3322_v53 = vpop.permute.xlu0 %3321  ;;  %v3328_v29 = vpop.permute.xlu1 %3327  ;;  %v3276_v15 = vmax.f32 %v3148_v37, %v9204_v41  ;;  %v9217_v37 = vld [vmem:[#allocation65_spill] sm:$0xff] }
 0x506   :  { %v7920_v10 = vmax.f32 %v3269_v25, %v3322_v53  ;;  %v7922_v23 = vmax.f32 %v3272_v62, %v3328_v29  ;;  %v9205_v25 = vld [vmem:[#allocation57_spill] sm:$0xff]  ;;  %v9206_v62 = vld [vmem:[#allocation79_spill] sm:$0xff]  ;;  %v3023_v47 = vmax.f32 %v9218_v34, %v9217_v37 }
 0x507   :  { %v3147_v50 = vmax.f32 %v3019_v60, %v9205_v25  ;;  %v3150_v53 = vmax.f32 %v3022_v20, %v9206_v62 }
 0x508   :  { %3481 = vrot.lane.b32.xlu0 %v7920_v10, %s3873_s5  ;;  %3487 = vrot.lane.b32.xlu1 %v7922_v23, %s3873_s5 }
 0x509   :  { %v3326_v52 = vpop.permute.xlu0 %3325  ;;  %v3332_v4 = vpop.permute.xlu1 %3331  ;;  %v3275_v8 = vmax.f32 %v3147_v50, %v9211_v59  ;;  %v3278_v49 = vmax.f32 %v3150_v53, %v9212_v39 }
 0x50a   :  { %v7936_v58 = vmax.f32 %v3271_v17, %v3326_v52  ;;  %v7938_v12 = vmax.f32 %v3274_v28, %v3332_v4  ;;  %v9213_v28 = vld [vmem:[#allocation28_spill] sm:$0xff]  ;;  %v9214_v4 = vld [vmem:[#allocation107_spill] sm:$0xff] }
 0x50b   :  { %v3149_v52 = vmax.f32 %v3021_v14, %v9213_v28  ;;  %v3152_v30 = vmax.f32 %v3024_v40, %v9214_v4 }
 0x50c   :  { %3485 = vrot.lane.b32.xlu0 %v7936_v58, %s3873_s5  ;;  %3491 = vrot.lane.b32.xlu1 %v7938_v12, %s3873_s5 }
 0x50d   :  { %v3330_v63 = vpop.permute.xlu0 %3329  ;;  %v3336_v22 = vpop.permute.xlu1 %3335  ;;  %v3277_v60 = vmax.f32 %v3149_v52, %v7737_v13  ;;  %v3280_v54 = vmax.f32 %v3152_v30, %v9219_v3 }
 0x50e   :  { %v7952_v29 = vmax.f32 %v3273_v43, %v3330_v63  ;;  %v7954_v56 = vmax.f32 %v3276_v15, %v3336_v22  ;;  %v9220_v43 = vld [vmem:[#allocation9_spill] sm:$0xff] }
 0x50f   :  { %v3151_v41 = vmax.f32 %v3023_v47, %v9220_v43 }
 0x510   :  { %3489 = vrot.lane.b32.xlu0 %v7952_v29, %s3873_s5  ;;  %3495 = vrot.lane.b32.xlu1 %v7954_v56, %s3873_s5 }
 0x511   :  { %v3334_v17 = vpop.permute.xlu0 %3333  ;;  %v3340_v38 = vpop.permute.xlu1 %3339  ;;  %v3279_v22 = vmax.f32 %v3151_v41, %v7746_v2 }
 0x512   :  { %v7968_v6 = vmax.f32 %v3275_v8, %v3334_v17  ;;  %v7970_v35 = vmax.f32 %v3278_v49, %v3340_v38 }
 0x514   :  { %9215 = vst [vmem:[#allocation15_spill] sm:$0xff] %v7968_v6  ;;  %9216 = vst [vmem:[#allocation16_spill] sm:$0xff] %v7970_v35  ;;  %3493 = vrot.lane.b32.xlu0 %v7968_v6, %s3873_s5  ;;  %3499 = vrot.lane.b32.xlu1 %v7970_v35, %s3873_s5 }
 0x515   :  { %v3338_v20 = vpop.permute.xlu0 %3337  ;;  %v3344_v31 = vpop.permute.xlu1 %3343 }
 0x516   :  { %v7981_v15 = vmax.f32 %v3277_v60, %v3338_v20  ;;  %v7983_v63 = vmax.f32 %v3280_v54, %v3344_v31 }
 0x518   :  { %9221 = vst [vmem:[#allocation17_spill] sm:$0xff] %v7981_v15  ;;  %9222 = vst [vmem:[#allocation18_spill] sm:$0xff] %v7983_v63  ;;  %3497 = vrot.lane.b32.xlu0 %v7981_v15, %s3873_s5  ;;  %3503 = vrot.lane.b32.xlu1 %v7983_v63, %s3873_s5 }
 0x519   :  { %v3342_v13 = vpop.permute.xlu0 %3341 }
 0x51a   :  { %v7990_v25 = vmax.f32 %v3279_v22, %v3342_v13 }
 0x51c   :  { %9223 = vst [vmem:[#allocation19_spill] sm:$0xff] %v7990_v25  ;;  %3501 = vrot.lane.b32.xlu0 %v7990_v25, %s3873_s5  ;;  %3571 = vrot.lane.b32.xlu1 %v7750_v57, %s3874_s15 }
 0x520   :  { %3569 = vrot.lane.b32.xlu0 %v7760_v27, %s3874_s15  ;;  %3575 = vrot.lane.b32.xlu1 %v7762_v42, %s3874_s15 }
 0x524   :  { %3573 = vrot.lane.b32.xlu0 %v7776_v1, %s3874_s15  ;;  %3579 = vrot.lane.b32.xlu1 %v7778_v9, %s3874_s15 }
 0x528   :  { %3577 = vrot.lane.b32.xlu0 %v7792_v33, %s3874_s15  ;;  %3583 = vrot.lane.b32.xlu1 %v7794_v11, %s3874_s15 }
 0x52c   :  { %3581 = vrot.lane.b32.xlu0 %v7808_v0, %s3874_s15  ;;  %3587 = vrot.lane.b32.xlu1 %v7810_v21, %s3874_s15 }
 0x530   :  { %3585 = vrot.lane.b32.xlu0 %v7824_v5, %s3874_s15  ;;  %3591 = vrot.lane.b32.xlu1 %v7826_v26, %s3874_s15 }
 0x534   :  { %3589 = vrot.lane.b32.xlu0 %v7840_v19, %s3874_s15  ;;  %3595 = vrot.lane.b32.xlu1 %v7842_v55, %s3874_s15 }
 0x538   :  { %3593 = vrot.lane.b32.xlu0 %v7856_v18, %s3874_s15  ;;  %3599 = vrot.lane.b32.xlu1 %v7858_v45, %s3874_s15 }
 0x53c   :  { %3597 = vrot.lane.b32.xlu0 %v7872_v44, %s3874_s15  ;;  %3603 = vrot.lane.b32.xlu1 %v7874_v16, %s3874_s15 }
 0x540   :  { %3601 = vrot.lane.b32.xlu0 %v7888_v46, %s3874_s15  ;;  %3607 = vrot.lane.b32.xlu1 %v7890_v32, %s3874_s15 }
 0x544   :  { %3605 = vrot.lane.b32.xlu0 %v7904_v7, %s3874_s15  ;;  %3611 = vrot.lane.b32.xlu1 %v7906_v36, %s3874_s15 }
 0x548   :  { %3609 = vrot.lane.b32.xlu0 %v7920_v10, %s3874_s15  ;;  %3615 = vrot.lane.b32.xlu1 %v7922_v23, %s3874_s15 }
 0x54c   :  { %3613 = vrot.lane.b32.xlu0 %v7936_v58, %s3874_s15  ;;  %3619 = vrot.lane.b32.xlu1 %v7938_v12, %s3874_s15 }
 0x54e   :  { %v3444_v2 = vpop.permute.xlu1 %3443 }
 0x54f   :  { %v3538_v13 = vmax.f32 %v7750_v57, %v3444_v2 }
 0x550   :  { %3617 = vrot.lane.b32.xlu0 %v7952_v29, %s3874_s15  ;;  %3623 = vrot.lane.b32.xlu1 %v7954_v56, %s3874_s15 }
 0x552   :  { %v3442_v50 = vpop.permute.xlu0 %3441  ;;  %v3448_v62 = vpop.permute.xlu1 %3447 }
 0x554   :  { %3621 = vrot.lane.b32.xlu0 %v7968_v6, %s3874_s15  ;;  %3627 = vrot.lane.b32.xlu1 %v7970_v35, %s3874_s15  ;;  %v3537_v35 = vmax.f32 %v7760_v27, %v3442_v50  ;;  %v3540_v6 = vmax.f32 %v7762_v42, %v3448_v62 }
 0x556   :  { %v3446_v53 = vpop.permute.xlu0 %3445  ;;  %v3452_v48 = vpop.permute.xlu1 %3451 }
 0x557   :  { %v3539_v57 = vmax.f32 %v7776_v1, %v3446_v53  ;;  %v3542_v2 = vmax.f32 %v7778_v9, %v3452_v48 }
 0x558   :  { %3625 = vrot.lane.b32.xlu0 %v7981_v15, %s3874_s15  ;;  %3631 = vrot.lane.b32.xlu1 %v7983_v63, %s3874_s15 }
 0x55a   :  { %v3450_v24 = vpop.permute.xlu0 %3449  ;;  %v3456_v14 = vpop.permute.xlu1 %3455 }
 0x55b   :  { %v3544_v1 = vmax.f32 %v7794_v11, %v3456_v14 }
 0x55c   :  { %3629 = vrot.lane.b32.xlu0 %v7990_v25, %s3874_s15 }
 0x55e   :  { %v3454_v61 = vpop.permute.xlu0 %3453  ;;  %v3460_v51 = vpop.permute.xlu1 %3459 }
 0x55f   :  { %v3543_v53 = vmax.f32 %v7808_v0, %v3454_v61 }
 0x562   :  { %v8058_v40 = vpop.permute.xlu0 %3457  ;;  %v8060_v59 = vpop.permute.xlu1 %3463 }
 0x563   :  { %v3548_v0 = vmax.f32 %v7826_v26, %v8060_v59 }
 0x566   :  { %v8062_v8 = vpop.permute.xlu0 %3461  ;;  %v8064_v39 = vpop.permute.xlu1 %3467 }
 0x567   :  { %v3550_v26 = vmax.f32 %v7842_v55, %v8064_v39 }
 0x56a   :  { %v8066_v49 = vpop.permute.xlu0 %3465  ;;  %v8068_v17 = vpop.permute.xlu1 %3471 }
 0x56b   :  { %v3552_v55 = vmax.f32 %v7858_v45, %v8068_v17 }
 0x56e   :  { %v8070_v38 = vpop.permute.xlu0 %3469  ;;  %v8072_v28 = vpop.permute.xlu1 %3475 }
 0x56f   :  { %v3554_v45 = vmax.f32 %v7874_v16, %v8072_v28 }
 0x572   :  { %v8074_v52 = vpop.permute.xlu0 %3473  ;;  %v8076_v4 = vpop.permute.xlu1 %3479 }
 0x573   :  { %v3556_v16 = vmax.f32 %v7890_v32, %v8076_v4 }
 0x576   :  { %v8078_v30 = vpop.permute.xlu0 %3477  ;;  %v8080_v37 = vpop.permute.xlu1 %3483 }
 0x577   :  { %v3558_v32 = vmax.f32 %v7906_v36, %v8080_v37 }
 0x57a   :  { %v8082_v34 = vpop.permute.xlu0 %3481  ;;  %v8084_v47 = vpop.permute.xlu1 %3487 }
 0x57b   :  { %v3560_v36 = vmax.f32 %v7922_v23, %v8084_v47 }
 0x57e   :  { %v8086_v60 = vpop.permute.xlu0 %3485  ;;  %v8088_v3 = vpop.permute.xlu1 %3491 }
 0x57f   :  { %v3562_v23 = vmax.f32 %v7938_v12, %v8088_v3 }
 0x582   :  { %v8090_v54 = vpop.permute.xlu0 %3489  ;;  %v8092_v20 = vpop.permute.xlu1 %3495 }
 0x583   :  { %v3564_v12 = vmax.f32 %v7954_v56, %v8092_v20 }
 0x586   :  { %v8094_v31 = vpop.permute.xlu0 %3493  ;;  %v8096_v43 = vpop.permute.xlu1 %3499 }
 0x587   :  { %9224 = vst [vmem:[#allocation20_spill] sm:$0xff] %v8094_v31  ;;  %9225 = vst [vmem:[#allocation21_spill] sm:$0xff] %v8096_v43 }
 0x58a   :  { %v8098_v41 = vpop.permute.xlu0 %3497  ;;  %v8100_v22 = vpop.permute.xlu1 %3503 }
 0x58b   :  { %9226 = vst [vmem:[#allocation23_spill] sm:$0xff] %v8098_v41  ;;  %9227 = vst [vmem:[#allocation25_spill] sm:$0xff] %v8100_v22 }
 0x58e   :  { %v8103_v25 = vpop.permute.xlu0 %3501  ;;  %v3572_v63 = vpop.permute.xlu1 %3571 }
 0x58f   :  { %v3666_v15 = vmax.f32 %v3538_v13, %v3572_v63 }
 0x591   :  { %3800 = vst.msk [vmem:[%s8288_s1 + $0xc2] sm:$0x3] %vm3698_vm7, %v3666_v15 }
 0x592   :  { %v3570_v43 = vpop.permute.xlu0 %3569  ;;  %v3576_v41 = vpop.permute.xlu1 %3575 }
 0x593   :  { %v3665_v31 = vmax.f32 %v3537_v35, %v3570_v43  ;;  %v3668_v22 = vmax.f32 %v3540_v6, %v3576_v41  ;;  %v3541_v6 = vmax.f32 %v7792_v33, %v3450_v24  ;;  %v3546_v33 = vmax.f32 %v7810_v21, %v3460_v51 }
 0x595   :  { %3799 = vst.msk [vmem:[%s8288_s1 + $0xc0] sm:$0x3] %vm3698_vm7, %v3665_v31  ;;  %3802 = vst.msk [vmem:[%s8288_s1 + $0xc6] sm:$0x3] %vm3698_vm7, %v3668_v22  ;;  %v3545_v31 = vmax.f32 %v7824_v5, %v8058_v40  ;;  %v3547_v5 = vmax.f32 %v7840_v19, %v8062_v8  ;;  %v3549_v19 = vmax.f32 %v7856_v18, %v8066_v49 }
 0x596   :  { %v3574_v27 = vpop.permute.xlu0 %3573  ;;  %v3580_v42 = vpop.permute.xlu1 %3579  ;;  %v3551_v18 = vmax.f32 %v7872_v44, %v8070_v38  ;;  %v3553_v44 = vmax.f32 %v7888_v46, %v8074_v52  ;;  %v3555_v46 = vmax.f32 %v7904_v7, %v8078_v30  ;;  %v3557_v7 = vmax.f32 %v7920_v10, %v8082_v34 }
 0x597   :  { %v3667_v15 = vmax.f32 %v3539_v57, %v3574_v27  ;;  %v3670_v63 = vmax.f32 %v3542_v2, %v3580_v42  ;;  %v3559_v10 = vmax.f32 %v7936_v58, %v8086_v60  ;;  %v3561_v58 = vmax.f32 %v7952_v29, %v8090_v54  ;;  %v9230_v54 = vld [vmem:[#allocation21_spill] sm:$0xff] }
 0x599   :  { %3801 = vst.msk [vmem:[%s8288_s1 + $0xc4] sm:$0x3] %vm3698_vm7, %v3667_v15  ;;  %3804 = vst.msk [vmem:[%s8288_s1 + $0xca] sm:$0x3] %vm3698_vm7, %v3670_v63 }
 0x59a   :  { %v3578_v9 = vpop.permute.xlu0 %3577  ;;  %v3584_v35 = vpop.permute.xlu1 %3583 }
 0x59b   :  { %v3669_v50 = vmax.f32 %v3541_v6, %v3578_v9  ;;  %v3672_v62 = vmax.f32 %v3544_v1, %v3584_v35 }
 0x59d   :  { %3803 = vst.msk [vmem:[%s8288_s1 + $0xc8] sm:$0x3] %vm3698_vm7, %v3669_v50  ;;  %3806 = vst.msk [vmem:[%s8288_s1 + $0xce] sm:$0x3] %vm3698_vm7, %v3672_v62 }
 0x59e   :  { %v3582_v11 = vpop.permute.xlu0 %3581  ;;  %v3588_v48 = vpop.permute.xlu1 %3587 }
 0x59f   :  { %v3671_v24 = vmax.f32 %v3543_v53, %v3582_v11  ;;  %v3674_v14 = vmax.f32 %v3546_v33, %v3588_v48  ;;  %v9228_v33 = vld [vmem:[#allocation20_spill] sm:$0xff]  ;;  %v9229_v11 = vld [vmem:[#allocation15_spill] sm:$0xff] }
 0x5a0   :  { %v3563_v29 = vmax.f32 %v9229_v11, %v9228_v33  ;;  %v9231_v48 = vld [vmem:[#allocation16_spill] sm:$0xff] }
 0x5a1   :  { %3805 = vst.msk [vmem:[%s8288_s1 + $0xcc] sm:$0x3] %vm3698_vm7, %v3671_v24  ;;  %3808 = vst.msk [vmem:[%s8288_s1 + $0xd2] sm:$0x3] %vm3698_vm7, %v3674_v14  ;;  %v3566_v56 = vmax.f32 %v9231_v48, %v9230_v54 }
 0x5a2   :  { %v3586_v21 = vpop.permute.xlu0 %3585  ;;  %v3592_v61 = vpop.permute.xlu1 %3591 }
 0x5a3   :  { %v3673_v51 = vmax.f32 %v3545_v31, %v3586_v21  ;;  %v3676_v43 = vmax.f32 %v3548_v0, %v3592_v61  ;;  %v9232_v0 = vld [vmem:[#allocation23_spill] sm:$0xff]  ;;  %v9233_v21 = vld [vmem:[#allocation17_spill] sm:$0xff] }
 0x5a4   :  { %v3565_v61 = vmax.f32 %v9233_v21, %v9232_v0 }
 0x5a5   :  { %3807 = vst.msk [vmem:[%s8288_s1 + $0xd0] sm:$0x3] %vm3698_vm7, %v3673_v51  ;;  %3810 = vst.msk [vmem:[%s8288_s1 + $0xd6] sm:$0x3] %vm3698_vm7, %v3676_v43  ;;  %v9234_v51 = vld [vmem:[#allocation25_spill] sm:$0xff]  ;;  %v9235_v43 = vld [vmem:[#allocation18_spill] sm:$0xff] }
 0x5a6   :  { %v3590_v40 = vpop.permute.xlu0 %3589  ;;  %v3596_v59 = vpop.permute.xlu1 %3595 }
 0x5a7   :  { %v3675_v41 = vmax.f32 %v3547_v5, %v3590_v40  ;;  %v3678_v22 = vmax.f32 %v3550_v26, %v3596_v59  ;;  %v3568_v5 = vmax.f32 %v9235_v43, %v9234_v51 }
 0x5a9   :  { %3809 = vst.msk [vmem:[%s8288_s1 + $0xd4] sm:$0x3] %vm3698_vm7, %v3675_v41  ;;  %3812 = vst.msk [vmem:[%s8288_s1 + $0xda] sm:$0x3] %vm3698_vm7, %v3678_v22  ;;  %v9236_v22 = vld [vmem:[#allocation19_spill] sm:$0xff] }
 0x5aa   :  { %v3594_v8 = vpop.permute.xlu0 %3593  ;;  %v3600_v39 = vpop.permute.xlu1 %3599 }
 0x5ab   :  { %v3677_v13 = vmax.f32 %v3549_v19, %v3594_v8  ;;  %v3680_v57 = vmax.f32 %v3552_v55, %v3600_v39  ;;  %v3567_v19 = vmax.f32 %v9236_v22, %v8103_v25 }
 0x5ad   :  { %3811 = vst.msk [vmem:[%s8288_s1 + $0xd8] sm:$0x3] %vm3698_vm7, %v3677_v13  ;;  %3814 = vst.msk [vmem:[%s8288_s1 + $0xde] sm:$0x3] %vm3698_vm7, %v3680_v57 }
 0x5ae   :  { %v3598_v49 = vpop.permute.xlu0 %3597  ;;  %v3604_v17 = vpop.permute.xlu1 %3603 }
 0x5af   :  { %v3679_v2 = vmax.f32 %v3551_v18, %v3598_v49  ;;  %v3682_v27 = vmax.f32 %v3554_v45, %v3604_v17 }
 0x5b1   :  { %3813 = vst.msk [vmem:[%s8288_s1 + $0xdc] sm:$0x3] %vm3698_vm7, %v3679_v2  ;;  %3816 = vst.msk [vmem:[%s8288_s1 + $0xe2] sm:$0x3] %vm3698_vm7, %v3682_v27 }
 0x5b2   :  { %v3602_v38 = vpop.permute.xlu0 %3601  ;;  %v3608_v28 = vpop.permute.xlu1 %3607 }
 0x5b3   :  { %v3681_v42 = vmax.f32 %v3553_v44, %v3602_v38  ;;  %v3684_v15 = vmax.f32 %v3556_v16, %v3608_v28 }
 0x5b5   :  { %3815 = vst.msk [vmem:[%s8288_s1 + $0xe0] sm:$0x3] %vm3698_vm7, %v3681_v42  ;;  %3818 = vst.msk [vmem:[%s8288_s1 + $0xe6] sm:$0x3] %vm3698_vm7, %v3684_v15 }
 0x5b6   :  { %v3606_v52 = vpop.permute.xlu0 %3605  ;;  %v3612_v4 = vpop.permute.xlu1 %3611 }
 0x5b7   :  { %v3683_v63 = vmax.f32 %v3555_v46, %v3606_v52  ;;  %v3686_v6 = vmax.f32 %v3558_v32, %v3612_v4 }
 0x5b9   :  { %3817 = vst.msk [vmem:[%s8288_s1 + $0xe4] sm:$0x3] %vm3698_vm7, %v3683_v63  ;;  %3820 = vst.msk [vmem:[%s8288_s1 + $0xea] sm:$0x3] %vm3698_vm7, %v3686_v6 }
 0x5ba   :  { %v3610_v30 = vpop.permute.xlu0 %3609  ;;  %v3616_v37 = vpop.permute.xlu1 %3615 }
 0x5bb   :  { %v3685_v1 = vmax.f32 %v3557_v7, %v3610_v30  ;;  %v3688_v9 = vmax.f32 %v3560_v36, %v3616_v37 }
 0x5bd   :  { %3819 = vst.msk [vmem:[%s8288_s1 + $0xe8] sm:$0x3] %vm3698_vm7, %v3685_v1  ;;  %3822 = vst.msk [vmem:[%s8288_s1 + $0xee] sm:$0x3] %vm3698_vm7, %v3688_v9 }
 0x5be   :  { %v3614_v34 = vpop.permute.xlu0 %3613  ;;  %v3620_v47 = vpop.permute.xlu1 %3619 }
 0x5bf   :  { %v3687_v35 = vmax.f32 %v3559_v10, %v3614_v34  ;;  %v3690_v50 = vmax.f32 %v3562_v23, %v3620_v47 }
 0x5c1   :  { %3821 = vst.msk [vmem:[%s8288_s1 + $0xec] sm:$0x3] %vm3698_vm7, %v3687_v35  ;;  %3824 = vst.msk [vmem:[%s8288_s1 + $0xf2] sm:$0x3] %vm3698_vm7, %v3690_v50 }
 0x5c2   :  { %v3618_v60 = vpop.permute.xlu0 %3617  ;;  %v3624_v3 = vpop.permute.xlu1 %3623 }
 0x5c3   :  { %v3689_v62 = vmax.f32 %v3561_v58, %v3618_v60  ;;  %v3692_v53 = vmax.f32 %v3564_v12, %v3624_v3 }
 0x5c5   :  { %3823 = vst.msk [vmem:[%s8288_s1 + $0xf0] sm:$0x3] %vm3698_vm7, %v3689_v62  ;;  %3826 = vst.msk [vmem:[%s8288_s1 + $0xf6] sm:$0x3] %vm3698_vm7, %v3692_v53 }
 0x5c6   :  { %v3622_v20 = vpop.permute.xlu0 %3621  ;;  %v3628_v24 = vpop.permute.xlu1 %3627 }
 0x5c7   :  { %v3691_v14 = vmax.f32 %v3563_v29, %v3622_v20  ;;  %v3694_v31 = vmax.f32 %v3566_v56, %v3628_v24 }
 0x5c9   :  { %3825 = vst.msk [vmem:[%s8288_s1 + $0xf4] sm:$0x3] %vm3698_vm7, %v3691_v14  ;;  %3828 = vst.msk [vmem:[%s8288_s1 + $0xfa] sm:$0x3] %vm3698_vm7, %v3694_v31 }
 0x5ca   :  { %v3626_v26 = vpop.permute.xlu0 %3625  ;;  %v3632_v40 = vpop.permute.xlu1 %3631 }
 0x5cb   :  { %v3693_v59 = vmax.f32 %v3565_v61, %v3626_v26  ;;  %v3696_v41 = vmax.f32 %v3568_v5, %v3632_v40 }
 0x5cd   :  { %3827 = vst.msk [vmem:[%s8288_s1 + $0xf8] sm:$0x3] %vm3698_vm7, %v3693_v59  ;;  %3830 = vst.msk [vmem:[%s8288_s1 + $0xfe] sm:$0x3] %vm3698_vm7, %v3696_v41 }
 0x5ce   :  { %v3630_v55 = vpop.permute.xlu0 %3629 }
 0x5cf   :  { %v3695_v8 = vmax.f32 %v3567_v19, %v3630_v55 }
 0x5d1   :  { %3829 = vst.msk [vmem:[%s8288_s1 + $0xfc] sm:$0x3] %vm3698_vm7, %v3695_v8 }

</bundles_post_ra>
